<compile_context>
chip_gen: v6e
topology: v6e:2x2x1
jax: 0.10.0
libtpu: 0.0.40
codegen_flags: <defaults>
</compile_context>

<pallas_src>
import functools

import jax
import jax.numpy as jnp
import numpy as np
from jax.experimental import pallas as pl
from jax.experimental.pallas import tpu as pltpu

# Problem sizes (small, consistent with the module's __init__).
T = 5                       # sequence length
B = 8                       # batch (multiple of 8 sublanes -> full vreg occupancy)
H = 32                      # opt.rnn_size
S = 8                       # memory slots per memory
K = 2                       # opt.context_size == len(mem_queue)
COMPOSE_IN = (K + 1) * H    # opt.context_size * rnn_size + rnn_size


def _softmax(x):
    """Row softmax over the last axis. Exact divide (no approx reciprocal):
    the approximate-reciprocal error compounded through the recurrence and
    broke the final-memory tolerance."""
    m = jnp.max(x, axis=-1, keepdims=True)
    e = jnp.exp(x - m)
    return e / jnp.sum(e, axis=-1, keepdims=True)


def _lstm_cell(x, h, c, wih_ref, whh_ref, bias_gates):
    """PyTorch nn.LSTMCell, gate order [i, f, g, o], per-gate matmuls.

    gates[g] = x @ W_ih[g] + h @ W_hh[g] + b[g] as (8,32)@(32,32) matmuls:
      * no lane-unaligned [x, h] concat,
      * every gate lands at lanes 0..H-1, aligned with c/h (no lane rotates),
      * sigmoid only on i/f/o, tanh only on g (single EUP slot is on the
        recurrence dependence chain).
    Weights are loaded from VMEM refs at each use (kept out of vregs across
    the fully-unrolled time loop).
    """
    def gate(g):
        return (jnp.dot(x, wih_ref[g], preferred_element_type=jnp.float32)
                + jnp.dot(h, whh_ref[g], preferred_element_type=jnp.float32)
                + bias_gates[g])

    i = jax.nn.sigmoid(gate(0))
    f = jax.nn.sigmoid(gate(1))
    g_ = jnp.tanh(gate(2))
    o = jax.nn.sigmoid(gate(3))
    c_new = f * c + i * g_
    h_new = o * jnp.tanh(c_new)
    return h_new, c_new


def nse_kernel(emb_ref, h0_ref, m0_ref,
               wih_r_ref, whh_r_ref, b_r_ref,
               wcomp_ref, bcomp_ref,
               wih_w_ref, whh_w_ref, b_w_ref,
               out_ref, hfin_ref, mfin_ref):
    # Recurrent hidden state as traced values (four quarter-vregs).
    hr = h0_ref[0]
    cr = h0_ref[1]
    hw = h0_ref[2]
    cw = h0_ref[3]

    # Memory queue lives in the output ref (VMEM) and is updated in place each
    # step: keeps the (K,B,S,H) state out of vregs across the unrolled loop.
    mfin_ref[...] = m0_ref[...]

    # Hoist the (tiny) bias broadcasts out of the unrolled time loop — JAX
    # does not CSE broadcast_in_dim, so per-step '+ b' would re-broadcast.
    b_r = [jnp.broadcast_to(b_r_ref[g], (B, H)) for g in range(4)]
    b_w = [jnp.broadcast_to(b_w_ref[g], (B, H)) for g in range(4)]
    bcomp = jnp.broadcast_to(bcomp_ref[...], (B, H))

    # Fully unrolled time loop (T is a small compile-time constant).
    for t in range(T):
        x = emb_ref[t]                                 # (B, H); input_dropout == identity (eval)

        # ---- read LSTM ----
        hr, cr = _lstm_cell(x, hr, cr, wih_r_ref, whh_r_ref, b_r)

        # ---- attention read of each memory ----
        ms = [hr]
        zs = []
        for k in range(K):
            Mk = mfin_ref[k]                                   # (B, S, H)
            sim = jnp.sum(hr[:, None, :] * Mk, axis=-1)        # (B, S) == hr . Mk^T
            z = _softmax(sim)                                  # softmax over slots
            m = jnp.sum(z[:, :, None] * Mk, axis=1)            # (B, H) == z . Mk
            ms.append(m)
            zs.append(z)

        # ---- compose: Linear((K+1)*H -> H) + Softmax, without the concat ----
        comp = bcomp
        for k in range(K + 1):
            comp = comp + jnp.dot(ms[k], wcomp_ref[k],
                                  preferred_element_type=jnp.float32)
        comp = _softmax(comp)
        # output_dropout == identity (eval)

        # ---- write LSTM ----
        hw, cw = _lstm_cell(comp, hw, cw, wih_w_ref, whh_w_ref, b_w)

        # ---- memory update: M <- (1 - z) * (M + hw), in place ----
        # (PyTorch does M*(1-z) + (1-z)*hw — algebraically identical.)
        for k in range(K):
            mfin_ref[k] = (1.0 - zs[k][:, :, None]) * (mfin_ref[k] + hw[:, None, :])

        out_ref[t] = hw                                # per-step output (static index)

    # Final hidden state written exactly once.
    hfin_ref[0] = hr
    hfin_ref[1] = cr
    hfin_ref[2] = hw
    hfin_ref[3] = cw


def _per_gate_w(w):
    """(H, 4H) weight (gate order i,f,g,o, stored transposed) -> (4, H, H)."""
    return jnp.transpose(w.reshape(H, 4, H), (1, 0, 2))


def _per_gate_b(b):
    """(1, 4H) folded bias -> (4, 1, H)."""
    return b.reshape(4, H)[:, None, :]


def mma_nse_forward(emb, h0, m0, params):
    """Runs the full T-step recurrence in one pallas_call (single grid step).

    emb : (T, B, H), h0 : (4, B, H) = [hr, cr, hw, cw], m0 : (K, B, S, H)
    returns (outputs (T,B,H), final hidden (4,B,H), final memories (K,B,S,H))
    """
    f32 = jnp.float32

    # Per-gate weight / bias layout so the kernel indexes gates along a
    # leading axis (no lane-offset slicing anywhere on the recurrence chain).
    wih_r = _per_gate_w(params["wih_r"])
    whh_r = _per_gate_w(params["whh_r"])
    b_r = _per_gate_b(params["b_r"])
    wih_w = _per_gate_w(params["wih_w"])
    whh_w = _per_gate_w(params["whh_w"])
    b_w = _per_gate_b(params["b_w"])
    wcomp = params["wcomp"].reshape(K + 1, H, H)       # row blocks: [hr | m1 | m2]
    bcomp = params["bcomp"]

    def full(shape):
        return pl.BlockSpec(shape, lambda i, _n=len(shape): (0,) * _n)

    out_shape = (
        jax.ShapeDtypeStruct((T, B, H), f32),
        jax.ShapeDtypeStruct((4, B, H), f32),
        jax.ShapeDtypeStruct((K, B, S, H), f32),
    )
    return pl.pallas_call(
        nse_kernel,
        grid=(1,),                                     # single invocation; loop is in-kernel
        in_specs=[
            full((T, B, H)),                           # emb_utts
            full((4, B, H)),                           # initial hidden
            full((K, B, S, H)),                        # initial memory queue
            full((4, H, H)), full((4, H, H)), full((4, 1, H)),   # read LSTM (per-gate)
            full((K + 1, H, H)), full((1, H)),                   # compose Linear
            full((4, H, H)), full((4, H, H)), full((4, 1, H)),   # write LSTM (per-gate)
        ],
        out_specs=[
            full((T, B, H)),
            full((4, B, H)),
            full((K, B, S, H)),
        ],
        out_shape=out_shape,
        compiler_params=pltpu.CompilerParams(dimension_semantics=("arbitrary",)),
    )(emb, h0, m0,
      wih_r, whh_r, b_r,
      wcomp, bcomp,
      wih_w, whh_w, b_w)


def mma_nse_reference(emb, h0, m0, params):
    """Pure-JAX reference mirroring the PyTorch forward exactly (eval mode)."""

    def lstm_cell(x, h, c, w_ih, w_hh, b):
        gates = x @ w_ih + h @ w_hh + b
        i, f, g, o = jnp.split(gates, 4, axis=-1)
        i = jax.nn.sigmoid(i)
        f = jax.nn.sigmoid(f)
        g = jnp.tanh(g)
        o = jax.nn.sigmoid(o)
        c_new = f * c + i * g
        return o * jnp.tanh(c_new), c_new

    hr, cr, hw, cw = h0[0], h0[1], h0[2], h0[3]
    Ms = [m0[k] for k in range(K)]
    outs = []
    for t in range(T):
        w = emb[t]
        hr, cr = lstm_cell(w, hr, cr, params["wih_r"], params["whh_r"], params["b_r"])
        ms, zs = [hr], []
        for k in range(K):
            Mk = Ms[k]
            sim = jnp.sum(hr[:, None, :] * Mk, axis=-1)
            z = jax.nn.softmax(sim, axis=-1)
            ms.append(jnp.sum(z[:, :, None] * Mk, axis=1))
            zs.append(z)
        comp = jax.nn.softmax(
            jnp.concatenate(ms, axis=1) @ params["wcomp"] + params["bcomp"], axis=-1)
        hw, cw = lstm_cell(comp, hw, cw, params["wih_w"], params["whh_w"], params["b_w"])
        for k in range(K):
            erase = 1.0 - zs[k][:, :, None]
            Ms[k] = Ms[k] * erase + erase * hw[:, None, :]   # (1-z) on BOTH terms, as in PyTorch
        outs.append(hw)
    return jnp.stack(outs), jnp.stack([hr, cr, hw, cw]), jnp.stack(Ms)


if __name__ == "__main__":
    key = jax.random.PRNGKey(0)
    keys = jax.random.split(key, 10)
    f32 = jnp.float32

    # Deterministic synthetic parameters (PyTorch LSTMCell gate order i,f,g,o;
    # weights stored transposed as (in_dim, 4H); b = b_ih + b_hh folded).
    params = {
        "wih_r": 0.1 * jax.random.normal(keys[0], (H, 4 * H), f32),
        "whh_r": 0.1 * jax.random.normal(keys[1], (H, 4 * H), f32),
        "b_r":   0.1 * jax.random.normal(keys[2], (1, 4 * H), f32),
        "wcomp": 0.1 * jax.random.normal(keys[3], (COMPOSE_IN, H), f32),
        "bcomp": 0.1 * jax.random.normal(keys[4], (1, H), f32),
        "wih_w": 0.1 * jax.random.normal(keys[5], (H, 4 * H), f32),
        "whh_w": 0.1 * jax.random.normal(keys[6], (H, 4 * H), f32),
        "b_w":   0.1 * jax.random.normal(keys[7], (1, 4 * H), f32),
    }

    emb = jax.random.normal(keys[8], (T, B, H), f32)          # emb_utts
    h0 = jnp.zeros((4, B, H), f32)                            # make_init_hidden (zeros)
    m0 = jax.random.normal(keys[9], (K, B, S, H), f32)        # memory queue contents

    outs, hfin, mfin = jax.block_until_ready(
        jax.jit(functools.partial(mma_nse_forward, params=params))(emb, h0, m0))

    outs_r, hfin_r, mfin_r = mma_nse_reference(emb, h0, m0, params)
    # Softmaxes now use exact division (the approximate-reciprocal error was
    # the previous failure); remaining differences are matmul-decomposition /
    # reassociation level, comfortably inside 1e-3 over T=5 recurrent steps.
    np.testing.assert_allclose(np.asarray(outs), np.asarray(outs_r), atol=1e-3, rtol=1e-3)
    np.testing.assert_allclose(np.asarray(hfin), np.asarray(hfin_r), atol=1e-3, rtol=1e-3)
    np.testing.assert_allclose(np.asarray(mfin), np.asarray(mfin_r), atol=1e-3, rtol=1e-3)

    print("KERNEL_OK")
</pallas_src>

<mosaic_0001>
module attributes {stable_mosaic.version = 11 : i64} {
  func.func @nse_kernel(%arg0: i32, %arg1: memref<5x8x32xf32, #tpu.memory_space<vmem>>, %arg2: memref<4x8x32xf32, #tpu.memory_space<vmem>>, %arg3: memref<2x8x8x32xf32, #tpu.memory_space<vmem>>, %arg4: memref<4x32x32xf32, #tpu.memory_space<vmem>>, %arg5: memref<4x32x32xf32, #tpu.memory_space<vmem>>, %arg6: memref<4x1x32xf32, #tpu.memory_space<vmem>>, %arg7: memref<3x32x32xf32, #tpu.memory_space<vmem>>, %arg8: memref<1x32xf32, #tpu.memory_space<vmem>>, %arg9: memref<4x32x32xf32, #tpu.memory_space<vmem>>, %arg10: memref<4x32x32xf32, #tpu.memory_space<vmem>>, %arg11: memref<4x1x32xf32, #tpu.memory_space<vmem>>, %arg12: memref<5x8x32xf32, #tpu.memory_space<vmem>>, %arg13: memref<4x8x32xf32, #tpu.memory_space<vmem>>, %arg14: memref<2x8x8x32xf32, #tpu.memory_space<vmem>>) attributes {dimension_semantics = [#tpu.dimension_semantics<arbitrary>], iteration_bounds = array<i64: 1>, scalar_prefetch = 0 : i64, scratch_operands = 0 : i64, tpu.core_type = #tpu.core_type<tc>, window_params = [{pipeline_mode = #tpu.pipeline_mode<synchronous>, transform_indices = @transform_0, window_bounds = array<i64: 5, 8, 32>}, {pipeline_mode = #tpu.pipeline_mode<synchronous>, transform_indices = @transform_1, window_bounds = array<i64: 4, 8, 32>}, {pipeline_mode = #tpu.pipeline_mode<synchronous>, transform_indices = @transform_2, window_bounds = array<i64: 2, 8, 8, 32>}, {pipeline_mode = #tpu.pipeline_mode<synchronous>, transform_indices = @transform_3, window_bounds = array<i64: 4, 32, 32>}, {pipeline_mode = #tpu.pipeline_mode<synchronous>, transform_indices = @transform_4, window_bounds = array<i64: 4, 32, 32>}, {pipeline_mode = #tpu.pipeline_mode<synchronous>, transform_indices = @transform_5, window_bounds = array<i64: 4, 1, 32>}, {pipeline_mode = #tpu.pipeline_mode<synchronous>, transform_indices = @transform_6, window_bounds = array<i64: 3, 32, 32>}, {pipeline_mode = #tpu.pipeline_mode<synchronous>, transform_indices = @transform_7, window_bounds = array<i64: 1, 32>}, {pipeline_mode = #tpu.pipeline_mode<synchronous>, transform_indices = @transform_8, window_bounds = array<i64: 4, 32, 32>}, {pipeline_mode = #tpu.pipeline_mode<synchronous>, transform_indices = @transform_9, window_bounds = array<i64: 4, 32, 32>}, {pipeline_mode = #tpu.pipeline_mode<synchronous>, transform_indices = @transform_10, window_bounds = array<i64: 4, 1, 32>}, {pipeline_mode = #tpu.pipeline_mode<synchronous>, transform_indices = @transform_11, window_bounds = array<i64: 5, 8, 32>}, {pipeline_mode = #tpu.pipeline_mode<synchronous>, transform_indices = @transform_12, window_bounds = array<i64: 4, 8, 32>}, {pipeline_mode = #tpu.pipeline_mode<synchronous>, transform_indices = @transform_13, window_bounds = array<i64: 2, 8, 8, 32>}]} {
    %c0 = arith.constant 0 : index
    %c0_0 = arith.constant 0 : index
    %c0_1 = arith.constant 0 : index
    %0 = vector.load %arg2[%c0, %c0_0, %c0_1] : memref<4x8x32xf32, #tpu.memory_space<vmem>>, vector<1x8x32xf32>
    %1 = vector.shape_cast %0 : vector<1x8x32xf32> to vector<8x32xf32>
    %c1 = arith.constant 1 : index
    %c0_2 = arith.constant 0 : index
    %c0_3 = arith.constant 0 : index
    %2 = vector.load %arg2[%c1, %c0_2, %c0_3] : memref<4x8x32xf32, #tpu.memory_space<vmem>>, vector<1x8x32xf32>
    %3 = vector.shape_cast %2 : vector<1x8x32xf32> to vector<8x32xf32>
    %c2 = arith.constant 2 : index
    %c0_4 = arith.constant 0 : index
    %c0_5 = arith.constant 0 : index
    %4 = vector.load %arg2[%c2, %c0_4, %c0_5] : memref<4x8x32xf32, #tpu.memory_space<vmem>>, vector<1x8x32xf32>
    %5 = vector.shape_cast %4 : vector<1x8x32xf32> to vector<8x32xf32>
    %c3 = arith.constant 3 : index
    %c0_6 = arith.constant 0 : index
    %c0_7 = arith.constant 0 : index
    %6 = vector.load %arg2[%c3, %c0_6, %c0_7] : memref<4x8x32xf32, #tpu.memory_space<vmem>>, vector<1x8x32xf32>
    %7 = vector.shape_cast %6 : vector<1x8x32xf32> to vector<8x32xf32>
    %c0_8 = arith.constant 0 : index
    %c0_9 = arith.constant 0 : index
    %c0_10 = arith.constant 0 : index
    %c0_11 = arith.constant 0 : index
    %8 = vector.load %arg3[%c0_8, %c0_9, %c0_10, %c0_11] : memref<2x8x8x32xf32, #tpu.memory_space<vmem>>, vector<2x8x8x32xf32>
    %c0_12 = arith.constant 0 : index
    %c0_13 = arith.constant 0 : index
    %c0_14 = arith.constant 0 : index
    %c0_15 = arith.constant 0 : index
    %9 = vector.load %arg14[%c0_12, %c0_13, %c0_14, %c0_15] : memref<2x8x8x32xf32, #tpu.memory_space<vmem>>, vector<2x8x8x32xf32>
    tpu.vector_store %arg14[%c0_12, %c0_13, %c0_14, %c0_15], %8 {strides = array<i32>} : memref<2x8x8x32xf32, #tpu.memory_space<vmem>>, vector<2x8x8x32xf32>,
    %c0_16 = arith.constant 0 : index
    %c0_17 = arith.constant 0 : index
    %c0_18 = arith.constant 0 : index
    %10 = vector.load %arg6[%c0_16, %c0_17, %c0_18] : memref<4x1x32xf32, #tpu.memory_space<vmem>>, vector<1x1x32xf32>
    %11 = vector.shape_cast %10 : vector<1x1x32xf32> to vector<1x32xf32>
    %12 = vector.shape_cast %11 : vector<1x32xf32> to vector<1x32xf32>
    %13 = vector.broadcast %12 : vector<1x32xf32> to vector<8x32xf32>
    %c1_19 = arith.constant 1 : index
    %c0_20 = arith.constant 0 : index
    %c0_21 = arith.constant 0 : index
    %14 = vector.load %arg6[%c1_19, %c0_20, %c0_21] : memref<4x1x32xf32, #tpu.memory_space<vmem>>, vector<1x1x32xf32>
    %15 = vector.shape_cast %14 : vector<1x1x32xf32> to vector<1x32xf32>
    %16 = vector.shape_cast %15 : vector<1x32xf32> to vector<1x32xf32>
    %17 = vector.broadcast %16 : vector<1x32xf32> to vector<8x32xf32>
    %c2_22 = arith.constant 2 : index
    %c0_23 = arith.constant 0 : index
    %c0_24 = arith.constant 0 : index
    %18 = vector.load %arg6[%c2_22, %c0_23, %c0_24] : memref<4x1x32xf32, #tpu.memory_space<vmem>>, vector<1x1x32xf32>
    %19 = vector.shape_cast %18 : vector<1x1x32xf32> to vector<1x32xf32>
    %20 = vector.shape_cast %19 : vector<1x32xf32> to vector<1x32xf32>
    %21 = vector.broadcast %20 : vector<1x32xf32> to vector<8x32xf32>
    %c3_25 = arith.constant 3 : index
    %c0_26 = arith.constant 0 : index
    %c0_27 = arith.constant 0 : index
    %22 = vector.load %arg6[%c3_25, %c0_26, %c0_27] : memref<4x1x32xf32, #tpu.memory_space<vmem>>, vector<1x1x32xf32>
    %23 = vector.shape_cast %22 : vector<1x1x32xf32> to vector<1x32xf32>
    %24 = vector.shape_cast %23 : vector<1x32xf32> to vector<1x32xf32>
    %25 = vector.broadcast %24 : vector<1x32xf32> to vector<8x32xf32>
    %c0_28 = arith.constant 0 : index
    %c0_29 = arith.constant 0 : index
    %c0_30 = arith.constant 0 : index
    %26 = vector.load %arg11[%c0_28, %c0_29, %c0_30] : memref<4x1x32xf32, #tpu.memory_space<vmem>>, vector<1x1x32xf32>
    %27 = vector.shape_cast %26 : vector<1x1x32xf32> to vector<1x32xf32>
    %28 = vector.shape_cast %27 : vector<1x32xf32> to vector<1x32xf32>
    %29 = vector.broadcast %28 : vector<1x32xf32> to vector<8x32xf32>
    %c1_31 = arith.constant 1 : index
    %c0_32 = arith.constant 0 : index
    %c0_33 = arith.constant 0 : index
    %30 = vector.load %arg11[%c1_31, %c0_32, %c0_33] : memref<4x1x32xf32, #tpu.memory_space<vmem>>, vector<1x1x32xf32>
    %31 = vector.shape_cast %30 : vector<1x1x32xf32> to vector<1x32xf32>
    %32 = vector.shape_cast %31 : vector<1x32xf32> to vector<1x32xf32>
    %33 = vector.broadcast %32 : vector<1x32xf32> to vector<8x32xf32>
    %c2_34 = arith.constant 2 : index
    %c0_35 = arith.constant 0 : index
    %c0_36 = arith.constant 0 : index
    %34 = vector.load %arg11[%c2_34, %c0_35, %c0_36] : memref<4x1x32xf32, #tpu.memory_space<vmem>>, vector<1x1x32xf32>
    %35 = vector.shape_cast %34 : vector<1x1x32xf32> to vector<1x32xf32>
    %36 = vector.shape_cast %35 : vector<1x32xf32> to vector<1x32xf32>
    %37 = vector.broadcast %36 : vector<1x32xf32> to vector<8x32xf32>
    %c3_37 = arith.constant 3 : index
    %c0_38 = arith.constant 0 : index
    %c0_39 = arith.constant 0 : index
    %38 = vector.load %arg11[%c3_37, %c0_38, %c0_39] : memref<4x1x32xf32, #tpu.memory_space<vmem>>, vector<1x1x32xf32>
    %39 = vector.shape_cast %38 : vector<1x1x32xf32> to vector<1x32xf32>
    %40 = vector.shape_cast %39 : vector<1x32xf32> to vector<1x32xf32>
    %41 = vector.broadcast %40 : vector<1x32xf32> to vector<8x32xf32>
    %c0_40 = arith.constant 0 : index
    %c0_41 = arith.constant 0 : index
    %42 = vector.load %arg8[%c0_40, %c0_41] : memref<1x32xf32, #tpu.memory_space<vmem>>, vector<1x32xf32>
    %43 = vector.shape_cast %42 : vector<1x32xf32> to vector<1x32xf32>
    %44 = vector.broadcast %43 : vector<1x32xf32> to vector<8x32xf32>
    %c0_42 = arith.constant 0 : index
    %c0_43 = arith.constant 0 : index
    %c0_44 = arith.constant 0 : index
    %45 = vector.load %arg1[%c0_42, %c0_43, %c0_44] : memref<5x8x32xf32, #tpu.memory_space<vmem>>, vector<1x8x32xf32>
    %46 = vector.shape_cast %45 : vector<1x8x32xf32> to vector<8x32xf32>
    %c0_45 = arith.constant 0 : index
    %c0_46 = arith.constant 0 : index
    %c0_47 = arith.constant 0 : index
    %47 = vector.load %arg4[%c0_45, %c0_46, %c0_47] : memref<4x32x32xf32, #tpu.memory_space<vmem>>, vector<1x32x32xf32>
    %48 = vector.shape_cast %47 : vector<1x32x32xf32> to vector<32x32xf32>
    %cst = arith.constant dense<0.000000e+00> : vector<8x32xf32>
    %49 = tpu.matmul %46, %48, %cst {dimension_numbers = #tpu.dot_dimension_numbers<[1], [0], [0], [1], [0, 0, 1, 1], [], []>} : vector<8x32xf32>, vector<32x32xf32>, vector<8x32xf32> -> vector<8x32xf32>
    %c0_48 = arith.constant 0 : index
    %c0_49 = arith.constant 0 : index
    %c0_50 = arith.constant 0 : index
    %50 = vector.load %arg5[%c0_48, %c0_49, %c0_50] : memref<4x32x32xf32, #tpu.memory_space<vmem>>, vector<1x32x32xf32>
    %51 = vector.shape_cast %50 : vector<1x32x32xf32> to vector<32x32xf32>
    %cst_51 = arith.constant dense<0.000000e+00> : vector<8x32xf32>
    %52 = tpu.matmul %1, %51, %cst_51 {dimension_numbers = #tpu.dot_dimension_numbers<[1], [0], [0], [1], [0, 0, 1, 1], [], []>} : vector<8x32xf32>, vector<32x32xf32>, vector<8x32xf32> -> vector<8x32xf32>
    %53 = arith.addf %49, %52 : vector<8x32xf32>
    %54 = arith.addf %53, %13 : vector<8x32xf32>
    %55 = arith.negf %54 : vector<8x32xf32>
    %56 = math.exp %55 : vector<8x32xf32>
    %cst_52 = arith.constant 1.000000e+00 : f32
    %57 = vector.broadcast %cst_52 : f32 to vector<8x32xf32>
    %58 = arith.addf %57, %56 : vector<8x32xf32>
    %59 = arith.divf %57, %58 : vector<8x32xf32>
    %c1_53 = arith.constant 1 : index
    %c0_54 = arith.constant 0 : index
    %c0_55 = arith.constant 0 : index
    %60 = vector.load %arg4[%c1_53, %c0_54, %c0_55] : memref<4x32x32xf32, #tpu.memory_space<vmem>>, vector<1x32x32xf32>
    %61 = vector.shape_cast %60 : vector<1x32x32xf32> to vector<32x32xf32>
    %cst_56 = arith.constant dense<0.000000e+00> : vector<8x32xf32>
    %62 = tpu.matmul %46, %61, %cst_56 {dimension_numbers = #tpu.dot_dimension_numbers<[1], [0], [0], [1], [0, 0, 1, 1], [], []>} : vector<8x32xf32>, vector<32x32xf32>, vector<8x32xf32> -> vector<8x32xf32>
    %c1_57 = arith.constant 1 : index
    %c0_58 = arith.constant 0 : index
    %c0_59 = arith.constant 0 : index
    %63 = vector.load %arg5[%c1_57, %c0_58, %c0_59] : memref<4x32x32xf32, #tpu.memory_space<vmem>>, vector<1x32x32xf32>
    %64 = vector.shape_cast %63 : vector<1x32x32xf32> to vector<32x32xf32>
    %cst_60 = arith.constant dense<0.000000e+00> : vector<8x32xf32>
    %65 = tpu.matmul %1, %64, %cst_60 {dimension_numbers = #tpu.dot_dimension_numbers<[1], [0], [0], [1], [0, 0, 1, 1], [], []>} : vector<8x32xf32>, vector<32x32xf32>, vector<8x32xf32> -> vector<8x32xf32>
    %66 = arith.addf %62, %65 : vector<8x32xf32>
    %67 = arith.addf %66, %17 : vector<8x32xf32>
    %68 = arith.negf %67 : vector<8x32xf32>
    %69 = math.exp %68 : vector<8x32xf32>
    %cst_61 = arith.constant 1.000000e+00 : f32
    %70 = vector.broadcast %cst_61 : f32 to vector<8x32xf32>
    %71 = arith.addf %70, %69 : vector<8x32xf32>
    %72 = arith.divf %70, %71 : vector<8x32xf32>
    %c2_62 = arith.constant 2 : index
    %c0_63 = arith.constant 0 : index
    %c0_64 = arith.constant 0 : index
    %73 = vector.load %arg4[%c2_62, %c0_63, %c0_64] : memref<4x32x32xf32, #tpu.memory_space<vmem>>, vector<1x32x32xf32>
    %74 = vector.shape_cast %73 : vector<1x32x32xf32> to vector<32x32xf32>
    %cst_65 = arith.constant dense<0.000000e+00> : vector<8x32xf32>
    %75 = tpu.matmul %46, %74, %cst_65 {dimension_numbers = #tpu.dot_dimension_numbers<[1], [0], [0], [1], [0, 0, 1, 1], [], []>} : vector<8x32xf32>, vector<32x32xf32>, vector<8x32xf32> -> vector<8x32xf32>
    %c2_66 = arith.constant 2 : index
    %c0_67 = arith.constant 0 : index
    %c0_68 = arith.constant 0 : index
    %76 = vector.load %arg5[%c2_66, %c0_67, %c0_68] : memref<4x32x32xf32, #tpu.memory_space<vmem>>, vector<1x32x32xf32>
    %77 = vector.shape_cast %76 : vector<1x32x32xf32> to vector<32x32xf32>
    %cst_69 = arith.constant dense<0.000000e+00> : vector<8x32xf32>
    %78 = tpu.matmul %1, %77, %cst_69 {dimension_numbers = #tpu.dot_dimension_numbers<[1], [0], [0], [1], [0, 0, 1, 1], [], []>} : vector<8x32xf32>, vector<32x32xf32>, vector<8x32xf32> -> vector<8x32xf32>
    %79 = arith.addf %75, %78 : vector<8x32xf32>
    %80 = arith.addf %79, %21 : vector<8x32xf32>
    %81 = math.tanh %80 : vector<8x32xf32>
    %c3_70 = arith.constant 3 : index
    %c0_71 = arith.constant 0 : index
    %c0_72 = arith.constant 0 : index
    %82 = vector.load %arg4[%c3_70, %c0_71, %c0_72] : memref<4x32x32xf32, #tpu.memory_space<vmem>>, vector<1x32x32xf32>
    %83 = vector.shape_cast %82 : vector<1x32x32xf32> to vector<32x32xf32>
    %cst_73 = arith.constant dense<0.000000e+00> : vector<8x32xf32>
    %84 = tpu.matmul %46, %83, %cst_73 {dimension_numbers = #tpu.dot_dimension_numbers<[1], [0], [0], [1], [0, 0, 1, 1], [], []>} : vector<8x32xf32>, vector<32x32xf32>, vector<8x32xf32> -> vector<8x32xf32>
    %c3_74 = arith.constant 3 : index
    %c0_75 = arith.constant 0 : index
    %c0_76 = arith.constant 0 : index
    %85 = vector.load %arg5[%c3_74, %c0_75, %c0_76] : memref<4x32x32xf32, #tpu.memory_space<vmem>>, vector<1x32x32xf32>
    %86 = vector.shape_cast %85 : vector<1x32x32xf32> to vector<32x32xf32>
    %cst_77 = arith.constant dense<0.000000e+00> : vector<8x32xf32>
    %87 = tpu.matmul %1, %86, %cst_77 {dimension_numbers = #tpu.dot_dimension_numbers<[1], [0], [0], [1], [0, 0, 1, 1], [], []>} : vector<8x32xf32>, vector<32x32xf32>, vector<8x32xf32> -> vector<8x32xf32>
    %88 = arith.addf %84, %87 : vector<8x32xf32>
    %89 = arith.addf %88, %25 : vector<8x32xf32>
    %90 = arith.negf %89 : vector<8x32xf32>
    %91 = math.exp %90 : vector<8x32xf32>
    %cst_78 = arith.constant 1.000000e+00 : f32
    %92 = vector.broadcast %cst_78 : f32 to vector<8x32xf32>
    %93 = arith.addf %92, %91 : vector<8x32xf32>
    %94 = arith.divf %92, %93 : vector<8x32xf32>
    %95 = arith.mulf %72, %3 : vector<8x32xf32>
    %96 = arith.mulf %59, %81 : vector<8x32xf32>
    %97 = arith.addf %95, %96 : vector<8x32xf32>
    %98 = math.tanh %97 : vector<8x32xf32>
    %99 = arith.mulf %94, %98 : vector<8x32xf32>
    %c0_79 = arith.constant 0 : index
    %c0_80 = arith.constant 0 : index
    %c0_81 = arith.constant 0 : index
    %c0_82 = arith.constant 0 : index
    %100 = vector.load %arg14[%c0_79, %c0_80, %c0_81, %c0_82] : memref<2x8x8x32xf32, #tpu.memory_space<vmem>>, vector<1x8x8x32xf32>
    %101 = vector.shape_cast %100 : vector<1x8x8x32xf32> to vector<8x8x32xf32>
    %102 = vector.shape_cast %99 : vector<8x32xf32> to vector<8x1x32xf32>
    %103 = vector.broadcast %102 : vector<8x1x32xf32> to vector<8x8x32xf32>
    %104 = arith.mulf %103, %101 : vector<8x8x32xf32>
    %cst_83 = arith.constant dense<0.000000e+00> : vector<8x8xf32>
    %105 = vector.multi_reduction <add>, %104, %cst_83 [2] : vector<8x8x32xf32> to vector<8x8xf32>
    %cst_84 = arith.constant dense<0xFF800000> : vector<8xf32>
    %106 = vector.multi_reduction <maximumf>, %105, %cst_84 [1] : vector<8x8xf32> to vector<8xf32>
    %107 = vector.shape_cast %106 : vector<8xf32> to vector<8x1xf32>
    %108 = vector.broadcast %107 : vector<8x1xf32> to vector<8x8xf32>
    %109 = arith.subf %105, %108 : vector<8x8xf32>
    %110 = math.exp %109 : vector<8x8xf32>
    %cst_85 = arith.constant dense<0.000000e+00> : vector<8xf32>
    %111 = vector.multi_reduction <add>, %110, %cst_85 [1] : vector<8x8xf32> to vector<8xf32>
    %112 = vector.shape_cast %111 : vector<8xf32> to vector<8x1xf32>
    %113 = vector.broadcast %112 : vector<8x1xf32> to vector<8x8xf32>
    %114 = arith.divf %110, %113 : vector<8x8xf32>
    %115 = vector.shape_cast %114 : vector<8x8xf32> to vector<8x8x1xf32>
    %116 = vector.broadcast %115 : vector<8x8x1xf32> to vector<8x8x32xf32>
    %117 = arith.mulf %116, %101 : vector<8x8x32xf32>
    %cst_86 = arith.constant dense<0.000000e+00> : vector<8x32xf32>
    %118 = vector.multi_reduction <add>, %117, %cst_86 [1] : vector<8x8x32xf32> to vector<8x32xf32>
    %c1_87 = arith.constant 1 : index
    %c0_88 = arith.constant 0 : index
    %c0_89 = arith.constant 0 : index
    %c0_90 = arith.constant 0 : index
    %119 = vector.load %arg14[%c1_87, %c0_88, %c0_89, %c0_90] : memref<2x8x8x32xf32, #tpu.memory_space<vmem>>, vector<1x8x8x32xf32>
    %120 = vector.shape_cast %119 : vector<1x8x8x32xf32> to vector<8x8x32xf32>
    %121 = vector.shape_cast %99 : vector<8x32xf32> to vector<8x1x32xf32>
    %122 = vector.broadcast %121 : vector<8x1x32xf32> to vector<8x8x32xf32>
    %123 = arith.mulf %122, %120 : vector<8x8x32xf32>
    %cst_91 = arith.constant dense<0.000000e+00> : vector<8x8xf32>
    %124 = vector.multi_reduction <add>, %123, %cst_91 [2] : vector<8x8x32xf32> to vector<8x8xf32>
    %cst_92 = arith.constant dense<0xFF800000> : vector<8xf32>
    %125 = vector.multi_reduction <maximumf>, %124, %cst_92 [1] : vector<8x8xf32> to vector<8xf32>
    %126 = vector.shape_cast %125 : vector<8xf32> to vector<8x1xf32>
    %127 = vector.broadcast %126 : vector<8x1xf32> to vector<8x8xf32>
    %128 = arith.subf %124, %127 : vector<8x8xf32>
    %129 = math.exp %128 : vector<8x8xf32>
    %cst_93 = arith.constant dense<0.000000e+00> : vector<8xf32>
    %130 = vector.multi_reduction <add>, %129, %cst_93 [1] : vector<8x8xf32> to vector<8xf32>
    %131 = vector.shape_cast %130 : vector<8xf32> to vector<8x1xf32>
    %132 = vector.broadcast %131 : vector<8x1xf32> to vector<8x8xf32>
    %133 = arith.divf %129, %132 : vector<8x8xf32>
    %134 = vector.shape_cast %133 : vector<8x8xf32> to vector<8x8x1xf32>
    %135 = vector.broadcast %134 : vector<8x8x1xf32> to vector<8x8x32xf32>
    %136 = arith.mulf %135, %120 : vector<8x8x32xf32>
    %cst_94 = arith.constant dense<0.000000e+00> : vector<8x32xf32>
    %137 = vector.multi_reduction <add>, %136, %cst_94 [1] : vector<8x8x32xf32> to vector<8x32xf32>
    %c0_95 = arith.constant 0 : index
    %c0_96 = arith.constant 0 : index
    %c0_97 = arith.constant 0 : index
    %138 = vector.load %arg7[%c0_95, %c0_96, %c0_97] : memref<3x32x32xf32, #tpu.memory_space<vmem>>, vector<1x32x32xf32>
    %139 = vector.shape_cast %138 : vector<1x32x32xf32> to vector<32x32xf32>
    %cst_98 = arith.constant dense<0.000000e+00> : vector<8x32xf32>
    %140 = tpu.matmul %99, %139, %cst_98 {dimension_numbers = #tpu.dot_dimension_numbers<[1], [0], [0], [1], [0, 0, 1, 1], [], []>} : vector<8x32xf32>, vector<32x32xf32>, vector<8x32xf32> -> vector<8x32xf32>
    %141 = arith.addf %44, %140 : vector<8x32xf32>
    %c1_99 = arith.constant 1 : index
    %c0_100 = arith.constant 0 : index
    %c0_101 = arith.constant 0 : index
    %142 = vector.load %arg7[%c1_99, %c0_100, %c0_101] : memref<3x32x32xf32, #tpu.memory_space<vmem>>, vector<1x32x32xf32>
    %143 = vector.shape_cast %142 : vector<1x32x32xf32> to vector<32x32xf32>
    %cst_102 = arith.constant dense<0.000000e+00> : vector<8x32xf32>
    %144 = tpu.matmul %118, %143, %cst_102 {dimension_numbers = #tpu.dot_dimension_numbers<[1], [0], [0], [1], [0, 0, 1, 1], [], []>} : vector<8x32xf32>, vector<32x32xf32>, vector<8x32xf32> -> vector<8x32xf32>
    %145 = arith.addf %141, %144 : vector<8x32xf32>
    %c2_103 = arith.constant 2 : index
    %c0_104 = arith.constant 0 : index
    %c0_105 = arith.constant 0 : index
    %146 = vector.load %arg7[%c2_103, %c0_104, %c0_105] : memref<3x32x32xf32, #tpu.memory_space<vmem>>, vector<1x32x32xf32>
    %147 = vector.shape_cast %146 : vector<1x32x32xf32> to vector<32x32xf32>
    %cst_106 = arith.constant dense<0.000000e+00> : vector<8x32xf32>
    %148 = tpu.matmul %137, %147, %cst_106 {dimension_numbers = #tpu.dot_dimension_numbers<[1], [0], [0], [1], [0, 0, 1, 1], [], []>} : vector<8x32xf32>, vector<32x32xf32>, vector<8x32xf32> -> vector<8x32xf32>
    %149 = arith.addf %145, %148 : vector<8x32xf32>
    %cst_107 = arith.constant dense<0xFF800000> : vector<8xf32>
    %150 = vector.multi_reduction <maximumf>, %149, %cst_107 [1] : vector<8x32xf32> to vector<8xf32>
    %151 = vector.shape_cast %150 : vector<8xf32> to vector<8x1xf32>
    %152 = vector.broadcast %151 : vector<8x1xf32> to vector<8x32xf32>
    %153 = arith.subf %149, %152 : vector<8x32xf32>
    %154 = math.exp %153 : vector<8x32xf32>
    %cst_108 = arith.constant dense<0.000000e+00> : vector<8xf32>
    %155 = vector.multi_reduction <add>, %154, %cst_108 [1] : vector<8x32xf32> to vector<8xf32>
    %156 = vector.shape_cast %155 : vector<8xf32> to vector<8x1xf32>
    %157 = vector.broadcast %156 : vector<8x1xf32> to vector<8x32xf32>
    %158 = arith.divf %154, %157 : vector<8x32xf32>
    %c0_109 = arith.constant 0 : index
    %c0_110 = arith.constant 0 : index
    %c0_111 = arith.constant 0 : index
    %159 = vector.load %arg9[%c0_109, %c0_110, %c0_111] : memref<4x32x32xf32, #tpu.memory_space<vmem>>, vector<1x32x32xf32>
    %160 = vector.shape_cast %159 : vector<1x32x32xf32> to vector<32x32xf32>
    %cst_112 = arith.constant dense<0.000000e+00> : vector<8x32xf32>
    %161 = tpu.matmul %158, %160, %cst_112 {dimension_numbers = #tpu.dot_dimension_numbers<[1], [0], [0], [1], [0, 0, 1, 1], [], []>} : vector<8x32xf32>, vector<32x32xf32>, vector<8x32xf32> -> vector<8x32xf32>
    %c0_113 = arith.constant 0 : index
    %c0_114 = arith.constant 0 : index
    %c0_115 = arith.constant 0 : index
    %162 = vector.load %arg10[%c0_113, %c0_114, %c0_115] : memref<4x32x32xf32, #tpu.memory_space<vmem>>, vector<1x32x32xf32>
    %163 = vector.shape_cast %162 : vector<1x32x32xf32> to vector<32x32xf32>
    %cst_116 = arith.constant dense<0.000000e+00> : vector<8x32xf32>
    %164 = tpu.matmul %5, %163, %cst_116 {dimension_numbers = #tpu.dot_dimension_numbers<[1], [0], [0], [1], [0, 0, 1, 1], [], []>} : vector<8x32xf32>, vector<32x32xf32>, vector<8x32xf32> -> vector<8x32xf32>
    %165 = arith.addf %161, %164 : vector<8x32xf32>
    %166 = arith.addf %165, %29 : vector<8x32xf32>
    %167 = arith.negf %166 : vector<8x32xf32>
    %168 = math.exp %167 : vector<8x32xf32>
    %cst_117 = arith.constant 1.000000e+00 : f32
    %169 = vector.broadcast %cst_117 : f32 to vector<8x32xf32>
    %170 = arith.addf %169, %168 : vector<8x32xf32>
    %171 = arith.divf %169, %170 : vector<8x32xf32>
    %c1_118 = arith.constant 1 : index
    %c0_119 = arith.constant 0 : index
    %c0_120 = arith.constant 0 : index
    %172 = vector.load %arg9[%c1_118, %c0_119, %c0_120] : memref<4x32x32xf32, #tpu.memory_space<vmem>>, vector<1x32x32xf32>
    %173 = vector.shape_cast %172 : vector<1x32x32xf32> to vector<32x32xf32>
    %cst_121 = arith.constant dense<0.000000e+00> : vector<8x32xf32>
    %174 = tpu.matmul %158, %173, %cst_121 {dimension_numbers = #tpu.dot_dimension_numbers<[1], [0], [0], [1], [0, 0, 1, 1], [], []>} : vector<8x32xf32>, vector<32x32xf32>, vector<8x32xf32> -> vector<8x32xf32>
    %c1_122 = arith.constant 1 : index
    %c0_123 = arith.constant 0 : index
    %c0_124 = arith.constant 0 : index
    %175 = vector.load %arg10[%c1_122, %c0_123, %c0_124] : memref<4x32x32xf32, #tpu.memory_space<vmem>>, vector<1x32x32xf32>
    %176 = vector.shape_cast %175 : vector<1x32x32xf32> to vector<32x32xf32>
    %cst_125 = arith.constant dense<0.000000e+00> : vector<8x32xf32>
    %177 = tpu.matmul %5, %176, %cst_125 {dimension_numbers = #tpu.dot_dimension_numbers<[1], [0], [0], [1], [0, 0, 1, 1], [], []>} : vector<8x32xf32>, vector<32x32xf32>, vector<8x32xf32> -> vector<8x32xf32>
    %178 = arith.addf %174, %177 : vector<8x32xf32>
    %179 = arith.addf %178, %33 : vector<8x32xf32>
    %180 = arith.negf %179 : vector<8x32xf32>
    %181 = math.exp %180 : vector<8x32xf32>
    %cst_126 = arith.constant 1.000000e+00 : f32
    %182 = vector.broadcast %cst_126 : f32 to vector<8x32xf32>
    %183 = arith.addf %182, %181 : vector<8x32xf32>
    %184 = arith.divf %182, %183 : vector<8x32xf32>
    %c2_127 = arith.constant 2 : index
    %c0_128 = arith.constant 0 : index
    %c0_129 = arith.constant 0 : index
    %185 = vector.load %arg9[%c2_127, %c0_128, %c0_129] : memref<4x32x32xf32, #tpu.memory_space<vmem>>, vector<1x32x32xf32>
    %186 = vector.shape_cast %185 : vector<1x32x32xf32> to vector<32x32xf32>
    %cst_130 = arith.constant dense<0.000000e+00> : vector<8x32xf32>
    %187 = tpu.matmul %158, %186, %cst_130 {dimension_numbers = #tpu.dot_dimension_numbers<[1], [0], [0], [1], [0, 0, 1, 1], [], []>} : vector<8x32xf32>, vector<32x32xf32>, vector<8x32xf32> -> vector<8x32xf32>
    %c2_131 = arith.constant 2 : index
    %c0_132 = arith.constant 0 : index
    %c0_133 = arith.constant 0 : index
    %188 = vector.load %arg10[%c2_131, %c0_132, %c0_133] : memref<4x32x32xf32, #tpu.memory_space<vmem>>, vector<1x32x32xf32>
    %189 = vector.shape_cast %188 : vector<1x32x32xf32> to vector<32x32xf32>
    %cst_134 = arith.constant dense<0.000000e+00> : vector<8x32xf32>
    %190 = tpu.matmul %5, %189, %cst_134 {dimension_numbers = #tpu.dot_dimension_numbers<[1], [0], [0], [1], [0, 0, 1, 1], [], []>} : vector<8x32xf32>, vector<32x32xf32>, vector<8x32xf32> -> vector<8x32xf32>
    %191 = arith.addf %187, %190 : vector<8x32xf32>
    %192 = arith.addf %191, %37 : vector<8x32xf32>
    %193 = math.tanh %192 : vector<8x32xf32>
    %c3_135 = arith.constant 3 : index
    %c0_136 = arith.constant 0 : index
    %c0_137 = arith.constant 0 : index
    %194 = vector.load %arg9[%c3_135, %c0_136, %c0_137] : memref<4x32x32xf32, #tpu.memory_space<vmem>>, vector<1x32x32xf32>
    %195 = vector.shape_cast %194 : vector<1x32x32xf32> to vector<32x32xf32>
    %cst_138 = arith.constant dense<0.000000e+00> : vector<8x32xf32>
    %196 = tpu.matmul %158, %195, %cst_138 {dimension_numbers = #tpu.dot_dimension_numbers<[1], [0], [0], [1], [0, 0, 1, 1], [], []>} : vector<8x32xf32>, vector<32x32xf32>, vector<8x32xf32> -> vector<8x32xf32>
    %c3_139 = arith.constant 3 : index
    %c0_140 = arith.constant 0 : index
    %c0_141 = arith.constant 0 : index
    %197 = vector.load %arg10[%c3_139, %c0_140, %c0_141] : memref<4x32x32xf32, #tpu.memory_space<vmem>>, vector<1x32x32xf32>
    %198 = vector.shape_cast %197 : vector<1x32x32xf32> to vector<32x32xf32>
    %cst_142 = arith.constant dense<0.000000e+00> : vector<8x32xf32>
    %199 = tpu.matmul %5, %198, %cst_142 {dimension_numbers = #tpu.dot_dimension_numbers<[1], [0], [0], [1], [0, 0, 1, 1], [], []>} : vector<8x32xf32>, vector<32x32xf32>, vector<8x32xf32> -> vector<8x32xf32>
    %200 = arith.addf %196, %199 : vector<8x32xf32>
    %201 = arith.addf %200, %41 : vector<8x32xf32>
    %202 = arith.negf %201 : vector<8x32xf32>
    %203 = math.exp %202 : vector<8x32xf32>
    %cst_143 = arith.constant 1.000000e+00 : f32
    %204 = vector.broadcast %cst_143 : f32 to vector<8x32xf32>
    %205 = arith.addf %204, %203 : vector<8x32xf32>
    %206 = arith.divf %204, %205 : vector<8x32xf32>
    %207 = arith.mulf %184, %7 : vector<8x32xf32>
    %208 = arith.mulf %171, %193 : vector<8x32xf32>
    %209 = arith.addf %207, %208 : vector<8x32xf32>
    %210 = math.tanh %209 : vector<8x32xf32>
    %211 = arith.mulf %206, %210 : vector<8x32xf32>
    %212 = vector.shape_cast %114 : vector<8x8xf32> to vector<8x8x1xf32>
    %cst_144 = arith.constant 1.000000e+00 : f32
    %213 = vector.broadcast %cst_144 : f32 to vector<8x8x1xf32>
    %214 = arith.subf %213, %212 : vector<8x8x1xf32>
    %c0_145 = arith.constant 0 : index
    %c0_146 = arith.constant 0 : index
    %c0_147 = arith.constant 0 : index
    %c0_148 = arith.constant 0 : index
    %215 = vector.load %arg14[%c0_145, %c0_146, %c0_147, %c0_148] : memref<2x8x8x32xf32, #tpu.memory_space<vmem>>, vector<1x8x8x32xf32>
    %216 = vector.shape_cast %215 : vector<1x8x8x32xf32> to vector<8x8x32xf32>
    %217 = vector.shape_cast %211 : vector<8x32xf32> to vector<8x1x32xf32>
    %218 = vector.broadcast %217 : vector<8x1x32xf32> to vector<8x8x32xf32>
    %219 = arith.addf %216, %218 : vector<8x8x32xf32>
    %220 = vector.broadcast %214 : vector<8x8x1xf32> to vector<8x8x32xf32>
    %221 = arith.mulf %220, %219 : vector<8x8x32xf32>
    %c0_149 = arith.constant 0 : index
    %c0_150 = arith.constant 0 : index
    %c0_151 = arith.constant 0 : index
    %c0_152 = arith.constant 0 : index
    %222 = vector.load %arg14[%c0_149, %c0_150, %c0_151, %c0_152] : memref<2x8x8x32xf32, #tpu.memory_space<vmem>>, vector<1x8x8x32xf32>
    %223 = vector.shape_cast %222 : vector<1x8x8x32xf32> to vector<8x8x32xf32>
    %224 = vector.shape_cast %221 : vector<8x8x32xf32> to vector<1x8x8x32xf32>
    tpu.vector_store %arg14[%c0_149, %c0_150, %c0_151, %c0_152], %224 {strides = array<i32>} : memref<2x8x8x32xf32, #tpu.memory_space<vmem>>, vector<1x8x8x32xf32>,
    %225 = vector.shape_cast %133 : vector<8x8xf32> to vector<8x8x1xf32>
    %cst_153 = arith.constant 1.000000e+00 : f32
    %226 = vector.broadcast %cst_153 : f32 to vector<8x8x1xf32>
    %227 = arith.subf %226, %225 : vector<8x8x1xf32>
    %c1_154 = arith.constant 1 : index
    %c0_155 = arith.constant 0 : index
    %c0_156 = arith.constant 0 : index
    %c0_157 = arith.constant 0 : index
    %228 = vector.load %arg14[%c1_154, %c0_155, %c0_156, %c0_157] : memref<2x8x8x32xf32, #tpu.memory_space<vmem>>, vector<1x8x8x32xf32>
    %229 = vector.shape_cast %228 : vector<1x8x8x32xf32> to vector<8x8x32xf32>
    %230 = vector.shape_cast %211 : vector<8x32xf32> to vector<8x1x32xf32>
    %231 = vector.broadcast %230 : vector<8x1x32xf32> to vector<8x8x32xf32>
    %232 = arith.addf %229, %231 : vector<8x8x32xf32>
    %233 = vector.broadcast %227 : vector<8x8x1xf32> to vector<8x8x32xf32>
    %234 = arith.mulf %233, %232 : vector<8x8x32xf32>
    %c1_158 = arith.constant 1 : index
    %c0_159 = arith.constant 0 : index
    %c0_160 = arith.constant 0 : index
    %c0_161 = arith.constant 0 : index
    %235 = vector.load %arg14[%c1_158, %c0_159, %c0_160, %c0_161] : memref<2x8x8x32xf32, #tpu.memory_space<vmem>>, vector<1x8x8x32xf32>
    %236 = vector.shape_cast %235 : vector<1x8x8x32xf32> to vector<8x8x32xf32>
    %237 = vector.shape_cast %234 : vector<8x8x32xf32> to vector<1x8x8x32xf32>
    tpu.vector_store %arg14[%c1_158, %c0_159, %c0_160, %c0_161], %237 {strides = array<i32>} : memref<2x8x8x32xf32, #tpu.memory_space<vmem>>, vector<1x8x8x32xf32>,
    %c0_162 = arith.constant 0 : index
    %c0_163 = arith.constant 0 : index
    %c0_164 = arith.constant 0 : index
    %238 = vector.load %arg12[%c0_162, %c0_163, %c0_164] : memref<5x8x32xf32, #tpu.memory_space<vmem>>, vector<1x8x32xf32>
    %239 = vector.shape_cast %238 : vector<1x8x32xf32> to vector<8x32xf32>
    %240 = vector.shape_cast %211 : vector<8x32xf32> to vector<1x8x32xf32>
    tpu.vector_store %arg12[%c0_162, %c0_163, %c0_164], %240 {strides = array<i32>} : memref<5x8x32xf32, #tpu.memory_space<vmem>>, vector<1x8x32xf32>,
    %c1_165 = arith.constant 1 : index
    %c0_166 = arith.constant 0 : index
    %c0_167 = arith.constant 0 : index
    %241 = vector.load %arg1[%c1_165, %c0_166, %c0_167] : memref<5x8x32xf32, #tpu.memory_space<vmem>>, vector<1x8x32xf32>
    %242 = vector.shape_cast %241 : vector<1x8x32xf32> to vector<8x32xf32>
    %c0_168 = arith.constant 0 : index
    %c0_169 = arith.constant 0 : index
    %c0_170 = arith.constant 0 : index
    %243 = vector.load %arg4[%c0_168, %c0_169, %c0_170] : memref<4x32x32xf32, #tpu.memory_space<vmem>>, vector<1x32x32xf32>
    %244 = vector.shape_cast %243 : vector<1x32x32xf32> to vector<32x32xf32>
    %cst_171 = arith.constant dense<0.000000e+00> : vector<8x32xf32>
    %245 = tpu.matmul %242, %244, %cst_171 {dimension_numbers = #tpu.dot_dimension_numbers<[1], [0], [0], [1], [0, 0, 1, 1], [], []>} : vector<8x32xf32>, vector<32x32xf32>, vector<8x32xf32> -> vector<8x32xf32>
    %c0_172 = arith.constant 0 : index
    %c0_173 = arith.constant 0 : index
    %c0_174 = arith.constant 0 : index
    %246 = vector.load %arg5[%c0_172, %c0_173, %c0_174] : memref<4x32x32xf32, #tpu.memory_space<vmem>>, vector<1x32x32xf32>
    %247 = vector.shape_cast %246 : vector<1x32x32xf32> to vector<32x32xf32>
    %cst_175 = arith.constant dense<0.000000e+00> : vector<8x32xf32>
    %248 = tpu.matmul %99, %247, %cst_175 {dimension_numbers = #tpu.dot_dimension_numbers<[1], [0], [0], [1], [0, 0, 1, 1], [], []>} : vector<8x32xf32>, vector<32x32xf32>, vector<8x32xf32> -> vector<8x32xf32>
    %249 = arith.addf %245, %248 : vector<8x32xf32>
    %250 = arith.addf %249, %13 : vector<8x32xf32>
    %251 = arith.negf %250 : vector<8x32xf32>
    %252 = math.exp %251 : vector<8x32xf32>
    %cst_176 = arith.constant 1.000000e+00 : f32
    %253 = vector.broadcast %cst_176 : f32 to vector<8x32xf32>
    %254 = arith.addf %253, %252 : vector<8x32xf32>
    %255 = arith.divf %253, %254 : vector<8x32xf32>
    %c1_177 = arith.constant 1 : index
    %c0_178 = arith.constant 0 : index
    %c0_179 = arith.constant 0 : index
    %256 = vector.load %arg4[%c1_177, %c0_178, %c0_179] : memref<4x32x32xf32, #tpu.memory_space<vmem>>, vector<1x32x32xf32>
    %257 = vector.shape_cast %256 : vector<1x32x32xf32> to vector<32x32xf32>
    %cst_180 = arith.constant dense<0.000000e+00> : vector<8x32xf32>
    %258 = tpu.matmul %242, %257, %cst_180 {dimension_numbers = #tpu.dot_dimension_numbers<[1], [0], [0], [1], [0, 0, 1, 1], [], []>} : vector<8x32xf32>, vector<32x32xf32>, vector<8x32xf32> -> vector<8x32xf32>
    %c1_181 = arith.constant 1 : index
    %c0_182 = arith.constant 0 : index
    %c0_183 = arith.constant 0 : index
    %259 = vector.load %arg5[%c1_181, %c0_182, %c0_183] : memref<4x32x32xf32, #tpu.memory_space<vmem>>, vector<1x32x32xf32>
    %260 = vector.shape_cast %259 : vector<1x32x32xf32> to vector<32x32xf32>
    %cst_184 = arith.constant dense<0.000000e+00> : vector<8x32xf32>
    %261 = tpu.matmul %99, %260, %cst_184 {dimension_numbers = #tpu.dot_dimension_numbers<[1], [0], [0], [1], [0, 0, 1, 1], [], []>} : vector<8x32xf32>, vector<32x32xf32>, vector<8x32xf32> -> vector<8x32xf32>
    %262 = arith.addf %258, %261 : vector<8x32xf32>
    %263 = arith.addf %262, %17 : vector<8x32xf32>
    %264 = arith.negf %263 : vector<8x32xf32>
    %265 = math.exp %264 : vector<8x32xf32>
    %cst_185 = arith.constant 1.000000e+00 : f32
    %266 = vector.broadcast %cst_185 : f32 to vector<8x32xf32>
    %267 = arith.addf %266, %265 : vector<8x32xf32>
    %268 = arith.divf %266, %267 : vector<8x32xf32>
    %c2_186 = arith.constant 2 : index
    %c0_187 = arith.constant 0 : index
    %c0_188 = arith.constant 0 : index
    %269 = vector.load %arg4[%c2_186, %c0_187, %c0_188] : memref<4x32x32xf32, #tpu.memory_space<vmem>>, vector<1x32x32xf32>
    %270 = vector.shape_cast %269 : vector<1x32x32xf32> to vector<32x32xf32>
    %cst_189 = arith.constant dense<0.000000e+00> : vector<8x32xf32>
    %271 = tpu.matmul %242, %270, %cst_189 {dimension_numbers = #tpu.dot_dimension_numbers<[1], [0], [0], [1], [0, 0, 1, 1], [], []>} : vector<8x32xf32>, vector<32x32xf32>, vector<8x32xf32> -> vector<8x32xf32>
    %c2_190 = arith.constant 2 : index
    %c0_191 = arith.constant 0 : index
    %c0_192 = arith.constant 0 : index
    %272 = vector.load %arg5[%c2_190, %c0_191, %c0_192] : memref<4x32x32xf32, #tpu.memory_space<vmem>>, vector<1x32x32xf32>
    %273 = vector.shape_cast %272 : vector<1x32x32xf32> to vector<32x32xf32>
    %cst_193 = arith.constant dense<0.000000e+00> : vector<8x32xf32>
    %274 = tpu.matmul %99, %273, %cst_193 {dimension_numbers = #tpu.dot_dimension_numbers<[1], [0], [0], [1], [0, 0, 1, 1], [], []>} : vector<8x32xf32>, vector<32x32xf32>, vector<8x32xf32> -> vector<8x32xf32>
    %275 = arith.addf %271, %274 : vector<8x32xf32>
    %276 = arith.addf %275, %21 : vector<8x32xf32>
    %277 = math.tanh %276 : vector<8x32xf32>
    %c3_194 = arith.constant 3 : index
    %c0_195 = arith.constant 0 : index
    %c0_196 = arith.constant 0 : index
    %278 = vector.load %arg4[%c3_194, %c0_195, %c0_196] : memref<4x32x32xf32, #tpu.memory_space<vmem>>, vector<1x32x32xf32>
    %279 = vector.shape_cast %278 : vector<1x32x32xf32> to vector<32x32xf32>
    %cst_197 = arith.constant dense<0.000000e+00> : vector<8x32xf32>
    %280 = tpu.matmul %242, %279, %cst_197 {dimension_numbers = #tpu.dot_dimension_numbers<[1], [0], [0], [1], [0, 0, 1, 1], [], []>} : vector<8x32xf32>, vector<32x32xf32>, vector<8x32xf32> -> vector<8x32xf32>
    %c3_198 = arith.constant 3 : index
    %c0_199 = arith.constant 0 : index
    %c0_200 = arith.constant 0 : index
    %281 = vector.load %arg5[%c3_198, %c0_199, %c0_200] : memref<4x32x32xf32, #tpu.memory_space<vmem>>, vector<1x32x32xf32>
    %282 = vector.shape_cast %281 : vector<1x32x32xf32> to vector<32x32xf32>
    %cst_201 = arith.constant dense<0.000000e+00> : vector<8x32xf32>
    %283 = tpu.matmul %99, %282, %cst_201 {dimension_numbers = #tpu.dot_dimension_numbers<[1], [0], [0], [1], [0, 0, 1, 1], [], []>} : vector<8x32xf32>, vector<32x32xf32>, vector<8x32xf32> -> vector<8x32xf32>
    %284 = arith.addf %280, %283 : vector<8x32xf32>
    %285 = arith.addf %284, %25 : vector<8x32xf32>
    %286 = arith.negf %285 : vector<8x32xf32>
    %287 = math.exp %286 : vector<8x32xf32>
    %cst_202 = arith.constant 1.000000e+00 : f32
    %288 = vector.broadcast %cst_202 : f32 to vector<8x32xf32>
    %289 = arith.addf %288, %287 : vector<8x32xf32>
    %290 = arith.divf %288, %289 : vector<8x32xf32>
    %291 = arith.mulf %268, %97 : vector<8x32xf32>
    %292 = arith.mulf %255, %277 : vector<8x32xf32>
    %293 = arith.addf %291, %292 : vector<8x32xf32>
    %294 = math.tanh %293 : vector<8x32xf32>
    %295 = arith.mulf %290, %294 : vector<8x32xf32>
    %c0_203 = arith.constant 0 : index
    %c0_204 = arith.constant 0 : index
    %c0_205 = arith.constant 0 : index
    %c0_206 = arith.constant 0 : index
    %296 = vector.load %arg14[%c0_203, %c0_204, %c0_205, %c0_206] : memref<2x8x8x32xf32, #tpu.memory_space<vmem>>, vector<1x8x8x32xf32>
    %297 = vector.shape_cast %296 : vector<1x8x8x32xf32> to vector<8x8x32xf32>
    %298 = vector.shape_cast %295 : vector<8x32xf32> to vector<8x1x32xf32>
    %299 = vector.broadcast %298 : vector<8x1x32xf32> to vector<8x8x32xf32>
    %300 = arith.mulf %299, %297 : vector<8x8x32xf32>
    %cst_207 = arith.constant dense<0.000000e+00> : vector<8x8xf32>
    %301 = vector.multi_reduction <add>, %300, %cst_207 [2] : vector<8x8x32xf32> to vector<8x8xf32>
    %cst_208 = arith.constant dense<0xFF800000> : vector<8xf32>
    %302 = vector.multi_reduction <maximumf>, %301, %cst_208 [1] : vector<8x8xf32> to vector<8xf32>
    %303 = vector.shape_cast %302 : vector<8xf32> to vector<8x1xf32>
    %304 = vector.broadcast %303 : vector<8x1xf32> to vector<8x8xf32>
    %305 = arith.subf %301, %304 : vector<8x8xf32>
    %306 = math.exp %305 : vector<8x8xf32>
    %cst_209 = arith.constant dense<0.000000e+00> : vector<8xf32>
    %307 = vector.multi_reduction <add>, %306, %cst_209 [1] : vector<8x8xf32> to vector<8xf32>
    %308 = vector.shape_cast %307 : vector<8xf32> to vector<8x1xf32>
    %309 = vector.broadcast %308 : vector<8x1xf32> to vector<8x8xf32>
    %310 = arith.divf %306, %309 : vector<8x8xf32>
    %311 = vector.shape_cast %310 : vector<8x8xf32> to vector<8x8x1xf32>
    %312 = vector.broadcast %311 : vector<8x8x1xf32> to vector<8x8x32xf32>
    %313 = arith.mulf %312, %297 : vector<8x8x32xf32>
    %cst_210 = arith.constant dense<0.000000e+00> : vector<8x32xf32>
    %314 = vector.multi_reduction <add>, %313, %cst_210 [1] : vector<8x8x32xf32> to vector<8x32xf32>
    %c1_211 = arith.constant 1 : index
    %c0_212 = arith.constant 0 : index
    %c0_213 = arith.constant 0 : index
    %c0_214 = arith.constant 0 : index
    %315 = vector.load %arg14[%c1_211, %c0_212, %c0_213, %c0_214] : memref<2x8x8x32xf32, #tpu.memory_space<vmem>>, vector<1x8x8x32xf32>
    %316 = vector.shape_cast %315 : vector<1x8x8x32xf32> to vector<8x8x32xf32>
    %317 = vector.shape_cast %295 : vector<8x32xf32> to vector<8x1x32xf32>
    %318 = vector.broadcast %317 : vector<8x1x32xf32> to vector<8x8x32xf32>
    %319 = arith.mulf %318, %316 : vector<8x8x32xf32>
    %cst_215 = arith.constant dense<0.000000e+00> : vector<8x8xf32>
    %320 = vector.multi_reduction <add>, %319, %cst_215 [2] : vector<8x8x32xf32> to vector<8x8xf32>
    %cst_216 = arith.constant dense<0xFF800000> : vector<8xf32>
    %321 = vector.multi_reduction <maximumf>, %320, %cst_216 [1] : vector<8x8xf32> to vector<8xf32>
    %322 = vector.shape_cast %321 : vector<8xf32> to vector<8x1xf32>
    %323 = vector.broadcast %322 : vector<8x1xf32> to vector<8x8xf32>
    %324 = arith.subf %320, %323 : vector<8x8xf32>
    %325 = math.exp %324 : vector<8x8xf32>
    %cst_217 = arith.constant dense<0.000000e+00> : vector<8xf32>
    %326 = vector.multi_reduction <add>, %325, %cst_217 [1] : vector<8x8xf32> to vector<8xf32>
    %327 = vector.shape_cast %326 : vector<8xf32> to vector<8x1xf32>
    %328 = vector.broadcast %327 : vector<8x1xf32> to vector<8x8xf32>
    %329 = arith.divf %325, %328 : vector<8x8xf32>
    %330 = vector.shape_cast %329 : vector<8x8xf32> to vector<8x8x1xf32>
    %331 = vector.broadcast %330 : vector<8x8x1xf32> to vector<8x8x32xf32>
    %332 = arith.mulf %331, %316 : vector<8x8x32xf32>
    %cst_218 = arith.constant dense<0.000000e+00> : vector<8x32xf32>
    %333 = vector.multi_reduction <add>, %332, %cst_218 [1] : vector<8x8x32xf32> to vector<8x32xf32>
    %c0_219 = arith.constant 0 : index
    %c0_220 = arith.constant 0 : index
    %c0_221 = arith.constant 0 : index
    %334 = vector.load %arg7[%c0_219, %c0_220, %c0_221] : memref<3x32x32xf32, #tpu.memory_space<vmem>>, vector<1x32x32xf32>
    %335 = vector.shape_cast %334 : vector<1x32x32xf32> to vector<32x32xf32>
    %cst_222 = arith.constant dense<0.000000e+00> : vector<8x32xf32>
    %336 = tpu.matmul %295, %335, %cst_222 {dimension_numbers = #tpu.dot_dimension_numbers<[1], [0], [0], [1], [0, 0, 1, 1], [], []>} : vector<8x32xf32>, vector<32x32xf32>, vector<8x32xf32> -> vector<8x32xf32>
    %337 = arith.addf %44, %336 : vector<8x32xf32>
    %c1_223 = arith.constant 1 : index
    %c0_224 = arith.constant 0 : index
    %c0_225 = arith.constant 0 : index
    %338 = vector.load %arg7[%c1_223, %c0_224, %c0_225] : memref<3x32x32xf32, #tpu.memory_space<vmem>>, vector<1x32x32xf32>
    %339 = vector.shape_cast %338 : vector<1x32x32xf32> to vector<32x32xf32>
    %cst_226 = arith.constant dense<0.000000e+00> : vector<8x32xf32>
    %340 = tpu.matmul %314, %339, %cst_226 {dimension_numbers = #tpu.dot_dimension_numbers<[1], [0], [0], [1], [0, 0, 1, 1], [], []>} : vector<8x32xf32>, vector<32x32xf32>, vector<8x32xf32> -> vector<8x32xf32>
    %341 = arith.addf %337, %340 : vector<8x32xf32>
    %c2_227 = arith.constant 2 : index
    %c0_228 = arith.constant 0 : index
    %c0_229 = arith.constant 0 : index
    %342 = vector.load %arg7[%c2_227, %c0_228, %c0_229] : memref<3x32x32xf32, #tpu.memory_space<vmem>>, vector<1x32x32xf32>
    %343 = vector.shape_cast %342 : vector<1x32x32xf32> to vector<32x32xf32>
    %cst_230 = arith.constant dense<0.000000e+00> : vector<8x32xf32>
    %344 = tpu.matmul %333, %343, %cst_230 {dimension_numbers = #tpu.dot_dimension_numbers<[1], [0], [0], [1], [0, 0, 1, 1], [], []>} : vector<8x32xf32>, vector<32x32xf32>, vector<8x32xf32> -> vector<8x32xf32>
    %345 = arith.addf %341, %344 : vector<8x32xf32>
    %cst_231 = arith.constant dense<0xFF800000> : vector<8xf32>
    %346 = vector.multi_reduction <maximumf>, %345, %cst_231 [1] : vector<8x32xf32> to vector<8xf32>
    %347 = vector.shape_cast %346 : vector<8xf32> to vector<8x1xf32>
    %348 = vector.broadcast %347 : vector<8x1xf32> to vector<8x32xf32>
    %349 = arith.subf %345, %348 : vector<8x32xf32>
    %350 = math.exp %349 : vector<8x32xf32>
    %cst_232 = arith.constant dense<0.000000e+00> : vector<8xf32>
    %351 = vector.multi_reduction <add>, %350, %cst_232 [1] : vector<8x32xf32> to vector<8xf32>
    %352 = vector.shape_cast %351 : vector<8xf32> to vector<8x1xf32>
    %353 = vector.broadcast %352 : vector<8x1xf32> to vector<8x32xf32>
    %354 = arith.divf %350, %353 : vector<8x32xf32>
    %c0_233 = arith.constant 0 : index
    %c0_234 = arith.constant 0 : index
    %c0_235 = arith.constant 0 : index
    %355 = vector.load %arg9[%c0_233, %c0_234, %c0_235] : memref<4x32x32xf32, #tpu.memory_space<vmem>>, vector<1x32x32xf32>
    %356 = vector.shape_cast %355 : vector<1x32x32xf32> to vector<32x32xf32>
    %cst_236 = arith.constant dense<0.000000e+00> : vector<8x32xf32>
    %357 = tpu.matmul %354, %356, %cst_236 {dimension_numbers = #tpu.dot_dimension_numbers<[1], [0], [0], [1], [0, 0, 1, 1], [], []>} : vector<8x32xf32>, vector<32x32xf32>, vector<8x32xf32> -> vector<8x32xf32>
    %c0_237 = arith.constant 0 : index
    %c0_238 = arith.constant 0 : index
    %c0_239 = arith.constant 0 : index
    %358 = vector.load %arg10[%c0_237, %c0_238, %c0_239] : memref<4x32x32xf32, #tpu.memory_space<vmem>>, vector<1x32x32xf32>
    %359 = vector.shape_cast %358 : vector<1x32x32xf32> to vector<32x32xf32>
    %cst_240 = arith.constant dense<0.000000e+00> : vector<8x32xf32>
    %360 = tpu.matmul %211, %359, %cst_240 {dimension_numbers = #tpu.dot_dimension_numbers<[1], [0], [0], [1], [0, 0, 1, 1], [], []>} : vector<8x32xf32>, vector<32x32xf32>, vector<8x32xf32> -> vector<8x32xf32>
    %361 = arith.addf %357, %360 : vector<8x32xf32>
    %362 = arith.addf %361, %29 : vector<8x32xf32>
    %363 = arith.negf %362 : vector<8x32xf32>
    %364 = math.exp %363 : vector<8x32xf32>
    %cst_241 = arith.constant 1.000000e+00 : f32
    %365 = vector.broadcast %cst_241 : f32 to vector<8x32xf32>
    %366 = arith.addf %365, %364 : vector<8x32xf32>
    %367 = arith.divf %365, %366 : vector<8x32xf32>
    %c1_242 = arith.constant 1 : index
    %c0_243 = arith.constant 0 : index
    %c0_244 = arith.constant 0 : index
    %368 = vector.load %arg9[%c1_242, %c0_243, %c0_244] : memref<4x32x32xf32, #tpu.memory_space<vmem>>, vector<1x32x32xf32>
    %369 = vector.shape_cast %368 : vector<1x32x32xf32> to vector<32x32xf32>
    %cst_245 = arith.constant dense<0.000000e+00> : vector<8x32xf32>
    %370 = tpu.matmul %354, %369, %cst_245 {dimension_numbers = #tpu.dot_dimension_numbers<[1], [0], [0], [1], [0, 0, 1, 1], [], []>} : vector<8x32xf32>, vector<32x32xf32>, vector<8x32xf32> -> vector<8x32xf32>
    %c1_246 = arith.constant 1 : index
    %c0_247 = arith.constant 0 : index
    %c0_248 = arith.constant 0 : index
    %371 = vector.load %arg10[%c1_246, %c0_247, %c0_248] : memref<4x32x32xf32, #tpu.memory_space<vmem>>, vector<1x32x32xf32>
    %372 = vector.shape_cast %371 : vector<1x32x32xf32> to vector<32x32xf32>
    %cst_249 = arith.constant dense<0.000000e+00> : vector<8x32xf32>
    %373 = tpu.matmul %211, %372, %cst_249 {dimension_numbers = #tpu.dot_dimension_numbers<[1], [0], [0], [1], [0, 0, 1, 1], [], []>} : vector<8x32xf32>, vector<32x32xf32>, vector<8x32xf32> -> vector<8x32xf32>
    %374 = arith.addf %370, %373 : vector<8x32xf32>
    %375 = arith.addf %374, %33 : vector<8x32xf32>
    %376 = arith.negf %375 : vector<8x32xf32>
    %377 = math.exp %376 : vector<8x32xf32>
    %cst_250 = arith.constant 1.000000e+00 : f32
    %378 = vector.broadcast %cst_250 : f32 to vector<8x32xf32>
    %379 = arith.addf %378, %377 : vector<8x32xf32>
    %380 = arith.divf %378, %379 : vector<8x32xf32>
    %c2_251 = arith.constant 2 : index
    %c0_252 = arith.constant 0 : index
    %c0_253 = arith.constant 0 : index
    %381 = vector.load %arg9[%c2_251, %c0_252, %c0_253] : memref<4x32x32xf32, #tpu.memory_space<vmem>>, vector<1x32x32xf32>
    %382 = vector.shape_cast %381 : vector<1x32x32xf32> to vector<32x32xf32>
    %cst_254 = arith.constant dense<0.000000e+00> : vector<8x32xf32>
    %383 = tpu.matmul %354, %382, %cst_254 {dimension_numbers = #tpu.dot_dimension_numbers<[1], [0], [0], [1], [0, 0, 1, 1], [], []>} : vector<8x32xf32>, vector<32x32xf32>, vector<8x32xf32> -> vector<8x32xf32>
    %c2_255 = arith.constant 2 : index
    %c0_256 = arith.constant 0 : index
    %c0_257 = arith.constant 0 : index
    %384 = vector.load %arg10[%c2_255, %c0_256, %c0_257] : memref<4x32x32xf32, #tpu.memory_space<vmem>>, vector<1x32x32xf32>
    %385 = vector.shape_cast %384 : vector<1x32x32xf32> to vector<32x32xf32>
    %cst_258 = arith.constant dense<0.000000e+00> : vector<8x32xf32>
    %386 = tpu.matmul %211, %385, %cst_258 {dimension_numbers = #tpu.dot_dimension_numbers<[1], [0], [0], [1], [0, 0, 1, 1], [], []>} : vector<8x32xf32>, vector<32x32xf32>, vector<8x32xf32> -> vector<8x32xf32>
    %387 = arith.addf %383, %386 : vector<8x32xf32>
    %388 = arith.addf %387, %37 : vector<8x32xf32>
    %389 = math.tanh %388 : vector<8x32xf32>
    %c3_259 = arith.constant 3 : index
    %c0_260 = arith.constant 0 : index
    %c0_261 = arith.constant 0 : index
    %390 = vector.load %arg9[%c3_259, %c0_260, %c0_261] : memref<4x32x32xf32, #tpu.memory_space<vmem>>, vector<1x32x32xf32>
    %391 = vector.shape_cast %390 : vector<1x32x32xf32> to vector<32x32xf32>
    %cst_262 = arith.constant dense<0.000000e+00> : vector<8x32xf32>
    %392 = tpu.matmul %354, %391, %cst_262 {dimension_numbers = #tpu.dot_dimension_numbers<[1], [0], [0], [1], [0, 0, 1, 1], [], []>} : vector<8x32xf32>, vector<32x32xf32>, vector<8x32xf32> -> vector<8x32xf32>
    %c3_263 = arith.constant 3 : index
    %c0_264 = arith.constant 0 : index
    %c0_265 = arith.constant 0 : index
    %393 = vector.load %arg10[%c3_263, %c0_264, %c0_265] : memref<4x32x32xf32, #tpu.memory_space<vmem>>, vector<1x32x32xf32>
    %394 = vector.shape_cast %393 : vector<1x32x32xf32> to vector<32x32xf32>
    %cst_266 = arith.constant dense<0.000000e+00> : vector<8x32xf32>
    %395 = tpu.matmul %211, %394, %cst_266 {dimension_numbers = #tpu.dot_dimension_numbers<[1], [0], [0], [1], [0, 0, 1, 1], [], []>} : vector<8x32xf32>, vector<32x32xf32>, vector<8x32xf32> -> vector<8x32xf32>
    %396 = arith.addf %392, %395 : vector<8x32xf32>
    %397 = arith.addf %396, %41 : vector<8x32xf32>
    %398 = arith.negf %397 : vector<8x32xf32>
    %399 = math.exp %398 : vector<8x32xf32>
    %cst_267 = arith.constant 1.000000e+00 : f32
    %400 = vector.broadcast %cst_267 : f32 to vector<8x32xf32>
    %401 = arith.addf %400, %399 : vector<8x32xf32>
    %402 = arith.divf %400, %401 : vector<8x32xf32>
    %403 = arith.mulf %380, %209 : vector<8x32xf32>
    %404 = arith.mulf %367, %389 : vector<8x32xf32>
    %405 = arith.addf %403, %404 : vector<8x32xf32>
    %406 = math.tanh %405 : vector<8x32xf32>
    %407 = arith.mulf %402, %406 : vector<8x32xf32>
    %408 = vector.shape_cast %310 : vector<8x8xf32> to vector<8x8x1xf32>
    %cst_268 = arith.constant 1.000000e+00 : f32
    %409 = vector.broadcast %cst_268 : f32 to vector<8x8x1xf32>
    %410 = arith.subf %409, %408 : vector<8x8x1xf32>
    %c0_269 = arith.constant 0 : index
    %c0_270 = arith.constant 0 : index
    %c0_271 = arith.constant 0 : index
    %c0_272 = arith.constant 0 : index
    %411 = vector.load %arg14[%c0_269, %c0_270, %c0_271, %c0_272] : memref<2x8x8x32xf32, #tpu.memory_space<vmem>>, vector<1x8x8x32xf32>
    %412 = vector.shape_cast %411 : vector<1x8x8x32xf32> to vector<8x8x32xf32>
    %413 = vector.shape_cast %407 : vector<8x32xf32> to vector<8x1x32xf32>
    %414 = vector.broadcast %413 : vector<8x1x32xf32> to vector<8x8x32xf32>
    %415 = arith.addf %412, %414 : vector<8x8x32xf32>
    %416 = vector.broadcast %410 : vector<8x8x1xf32> to vector<8x8x32xf32>
    %417 = arith.mulf %416, %415 : vector<8x8x32xf32>
    %c0_273 = arith.constant 0 : index
    %c0_274 = arith.constant 0 : index
    %c0_275 = arith.constant 0 : index
    %c0_276 = arith.constant 0 : index
    %418 = vector.load %arg14[%c0_273, %c0_274, %c0_275, %c0_276] : memref<2x8x8x32xf32, #tpu.memory_space<vmem>>, vector<1x8x8x32xf32>
    %419 = vector.shape_cast %418 : vector<1x8x8x32xf32> to vector<8x8x32xf32>
    %420 = vector.shape_cast %417 : vector<8x8x32xf32> to vector<1x8x8x32xf32>
    tpu.vector_store %arg14[%c0_273, %c0_274, %c0_275, %c0_276], %420 {strides = array<i32>} : memref<2x8x8x32xf32, #tpu.memory_space<vmem>>, vector<1x8x8x32xf32>,
    %421 = vector.shape_cast %329 : vector<8x8xf32> to vector<8x8x1xf32>
    %cst_277 = arith.constant 1.000000e+00 : f32
    %422 = vector.broadcast %cst_277 : f32 to vector<8x8x1xf32>
    %423 = arith.subf %422, %421 : vector<8x8x1xf32>
    %c1_278 = arith.constant 1 : index
    %c0_279 = arith.constant 0 : index
    %c0_280 = arith.constant 0 : index
    %c0_281 = arith.constant 0 : index
    %424 = vector.load %arg14[%c1_278, %c0_279, %c0_280, %c0_281] : memref<2x8x8x32xf32, #tpu.memory_space<vmem>>, vector<1x8x8x32xf32>
    %425 = vector.shape_cast %424 : vector<1x8x8x32xf32> to vector<8x8x32xf32>
    %426 = vector.shape_cast %407 : vector<8x32xf32> to vector<8x1x32xf32>
    %427 = vector.broadcast %426 : vector<8x1x32xf32> to vector<8x8x32xf32>
    %428 = arith.addf %425, %427 : vector<8x8x32xf32>
    %429 = vector.broadcast %423 : vector<8x8x1xf32> to vector<8x8x32xf32>
    %430 = arith.mulf %429, %428 : vector<8x8x32xf32>
    %c1_282 = arith.constant 1 : index
    %c0_283 = arith.constant 0 : index
    %c0_284 = arith.constant 0 : index
    %c0_285 = arith.constant 0 : index
    %431 = vector.load %arg14[%c1_282, %c0_283, %c0_284, %c0_285] : memref<2x8x8x32xf32, #tpu.memory_space<vmem>>, vector<1x8x8x32xf32>
    %432 = vector.shape_cast %431 : vector<1x8x8x32xf32> to vector<8x8x32xf32>
    %433 = vector.shape_cast %430 : vector<8x8x32xf32> to vector<1x8x8x32xf32>
    tpu.vector_store %arg14[%c1_282, %c0_283, %c0_284, %c0_285], %433 {strides = array<i32>} : memref<2x8x8x32xf32, #tpu.memory_space<vmem>>, vector<1x8x8x32xf32>,
    %c1_286 = arith.constant 1 : index
    %c0_287 = arith.constant 0 : index
    %c0_288 = arith.constant 0 : index
    %434 = vector.load %arg12[%c1_286, %c0_287, %c0_288] : memref<5x8x32xf32, #tpu.memory_space<vmem>>, vector<1x8x32xf32>
    %435 = vector.shape_cast %434 : vector<1x8x32xf32> to vector<8x32xf32>
    %436 = vector.shape_cast %407 : vector<8x32xf32> to vector<1x8x32xf32>
    tpu.vector_store %arg12[%c1_286, %c0_287, %c0_288], %436 {strides = array<i32>} : memref<5x8x32xf32, #tpu.memory_space<vmem>>, vector<1x8x32xf32>,
    %c2_289 = arith.constant 2 : index
    %c0_290 = arith.constant 0 : index
    %c0_291 = arith.constant 0 : index
    %437 = vector.load %arg1[%c2_289, %c0_290, %c0_291] : memref<5x8x32xf32, #tpu.memory_space<vmem>>, vector<1x8x32xf32>
    %438 = vector.shape_cast %437 : vector<1x8x32xf32> to vector<8x32xf32>
    %c0_292 = arith.constant 0 : index
    %c0_293 = arith.constant 0 : index
    %c0_294 = arith.constant 0 : index
    %439 = vector.load %arg4[%c0_292, %c0_293, %c0_294] : memref<4x32x32xf32, #tpu.memory_space<vmem>>, vector<1x32x32xf32>
    %440 = vector.shape_cast %439 : vector<1x32x32xf32> to vector<32x32xf32>
    %cst_295 = arith.constant dense<0.000000e+00> : vector<8x32xf32>
    %441 = tpu.matmul %438, %440, %cst_295 {dimension_numbers = #tpu.dot_dimension_numbers<[1], [0], [0], [1], [0, 0, 1, 1], [], []>} : vector<8x32xf32>, vector<32x32xf32>, vector<8x32xf32> -> vector<8x32xf32>
    %c0_296 = arith.constant 0 : index
    %c0_297 = arith.constant 0 : index
    %c0_298 = arith.constant 0 : index
    %442 = vector.load %arg5[%c0_296, %c0_297, %c0_298] : memref<4x32x32xf32, #tpu.memory_space<vmem>>, vector<1x32x32xf32>
    %443 = vector.shape_cast %442 : vector<1x32x32xf32> to vector<32x32xf32>
    %cst_299 = arith.constant dense<0.000000e+00> : vector<8x32xf32>
    %444 = tpu.matmul %295, %443, %cst_299 {dimension_numbers = #tpu.dot_dimension_numbers<[1], [0], [0], [1], [0, 0, 1, 1], [], []>} : vector<8x32xf32>, vector<32x32xf32>, vector<8x32xf32> -> vector<8x32xf32>
    %445 = arith.addf %441, %444 : vector<8x32xf32>
    %446 = arith.addf %445, %13 : vector<8x32xf32>
    %447 = arith.negf %446 : vector<8x32xf32>
    %448 = math.exp %447 : vector<8x32xf32>
    %cst_300 = arith.constant 1.000000e+00 : f32
    %449 = vector.broadcast %cst_300 : f32 to vector<8x32xf32>
    %450 = arith.addf %449, %448 : vector<8x32xf32>
    %451 = arith.divf %449, %450 : vector<8x32xf32>
    %c1_301 = arith.constant 1 : index
    %c0_302 = arith.constant 0 : index
    %c0_303 = arith.constant 0 : index
    %452 = vector.load %arg4[%c1_301, %c0_302, %c0_303] : memref<4x32x32xf32, #tpu.memory_space<vmem>>, vector<1x32x32xf32>
    %453 = vector.shape_cast %452 : vector<1x32x32xf32> to vector<32x32xf32>
    %cst_304 = arith.constant dense<0.000000e+00> : vector<8x32xf32>
    %454 = tpu.matmul %438, %453, %cst_304 {dimension_numbers = #tpu.dot_dimension_numbers<[1], [0], [0], [1], [0, 0, 1, 1], [], []>} : vector<8x32xf32>, vector<32x32xf32>, vector<8x32xf32> -> vector<8x32xf32>
    %c1_305 = arith.constant 1 : index
    %c0_306 = arith.constant 0 : index
    %c0_307 = arith.constant 0 : index
    %455 = vector.load %arg5[%c1_305, %c0_306, %c0_307] : memref<4x32x32xf32, #tpu.memory_space<vmem>>, vector<1x32x32xf32>
    %456 = vector.shape_cast %455 : vector<1x32x32xf32> to vector<32x32xf32>
    %cst_308 = arith.constant dense<0.000000e+00> : vector<8x32xf32>
    %457 = tpu.matmul %295, %456, %cst_308 {dimension_numbers = #tpu.dot_dimension_numbers<[1], [0], [0], [1], [0, 0, 1, 1], [], []>} : vector<8x32xf32>, vector<32x32xf32>, vector<8x32xf32> -> vector<8x32xf32>
    %458 = arith.addf %454, %457 : vector<8x32xf32>
    %459 = arith.addf %458, %17 : vector<8x32xf32>
    %460 = arith.negf %459 : vector<8x32xf32>
    %461 = math.exp %460 : vector<8x32xf32>
    %cst_309 = arith.constant 1.000000e+00 : f32
    %462 = vector.broadcast %cst_309 : f32 to vector<8x32xf32>
    %463 = arith.addf %462, %461 : vector<8x32xf32>
    %464 = arith.divf %462, %463 : vector<8x32xf32>
    %c2_310 = arith.constant 2 : index
    %c0_311 = arith.constant 0 : index
    %c0_312 = arith.constant 0 : index
    %465 = vector.load %arg4[%c2_310, %c0_311, %c0_312] : memref<4x32x32xf32, #tpu.memory_space<vmem>>, vector<1x32x32xf32>
    %466 = vector.shape_cast %465 : vector<1x32x32xf32> to vector<32x32xf32>
    %cst_313 = arith.constant dense<0.000000e+00> : vector<8x32xf32>
    %467 = tpu.matmul %438, %466, %cst_313 {dimension_numbers = #tpu.dot_dimension_numbers<[1], [0], [0], [1], [0, 0, 1, 1], [], []>} : vector<8x32xf32>, vector<32x32xf32>, vector<8x32xf32> -> vector<8x32xf32>
    %c2_314 = arith.constant 2 : index
    %c0_315 = arith.constant 0 : index
    %c0_316 = arith.constant 0 : index
    %468 = vector.load %arg5[%c2_314, %c0_315, %c0_316] : memref<4x32x32xf32, #tpu.memory_space<vmem>>, vector<1x32x32xf32>
    %469 = vector.shape_cast %468 : vector<1x32x32xf32> to vector<32x32xf32>
    %cst_317 = arith.constant dense<0.000000e+00> : vector<8x32xf32>
    %470 = tpu.matmul %295, %469, %cst_317 {dimension_numbers = #tpu.dot_dimension_numbers<[1], [0], [0], [1], [0, 0, 1, 1], [], []>} : vector<8x32xf32>, vector<32x32xf32>, vector<8x32xf32> -> vector<8x32xf32>
    %471 = arith.addf %467, %470 : vector<8x32xf32>
    %472 = arith.addf %471, %21 : vector<8x32xf32>
    %473 = math.tanh %472 : vector<8x32xf32>
    %c3_318 = arith.constant 3 : index
    %c0_319 = arith.constant 0 : index
    %c0_320 = arith.constant 0 : index
    %474 = vector.load %arg4[%c3_318, %c0_319, %c0_320] : memref<4x32x32xf32, #tpu.memory_space<vmem>>, vector<1x32x32xf32>
    %475 = vector.shape_cast %474 : vector<1x32x32xf32> to vector<32x32xf32>
    %cst_321 = arith.constant dense<0.000000e+00> : vector<8x32xf32>
    %476 = tpu.matmul %438, %475, %cst_321 {dimension_numbers = #tpu.dot_dimension_numbers<[1], [0], [0], [1], [0, 0, 1, 1], [], []>} : vector<8x32xf32>, vector<32x32xf32>, vector<8x32xf32> -> vector<8x32xf32>
    %c3_322 = arith.constant 3 : index
    %c0_323 = arith.constant 0 : index
    %c0_324 = arith.constant 0 : index
    %477 = vector.load %arg5[%c3_322, %c0_323, %c0_324] : memref<4x32x32xf32, #tpu.memory_space<vmem>>, vector<1x32x32xf32>
    %478 = vector.shape_cast %477 : vector<1x32x32xf32> to vector<32x32xf32>
    %cst_325 = arith.constant dense<0.000000e+00> : vector<8x32xf32>
    %479 = tpu.matmul %295, %478, %cst_325 {dimension_numbers = #tpu.dot_dimension_numbers<[1], [0], [0], [1], [0, 0, 1, 1], [], []>} : vector<8x32xf32>, vector<32x32xf32>, vector<8x32xf32> -> vector<8x32xf32>
    %480 = arith.addf %476, %479 : vector<8x32xf32>
    %481 = arith.addf %480, %25 : vector<8x32xf32>
    %482 = arith.negf %481 : vector<8x32xf32>
    %483 = math.exp %482 : vector<8x32xf32>
    %cst_326 = arith.constant 1.000000e+00 : f32
    %484 = vector.broadcast %cst_326 : f32 to vector<8x32xf32>
    %485 = arith.addf %484, %483 : vector<8x32xf32>
    %486 = arith.divf %484, %485 : vector<8x32xf32>
    %487 = arith.mulf %464, %293 : vector<8x32xf32>
    %488 = arith.mulf %451, %473 : vector<8x32xf32>
    %489 = arith.addf %487, %488 : vector<8x32xf32>
    %490 = math.tanh %489 : vector<8x32xf32>
    %491 = arith.mulf %486, %490 : vector<8x32xf32>
    %c0_327 = arith.constant 0 : index
    %c0_328 = arith.constant 0 : index
    %c0_329 = arith.constant 0 : index
    %c0_330 = arith.constant 0 : index
    %492 = vector.load %arg14[%c0_327, %c0_328, %c0_329, %c0_330] : memref<2x8x8x32xf32, #tpu.memory_space<vmem>>, vector<1x8x8x32xf32>
    %493 = vector.shape_cast %492 : vector<1x8x8x32xf32> to vector<8x8x32xf32>
    %494 = vector.shape_cast %491 : vector<8x32xf32> to vector<8x1x32xf32>
    %495 = vector.broadcast %494 : vector<8x1x32xf32> to vector<8x8x32xf32>
    %496 = arith.mulf %495, %493 : vector<8x8x32xf32>
    %cst_331 = arith.constant dense<0.000000e+00> : vector<8x8xf32>
    %497 = vector.multi_reduction <add>, %496, %cst_331 [2] : vector<8x8x32xf32> to vector<8x8xf32>
    %cst_332 = arith.constant dense<0xFF800000> : vector<8xf32>
    %498 = vector.multi_reduction <maximumf>, %497, %cst_332 [1] : vector<8x8xf32> to vector<8xf32>
    %499 = vector.shape_cast %498 : vector<8xf32> to vector<8x1xf32>
    %500 = vector.broadcast %499 : vector<8x1xf32> to vector<8x8xf32>
    %501 = arith.subf %497, %500 : vector<8x8xf32>
    %502 = math.exp %501 : vector<8x8xf32>
    %cst_333 = arith.constant dense<0.000000e+00> : vector<8xf32>
    %503 = vector.multi_reduction <add>, %502, %cst_333 [1] : vector<8x8xf32> to vector<8xf32>
    %504 = vector.shape_cast %503 : vector<8xf32> to vector<8x1xf32>
    %505 = vector.broadcast %504 : vector<8x1xf32> to vector<8x8xf32>
    %506 = arith.divf %502, %505 : vector<8x8xf32>
    %507 = vector.shape_cast %506 : vector<8x8xf32> to vector<8x8x1xf32>
    %508 = vector.broadcast %507 : vector<8x8x1xf32> to vector<8x8x32xf32>
    %509 = arith.mulf %508, %493 : vector<8x8x32xf32>
    %cst_334 = arith.constant dense<0.000000e+00> : vector<8x32xf32>
    %510 = vector.multi_reduction <add>, %509, %cst_334 [1] : vector<8x8x32xf32> to vector<8x32xf32>
    %c1_335 = arith.constant 1 : index
    %c0_336 = arith.constant 0 : index
    %c0_337 = arith.constant 0 : index
    %c0_338 = arith.constant 0 : index
    %511 = vector.load %arg14[%c1_335, %c0_336, %c0_337, %c0_338] : memref<2x8x8x32xf32, #tpu.memory_space<vmem>>, vector<1x8x8x32xf32>
    %512 = vector.shape_cast %511 : vector<1x8x8x32xf32> to vector<8x8x32xf32>
    %513 = vector.shape_cast %491 : vector<8x32xf32> to vector<8x1x32xf32>
    %514 = vector.broadcast %513 : vector<8x1x32xf32> to vector<8x8x32xf32>
    %515 = arith.mulf %514, %512 : vector<8x8x32xf32>
    %cst_339 = arith.constant dense<0.000000e+00> : vector<8x8xf32>
    %516 = vector.multi_reduction <add>, %515, %cst_339 [2] : vector<8x8x32xf32> to vector<8x8xf32>
    %cst_340 = arith.constant dense<0xFF800000> : vector<8xf32>
    %517 = vector.multi_reduction <maximumf>, %516, %cst_340 [1] : vector<8x8xf32> to vector<8xf32>
    %518 = vector.shape_cast %517 : vector<8xf32> to vector<8x1xf32>
    %519 = vector.broadcast %518 : vector<8x1xf32> to vector<8x8xf32>
    %520 = arith.subf %516, %519 : vector<8x8xf32>
    %521 = math.exp %520 : vector<8x8xf32>
    %cst_341 = arith.constant dense<0.000000e+00> : vector<8xf32>
    %522 = vector.multi_reduction <add>, %521, %cst_341 [1] : vector<8x8xf32> to vector<8xf32>
    %523 = vector.shape_cast %522 : vector<8xf32> to vector<8x1xf32>
    %524 = vector.broadcast %523 : vector<8x1xf32> to vector<8x8xf32>
    %525 = arith.divf %521, %524 : vector<8x8xf32>
    %526 = vector.shape_cast %525 : vector<8x8xf32> to vector<8x8x1xf32>
    %527 = vector.broadcast %526 : vector<8x8x1xf32> to vector<8x8x32xf32>
    %528 = arith.mulf %527, %512 : vector<8x8x32xf32>
    %cst_342 = arith.constant dense<0.000000e+00> : vector<8x32xf32>
    %529 = vector.multi_reduction <add>, %528, %cst_342 [1] : vector<8x8x32xf32> to vector<8x32xf32>
    %c0_343 = arith.constant 0 : index
    %c0_344 = arith.constant 0 : index
    %c0_345 = arith.constant 0 : index
    %530 = vector.load %arg7[%c0_343, %c0_344, %c0_345] : memref<3x32x32xf32, #tpu.memory_space<vmem>>, vector<1x32x32xf32>
    %531 = vector.shape_cast %530 : vector<1x32x32xf32> to vector<32x32xf32>
    %cst_346 = arith.constant dense<0.000000e+00> : vector<8x32xf32>
    %532 = tpu.matmul %491, %531, %cst_346 {dimension_numbers = #tpu.dot_dimension_numbers<[1], [0], [0], [1], [0, 0, 1, 1], [], []>} : vector<8x32xf32>, vector<32x32xf32>, vector<8x32xf32> -> vector<8x32xf32>
    %533 = arith.addf %44, %532 : vector<8x32xf32>
    %c1_347 = arith.constant 1 : index
    %c0_348 = arith.constant 0 : index
    %c0_349 = arith.constant 0 : index
    %534 = vector.load %arg7[%c1_347, %c0_348, %c0_349] : memref<3x32x32xf32, #tpu.memory_space<vmem>>, vector<1x32x32xf32>
    %535 = vector.shape_cast %534 : vector<1x32x32xf32> to vector<32x32xf32>
    %cst_350 = arith.constant dense<0.000000e+00> : vector<8x32xf32>
    %536 = tpu.matmul %510, %535, %cst_350 {dimension_numbers = #tpu.dot_dimension_numbers<[1], [0], [0], [1], [0, 0, 1, 1], [], []>} : vector<8x32xf32>, vector<32x32xf32>, vector<8x32xf32> -> vector<8x32xf32>
    %537 = arith.addf %533, %536 : vector<8x32xf32>
    %c2_351 = arith.constant 2 : index
    %c0_352 = arith.constant 0 : index
    %c0_353 = arith.constant 0 : index
    %538 = vector.load %arg7[%c2_351, %c0_352, %c0_353] : memref<3x32x32xf32, #tpu.memory_space<vmem>>, vector<1x32x32xf32>
    %539 = vector.shape_cast %538 : vector<1x32x32xf32> to vector<32x32xf32>
    %cst_354 = arith.constant dense<0.000000e+00> : vector<8x32xf32>
    %540 = tpu.matmul %529, %539, %cst_354 {dimension_numbers = #tpu.dot_dimension_numbers<[1], [0], [0], [1], [0, 0, 1, 1], [], []>} : vector<8x32xf32>, vector<32x32xf32>, vector<8x32xf32> -> vector<8x32xf32>
    %541 = arith.addf %537, %540 : vector<8x32xf32>
    %cst_355 = arith.constant dense<0xFF800000> : vector<8xf32>
    %542 = vector.multi_reduction <maximumf>, %541, %cst_355 [1] : vector<8x32xf32> to vector<8xf32>
    %543 = vector.shape_cast %542 : vector<8xf32> to vector<8x1xf32>
    %544 = vector.broadcast %543 : vector<8x1xf32> to vector<8x32xf32>
    %545 = arith.subf %541, %544 : vector<8x32xf32>
    %546 = math.exp %545 : vector<8x32xf32>
    %cst_356 = arith.constant dense<0.000000e+00> : vector<8xf32>
    %547 = vector.multi_reduction <add>, %546, %cst_356 [1] : vector<8x32xf32> to vector<8xf32>
    %548 = vector.shape_cast %547 : vector<8xf32> to vector<8x1xf32>
    %549 = vector.broadcast %548 : vector<8x1xf32> to vector<8x32xf32>
    %550 = arith.divf %546, %549 : vector<8x32xf32>
    %c0_357 = arith.constant 0 : index
    %c0_358 = arith.constant 0 : index
    %c0_359 = arith.constant 0 : index
    %551 = vector.load %arg9[%c0_357, %c0_358, %c0_359] : memref<4x32x32xf32, #tpu.memory_space<vmem>>, vector<1x32x32xf32>
    %552 = vector.shape_cast %551 : vector<1x32x32xf32> to vector<32x32xf32>
    %cst_360 = arith.constant dense<0.000000e+00> : vector<8x32xf32>
    %553 = tpu.matmul %550, %552, %cst_360 {dimension_numbers = #tpu.dot_dimension_numbers<[1], [0], [0], [1], [0, 0, 1, 1], [], []>} : vector<8x32xf32>, vector<32x32xf32>, vector<8x32xf32> -> vector<8x32xf32>
    %c0_361 = arith.constant 0 : index
    %c0_362 = arith.constant 0 : index
    %c0_363 = arith.constant 0 : index
    %554 = vector.load %arg10[%c0_361, %c0_362, %c0_363] : memref<4x32x32xf32, #tpu.memory_space<vmem>>, vector<1x32x32xf32>
    %555 = vector.shape_cast %554 : vector<1x32x32xf32> to vector<32x32xf32>
    %cst_364 = arith.constant dense<0.000000e+00> : vector<8x32xf32>
    %556 = tpu.matmul %407, %555, %cst_364 {dimension_numbers = #tpu.dot_dimension_numbers<[1], [0], [0], [1], [0, 0, 1, 1], [], []>} : vector<8x32xf32>, vector<32x32xf32>, vector<8x32xf32> -> vector<8x32xf32>
    %557 = arith.addf %553, %556 : vector<8x32xf32>
    %558 = arith.addf %557, %29 : vector<8x32xf32>
    %559 = arith.negf %558 : vector<8x32xf32>
    %560 = math.exp %559 : vector<8x32xf32>
    %cst_365 = arith.constant 1.000000e+00 : f32
    %561 = vector.broadcast %cst_365 : f32 to vector<8x32xf32>
    %562 = arith.addf %561, %560 : vector<8x32xf32>
    %563 = arith.divf %561, %562 : vector<8x32xf32>
    %c1_366 = arith.constant 1 : index
    %c0_367 = arith.constant 0 : index
    %c0_368 = arith.constant 0 : index
    %564 = vector.load %arg9[%c1_366, %c0_367, %c0_368] : memref<4x32x32xf32, #tpu.memory_space<vmem>>, vector<1x32x32xf32>
    %565 = vector.shape_cast %564 : vector<1x32x32xf32> to vector<32x32xf32>
    %cst_369 = arith.constant dense<0.000000e+00> : vector<8x32xf32>
    %566 = tpu.matmul %550, %565, %cst_369 {dimension_numbers = #tpu.dot_dimension_numbers<[1], [0], [0], [1], [0, 0, 1, 1], [], []>} : vector<8x32xf32>, vector<32x32xf32>, vector<8x32xf32> -> vector<8x32xf32>
    %c1_370 = arith.constant 1 : index
    %c0_371 = arith.constant 0 : index
    %c0_372 = arith.constant 0 : index
    %567 = vector.load %arg10[%c1_370, %c0_371, %c0_372] : memref<4x32x32xf32, #tpu.memory_space<vmem>>, vector<1x32x32xf32>
    %568 = vector.shape_cast %567 : vector<1x32x32xf32> to vector<32x32xf32>
    %cst_373 = arith.constant dense<0.000000e+00> : vector<8x32xf32>
    %569 = tpu.matmul %407, %568, %cst_373 {dimension_numbers = #tpu.dot_dimension_numbers<[1], [0], [0], [1], [0, 0, 1, 1], [], []>} : vector<8x32xf32>, vector<32x32xf32>, vector<8x32xf32> -> vector<8x32xf32>
    %570 = arith.addf %566, %569 : vector<8x32xf32>
    %571 = arith.addf %570, %33 : vector<8x32xf32>
    %572 = arith.negf %571 : vector<8x32xf32>
    %573 = math.exp %572 : vector<8x32xf32>
    %cst_374 = arith.constant 1.000000e+00 : f32
    %574 = vector.broadcast %cst_374 : f32 to vector<8x32xf32>
    %575 = arith.addf %574, %573 : vector<8x32xf32>
    %576 = arith.divf %574, %575 : vector<8x32xf32>
    %c2_375 = arith.constant 2 : index
    %c0_376 = arith.constant 0 : index
    %c0_377 = arith.constant 0 : index
    %577 = vector.load %arg9[%c2_375, %c0_376, %c0_377] : memref<4x32x32xf32, #tpu.memory_space<vmem>>, vector<1x32x32xf32>
    %578 = vector.shape_cast %577 : vector<1x32x32xf32> to vector<32x32xf32>
    %cst_378 = arith.constant dense<0.000000e+00> : vector<8x32xf32>
    %579 = tpu.matmul %550, %578, %cst_378 {dimension_numbers = #tpu.dot_dimension_numbers<[1], [0], [0], [1], [0, 0, 1, 1], [], []>} : vector<8x32xf32>, vector<32x32xf32>, vector<8x32xf32> -> vector<8x32xf32>
    %c2_379 = arith.constant 2 : index
    %c0_380 = arith.constant 0 : index
    %c0_381 = arith.constant 0 : index
    %580 = vector.load %arg10[%c2_379, %c0_380, %c0_381] : memref<4x32x32xf32, #tpu.memory_space<vmem>>, vector<1x32x32xf32>
    %581 = vector.shape_cast %580 : vector<1x32x32xf32> to vector<32x32xf32>
    %cst_382 = arith.constant dense<0.000000e+00> : vector<8x32xf32>
    %582 = tpu.matmul %407, %581, %cst_382 {dimension_numbers = #tpu.dot_dimension_numbers<[1], [0], [0], [1], [0, 0, 1, 1], [], []>} : vector<8x32xf32>, vector<32x32xf32>, vector<8x32xf32> -> vector<8x32xf32>
    %583 = arith.addf %579, %582 : vector<8x32xf32>
    %584 = arith.addf %583, %37 : vector<8x32xf32>
    %585 = math.tanh %584 : vector<8x32xf32>
    %c3_383 = arith.constant 3 : index
    %c0_384 = arith.constant 0 : index
    %c0_385 = arith.constant 0 : index
    %586 = vector.load %arg9[%c3_383, %c0_384, %c0_385] : memref<4x32x32xf32, #tpu.memory_space<vmem>>, vector<1x32x32xf32>
    %587 = vector.shape_cast %586 : vector<1x32x32xf32> to vector<32x32xf32>
    %cst_386 = arith.constant dense<0.000000e+00> : vector<8x32xf32>
    %588 = tpu.matmul %550, %587, %cst_386 {dimension_numbers = #tpu.dot_dimension_numbers<[1], [0], [0], [1], [0, 0, 1, 1], [], []>} : vector<8x32xf32>, vector<32x32xf32>, vector<8x32xf32> -> vector<8x32xf32>
    %c3_387 = arith.constant 3 : index
    %c0_388 = arith.constant 0 : index
    %c0_389 = arith.constant 0 : index
    %589 = vector.load %arg10[%c3_387, %c0_388, %c0_389] : memref<4x32x32xf32, #tpu.memory_space<vmem>>, vector<1x32x32xf32>
    %590 = vector.shape_cast %589 : vector<1x32x32xf32> to vector<32x32xf32>
    %cst_390 = arith.constant dense<0.000000e+00> : vector<8x32xf32>
    %591 = tpu.matmul %407, %590, %cst_390 {dimension_numbers = #tpu.dot_dimension_numbers<[1], [0], [0], [1], [0, 0, 1, 1], [], []>} : vector<8x32xf32>, vector<32x32xf32>, vector<8x32xf32> -> vector<8x32xf32>
    %592 = arith.addf %588, %591 : vector<8x32xf32>
    %593 = arith.addf %592, %41 : vector<8x32xf32>
    %594 = arith.negf %593 : vector<8x32xf32>
    %595 = math.exp %594 : vector<8x32xf32>
    %cst_391 = arith.constant 1.000000e+00 : f32
    %596 = vector.broadcast %cst_391 : f32 to vector<8x32xf32>
    %597 = arith.addf %596, %595 : vector<8x32xf32>
    %598 = arith.divf %596, %597 : vector<8x32xf32>
    %599 = arith.mulf %576, %405 : vector<8x32xf32>
    %600 = arith.mulf %563, %585 : vector<8x32xf32>
    %601 = arith.addf %599, %600 : vector<8x32xf32>
    %602 = math.tanh %601 : vector<8x32xf32>
    %603 = arith.mulf %598, %602 : vector<8x32xf32>
    %604 = vector.shape_cast %506 : vector<8x8xf32> to vector<8x8x1xf32>
    %cst_392 = arith.constant 1.000000e+00 : f32
    %605 = vector.broadcast %cst_392 : f32 to vector<8x8x1xf32>
    %606 = arith.subf %605, %604 : vector<8x8x1xf32>
    %c0_393 = arith.constant 0 : index
    %c0_394 = arith.constant 0 : index
    %c0_395 = arith.constant 0 : index
    %c0_396 = arith.constant 0 : index
    %607 = vector.load %arg14[%c0_393, %c0_394, %c0_395, %c0_396] : memref<2x8x8x32xf32, #tpu.memory_space<vmem>>, vector<1x8x8x32xf32>
    %608 = vector.shape_cast %607 : vector<1x8x8x32xf32> to vector<8x8x32xf32>
    %609 = vector.shape_cast %603 : vector<8x32xf32> to vector<8x1x32xf32>
    %610 = vector.broadcast %609 : vector<8x1x32xf32> to vector<8x8x32xf32>
    %611 = arith.addf %608, %610 : vector<8x8x32xf32>
    %612 = vector.broadcast %606 : vector<8x8x1xf32> to vector<8x8x32xf32>
    %613 = arith.mulf %612, %611 : vector<8x8x32xf32>
    %c0_397 = arith.constant 0 : index
    %c0_398 = arith.constant 0 : index
    %c0_399 = arith.constant 0 : index
    %c0_400 = arith.constant 0 : index
    %614 = vector.load %arg14[%c0_397, %c0_398, %c0_399, %c0_400] : memref<2x8x8x32xf32, #tpu.memory_space<vmem>>, vector<1x8x8x32xf32>
    %615 = vector.shape_cast %614 : vector<1x8x8x32xf32> to vector<8x8x32xf32>
    %616 = vector.shape_cast %613 : vector<8x8x32xf32> to vector<1x8x8x32xf32>
    tpu.vector_store %arg14[%c0_397, %c0_398, %c0_399, %c0_400], %616 {strides = array<i32>} : memref<2x8x8x32xf32, #tpu.memory_space<vmem>>, vector<1x8x8x32xf32>,
    %617 = vector.shape_cast %525 : vector<8x8xf32> to vector<8x8x1xf32>
    %cst_401 = arith.constant 1.000000e+00 : f32
    %618 = vector.broadcast %cst_401 : f32 to vector<8x8x1xf32>
    %619 = arith.subf %618, %617 : vector<8x8x1xf32>
    %c1_402 = arith.constant 1 : index
    %c0_403 = arith.constant 0 : index
    %c0_404 = arith.constant 0 : index
    %c0_405 = arith.constant 0 : index
    %620 = vector.load %arg14[%c1_402, %c0_403, %c0_404, %c0_405] : memref<2x8x8x32xf32, #tpu.memory_space<vmem>>, vector<1x8x8x32xf32>
    %621 = vector.shape_cast %620 : vector<1x8x8x32xf32> to vector<8x8x32xf32>
    %622 = vector.shape_cast %603 : vector<8x32xf32> to vector<8x1x32xf32>
    %623 = vector.broadcast %622 : vector<8x1x32xf32> to vector<8x8x32xf32>
    %624 = arith.addf %621, %623 : vector<8x8x32xf32>
    %625 = vector.broadcast %619 : vector<8x8x1xf32> to vector<8x8x32xf32>
    %626 = arith.mulf %625, %624 : vector<8x8x32xf32>
    %c1_406 = arith.constant 1 : index
    %c0_407 = arith.constant 0 : index
    %c0_408 = arith.constant 0 : index
    %c0_409 = arith.constant 0 : index
    %627 = vector.load %arg14[%c1_406, %c0_407, %c0_408, %c0_409] : memref<2x8x8x32xf32, #tpu.memory_space<vmem>>, vector<1x8x8x32xf32>
    %628 = vector.shape_cast %627 : vector<1x8x8x32xf32> to vector<8x8x32xf32>
    %629 = vector.shape_cast %626 : vector<8x8x32xf32> to vector<1x8x8x32xf32>
    tpu.vector_store %arg14[%c1_406, %c0_407, %c0_408, %c0_409], %629 {strides = array<i32>} : memref<2x8x8x32xf32, #tpu.memory_space<vmem>>, vector<1x8x8x32xf32>,
    %c2_410 = arith.constant 2 : index
    %c0_411 = arith.constant 0 : index
    %c0_412 = arith.constant 0 : index
    %630 = vector.load %arg12[%c2_410, %c0_411, %c0_412] : memref<5x8x32xf32, #tpu.memory_space<vmem>>, vector<1x8x32xf32>
    %631 = vector.shape_cast %630 : vector<1x8x32xf32> to vector<8x32xf32>
    %632 = vector.shape_cast %603 : vector<8x32xf32> to vector<1x8x32xf32>
    tpu.vector_store %arg12[%c2_410, %c0_411, %c0_412], %632 {strides = array<i32>} : memref<5x8x32xf32, #tpu.memory_space<vmem>>, vector<1x8x32xf32>,
    %c3_413 = arith.constant 3 : index
    %c0_414 = arith.constant 0 : index
    %c0_415 = arith.constant 0 : index
    %633 = vector.load %arg1[%c3_413, %c0_414, %c0_415] : memref<5x8x32xf32, #tpu.memory_space<vmem>>, vector<1x8x32xf32>
    %634 = vector.shape_cast %633 : vector<1x8x32xf32> to vector<8x32xf32>
    %c0_416 = arith.constant 0 : index
    %c0_417 = arith.constant 0 : index
    %c0_418 = arith.constant 0 : index
    %635 = vector.load %arg4[%c0_416, %c0_417, %c0_418] : memref<4x32x32xf32, #tpu.memory_space<vmem>>, vector<1x32x32xf32>
    %636 = vector.shape_cast %635 : vector<1x32x32xf32> to vector<32x32xf32>
    %cst_419 = arith.constant dense<0.000000e+00> : vector<8x32xf32>
    %637 = tpu.matmul %634, %636, %cst_419 {dimension_numbers = #tpu.dot_dimension_numbers<[1], [0], [0], [1], [0, 0, 1, 1], [], []>} : vector<8x32xf32>, vector<32x32xf32>, vector<8x32xf32> -> vector<8x32xf32>
    %c0_420 = arith.constant 0 : index
    %c0_421 = arith.constant 0 : index
    %c0_422 = arith.constant 0 : index
    %638 = vector.load %arg5[%c0_420, %c0_421, %c0_422] : memref<4x32x32xf32, #tpu.memory_space<vmem>>, vector<1x32x32xf32>
    %639 = vector.shape_cast %638 : vector<1x32x32xf32> to vector<32x32xf32>
    %cst_423 = arith.constant dense<0.000000e+00> : vector<8x32xf32>
    %640 = tpu.matmul %491, %639, %cst_423 {dimension_numbers = #tpu.dot_dimension_numbers<[1], [0], [0], [1], [0, 0, 1, 1], [], []>} : vector<8x32xf32>, vector<32x32xf32>, vector<8x32xf32> -> vector<8x32xf32>
    %641 = arith.addf %637, %640 : vector<8x32xf32>
    %642 = arith.addf %641, %13 : vector<8x32xf32>
    %643 = arith.negf %642 : vector<8x32xf32>
    %644 = math.exp %643 : vector<8x32xf32>
    %cst_424 = arith.constant 1.000000e+00 : f32
    %645 = vector.broadcast %cst_424 : f32 to vector<8x32xf32>
    %646 = arith.addf %645, %644 : vector<8x32xf32>
    %647 = arith.divf %645, %646 : vector<8x32xf32>
    %c1_425 = arith.constant 1 : index
    %c0_426 = arith.constant 0 : index
    %c0_427 = arith.constant 0 : index
    %648 = vector.load %arg4[%c1_425, %c0_426, %c0_427] : memref<4x32x32xf32, #tpu.memory_space<vmem>>, vector<1x32x32xf32>
    %649 = vector.shape_cast %648 : vector<1x32x32xf32> to vector<32x32xf32>
    %cst_428 = arith.constant dense<0.000000e+00> : vector<8x32xf32>
    %650 = tpu.matmul %634, %649, %cst_428 {dimension_numbers = #tpu.dot_dimension_numbers<[1], [0], [0], [1], [0, 0, 1, 1], [], []>} : vector<8x32xf32>, vector<32x32xf32>, vector<8x32xf32> -> vector<8x32xf32>
    %c1_429 = arith.constant 1 : index
    %c0_430 = arith.constant 0 : index
    %c0_431 = arith.constant 0 : index
    %651 = vector.load %arg5[%c1_429, %c0_430, %c0_431] : memref<4x32x32xf32, #tpu.memory_space<vmem>>, vector<1x32x32xf32>
    %652 = vector.shape_cast %651 : vector<1x32x32xf32> to vector<32x32xf32>
    %cst_432 = arith.constant dense<0.000000e+00> : vector<8x32xf32>
    %653 = tpu.matmul %491, %652, %cst_432 {dimension_numbers = #tpu.dot_dimension_numbers<[1], [0], [0], [1], [0, 0, 1, 1], [], []>} : vector<8x32xf32>, vector<32x32xf32>, vector<8x32xf32> -> vector<8x32xf32>
    %654 = arith.addf %650, %653 : vector<8x32xf32>
    %655 = arith.addf %654, %17 : vector<8x32xf32>
    %656 = arith.negf %655 : vector<8x32xf32>
    %657 = math.exp %656 : vector<8x32xf32>
    %cst_433 = arith.constant 1.000000e+00 : f32
    %658 = vector.broadcast %cst_433 : f32 to vector<8x32xf32>
    %659 = arith.addf %658, %657 : vector<8x32xf32>
    %660 = arith.divf %658, %659 : vector<8x32xf32>
    %c2_434 = arith.constant 2 : index
    %c0_435 = arith.constant 0 : index
    %c0_436 = arith.constant 0 : index
    %661 = vector.load %arg4[%c2_434, %c0_435, %c0_436] : memref<4x32x32xf32, #tpu.memory_space<vmem>>, vector<1x32x32xf32>
    %662 = vector.shape_cast %661 : vector<1x32x32xf32> to vector<32x32xf32>
    %cst_437 = arith.constant dense<0.000000e+00> : vector<8x32xf32>
    %663 = tpu.matmul %634, %662, %cst_437 {dimension_numbers = #tpu.dot_dimension_numbers<[1], [0], [0], [1], [0, 0, 1, 1], [], []>} : vector<8x32xf32>, vector<32x32xf32>, vector<8x32xf32> -> vector<8x32xf32>
    %c2_438 = arith.constant 2 : index
    %c0_439 = arith.constant 0 : index
    %c0_440 = arith.constant 0 : index
    %664 = vector.load %arg5[%c2_438, %c0_439, %c0_440] : memref<4x32x32xf32, #tpu.memory_space<vmem>>, vector<1x32x32xf32>
    %665 = vector.shape_cast %664 : vector<1x32x32xf32> to vector<32x32xf32>
    %cst_441 = arith.constant dense<0.000000e+00> : vector<8x32xf32>
    %666 = tpu.matmul %491, %665, %cst_441 {dimension_numbers = #tpu.dot_dimension_numbers<[1], [0], [0], [1], [0, 0, 1, 1], [], []>} : vector<8x32xf32>, vector<32x32xf32>, vector<8x32xf32> -> vector<8x32xf32>
    %667 = arith.addf %663, %666 : vector<8x32xf32>
    %668 = arith.addf %667, %21 : vector<8x32xf32>
    %669 = math.tanh %668 : vector<8x32xf32>
    %c3_442 = arith.constant 3 : index
    %c0_443 = arith.constant 0 : index
    %c0_444 = arith.constant 0 : index
    %670 = vector.load %arg4[%c3_442, %c0_443, %c0_444] : memref<4x32x32xf32, #tpu.memory_space<vmem>>, vector<1x32x32xf32>
    %671 = vector.shape_cast %670 : vector<1x32x32xf32> to vector<32x32xf32>
    %cst_445 = arith.constant dense<0.000000e+00> : vector<8x32xf32>
    %672 = tpu.matmul %634, %671, %cst_445 {dimension_numbers = #tpu.dot_dimension_numbers<[1], [0], [0], [1], [0, 0, 1, 1], [], []>} : vector<8x32xf32>, vector<32x32xf32>, vector<8x32xf32> -> vector<8x32xf32>
    %c3_446 = arith.constant 3 : index
    %c0_447 = arith.constant 0 : index
    %c0_448 = arith.constant 0 : index
    %673 = vector.load %arg5[%c3_446, %c0_447, %c0_448] : memref<4x32x32xf32, #tpu.memory_space<vmem>>, vector<1x32x32xf32>
    %674 = vector.shape_cast %673 : vector<1x32x32xf32> to vector<32x32xf32>
    %cst_449 = arith.constant dense<0.000000e+00> : vector<8x32xf32>
    %675 = tpu.matmul %491, %674, %cst_449 {dimension_numbers = #tpu.dot_dimension_numbers<[1], [0], [0], [1], [0, 0, 1, 1], [], []>} : vector<8x32xf32>, vector<32x32xf32>, vector<8x32xf32> -> vector<8x32xf32>
    %676 = arith.addf %672, %675 : vector<8x32xf32>
    %677 = arith.addf %676, %25 : vector<8x32xf32>
    %678 = arith.negf %677 : vector<8x32xf32>
    %679 = math.exp %678 : vector<8x32xf32>
    %cst_450 = arith.constant 1.000000e+00 : f32
    %680 = vector.broadcast %cst_450 : f32 to vector<8x32xf32>
    %681 = arith.addf %680, %679 : vector<8x32xf32>
    %682 = arith.divf %680, %681 : vector<8x32xf32>
    %683 = arith.mulf %660, %489 : vector<8x32xf32>
    %684 = arith.mulf %647, %669 : vector<8x32xf32>
    %685 = arith.addf %683, %684 : vector<8x32xf32>
    %686 = math.tanh %685 : vector<8x32xf32>
    %687 = arith.mulf %682, %686 : vector<8x32xf32>
    %c0_451 = arith.constant 0 : index
    %c0_452 = arith.constant 0 : index
    %c0_453 = arith.constant 0 : index
    %c0_454 = arith.constant 0 : index
    %688 = vector.load %arg14[%c0_451, %c0_452, %c0_453, %c0_454] : memref<2x8x8x32xf32, #tpu.memory_space<vmem>>, vector<1x8x8x32xf32>
    %689 = vector.shape_cast %688 : vector<1x8x8x32xf32> to vector<8x8x32xf32>
    %690 = vector.shape_cast %687 : vector<8x32xf32> to vector<8x1x32xf32>
    %691 = vector.broadcast %690 : vector<8x1x32xf32> to vector<8x8x32xf32>
    %692 = arith.mulf %691, %689 : vector<8x8x32xf32>
    %cst_455 = arith.constant dense<0.000000e+00> : vector<8x8xf32>
    %693 = vector.multi_reduction <add>, %692, %cst_455 [2] : vector<8x8x32xf32> to vector<8x8xf32>
    %cst_456 = arith.constant dense<0xFF800000> : vector<8xf32>
    %694 = vector.multi_reduction <maximumf>, %693, %cst_456 [1] : vector<8x8xf32> to vector<8xf32>
    %695 = vector.shape_cast %694 : vector<8xf32> to vector<8x1xf32>
    %696 = vector.broadcast %695 : vector<8x1xf32> to vector<8x8xf32>
    %697 = arith.subf %693, %696 : vector<8x8xf32>
    %698 = math.exp %697 : vector<8x8xf32>
    %cst_457 = arith.constant dense<0.000000e+00> : vector<8xf32>
    %699 = vector.multi_reduction <add>, %698, %cst_457 [1] : vector<8x8xf32> to vector<8xf32>
    %700 = vector.shape_cast %699 : vector<8xf32> to vector<8x1xf32>
    %701 = vector.broadcast %700 : vector<8x1xf32> to vector<8x8xf32>
    %702 = arith.divf %698, %701 : vector<8x8xf32>
    %703 = vector.shape_cast %702 : vector<8x8xf32> to vector<8x8x1xf32>
    %704 = vector.broadcast %703 : vector<8x8x1xf32> to vector<8x8x32xf32>
    %705 = arith.mulf %704, %689 : vector<8x8x32xf32>
    %cst_458 = arith.constant dense<0.000000e+00> : vector<8x32xf32>
    %706 = vector.multi_reduction <add>, %705, %cst_458 [1] : vector<8x8x32xf32> to vector<8x32xf32>
    %c1_459 = arith.constant 1 : index
    %c0_460 = arith.constant 0 : index
    %c0_461 = arith.constant 0 : index
    %c0_462 = arith.constant 0 : index
    %707 = vector.load %arg14[%c1_459, %c0_460, %c0_461, %c0_462] : memref<2x8x8x32xf32, #tpu.memory_space<vmem>>, vector<1x8x8x32xf32>
    %708 = vector.shape_cast %707 : vector<1x8x8x32xf32> to vector<8x8x32xf32>
    %709 = vector.shape_cast %687 : vector<8x32xf32> to vector<8x1x32xf32>
    %710 = vector.broadcast %709 : vector<8x1x32xf32> to vector<8x8x32xf32>
    %711 = arith.mulf %710, %708 : vector<8x8x32xf32>
    %cst_463 = arith.constant dense<0.000000e+00> : vector<8x8xf32>
    %712 = vector.multi_reduction <add>, %711, %cst_463 [2] : vector<8x8x32xf32> to vector<8x8xf32>
    %cst_464 = arith.constant dense<0xFF800000> : vector<8xf32>
    %713 = vector.multi_reduction <maximumf>, %712, %cst_464 [1] : vector<8x8xf32> to vector<8xf32>
    %714 = vector.shape_cast %713 : vector<8xf32> to vector<8x1xf32>
    %715 = vector.broadcast %714 : vector<8x1xf32> to vector<8x8xf32>
    %716 = arith.subf %712, %715 : vector<8x8xf32>
    %717 = math.exp %716 : vector<8x8xf32>
    %cst_465 = arith.constant dense<0.000000e+00> : vector<8xf32>
    %718 = vector.multi_reduction <add>, %717, %cst_465 [1] : vector<8x8xf32> to vector<8xf32>
    %719 = vector.shape_cast %718 : vector<8xf32> to vector<8x1xf32>
    %720 = vector.broadcast %719 : vector<8x1xf32> to vector<8x8xf32>
    %721 = arith.divf %717, %720 : vector<8x8xf32>
    %722 = vector.shape_cast %721 : vector<8x8xf32> to vector<8x8x1xf32>
    %723 = vector.broadcast %722 : vector<8x8x1xf32> to vector<8x8x32xf32>
    %724 = arith.mulf %723, %708 : vector<8x8x32xf32>
    %cst_466 = arith.constant dense<0.000000e+00> : vector<8x32xf32>
    %725 = vector.multi_reduction <add>, %724, %cst_466 [1] : vector<8x8x32xf32> to vector<8x32xf32>
    %c0_467 = arith.constant 0 : index
    %c0_468 = arith.constant 0 : index
    %c0_469 = arith.constant 0 : index
    %726 = vector.load %arg7[%c0_467, %c0_468, %c0_469] : memref<3x32x32xf32, #tpu.memory_space<vmem>>, vector<1x32x32xf32>
    %727 = vector.shape_cast %726 : vector<1x32x32xf32> to vector<32x32xf32>
    %cst_470 = arith.constant dense<0.000000e+00> : vector<8x32xf32>
    %728 = tpu.matmul %687, %727, %cst_470 {dimension_numbers = #tpu.dot_dimension_numbers<[1], [0], [0], [1], [0, 0, 1, 1], [], []>} : vector<8x32xf32>, vector<32x32xf32>, vector<8x32xf32> -> vector<8x32xf32>
    %729 = arith.addf %44, %728 : vector<8x32xf32>
    %c1_471 = arith.constant 1 : index
    %c0_472 = arith.constant 0 : index
    %c0_473 = arith.constant 0 : index
    %730 = vector.load %arg7[%c1_471, %c0_472, %c0_473] : memref<3x32x32xf32, #tpu.memory_space<vmem>>, vector<1x32x32xf32>
    %731 = vector.shape_cast %730 : vector<1x32x32xf32> to vector<32x32xf32>
    %cst_474 = arith.constant dense<0.000000e+00> : vector<8x32xf32>
    %732 = tpu.matmul %706, %731, %cst_474 {dimension_numbers = #tpu.dot_dimension_numbers<[1], [0], [0], [1], [0, 0, 1, 1], [], []>} : vector<8x32xf32>, vector<32x32xf32>, vector<8x32xf32> -> vector<8x32xf32>
    %733 = arith.addf %729, %732 : vector<8x32xf32>
    %c2_475 = arith.constant 2 : index
    %c0_476 = arith.constant 0 : index
    %c0_477 = arith.constant 0 : index
    %734 = vector.load %arg7[%c2_475, %c0_476, %c0_477] : memref<3x32x32xf32, #tpu.memory_space<vmem>>, vector<1x32x32xf32>
    %735 = vector.shape_cast %734 : vector<1x32x32xf32> to vector<32x32xf32>
    %cst_478 = arith.constant dense<0.000000e+00> : vector<8x32xf32>
    %736 = tpu.matmul %725, %735, %cst_478 {dimension_numbers = #tpu.dot_dimension_numbers<[1], [0], [0], [1], [0, 0, 1, 1], [], []>} : vector<8x32xf32>, vector<32x32xf32>, vector<8x32xf32> -> vector<8x32xf32>
    %737 = arith.addf %733, %736 : vector<8x32xf32>
    %cst_479 = arith.constant dense<0xFF800000> : vector<8xf32>
    %738 = vector.multi_reduction <maximumf>, %737, %cst_479 [1] : vector<8x32xf32> to vector<8xf32>
    %739 = vector.shape_cast %738 : vector<8xf32> to vector<8x1xf32>
    %740 = vector.broadcast %739 : vector<8x1xf32> to vector<8x32xf32>
    %741 = arith.subf %737, %740 : vector<8x32xf32>
    %742 = math.exp %741 : vector<8x32xf32>
    %cst_480 = arith.constant dense<0.000000e+00> : vector<8xf32>
    %743 = vector.multi_reduction <add>, %742, %cst_480 [1] : vector<8x32xf32> to vector<8xf32>
    %744 = vector.shape_cast %743 : vector<8xf32> to vector<8x1xf32>
    %745 = vector.broadcast %744 : vector<8x1xf32> to vector<8x32xf32>
    %746 = arith.divf %742, %745 : vector<8x32xf32>
    %c0_481 = arith.constant 0 : index
    %c0_482 = arith.constant 0 : index
    %c0_483 = arith.constant 0 : index
    %747 = vector.load %arg9[%c0_481, %c0_482, %c0_483] : memref<4x32x32xf32, #tpu.memory_space<vmem>>, vector<1x32x32xf32>
    %748 = vector.shape_cast %747 : vector<1x32x32xf32> to vector<32x32xf32>
    %cst_484 = arith.constant dense<0.000000e+00> : vector<8x32xf32>
    %749 = tpu.matmul %746, %748, %cst_484 {dimension_numbers = #tpu.dot_dimension_numbers<[1], [0], [0], [1], [0, 0, 1, 1], [], []>} : vector<8x32xf32>, vector<32x32xf32>, vector<8x32xf32> -> vector<8x32xf32>
    %c0_485 = arith.constant 0 : index
    %c0_486 = arith.constant 0 : index
    %c0_487 = arith.constant 0 : index
    %750 = vector.load %arg10[%c0_485, %c0_486, %c0_487] : memref<4x32x32xf32, #tpu.memory_space<vmem>>, vector<1x32x32xf32>
    %751 = vector.shape_cast %750 : vector<1x32x32xf32> to vector<32x32xf32>
    %cst_488 = arith.constant dense<0.000000e+00> : vector<8x32xf32>
    %752 = tpu.matmul %603, %751, %cst_488 {dimension_numbers = #tpu.dot_dimension_numbers<[1], [0], [0], [1], [0, 0, 1, 1], [], []>} : vector<8x32xf32>, vector<32x32xf32>, vector<8x32xf32> -> vector<8x32xf32>
    %753 = arith.addf %749, %752 : vector<8x32xf32>
    %754 = arith.addf %753, %29 : vector<8x32xf32>
    %755 = arith.negf %754 : vector<8x32xf32>
    %756 = math.exp %755 : vector<8x32xf32>
    %cst_489 = arith.constant 1.000000e+00 : f32
    %757 = vector.broadcast %cst_489 : f32 to vector<8x32xf32>
    %758 = arith.addf %757, %756 : vector<8x32xf32>
    %759 = arith.divf %757, %758 : vector<8x32xf32>
    %c1_490 = arith.constant 1 : index
    %c0_491 = arith.constant 0 : index
    %c0_492 = arith.constant 0 : index
    %760 = vector.load %arg9[%c1_490, %c0_491, %c0_492] : memref<4x32x32xf32, #tpu.memory_space<vmem>>, vector<1x32x32xf32>
    %761 = vector.shape_cast %760 : vector<1x32x32xf32> to vector<32x32xf32>
    %cst_493 = arith.constant dense<0.000000e+00> : vector<8x32xf32>
    %762 = tpu.matmul %746, %761, %cst_493 {dimension_numbers = #tpu.dot_dimension_numbers<[1], [0], [0], [1], [0, 0, 1, 1], [], []>} : vector<8x32xf32>, vector<32x32xf32>, vector<8x32xf32> -> vector<8x32xf32>
    %c1_494 = arith.constant 1 : index
    %c0_495 = arith.constant 0 : index
    %c0_496 = arith.constant 0 : index
    %763 = vector.load %arg10[%c1_494, %c0_495, %c0_496] : memref<4x32x32xf32, #tpu.memory_space<vmem>>, vector<1x32x32xf32>
    %764 = vector.shape_cast %763 : vector<1x32x32xf32> to vector<32x32xf32>
    %cst_497 = arith.constant dense<0.000000e+00> : vector<8x32xf32>
    %765 = tpu.matmul %603, %764, %cst_497 {dimension_numbers = #tpu.dot_dimension_numbers<[1], [0], [0], [1], [0, 0, 1, 1], [], []>} : vector<8x32xf32>, vector<32x32xf32>, vector<8x32xf32> -> vector<8x32xf32>
    %766 = arith.addf %762, %765 : vector<8x32xf32>
    %767 = arith.addf %766, %33 : vector<8x32xf32>
    %768 = arith.negf %767 : vector<8x32xf32>
    %769 = math.exp %768 : vector<8x32xf32>
    %cst_498 = arith.constant 1.000000e+00 : f32
    %770 = vector.broadcast %cst_498 : f32 to vector<8x32xf32>
    %771 = arith.addf %770, %769 : vector<8x32xf32>
    %772 = arith.divf %770, %771 : vector<8x32xf32>
    %c2_499 = arith.constant 2 : index
    %c0_500 = arith.constant 0 : index
    %c0_501 = arith.constant 0 : index
    %773 = vector.load %arg9[%c2_499, %c0_500, %c0_501] : memref<4x32x32xf32, #tpu.memory_space<vmem>>, vector<1x32x32xf32>
    %774 = vector.shape_cast %773 : vector<1x32x32xf32> to vector<32x32xf32>
    %cst_502 = arith.constant dense<0.000000e+00> : vector<8x32xf32>
    %775 = tpu.matmul %746, %774, %cst_502 {dimension_numbers = #tpu.dot_dimension_numbers<[1], [0], [0], [1], [0, 0, 1, 1], [], []>} : vector<8x32xf32>, vector<32x32xf32>, vector<8x32xf32> -> vector<8x32xf32>
    %c2_503 = arith.constant 2 : index
    %c0_504 = arith.constant 0 : index
    %c0_505 = arith.constant 0 : index
    %776 = vector.load %arg10[%c2_503, %c0_504, %c0_505] : memref<4x32x32xf32, #tpu.memory_space<vmem>>, vector<1x32x32xf32>
    %777 = vector.shape_cast %776 : vector<1x32x32xf32> to vector<32x32xf32>
    %cst_506 = arith.constant dense<0.000000e+00> : vector<8x32xf32>
    %778 = tpu.matmul %603, %777, %cst_506 {dimension_numbers = #tpu.dot_dimension_numbers<[1], [0], [0], [1], [0, 0, 1, 1], [], []>} : vector<8x32xf32>, vector<32x32xf32>, vector<8x32xf32> -> vector<8x32xf32>
    %779 = arith.addf %775, %778 : vector<8x32xf32>
    %780 = arith.addf %779, %37 : vector<8x32xf32>
    %781 = math.tanh %780 : vector<8x32xf32>
    %c3_507 = arith.constant 3 : index
    %c0_508 = arith.constant 0 : index
    %c0_509 = arith.constant 0 : index
    %782 = vector.load %arg9[%c3_507, %c0_508, %c0_509] : memref<4x32x32xf32, #tpu.memory_space<vmem>>, vector<1x32x32xf32>
    %783 = vector.shape_cast %782 : vector<1x32x32xf32> to vector<32x32xf32>
    %cst_510 = arith.constant dense<0.000000e+00> : vector<8x32xf32>
    %784 = tpu.matmul %746, %783, %cst_510 {dimension_numbers = #tpu.dot_dimension_numbers<[1], [0], [0], [1], [0, 0, 1, 1], [], []>} : vector<8x32xf32>, vector<32x32xf32>, vector<8x32xf32> -> vector<8x32xf32>
    %c3_511 = arith.constant 3 : index
    %c0_512 = arith.constant 0 : index
    %c0_513 = arith.constant 0 : index
    %785 = vector.load %arg10[%c3_511, %c0_512, %c0_513] : memref<4x32x32xf32, #tpu.memory_space<vmem>>, vector<1x32x32xf32>
    %786 = vector.shape_cast %785 : vector<1x32x32xf32> to vector<32x32xf32>
    %cst_514 = arith.constant dense<0.000000e+00> : vector<8x32xf32>
    %787 = tpu.matmul %603, %786, %cst_514 {dimension_numbers = #tpu.dot_dimension_numbers<[1], [0], [0], [1], [0, 0, 1, 1], [], []>} : vector<8x32xf32>, vector<32x32xf32>, vector<8x32xf32> -> vector<8x32xf32>
    %788 = arith.addf %784, %787 : vector<8x32xf32>
    %789 = arith.addf %788, %41 : vector<8x32xf32>
    %790 = arith.negf %789 : vector<8x32xf32>
    %791 = math.exp %790 : vector<8x32xf32>
    %cst_515 = arith.constant 1.000000e+00 : f32
    %792 = vector.broadcast %cst_515 : f32 to vector<8x32xf32>
    %793 = arith.addf %792, %791 : vector<8x32xf32>
    %794 = arith.divf %792, %793 : vector<8x32xf32>
    %795 = arith.mulf %772, %601 : vector<8x32xf32>
    %796 = arith.mulf %759, %781 : vector<8x32xf32>
    %797 = arith.addf %795, %796 : vector<8x32xf32>
    %798 = math.tanh %797 : vector<8x32xf32>
    %799 = arith.mulf %794, %798 : vector<8x32xf32>
    %800 = vector.shape_cast %702 : vector<8x8xf32> to vector<8x8x1xf32>
    %cst_516 = arith.constant 1.000000e+00 : f32
    %801 = vector.broadcast %cst_516 : f32 to vector<8x8x1xf32>
    %802 = arith.subf %801, %800 : vector<8x8x1xf32>
    %c0_517 = arith.constant 0 : index
    %c0_518 = arith.constant 0 : index
    %c0_519 = arith.constant 0 : index
    %c0_520 = arith.constant 0 : index
    %803 = vector.load %arg14[%c0_517, %c0_518, %c0_519, %c0_520] : memref<2x8x8x32xf32, #tpu.memory_space<vmem>>, vector<1x8x8x32xf32>
    %804 = vector.shape_cast %803 : vector<1x8x8x32xf32> to vector<8x8x32xf32>
    %805 = vector.shape_cast %799 : vector<8x32xf32> to vector<8x1x32xf32>
    %806 = vector.broadcast %805 : vector<8x1x32xf32> to vector<8x8x32xf32>
    %807 = arith.addf %804, %806 : vector<8x8x32xf32>
    %808 = vector.broadcast %802 : vector<8x8x1xf32> to vector<8x8x32xf32>
    %809 = arith.mulf %808, %807 : vector<8x8x32xf32>
    %c0_521 = arith.constant 0 : index
    %c0_522 = arith.constant 0 : index
    %c0_523 = arith.constant 0 : index
    %c0_524 = arith.constant 0 : index
    %810 = vector.load %arg14[%c0_521, %c0_522, %c0_523, %c0_524] : memref<2x8x8x32xf32, #tpu.memory_space<vmem>>, vector<1x8x8x32xf32>
    %811 = vector.shape_cast %810 : vector<1x8x8x32xf32> to vector<8x8x32xf32>
    %812 = vector.shape_cast %809 : vector<8x8x32xf32> to vector<1x8x8x32xf32>
    tpu.vector_store %arg14[%c0_521, %c0_522, %c0_523, %c0_524], %812 {strides = array<i32>} : memref<2x8x8x32xf32, #tpu.memory_space<vmem>>, vector<1x8x8x32xf32>,
    %813 = vector.shape_cast %721 : vector<8x8xf32> to vector<8x8x1xf32>
    %cst_525 = arith.constant 1.000000e+00 : f32
    %814 = vector.broadcast %cst_525 : f32 to vector<8x8x1xf32>
    %815 = arith.subf %814, %813 : vector<8x8x1xf32>
    %c1_526 = arith.constant 1 : index
    %c0_527 = arith.constant 0 : index
    %c0_528 = arith.constant 0 : index
    %c0_529 = arith.constant 0 : index
    %816 = vector.load %arg14[%c1_526, %c0_527, %c0_528, %c0_529] : memref<2x8x8x32xf32, #tpu.memory_space<vmem>>, vector<1x8x8x32xf32>
    %817 = vector.shape_cast %816 : vector<1x8x8x32xf32> to vector<8x8x32xf32>
    %818 = vector.shape_cast %799 : vector<8x32xf32> to vector<8x1x32xf32>
    %819 = vector.broadcast %818 : vector<8x1x32xf32> to vector<8x8x32xf32>
    %820 = arith.addf %817, %819 : vector<8x8x32xf32>
    %821 = vector.broadcast %815 : vector<8x8x1xf32> to vector<8x8x32xf32>
    %822 = arith.mulf %821, %820 : vector<8x8x32xf32>
    %c1_530 = arith.constant 1 : index
    %c0_531 = arith.constant 0 : index
    %c0_532 = arith.constant 0 : index
    %c0_533 = arith.constant 0 : index
    %823 = vector.load %arg14[%c1_530, %c0_531, %c0_532, %c0_533] : memref<2x8x8x32xf32, #tpu.memory_space<vmem>>, vector<1x8x8x32xf32>
    %824 = vector.shape_cast %823 : vector<1x8x8x32xf32> to vector<8x8x32xf32>
    %825 = vector.shape_cast %822 : vector<8x8x32xf32> to vector<1x8x8x32xf32>
    tpu.vector_store %arg14[%c1_530, %c0_531, %c0_532, %c0_533], %825 {strides = array<i32>} : memref<2x8x8x32xf32, #tpu.memory_space<vmem>>, vector<1x8x8x32xf32>,
    %c3_534 = arith.constant 3 : index
    %c0_535 = arith.constant 0 : index
    %c0_536 = arith.constant 0 : index
    %826 = vector.load %arg12[%c3_534, %c0_535, %c0_536] : memref<5x8x32xf32, #tpu.memory_space<vmem>>, vector<1x8x32xf32>
    %827 = vector.shape_cast %826 : vector<1x8x32xf32> to vector<8x32xf32>
    %828 = vector.shape_cast %799 : vector<8x32xf32> to vector<1x8x32xf32>
    tpu.vector_store %arg12[%c3_534, %c0_535, %c0_536], %828 {strides = array<i32>} : memref<5x8x32xf32, #tpu.memory_space<vmem>>, vector<1x8x32xf32>,
    %c4 = arith.constant 4 : index
    %c0_537 = arith.constant 0 : index
    %c0_538 = arith.constant 0 : index
    %829 = vector.load %arg1[%c4, %c0_537, %c0_538] : memref<5x8x32xf32, #tpu.memory_space<vmem>>, vector<1x8x32xf32>
    %830 = vector.shape_cast %829 : vector<1x8x32xf32> to vector<8x32xf32>
    %c0_539 = arith.constant 0 : index
    %c0_540 = arith.constant 0 : index
    %c0_541 = arith.constant 0 : index
    %831 = vector.load %arg4[%c0_539, %c0_540, %c0_541] : memref<4x32x32xf32, #tpu.memory_space<vmem>>, vector<1x32x32xf32>
    %832 = vector.shape_cast %831 : vector<1x32x32xf32> to vector<32x32xf32>
    %cst_542 = arith.constant dense<0.000000e+00> : vector<8x32xf32>
    %833 = tpu.matmul %830, %832, %cst_542 {dimension_numbers = #tpu.dot_dimension_numbers<[1], [0], [0], [1], [0, 0, 1, 1], [], []>} : vector<8x32xf32>, vector<32x32xf32>, vector<8x32xf32> -> vector<8x32xf32>
    %c0_543 = arith.constant 0 : index
    %c0_544 = arith.constant 0 : index
    %c0_545 = arith.constant 0 : index
    %834 = vector.load %arg5[%c0_543, %c0_544, %c0_545] : memref<4x32x32xf32, #tpu.memory_space<vmem>>, vector<1x32x32xf32>
    %835 = vector.shape_cast %834 : vector<1x32x32xf32> to vector<32x32xf32>
    %cst_546 = arith.constant dense<0.000000e+00> : vector<8x32xf32>
    %836 = tpu.matmul %687, %835, %cst_546 {dimension_numbers = #tpu.dot_dimension_numbers<[1], [0], [0], [1], [0, 0, 1, 1], [], []>} : vector<8x32xf32>, vector<32x32xf32>, vector<8x32xf32> -> vector<8x32xf32>
    %837 = arith.addf %833, %836 : vector<8x32xf32>
    %838 = arith.addf %837, %13 : vector<8x32xf32>
    %839 = arith.negf %838 : vector<8x32xf32>
    %840 = math.exp %839 : vector<8x32xf32>
    %cst_547 = arith.constant 1.000000e+00 : f32
    %841 = vector.broadcast %cst_547 : f32 to vector<8x32xf32>
    %842 = arith.addf %841, %840 : vector<8x32xf32>
    %843 = arith.divf %841, %842 : vector<8x32xf32>
    %c1_548 = arith.constant 1 : index
    %c0_549 = arith.constant 0 : index
    %c0_550 = arith.constant 0 : index
    %844 = vector.load %arg4[%c1_548, %c0_549, %c0_550] : memref<4x32x32xf32, #tpu.memory_space<vmem>>, vector<1x32x32xf32>
    %845 = vector.shape_cast %844 : vector<1x32x32xf32> to vector<32x32xf32>
    %cst_551 = arith.constant dense<0.000000e+00> : vector<8x32xf32>
    %846 = tpu.matmul %830, %845, %cst_551 {dimension_numbers = #tpu.dot_dimension_numbers<[1], [0], [0], [1], [0, 0, 1, 1], [], []>} : vector<8x32xf32>, vector<32x32xf32>, vector<8x32xf32> -> vector<8x32xf32>
    %c1_552 = arith.constant 1 : index
    %c0_553 = arith.constant 0 : index
    %c0_554 = arith.constant 0 : index
    %847 = vector.load %arg5[%c1_552, %c0_553, %c0_554] : memref<4x32x32xf32, #tpu.memory_space<vmem>>, vector<1x32x32xf32>
    %848 = vector.shape_cast %847 : vector<1x32x32xf32> to vector<32x32xf32>
    %cst_555 = arith.constant dense<0.000000e+00> : vector<8x32xf32>
    %849 = tpu.matmul %687, %848, %cst_555 {dimension_numbers = #tpu.dot_dimension_numbers<[1], [0], [0], [1], [0, 0, 1, 1], [], []>} : vector<8x32xf32>, vector<32x32xf32>, vector<8x32xf32> -> vector<8x32xf32>
    %850 = arith.addf %846, %849 : vector<8x32xf32>
    %851 = arith.addf %850, %17 : vector<8x32xf32>
    %852 = arith.negf %851 : vector<8x32xf32>
    %853 = math.exp %852 : vector<8x32xf32>
    %cst_556 = arith.constant 1.000000e+00 : f32
    %854 = vector.broadcast %cst_556 : f32 to vector<8x32xf32>
    %855 = arith.addf %854, %853 : vector<8x32xf32>
    %856 = arith.divf %854, %855 : vector<8x32xf32>
    %c2_557 = arith.constant 2 : index
    %c0_558 = arith.constant 0 : index
    %c0_559 = arith.constant 0 : index
    %857 = vector.load %arg4[%c2_557, %c0_558, %c0_559] : memref<4x32x32xf32, #tpu.memory_space<vmem>>, vector<1x32x32xf32>
    %858 = vector.shape_cast %857 : vector<1x32x32xf32> to vector<32x32xf32>
    %cst_560 = arith.constant dense<0.000000e+00> : vector<8x32xf32>
    %859 = tpu.matmul %830, %858, %cst_560 {dimension_numbers = #tpu.dot_dimension_numbers<[1], [0], [0], [1], [0, 0, 1, 1], [], []>} : vector<8x32xf32>, vector<32x32xf32>, vector<8x32xf32> -> vector<8x32xf32>
    %c2_561 = arith.constant 2 : index
    %c0_562 = arith.constant 0 : index
    %c0_563 = arith.constant 0 : index
    %860 = vector.load %arg5[%c2_561, %c0_562, %c0_563] : memref<4x32x32xf32, #tpu.memory_space<vmem>>, vector<1x32x32xf32>
    %861 = vector.shape_cast %860 : vector<1x32x32xf32> to vector<32x32xf32>
    %cst_564 = arith.constant dense<0.000000e+00> : vector<8x32xf32>
    %862 = tpu.matmul %687, %861, %cst_564 {dimension_numbers = #tpu.dot_dimension_numbers<[1], [0], [0], [1], [0, 0, 1, 1], [], []>} : vector<8x32xf32>, vector<32x32xf32>, vector<8x32xf32> -> vector<8x32xf32>
    %863 = arith.addf %859, %862 : vector<8x32xf32>
    %864 = arith.addf %863, %21 : vector<8x32xf32>
    %865 = math.tanh %864 : vector<8x32xf32>
    %c3_565 = arith.constant 3 : index
    %c0_566 = arith.constant 0 : index
    %c0_567 = arith.constant 0 : index
    %866 = vector.load %arg4[%c3_565, %c0_566, %c0_567] : memref<4x32x32xf32, #tpu.memory_space<vmem>>, vector<1x32x32xf32>
    %867 = vector.shape_cast %866 : vector<1x32x32xf32> to vector<32x32xf32>
    %cst_568 = arith.constant dense<0.000000e+00> : vector<8x32xf32>
    %868 = tpu.matmul %830, %867, %cst_568 {dimension_numbers = #tpu.dot_dimension_numbers<[1], [0], [0], [1], [0, 0, 1, 1], [], []>} : vector<8x32xf32>, vector<32x32xf32>, vector<8x32xf32> -> vector<8x32xf32>
    %c3_569 = arith.constant 3 : index
    %c0_570 = arith.constant 0 : index
    %c0_571 = arith.constant 0 : index
    %869 = vector.load %arg5[%c3_569, %c0_570, %c0_571] : memref<4x32x32xf32, #tpu.memory_space<vmem>>, vector<1x32x32xf32>
    %870 = vector.shape_cast %869 : vector<1x32x32xf32> to vector<32x32xf32>
    %cst_572 = arith.constant dense<0.000000e+00> : vector<8x32xf32>
    %871 = tpu.matmul %687, %870, %cst_572 {dimension_numbers = #tpu.dot_dimension_numbers<[1], [0], [0], [1], [0, 0, 1, 1], [], []>} : vector<8x32xf32>, vector<32x32xf32>, vector<8x32xf32> -> vector<8x32xf32>
    %872 = arith.addf %868, %871 : vector<8x32xf32>
    %873 = arith.addf %872, %25 : vector<8x32xf32>
    %874 = arith.negf %873 : vector<8x32xf32>
    %875 = math.exp %874 : vector<8x32xf32>
    %cst_573 = arith.constant 1.000000e+00 : f32
    %876 = vector.broadcast %cst_573 : f32 to vector<8x32xf32>
    %877 = arith.addf %876, %875 : vector<8x32xf32>
    %878 = arith.divf %876, %877 : vector<8x32xf32>
    %879 = arith.mulf %856, %685 : vector<8x32xf32>
    %880 = arith.mulf %843, %865 : vector<8x32xf32>
    %881 = arith.addf %879, %880 : vector<8x32xf32>
    %882 = math.tanh %881 : vector<8x32xf32>
    %883 = arith.mulf %878, %882 : vector<8x32xf32>
    %c0_574 = arith.constant 0 : index
    %c0_575 = arith.constant 0 : index
    %c0_576 = arith.constant 0 : index
    %c0_577 = arith.constant 0 : index
    %884 = vector.load %arg14[%c0_574, %c0_575, %c0_576, %c0_577] : memref<2x8x8x32xf32, #tpu.memory_space<vmem>>, vector<1x8x8x32xf32>
    %885 = vector.shape_cast %884 : vector<1x8x8x32xf32> to vector<8x8x32xf32>
    %886 = vector.shape_cast %883 : vector<8x32xf32> to vector<8x1x32xf32>
    %887 = vector.broadcast %886 : vector<8x1x32xf32> to vector<8x8x32xf32>
    %888 = arith.mulf %887, %885 : vector<8x8x32xf32>
    %cst_578 = arith.constant dense<0.000000e+00> : vector<8x8xf32>
    %889 = vector.multi_reduction <add>, %888, %cst_578 [2] : vector<8x8x32xf32> to vector<8x8xf32>
    %cst_579 = arith.constant dense<0xFF800000> : vector<8xf32>
    %890 = vector.multi_reduction <maximumf>, %889, %cst_579 [1] : vector<8x8xf32> to vector<8xf32>
    %891 = vector.shape_cast %890 : vector<8xf32> to vector<8x1xf32>
    %892 = vector.broadcast %891 : vector<8x1xf32> to vector<8x8xf32>
    %893 = arith.subf %889, %892 : vector<8x8xf32>
    %894 = math.exp %893 : vector<8x8xf32>
    %cst_580 = arith.constant dense<0.000000e+00> : vector<8xf32>
    %895 = vector.multi_reduction <add>, %894, %cst_580 [1] : vector<8x8xf32> to vector<8xf32>
    %896 = vector.shape_cast %895 : vector<8xf32> to vector<8x1xf32>
    %897 = vector.broadcast %896 : vector<8x1xf32> to vector<8x8xf32>
    %898 = arith.divf %894, %897 : vector<8x8xf32>
    %899 = vector.shape_cast %898 : vector<8x8xf32> to vector<8x8x1xf32>
    %900 = vector.broadcast %899 : vector<8x8x1xf32> to vector<8x8x32xf32>
    %901 = arith.mulf %900, %885 : vector<8x8x32xf32>
    %cst_581 = arith.constant dense<0.000000e+00> : vector<8x32xf32>
    %902 = vector.multi_reduction <add>, %901, %cst_581 [1] : vector<8x8x32xf32> to vector<8x32xf32>
    %c1_582 = arith.constant 1 : index
    %c0_583 = arith.constant 0 : index
    %c0_584 = arith.constant 0 : index
    %c0_585 = arith.constant 0 : index
    %903 = vector.load %arg14[%c1_582, %c0_583, %c0_584, %c0_585] : memref<2x8x8x32xf32, #tpu.memory_space<vmem>>, vector<1x8x8x32xf32>
    %904 = vector.shape_cast %903 : vector<1x8x8x32xf32> to vector<8x8x32xf32>
    %905 = vector.shape_cast %883 : vector<8x32xf32> to vector<8x1x32xf32>
    %906 = vector.broadcast %905 : vector<8x1x32xf32> to vector<8x8x32xf32>
    %907 = arith.mulf %906, %904 : vector<8x8x32xf32>
    %cst_586 = arith.constant dense<0.000000e+00> : vector<8x8xf32>
    %908 = vector.multi_reduction <add>, %907, %cst_586 [2] : vector<8x8x32xf32> to vector<8x8xf32>
    %cst_587 = arith.constant dense<0xFF800000> : vector<8xf32>
    %909 = vector.multi_reduction <maximumf>, %908, %cst_587 [1] : vector<8x8xf32> to vector<8xf32>
    %910 = vector.shape_cast %909 : vector<8xf32> to vector<8x1xf32>
    %911 = vector.broadcast %910 : vector<8x1xf32> to vector<8x8xf32>
    %912 = arith.subf %908, %911 : vector<8x8xf32>
    %913 = math.exp %912 : vector<8x8xf32>
    %cst_588 = arith.constant dense<0.000000e+00> : vector<8xf32>
    %914 = vector.multi_reduction <add>, %913, %cst_588 [1] : vector<8x8xf32> to vector<8xf32>
    %915 = vector.shape_cast %914 : vector<8xf32> to vector<8x1xf32>
    %916 = vector.broadcast %915 : vector<8x1xf32> to vector<8x8xf32>
    %917 = arith.divf %913, %916 : vector<8x8xf32>
    %918 = vector.shape_cast %917 : vector<8x8xf32> to vector<8x8x1xf32>
    %919 = vector.broadcast %918 : vector<8x8x1xf32> to vector<8x8x32xf32>
    %920 = arith.mulf %919, %904 : vector<8x8x32xf32>
    %cst_589 = arith.constant dense<0.000000e+00> : vector<8x32xf32>
    %921 = vector.multi_reduction <add>, %920, %cst_589 [1] : vector<8x8x32xf32> to vector<8x32xf32>
    %c0_590 = arith.constant 0 : index
    %c0_591 = arith.constant 0 : index
    %c0_592 = arith.constant 0 : index
    %922 = vector.load %arg7[%c0_590, %c0_591, %c0_592] : memref<3x32x32xf32, #tpu.memory_space<vmem>>, vector<1x32x32xf32>
    %923 = vector.shape_cast %922 : vector<1x32x32xf32> to vector<32x32xf32>
    %cst_593 = arith.constant dense<0.000000e+00> : vector<8x32xf32>
    %924 = tpu.matmul %883, %923, %cst_593 {dimension_numbers = #tpu.dot_dimension_numbers<[1], [0], [0], [1], [0, 0, 1, 1], [], []>} : vector<8x32xf32>, vector<32x32xf32>, vector<8x32xf32> -> vector<8x32xf32>
    %925 = arith.addf %44, %924 : vector<8x32xf32>
    %c1_594 = arith.constant 1 : index
    %c0_595 = arith.constant 0 : index
    %c0_596 = arith.constant 0 : index
    %926 = vector.load %arg7[%c1_594, %c0_595, %c0_596] : memref<3x32x32xf32, #tpu.memory_space<vmem>>, vector<1x32x32xf32>
    %927 = vector.shape_cast %926 : vector<1x32x32xf32> to vector<32x32xf32>
    %cst_597 = arith.constant dense<0.000000e+00> : vector<8x32xf32>
    %928 = tpu.matmul %902, %927, %cst_597 {dimension_numbers = #tpu.dot_dimension_numbers<[1], [0], [0], [1], [0, 0, 1, 1], [], []>} : vector<8x32xf32>, vector<32x32xf32>, vector<8x32xf32> -> vector<8x32xf32>
    %929 = arith.addf %925, %928 : vector<8x32xf32>
    %c2_598 = arith.constant 2 : index
    %c0_599 = arith.constant 0 : index
    %c0_600 = arith.constant 0 : index
    %930 = vector.load %arg7[%c2_598, %c0_599, %c0_600] : memref<3x32x32xf32, #tpu.memory_space<vmem>>, vector<1x32x32xf32>
    %931 = vector.shape_cast %930 : vector<1x32x32xf32> to vector<32x32xf32>
    %cst_601 = arith.constant dense<0.000000e+00> : vector<8x32xf32>
    %932 = tpu.matmul %921, %931, %cst_601 {dimension_numbers = #tpu.dot_dimension_numbers<[1], [0], [0], [1], [0, 0, 1, 1], [], []>} : vector<8x32xf32>, vector<32x32xf32>, vector<8x32xf32> -> vector<8x32xf32>
    %933 = arith.addf %929, %932 : vector<8x32xf32>
    %cst_602 = arith.constant dense<0xFF800000> : vector<8xf32>
    %934 = vector.multi_reduction <maximumf>, %933, %cst_602 [1] : vector<8x32xf32> to vector<8xf32>
    %935 = vector.shape_cast %934 : vector<8xf32> to vector<8x1xf32>
    %936 = vector.broadcast %935 : vector<8x1xf32> to vector<8x32xf32>
    %937 = arith.subf %933, %936 : vector<8x32xf32>
    %938 = math.exp %937 : vector<8x32xf32>
    %cst_603 = arith.constant dense<0.000000e+00> : vector<8xf32>
    %939 = vector.multi_reduction <add>, %938, %cst_603 [1] : vector<8x32xf32> to vector<8xf32>
    %940 = vector.shape_cast %939 : vector<8xf32> to vector<8x1xf32>
    %941 = vector.broadcast %940 : vector<8x1xf32> to vector<8x32xf32>
    %942 = arith.divf %938, %941 : vector<8x32xf32>
    %c0_604 = arith.constant 0 : index
    %c0_605 = arith.constant 0 : index
    %c0_606 = arith.constant 0 : index
    %943 = vector.load %arg9[%c0_604, %c0_605, %c0_606] : memref<4x32x32xf32, #tpu.memory_space<vmem>>, vector<1x32x32xf32>
    %944 = vector.shape_cast %943 : vector<1x32x32xf32> to vector<32x32xf32>
    %cst_607 = arith.constant dense<0.000000e+00> : vector<8x32xf32>
    %945 = tpu.matmul %942, %944, %cst_607 {dimension_numbers = #tpu.dot_dimension_numbers<[1], [0], [0], [1], [0, 0, 1, 1], [], []>} : vector<8x32xf32>, vector<32x32xf32>, vector<8x32xf32> -> vector<8x32xf32>
    %c0_608 = arith.constant 0 : index
    %c0_609 = arith.constant 0 : index
    %c0_610 = arith.constant 0 : index
    %946 = vector.load %arg10[%c0_608, %c0_609, %c0_610] : memref<4x32x32xf32, #tpu.memory_space<vmem>>, vector<1x32x32xf32>
    %947 = vector.shape_cast %946 : vector<1x32x32xf32> to vector<32x32xf32>
    %cst_611 = arith.constant dense<0.000000e+00> : vector<8x32xf32>
    %948 = tpu.matmul %799, %947, %cst_611 {dimension_numbers = #tpu.dot_dimension_numbers<[1], [0], [0], [1], [0, 0, 1, 1], [], []>} : vector<8x32xf32>, vector<32x32xf32>, vector<8x32xf32> -> vector<8x32xf32>
    %949 = arith.addf %945, %948 : vector<8x32xf32>
    %950 = arith.addf %949, %29 : vector<8x32xf32>
    %951 = arith.negf %950 : vector<8x32xf32>
    %952 = math.exp %951 : vector<8x32xf32>
    %cst_612 = arith.constant 1.000000e+00 : f32
    %953 = vector.broadcast %cst_612 : f32 to vector<8x32xf32>
    %954 = arith.addf %953, %952 : vector<8x32xf32>
    %955 = arith.divf %953, %954 : vector<8x32xf32>
    %c1_613 = arith.constant 1 : index
    %c0_614 = arith.constant 0 : index
    %c0_615 = arith.constant 0 : index
    %956 = vector.load %arg9[%c1_613, %c0_614, %c0_615] : memref<4x32x32xf32, #tpu.memory_space<vmem>>, vector<1x32x32xf32>
    %957 = vector.shape_cast %956 : vector<1x32x32xf32> to vector<32x32xf32>
    %cst_616 = arith.constant dense<0.000000e+00> : vector<8x32xf32>
    %958 = tpu.matmul %942, %957, %cst_616 {dimension_numbers = #tpu.dot_dimension_numbers<[1], [0], [0], [1], [0, 0, 1, 1], [], []>} : vector<8x32xf32>, vector<32x32xf32>, vector<8x32xf32> -> vector<8x32xf32>
    %c1_617 = arith.constant 1 : index
    %c0_618 = arith.constant 0 : index
    %c0_619 = arith.constant 0 : index
    %959 = vector.load %arg10[%c1_617, %c0_618, %c0_619] : memref<4x32x32xf32, #tpu.memory_space<vmem>>, vector<1x32x32xf32>
    %960 = vector.shape_cast %959 : vector<1x32x32xf32> to vector<32x32xf32>
    %cst_620 = arith.constant dense<0.000000e+00> : vector<8x32xf32>
    %961 = tpu.matmul %799, %960, %cst_620 {dimension_numbers = #tpu.dot_dimension_numbers<[1], [0], [0], [1], [0, 0, 1, 1], [], []>} : vector<8x32xf32>, vector<32x32xf32>, vector<8x32xf32> -> vector<8x32xf32>
    %962 = arith.addf %958, %961 : vector<8x32xf32>
    %963 = arith.addf %962, %33 : vector<8x32xf32>
    %964 = arith.negf %963 : vector<8x32xf32>
    %965 = math.exp %964 : vector<8x32xf32>
    %cst_621 = arith.constant 1.000000e+00 : f32
    %966 = vector.broadcast %cst_621 : f32 to vector<8x32xf32>
    %967 = arith.addf %966, %965 : vector<8x32xf32>
    %968 = arith.divf %966, %967 : vector<8x32xf32>
    %c2_622 = arith.constant 2 : index
    %c0_623 = arith.constant 0 : index
    %c0_624 = arith.constant 0 : index
    %969 = vector.load %arg9[%c2_622, %c0_623, %c0_624] : memref<4x32x32xf32, #tpu.memory_space<vmem>>, vector<1x32x32xf32>
    %970 = vector.shape_cast %969 : vector<1x32x32xf32> to vector<32x32xf32>
    %cst_625 = arith.constant dense<0.000000e+00> : vector<8x32xf32>
    %971 = tpu.matmul %942, %970, %cst_625 {dimension_numbers = #tpu.dot_dimension_numbers<[1], [0], [0], [1], [0, 0, 1, 1], [], []>} : vector<8x32xf32>, vector<32x32xf32>, vector<8x32xf32> -> vector<8x32xf32>
    %c2_626 = arith.constant 2 : index
    %c0_627 = arith.constant 0 : index
    %c0_628 = arith.constant 0 : index
    %972 = vector.load %arg10[%c2_626, %c0_627, %c0_628] : memref<4x32x32xf32, #tpu.memory_space<vmem>>, vector<1x32x32xf32>
    %973 = vector.shape_cast %972 : vector<1x32x32xf32> to vector<32x32xf32>
    %cst_629 = arith.constant dense<0.000000e+00> : vector<8x32xf32>
    %974 = tpu.matmul %799, %973, %cst_629 {dimension_numbers = #tpu.dot_dimension_numbers<[1], [0], [0], [1], [0, 0, 1, 1], [], []>} : vector<8x32xf32>, vector<32x32xf32>, vector<8x32xf32> -> vector<8x32xf32>
    %975 = arith.addf %971, %974 : vector<8x32xf32>
    %976 = arith.addf %975, %37 : vector<8x32xf32>
    %977 = math.tanh %976 : vector<8x32xf32>
    %c3_630 = arith.constant 3 : index
    %c0_631 = arith.constant 0 : index
    %c0_632 = arith.constant 0 : index
    %978 = vector.load %arg9[%c3_630, %c0_631, %c0_632] : memref<4x32x32xf32, #tpu.memory_space<vmem>>, vector<1x32x32xf32>
    %979 = vector.shape_cast %978 : vector<1x32x32xf32> to vector<32x32xf32>
    %cst_633 = arith.constant dense<0.000000e+00> : vector<8x32xf32>
    %980 = tpu.matmul %942, %979, %cst_633 {dimension_numbers = #tpu.dot_dimension_numbers<[1], [0], [0], [1], [0, 0, 1, 1], [], []>} : vector<8x32xf32>, vector<32x32xf32>, vector<8x32xf32> -> vector<8x32xf32>
    %c3_634 = arith.constant 3 : index
    %c0_635 = arith.constant 0 : index
    %c0_636 = arith.constant 0 : index
    %981 = vector.load %arg10[%c3_634, %c0_635, %c0_636] : memref<4x32x32xf32, #tpu.memory_space<vmem>>, vector<1x32x32xf32>
    %982 = vector.shape_cast %981 : vector<1x32x32xf32> to vector<32x32xf32>
    %cst_637 = arith.constant dense<0.000000e+00> : vector<8x32xf32>
    %983 = tpu.matmul %799, %982, %cst_637 {dimension_numbers = #tpu.dot_dimension_numbers<[1], [0], [0], [1], [0, 0, 1, 1], [], []>} : vector<8x32xf32>, vector<32x32xf32>, vector<8x32xf32> -> vector<8x32xf32>
    %984 = arith.addf %980, %983 : vector<8x32xf32>
    %985 = arith.addf %984, %41 : vector<8x32xf32>
    %986 = arith.negf %985 : vector<8x32xf32>
    %987 = math.exp %986 : vector<8x32xf32>
    %cst_638 = arith.constant 1.000000e+00 : f32
    %988 = vector.broadcast %cst_638 : f32 to vector<8x32xf32>
    %989 = arith.addf %988, %987 : vector<8x32xf32>
    %990 = arith.divf %988, %989 : vector<8x32xf32>
    %991 = arith.mulf %968, %797 : vector<8x32xf32>
    %992 = arith.mulf %955, %977 : vector<8x32xf32>
    %993 = arith.addf %991, %992 : vector<8x32xf32>
    %994 = math.tanh %993 : vector<8x32xf32>
    %995 = arith.mulf %990, %994 : vector<8x32xf32>
    %996 = vector.shape_cast %898 : vector<8x8xf32> to vector<8x8x1xf32>
    %cst_639 = arith.constant 1.000000e+00 : f32
    %997 = vector.broadcast %cst_639 : f32 to vector<8x8x1xf32>
    %998 = arith.subf %997, %996 : vector<8x8x1xf32>
    %c0_640 = arith.constant 0 : index
    %c0_641 = arith.constant 0 : index
    %c0_642 = arith.constant 0 : index
    %c0_643 = arith.constant 0 : index
    %999 = vector.load %arg14[%c0_640, %c0_641, %c0_642, %c0_643] : memref<2x8x8x32xf32, #tpu.memory_space<vmem>>, vector<1x8x8x32xf32>
    %1000 = vector.shape_cast %999 : vector<1x8x8x32xf32> to vector<8x8x32xf32>
    %1001 = vector.shape_cast %995 : vector<8x32xf32> to vector<8x1x32xf32>
    %1002 = vector.broadcast %1001 : vector<8x1x32xf32> to vector<8x8x32xf32>
    %1003 = arith.addf %1000, %1002 : vector<8x8x32xf32>
    %1004 = vector.broadcast %998 : vector<8x8x1xf32> to vector<8x8x32xf32>
    %1005 = arith.mulf %1004, %1003 : vector<8x8x32xf32>
    %c0_644 = arith.constant 0 : index
    %c0_645 = arith.constant 0 : index
    %c0_646 = arith.constant 0 : index
    %c0_647 = arith.constant 0 : index
    %1006 = vector.load %arg14[%c0_644, %c0_645, %c0_646, %c0_647] : memref<2x8x8x32xf32, #tpu.memory_space<vmem>>, vector<1x8x8x32xf32>
    %1007 = vector.shape_cast %1006 : vector<1x8x8x32xf32> to vector<8x8x32xf32>
    %1008 = vector.shape_cast %1005 : vector<8x8x32xf32> to vector<1x8x8x32xf32>
    tpu.vector_store %arg14[%c0_644, %c0_645, %c0_646, %c0_647], %1008 {strides = array<i32>} : memref<2x8x8x32xf32, #tpu.memory_space<vmem>>, vector<1x8x8x32xf32>,
    %1009 = vector.shape_cast %917 : vector<8x8xf32> to vector<8x8x1xf32>
    %cst_648 = arith.constant 1.000000e+00 : f32
    %1010 = vector.broadcast %cst_648 : f32 to vector<8x8x1xf32>
    %1011 = arith.subf %1010, %1009 : vector<8x8x1xf32>
    %c1_649 = arith.constant 1 : index
    %c0_650 = arith.constant 0 : index
    %c0_651 = arith.constant 0 : index
    %c0_652 = arith.constant 0 : index
    %1012 = vector.load %arg14[%c1_649, %c0_650, %c0_651, %c0_652] : memref<2x8x8x32xf32, #tpu.memory_space<vmem>>, vector<1x8x8x32xf32>
    %1013 = vector.shape_cast %1012 : vector<1x8x8x32xf32> to vector<8x8x32xf32>
    %1014 = vector.shape_cast %995 : vector<8x32xf32> to vector<8x1x32xf32>
    %1015 = vector.broadcast %1014 : vector<8x1x32xf32> to vector<8x8x32xf32>
    %1016 = arith.addf %1013, %1015 : vector<8x8x32xf32>
    %1017 = vector.broadcast %1011 : vector<8x8x1xf32> to vector<8x8x32xf32>
    %1018 = arith.mulf %1017, %1016 : vector<8x8x32xf32>
    %c1_653 = arith.constant 1 : index
    %c0_654 = arith.constant 0 : index
    %c0_655 = arith.constant 0 : index
    %c0_656 = arith.constant 0 : index
    %1019 = vector.load %arg14[%c1_653, %c0_654, %c0_655, %c0_656] : memref<2x8x8x32xf32, #tpu.memory_space<vmem>>, vector<1x8x8x32xf32>
    %1020 = vector.shape_cast %1019 : vector<1x8x8x32xf32> to vector<8x8x32xf32>
    %1021 = vector.shape_cast %1018 : vector<8x8x32xf32> to vector<1x8x8x32xf32>
    tpu.vector_store %arg14[%c1_653, %c0_654, %c0_655, %c0_656], %1021 {strides = array<i32>} : memref<2x8x8x32xf32, #tpu.memory_space<vmem>>, vector<1x8x8x32xf32>,
    %c4_657 = arith.constant 4 : index
    %c0_658 = arith.constant 0 : index
    %c0_659 = arith.constant 0 : index
    %1022 = vector.load %arg12[%c4_657, %c0_658, %c0_659] : memref<5x8x32xf32, #tpu.memory_space<vmem>>, vector<1x8x32xf32>
    %1023 = vector.shape_cast %1022 : vector<1x8x32xf32> to vector<8x32xf32>
    %1024 = vector.shape_cast %995 : vector<8x32xf32> to vector<1x8x32xf32>
    tpu.vector_store %arg12[%c4_657, %c0_658, %c0_659], %1024 {strides = array<i32>} : memref<5x8x32xf32, #tpu.memory_space<vmem>>, vector<1x8x32xf32>,
    %c0_660 = arith.constant 0 : index
    %c0_661 = arith.constant 0 : index
    %c0_662 = arith.constant 0 : index
    %1025 = vector.load %arg13[%c0_660, %c0_661, %c0_662] : memref<4x8x32xf32, #tpu.memory_space<vmem>>, vector<1x8x32xf32>
    %1026 = vector.shape_cast %1025 : vector<1x8x32xf32> to vector<8x32xf32>
    %1027 = vector.shape_cast %883 : vector<8x32xf32> to vector<1x8x32xf32>
    tpu.vector_store %arg13[%c0_660, %c0_661, %c0_662], %1027 {strides = array<i32>} : memref<4x8x32xf32, #tpu.memory_space<vmem>>, vector<1x8x32xf32>,
    %c1_663 = arith.constant 1 : index
    %c0_664 = arith.constant 0 : index
    %c0_665 = arith.constant 0 : index
    %1028 = vector.load %arg13[%c1_663, %c0_664, %c0_665] : memref<4x8x32xf32, #tpu.memory_space<vmem>>, vector<1x8x32xf32>
    %1029 = vector.shape_cast %1028 : vector<1x8x32xf32> to vector<8x32xf32>
    %1030 = vector.shape_cast %881 : vector<8x32xf32> to vector<1x8x32xf32>
    tpu.vector_store %arg13[%c1_663, %c0_664, %c0_665], %1030 {strides = array<i32>} : memref<4x8x32xf32, #tpu.memory_space<vmem>>, vector<1x8x32xf32>,
    %c2_666 = arith.constant 2 : index
    %c0_667 = arith.constant 0 : index
    %c0_668 = arith.constant 0 : index
    %1031 = vector.load %arg13[%c2_666, %c0_667, %c0_668] : memref<4x8x32xf32, #tpu.memory_space<vmem>>, vector<1x8x32xf32>
    %1032 = vector.shape_cast %1031 : vector<1x8x32xf32> to vector<8x32xf32>
    %1033 = vector.shape_cast %995 : vector<8x32xf32> to vector<1x8x32xf32>
    tpu.vector_store %arg13[%c2_666, %c0_667, %c0_668], %1033 {strides = array<i32>} : memref<4x8x32xf32, #tpu.memory_space<vmem>>, vector<1x8x32xf32>,
    %c3_669 = arith.constant 3 : index
    %c0_670 = arith.constant 0 : index
    %c0_671 = arith.constant 0 : index
    %1034 = vector.load %arg13[%c3_669, %c0_670, %c0_671] : memref<4x8x32xf32, #tpu.memory_space<vmem>>, vector<1x8x32xf32>
    %1035 = vector.shape_cast %1034 : vector<1x8x32xf32> to vector<8x32xf32>
    %1036 = vector.shape_cast %993 : vector<8x32xf32> to vector<1x8x32xf32>
    tpu.vector_store %arg13[%c3_669, %c0_670, %c0_671], %1036 {strides = array<i32>} : memref<4x8x32xf32, #tpu.memory_space<vmem>>, vector<1x8x32xf32>,
    return
  }
  func.func @transform_0(%arg0: i32) -> (i32, i32, i32) {
    %c0_i32 = arith.constant 0 : i32
    %c0_i32_0 = arith.constant 0 : i32
    %c0_i32_1 = arith.constant 0 : i32
    %c0_i32_2 = arith.constant 0 : i32
    return %c0_i32, %c0_i32_0, %c0_i32_1 : i32, i32, i32
  }
  func.func @transform_1(%arg0: i32) -> (i32, i32, i32) {
    %c0_i32 = arith.constant 0 : i32
    %c0_i32_0 = arith.constant 0 : i32
    %c0_i32_1 = arith.constant 0 : i32
    %c0_i32_2 = arith.constant 0 : i32
    return %c0_i32, %c0_i32_0, %c0_i32_1 : i32, i32, i32
  }
  func.func @transform_2(%arg0: i32) -> (i32, i32, i32, i32) {
    %c0_i32 = arith.constant 0 : i32
    %c0_i32_0 = arith.constant 0 : i32
    %c0_i32_1 = arith.constant 0 : i32
    %c0_i32_2 = arith.constant 0 : i32
    %c0_i32_3 = arith.constant 0 : i32
    return %c0_i32, %c0_i32_0, %c0_i32_1, %c0_i32_2 : i32, i32, i32, i32
  }
  func.func @transform_3(%arg0: i32) -> (i32, i32, i32) {
    %c0_i32 = arith.constant 0 : i32
    %c0_i32_0 = arith.constant 0 : i32
    %c0_i32_1 = arith.constant 0 : i32
    %c0_i32_2 = arith.constant 0 : i32
    return %c0_i32, %c0_i32_0, %c0_i32_1 : i32, i32, i32
  }
  func.func @transform_4(%arg0: i32) -> (i32, i32, i32) {
    %c0_i32 = arith.constant 0 : i32
    %c0_i32_0 = arith.constant 0 : i32
    %c0_i32_1 = arith.constant 0 : i32
    %c0_i32_2 = arith.constant 0 : i32
    return %c0_i32, %c0_i32_0, %c0_i32_1 : i32, i32, i32
  }
  func.func @transform_5(%arg0: i32) -> (i32, i32, i32) {
    %c0_i32 = arith.constant 0 : i32
    %c0_i32_0 = arith.constant 0 : i32
    %c0_i32_1 = arith.constant 0 : i32
    %c0_i32_2 = arith.constant 0 : i32
    return %c0_i32, %c0_i32_0, %c0_i32_1 : i32, i32, i32
  }
  func.func @transform_6(%arg0: i32) -> (i32, i32, i32) {
    %c0_i32 = arith.constant 0 : i32
    %c0_i32_0 = arith.constant 0 : i32
    %c0_i32_1 = arith.constant 0 : i32
    %c0_i32_2 = arith.constant 0 : i32
    return %c0_i32, %c0_i32_0, %c0_i32_1 : i32, i32, i32
  }
  func.func @transform_7(%arg0: i32) -> (i32, i32) {
    %c0_i32 = arith.constant 0 : i32
    %c0_i32_0 = arith.constant 0 : i32
    %c0_i32_1 = arith.constant 0 : i32
    return %c0_i32, %c0_i32_0 : i32, i32
  }
  func.func @transform_8(%arg0: i32) -> (i32, i32, i32) {
    %c0_i32 = arith.constant 0 : i32
    %c0_i32_0 = arith.constant 0 : i32
    %c0_i32_1 = arith.constant 0 : i32
    %c0_i32_2 = arith.constant 0 : i32
    return %c0_i32, %c0_i32_0, %c0_i32_1 : i32, i32, i32
  }
  func.func @transform_9(%arg0: i32) -> (i32, i32, i32) {
    %c0_i32 = arith.constant 0 : i32
    %c0_i32_0 = arith.constant 0 : i32
    %c0_i32_1 = arith.constant 0 : i32
    %c0_i32_2 = arith.constant 0 : i32
    return %c0_i32, %c0_i32_0, %c0_i32_1 : i32, i32, i32
  }
  func.func @transform_10(%arg0: i32) -> (i32, i32, i32) {
    %c0_i32 = arith.constant 0 : i32
    %c0_i32_0 = arith.constant 0 : i32
    %c0_i32_1 = arith.constant 0 : i32
    %c0_i32_2 = arith.constant 0 : i32
    return %c0_i32, %c0_i32_0, %c0_i32_1 : i32, i32, i32
  }
  func.func @transform_11(%arg0: i32) -> (i32, i32, i32) {
    %c0_i32 = arith.constant 0 : i32
    %c0_i32_0 = arith.constant 0 : i32
    %c0_i32_1 = arith.constant 0 : i32
    %c0_i32_2 = arith.constant 0 : i32
    return %c0_i32, %c0_i32_0, %c0_i32_1 : i32, i32, i32
  }
  func.func @transform_12(%arg0: i32) -> (i32, i32, i32) {
    %c0_i32 = arith.constant 0 : i32
    %c0_i32_0 = arith.constant 0 : i32
    %c0_i32_1 = arith.constant 0 : i32
    %c0_i32_2 = arith.constant 0 : i32
    return %c0_i32, %c0_i32_0, %c0_i32_1 : i32, i32, i32
  }
  func.func @transform_13(%arg0: i32) -> (i32, i32, i32, i32) {
    %c0_i32 = arith.constant 0 : i32
    %c0_i32_0 = arith.constant 0 : i32
    %c0_i32_1 = arith.constant 0 : i32
    %c0_i32_2 = arith.constant 0 : i32
    %c0_i32_3 = arith.constant 0 : i32
    return %c0_i32, %c0_i32_0, %c0_i32_1, %c0_i32_2 : i32, i32, i32, i32
  }
}

</mosaic_0001>

<bundles_post_ra>
// kernel: mma_nse_forward.1
= control target key start
LH: loop header
LB: loop body
LE: loop exit
PB: predicated region body
PF: predicated region fallthrough
CT: control target
= control target key end

     0   :  { %19 = vsyncpa [#allocation3], 0  ;;  %s19628_s0 = inlined_call_operand.hbm [shape: f32[5,8,32], index: 0, kind: input, shape index: {}]   ;;  %s19629_s1 = inlined_call_operand.hbm [shape: f32[4,8,32], index: 1, kind: input, shape index: {}]   ;;  %s19630_s2 = inlined_call_operand.hbm [shape: f32[2,8,8,32], index: 2, kind: input, shape index: {}]   ;;  %s19631_s3 = inlined_call_operand.hbm [shape: f32[4,32,32], index: 3, kind: input, shape index: {}]   ;;  %s19632_s4 = inlined_call_operand.hbm [shape: f32[4,32,32], index: 4, kind: input, shape index: {}]   ;;  %s19633_s5 = inlined_call_operand.vmem [shape: f32[4,1,32], index: 5, kind: input, shape index: {}]   ;;  %s19634_s6 = inlined_call_operand.hbm [shape: f32[3,32,32], index: 6, kind: input, shape index: {}]   ;;  %s19635_s7 = inlined_call_operand.vmem [shape: f32[1,32], index: 7, kind: input, shape index: {}]   ;;  %s19636_s8 = inlined_call_operand.hbm [shape: f32[4,32,32], index: 8, kind: input, shape index: {}]   ;;  %s19637_s9 = inlined_call_operand.hbm [shape: f32[4,32,32], index: 9, kind: input, shape index: {}]   ;;  %s19638_s10 = inlined_call_operand.vmem [shape: f32[4,1,32], index: 10, kind: input, shape index: {}]   ;;  %s19639_s11 = inlined_call_operand.hbm [shape: f32[5,8,32], index: 11, kind: output, shape index: {0}]   ;;  %s19640_s12 = inlined_call_operand.hbm [shape: f32[4,8,32], index: 12, kind: output, shape index: {1}]   ;;  %s19641_s13 = inlined_call_operand.hbm [shape: f32[2,8,8,32], index: 13, kind: output, shape index: {2}]  }
   0x1   :  { %20 = vsyncpa [#allocation6], 0 }
   0x2   :  { %21 = vsyncpa [#allocation9], 0 }
   0x3   :  { %22 = vsyncpa [#allocation12], 0 }
   0x4   :  { %23 = vsyncpa [#allocation15], 0 }
   0x5   :  { %24 = vsyncpa [#allocation4], 0 }
   0x6   :  { %25 = vsyncpa [#allocation18], 0  ;;  %s16036_s25 = smov [#allocation5]   ;;  %s16037_s27 = smov [#allocation8]  }
   0x7   :  { %s43_s26 = sshll.u32 %s16036_s25, 4  ;;  %s67_s28 = sshll.u32 %s16037_s27, 4  ;;  %s44_s26 = int_to_ptr.vmem [resolvable:$true] %s43_s26  ;;  %s68_s28 = int_to_ptr.vmem [resolvable:$true] %s67_s28 }
   0x8   :  { %s15810_s29 = scalar_lea.vmem %s44_s26, 512  ;;  %p15815_p1 = scmp.lt.s32.totalorder %s44_s26, %s44_s26 }
   0x9   :  { %p15811_p0 = scmp.ne.s32.totalorder %s44_s26, %s15810_s29  ;;  %p15816_p2 = scmp.lt.s32.totalorder %s15810_s29, %s15810_s29 }
   0xb   :  { %p15817_p3 = por %p15816_p2, %p15815_p1 }
   0xd   :  { %p15818_p4 = pnand %p15817_p3, %p15811_p0 }
   0xf   :  { %15821 = shalt.err (!%p15818_p4)
}
  0x10   :  { %s16038_s30 = smov 128   ;;  %s16039_s14 = smov 8  }
  0x11   :  { %49 = dma.hbm_to_vmem [thread:$0]  %s19629_s1, 512, %s44_s26, [#allocation6], %s16038_s30, %s16038_s30, %s16039_s14  }
  0x12   :  { %s15830_s17 = scalar_lea.vmem %s68_s28, 2048  ;;  %p15835_p6 = scmp.lt.s32.totalorder %s68_s28, %s68_s28 }
  0x13   :  { %p15831_p5 = scmp.ne.s32.totalorder %s68_s28, %s15830_s17  ;;  %p15836_p7 = scmp.lt.s32.totalorder %s15830_s17, %s15830_s17 }
  0x15   :  { %p15837_p8 = por %p15836_p7, %p15835_p6 }
  0x17   :  { %p15838_p9 = pnand %p15837_p8, %p15831_p5 }
  0x19   :  { %15841 = shalt.err (!%p15838_p9)
}
  0x1a   :  { %73 = dma.hbm_to_vmem [thread:$0]  %s19631_s3, 2048, %s68_s28, [#allocation9], %s16038_s30, %s16038_s30, %s16039_s14  }
  0x1b   :  { %s16040_s20 = smov [#allocation11]   ;;  %s16041_s22 = smov [#allocation2]  }
  0x1c   :  { %s93_s21 = sshll.u32 %s16040_s20, 4  ;;  %s31_s23 = sshll.u32 %s16041_s22, 4  ;;  %s94_s21 = int_to_ptr.vmem [resolvable:$true] %s93_s21  ;;  %s32_s23 = int_to_ptr.vmem [resolvable:$true] %s31_s23 }
  0x1d   :  { %s15850_s1 = scalar_lea.vmem %s94_s21, 1536  ;;  %p15855_p11 = scmp.lt.s32.totalorder %s94_s21, %s94_s21 }
  0x1e   :  { %p15851_p10 = scmp.ne.s32.totalorder %s94_s21, %s15850_s1  ;;  %p15856_p12 = scmp.lt.s32.totalorder %s15850_s1, %s15850_s1 }
  0x20   :  { %p15857_p13 = por %p15856_p12, %p15855_p11 }
  0x22   :  { %p15858_p0 = pnand %p15857_p13, %p15851_p10 }
  0x24   :  { %15861 = shalt.err (!%p15858_p0)
}
  0x25   :  { %99 = dma.hbm_to_vmem [thread:$0]  %s19634_s6, 1536, %s94_s21, [#allocation12], %s16038_s30, %s16038_s30, %s16039_s14  }
  0x26   :  { %s15870_s3 = scalar_lea.vmem %s32_s23, 640  ;;  %p15875_p2 = scmp.lt.s32.totalorder %s32_s23, %s32_s23 }
  0x27   :  { %p15871_p1 = scmp.ne.s32.totalorder %s32_s23, %s15870_s3  ;;  %p15876_p3 = scmp.lt.s32.totalorder %s15870_s3, %s15870_s3 }
  0x29   :  { %p15877_p4 = por %p15876_p3, %p15875_p2 }
  0x2b   :  { %p15878_p5 = pnand %p15877_p4, %p15871_p1 }
  0x2d   :  { %15881 = shalt.err (!%p15878_p5)
}
  0x2e   :  { %37 = dma.hbm_to_vmem [thread:$0]  %s19628_s0, 640, %s32_s23, [#allocation3], %s16038_s30, %s16038_s30, %s16039_s14  }
  0x2f   :  { %s16042_s28 = smov [#allocation7]   ;;  %s16043_s15 = smov [#allocation10]  }
  0x30   :  { %s55_s29 = sshll.u32 %s16042_s28, 4  ;;  %s79_s16 = sshll.u32 %s16043_s15, 4  ;;  %s56_s29 = int_to_ptr.vmem [resolvable:$true] %s55_s29  ;;  %s80_s16 = int_to_ptr.vmem [resolvable:$true] %s79_s16 }
  0x31   :  { %s15890_s6 = scalar_lea.vmem %s56_s29, 2048  ;;  %p15895_p7 = scmp.lt.s32.totalorder %s56_s29, %s56_s29 }
  0x32   :  { %p15891_p6 = scmp.ne.s32.totalorder %s56_s29, %s15890_s6  ;;  %p15896_p8 = scmp.lt.s32.totalorder %s15890_s6, %s15890_s6 }
  0x34   :  { %p15897_p9 = por %p15896_p8, %p15895_p7 }
  0x36   :  { %p15898_p10 = pnand %p15897_p9, %p15891_p6 }
  0x38   :  { %15901 = shalt.err (!%p15898_p10)
}
  0x39   :  { %61 = dma.hbm_to_vmem [thread:$0]  %s19630_s2, 2048, %s56_s29, [#allocation6], %s16038_s30, %s16038_s30, %s16039_s14  }
  0x3a   :  { %s15910_s0 = scalar_lea.vmem %s80_s16, 2048  ;;  %p15915_p12 = scmp.lt.s32.totalorder %s80_s16, %s80_s16 }
  0x3b   :  { %p15911_p11 = scmp.ne.s32.totalorder %s80_s16, %s15910_s0  ;;  %p15916_p13 = scmp.lt.s32.totalorder %s15910_s0, %s15910_s0 }
  0x3d   :  { %p15917_p0 = por %p15916_p13, %p15915_p12 }
  0x3f   :  { %p15918_p1 = pnand %p15917_p0, %p15911_p11 }
  0x41   :  { %15921 = shalt.err (!%p15918_p1)
}
  0x42   :  { %85 = dma.hbm_to_vmem [thread:$0]  %s19632_s4, 2048, %s80_s16, [#allocation9], %s16038_s30, %s16038_s30, %s16039_s14  }
  0x43   :  { %s16044_s21 = smov [#allocation13]   ;;  %s16045_s23 = smov [#allocation14]  }
  0x44   :  { %s107_s22 = sshll.u32 %s16044_s21, 4  ;;  %s119_s1 = sshll.u32 %s16045_s23, 4  ;;  %s108_s22 = int_to_ptr.vmem [resolvable:$true] %s107_s22  ;;  %s120_s1 = int_to_ptr.vmem [resolvable:$true] %s119_s1 }
  0x45   :  { %s15930_s2 = scalar_lea.vmem %s108_s22, 2048  ;;  %p15935_p3 = scmp.lt.s32.totalorder %s108_s22, %s108_s22 }
  0x46   :  { %p15931_p2 = scmp.ne.s32.totalorder %s108_s22, %s15930_s2  ;;  %p15936_p4 = scmp.lt.s32.totalorder %s15930_s2, %s15930_s2 }
  0x48   :  { %p15937_p5 = por %p15936_p4, %p15935_p3 }
  0x4a   :  { %p15938_p6 = pnand %p15937_p5, %p15931_p2 }
  0x4c   :  { %15941 = shalt.err (!%p15938_p6)
}
  0x4d   :  { %113 = dma.hbm_to_vmem [thread:$0]  %s19636_s8, 2048, %s108_s22, [#allocation12], %s16038_s30, %s16038_s30, %s16039_s14  }
  0x4e   :  { %s15950_s4 = scalar_lea.vmem %s120_s1, 2048  ;;  %p15955_p8 = scmp.lt.s32.totalorder %s120_s1, %s120_s1 }
  0x4f   :  { %p15951_p7 = scmp.ne.s32.totalorder %s120_s1, %s15950_s4  ;;  %p15956_p9 = scmp.lt.s32.totalorder %s15950_s4, %s15950_s4 }
  0x51   :  { %p15957_p10 = por %p15956_p9, %p15955_p8 }
  0x53   :  { %p15958_p11 = pnand %p15957_p10, %p15951_p7 }
  0x55   :  { %15961 = shalt.err (!%p15958_p11)
}
  0x56   :  { %125 = dma.hbm_to_vmem [thread:$0]  %s19637_s9, 2048, %s120_s1, [#allocation15], %s16038_s30, %s16038_s30, %s16039_s14  }
  0x57   :  { %16022 = dma.done.wait [#allocation3], 640  }
  0x58   :  { %16023 = vsyncadd [#allocation3], 4294966656 }
  0x59   :  { %16024 = dma.done.wait [#allocation6], 2560  }
  0x5a   :  { %16025 = vsyncadd [#allocation6], 4294964736 }
  0x5b   :  { %16026 = dma.done.wait [#allocation9], 4096  }
  0x5c   :  { %16027 = vsyncadd [#allocation9], 4294963200 }
  0x5d   :  { %16028 = dma.done.wait [#allocation12], 3584  }
  0x5e   :  { %16029 = vsyncadd [#allocation12], 4294963712 }
  0x5f   :  { %16030 = dma.done.wait [#allocation15], 2048  }
  0x60   :  { %16031 = vsyncadd [#allocation15], 4294965248  ;;  %v19642_v0 = vmov 0.0   ;;  %vm16047_vm0 = vmmov 0   ;;  %v269_v1 = vld [vmem:[#allocation10 + $0x18] sm:$0xff]  ;;  %v268_v3 = vld [vmem:[#allocation10 + $0x10] sm:$0xff] }
  0x61   :  { %14162 = vmatprep.subr.mxu0 %v19642_v0  ;;  %14173 = vmatprep.subr.mxu1 %v19642_v0  ;;  %v265_v2 = vld [vmem:[#allocation8 + $0x18] sm:$0xff]  ;;  %v264_v4 = vld [vmem:[#allocation8 + $0x10] sm:$0xff]  ;;  %v267_v5 = vld [vmem:[#allocation10 + $0x8] sm:$0xff]  ;;  %vm175_vm1 = vcmask 261120   ;;  %vm1066_vm2 = vcmask 1041409   ;;  %vm1068_vm3 = vcmask 1042434  }
  0x62   :  { %14170 = vmatprep.mubr.msk.f32.mxu0 %vm16047_vm0, %v19642_v0  ;;  %14181 = vmatprep.mubr.msk.f32.mxu1 %vm16047_vm0, %v19642_v0  ;;  %v263_v6 = vld [vmem:[#allocation8 + $0x8] sm:$0xff]  ;;  %v266_v7 = vld [vmem:[#allocation10] sm:$0xff]  ;;  %v16183_v10 = vld [vmem:[#allocation2] sm:$0xff]  ;;  %vm1070_vm4 = vcmask 1043459   ;;  %vm1072_vm5 = vcmask 1044484   ;;  %vm1074_vm6 = vcmask 1045509  }
  0x63   :  { %14163 = vmatpush3.msra.mxu0 %v269_v1  ;;  %14174 = vmatpush3.msra.mxu1 %v265_v2  ;;  %v262_v8 = vld [vmem:[#allocation8] sm:$0xff]  ;;  %v432_v11 = vld [vmem:[#allocation10 + $0x38] sm:$0xff]  ;;  %v431_v13 = vld [vmem:[#allocation10 + $0x30] sm:$0xff]  ;;  %vm1076_vm7 = vcmask 1046534   ;;  %vm1078_vm8 = vcmask 1047559   ;;  %vm1081_vm9 = vcmask 64512  }
  0x64   :  { %14164 = vmatprep.subr.mxu0 %v19642_v0  ;;  %14175 = vmatprep.subr.mxu1 %v19642_v0  ;;  %v16181_v9 = vld [vmem:[#allocation5] sm:$0xff]  ;;  %v427_v12 = vld [vmem:[#allocation8 + $0x38] sm:$0xff]  ;;  %v426_v14 = vld [vmem:[#allocation8 + $0x30] sm:$0xff]  ;;  %s16051_s4 = smov [#allocation16]  }
  0x65   :  { %14165 = vmatpush3.msra.mxu0 %v268_v3  ;;  %14176 = vmatpush3.msra.mxu1 %v264_v4  ;;  %v430_v15 = vld [vmem:[#allocation10 + $0x28] sm:$0xff]  ;;  %v429_v17 = vld [vmem:[#allocation10 + $0x20] sm:$0xff]  ;;  %v589_v19 = vld [vmem:[#allocation10 + $0x58] sm:$0xff]  ;;  %s13500_s3 = sshll.u32 %s16051_s4, 4  ;;  %s13501_s3 = int_to_ptr.vmem [resolvable:$true] %s13500_s3 }
  0x66   :  { %14166 = vmatprep.subr.mxu0 %v19642_v0  ;;  %14177 = vmatprep.subr.mxu1 %v19642_v0  ;;  %v425_v16 = vld [vmem:[#allocation8 + $0x28] sm:$0xff]  ;;  %v424_v18 = vld [vmem:[#allocation8 + $0x20] sm:$0xff]  ;;  %v584_v20 = vld [vmem:[#allocation8 + $0x58] sm:$0xff] }
  0x67   :  { %14167 = vmatpush3.msra.mxu0 %v267_v5  ;;  %14178 = vmatpush3.msra.mxu1 %v263_v6  ;;  %v588_v21 = vld [vmem:[#allocation10 + $0x50] sm:$0xff]  ;;  %v587_v23 = vld [vmem:[#allocation10 + $0x48] sm:$0xff]  ;;  %v586_v25 = vld [vmem:[#allocation10 + $0x40] sm:$0xff] }
  0x68   :  { %14168 = vmatprep.subr.mxu0 %v19642_v0  ;;  %14179 = vmatprep.subr.mxu1 %v19642_v0  ;;  %v583_v22 = vld [vmem:[#allocation8 + $0x50] sm:$0xff]  ;;  %v582_v24 = vld [vmem:[#allocation8 + $0x48] sm:$0xff]  ;;  %v581_v26 = vld [vmem:[#allocation8 + $0x40] sm:$0xff] }
  0x69   :  { %14169 = vmatpush3.msra.mxu0 %v266_v7  ;;  %14180 = vmatpush3.msra.mxu1 %v262_v8  ;;  %v741_v27 = vld [vmem:[#allocation10 + $0x78] sm:$0xff]  ;;  %v740_v29 = vld [vmem:[#allocation10 + $0x70] sm:$0xff]  ;;  %v739_v31 = vld [vmem:[#allocation10 + $0x68] sm:$0xff] }
  0x6a   :  { %14171 = vmatmul.mubr.msk.f32.vlgmr.msra.gmra.mxu0 %vm175_vm1, %v16181_v9  ;;  %14182 = vmatmul.mubr.msk.f32.vlgmr.msra.gmra.mxu1 %vm175_vm1, %v16183_v10  ;;  %v736_v28 = vld [vmem:[#allocation8 + $0x78] sm:$0xff]  ;;  %v735_v30 = vld [vmem:[#allocation8 + $0x70] sm:$0xff]  ;;  %v734_v32 = vld [vmem:[#allocation8 + $0x68] sm:$0xff] }
  0x6b   :  { %14184 = vmatprep.subr.mxu0 %v19642_v0  ;;  %14195 = vmatprep.subr.mxu1 %v19642_v0  ;;  %v738_v33 = vld [vmem:[#allocation10 + $0x60] sm:$0xff]  ;;  %v1782_v35 = vld [vmem:[#allocation11 + $0x18] sm:$0xff]  ;;  %v1781_v36 = vld [vmem:[#allocation11 + $0x10] sm:$0xff] }
  0x6c   :  { %14185 = vmatpush3.msra.mxu0 %v432_v11  ;;  %14196 = vmatpush3.msra.mxu1 %v427_v12  ;;  %v733_v34 = vld [vmem:[#allocation8 + $0x60] sm:$0xff]  ;;  %v1780_v37 = vld [vmem:[#allocation11 + $0x8] sm:$0xff]  ;;  %v161_v41 = vld [vmem:[#allocation7 + $0x10] sm:$0xff] }
  0x6d   :  { %14186 = vmatprep.subr.mxu0 %v19642_v0  ;;  %14197 = vmatprep.subr.mxu1 %v19642_v0  ;;  %v1779_v38 = vld [vmem:[#allocation11] sm:$0xff]  ;;  %v168_v42 = vld [vmem:[#allocation7 + $0x48] sm:$0xff]  ;;  %178 = vst.msk [vmem:[#allocation19 + $0x10] sm:$0xff] %vm175_vm1, %v161_v41  ;;  %v169_v44 = vld [vmem:[#allocation7 + $0x50] sm:$0xff] }
  0x6e   :  { %14187 = vmatpush3.msra.mxu0 %v431_v13  ;;  %14198 = vmatpush3.msra.mxu1 %v426_v14  ;;  %v159_v39 = vld [vmem:[#allocation7] sm:$0xff]  ;;  %v160_v43 = vld [vmem:[#allocation7 + $0x8] sm:$0xff]  ;;  %185 = vst.msk [vmem:[#allocation19 + $0x48] sm:$0xff] %vm175_vm1, %v168_v42  ;;  %186 = vst.msk [vmem:[#allocation19 + $0x50] sm:$0xff] %vm175_vm1, %v169_v44 }
  0x6f   :  { %14188 = vmatprep.subr.mxu0 %v19642_v0  ;;  %14199 = vmatprep.subr.mxu1 %v19642_v0  ;;  %v167_v40 = vld [vmem:[#allocation7 + $0x40] sm:$0xff]  ;;  %176 = vst.msk [vmem:[#allocation19] sm:$0xff] %vm175_vm1, %v159_v39  ;;  %177 = vst.msk [vmem:[#allocation19 + $0x8] sm:$0xff] %vm175_vm1, %v160_v43  ;;  %v164_v47 = vld [vmem:[#allocation7 + $0x28] sm:$0xff] }
  0x70   :  { %14189 = vmatpush3.msra.mxu0 %v430_v15  ;;  %14200 = vmatpush3.msra.mxu1 %v425_v16  ;;  %184 = vst.msk [vmem:[#allocation19 + $0x40] sm:$0xff] %vm175_vm1, %v167_v40  ;;  %v163_v45 = vld [vmem:[#allocation7 + $0x20] sm:$0xff]  ;;  %v162_v48 = vld [vmem:[#allocation7 + $0x18] sm:$0xff]  ;;  %v165_v49 = vld [vmem:[#allocation7 + $0x30] sm:$0xff] }
  0x71   :  { %14190 = vmatprep.subr.mxu0 %v19642_v0  ;;  %14201 = vmatprep.subr.mxu1 %v19642_v0  ;;  %v171_v46 = vld [vmem:[#allocation7 + $0x60] sm:$0xff]  ;;  %180 = vst.msk [vmem:[#allocation19 + $0x20] sm:$0xff] %vm175_vm1, %v163_v45  ;;  %181 = vst.msk [vmem:[#allocation19 + $0x28] sm:$0xff] %vm175_vm1, %v164_v47  ;;  %v170_v50 = vld [vmem:[#allocation7 + $0x58] sm:$0xff] }
  0x72   :  { %14191 = vmatpush3.msra.mxu0 %v429_v17  ;;  %14192 = vmatprep.mubr.msk.f32.mxu0 %vm16047_vm0, %v19642_v0  ;;  %188 = vst.msk [vmem:[#allocation19 + $0x60] sm:$0xff] %vm175_vm1, %v171_v46  ;;  %179 = vst.msk [vmem:[#allocation19 + $0x18] sm:$0xff] %vm175_vm1, %v162_v48  ;;  %v172_v51 = vld [vmem:[#allocation7 + $0x68] sm:$0xff]  ;;  %v173_v52 = vld [vmem:[#allocation7 + $0x70] sm:$0xff] }
  0x73   :  { %14202 = vmatpush3.msra.mxu1 %v424_v18  ;;  %14203 = vmatprep.mubr.msk.f32.mxu1 %vm16047_vm0, %v19642_v0  ;;  %182 = vst.msk [vmem:[#allocation19 + $0x30] sm:$0xff] %vm175_vm1, %v165_v49  ;;  %187 = vst.msk [vmem:[#allocation19 + $0x58] sm:$0xff] %vm175_vm1, %v170_v50  ;;  %v166_v53 = vld [vmem:[#allocation7 + $0x38] sm:$0xff] }
  0x74   :  { %14193 = vmatmul.mubr.msk.f32.vlgmr.msra.gmra.mxu0 %vm175_vm1, %v16181_v9  ;;  %14204 = vmatmul.mubr.msk.f32.vlgmr.msra.gmra.mxu1 %vm175_vm1, %v16183_v10  ;;  %189 = vst.msk [vmem:[#allocation19 + $0x68] sm:$0xff] %vm175_vm1, %v172_v51  ;;  %190 = vst.msk [vmem:[#allocation19 + $0x70] sm:$0xff] %vm175_vm1, %v173_v52  ;;  %v174_v54 = vld [vmem:[#allocation7 + $0x78] sm:$0xff] }
  0x75   :  { %14206 = vmatprep.subr.mxu0 %v19642_v0  ;;  %14217 = vmatprep.subr.mxu1 %v19642_v0  ;;  %183 = vst.msk [vmem:[#allocation19 + $0x38] sm:$0xff] %vm175_vm1, %v166_v53  ;;  %191 = vst.msk [vmem:[#allocation19 + $0x78] sm:$0xff] %vm175_vm1, %v174_v54  ;;  %v13547_v56 = vld [vmem:[%s19633_s5] ss:$0 sm:$0xff]  ;;  %v13549_v1 = vld [vmem:[%s19633_s5 + $0x1] ss:$0 sm:$0xff] }
  0x76   :  { %14207 = vmatpush3.msra.mxu0 %v589_v19  ;;  %14218 = vmatpush3.msra.mxu1 %v584_v20  ;;  %v13551_v14 = vld [vmem:[%s19633_s5 + $0x2] ss:$0 sm:$0xff]  ;;  %v13553_v19 = vld [vmem:[%s19633_s5 + $0x3] ss:$0 sm:$0xff]  ;;  %v16300_v50 = vld [vmem:[#allocation19] sm:$0xff] }
  0x77   :  { %14208 = vmatprep.subr.mxu0 %v19642_v0  ;;  %14219 = vmatprep.subr.mxu1 %v19642_v0 }
  0x78   :  { %14209 = vmatpush3.msra.mxu0 %v588_v21  ;;  %14220 = vmatpush3.msra.mxu1 %v583_v22 }
  0x79   :  { %14210 = vmatprep.subr.mxu0 %v19642_v0  ;;  %14221 = vmatprep.subr.mxu1 %v19642_v0 }
  0x7a   :  { %14211 = vmatpush3.msra.mxu0 %v587_v23  ;;  %14222 = vmatpush3.msra.mxu1 %v582_v24 }
  0x7b   :  { %14212 = vmatprep.subr.mxu0 %v19642_v0  ;;  %14223 = vmatprep.subr.mxu1 %v19642_v0 }
  0x7c   :  { %14213 = vmatpush3.msra.mxu0 %v586_v25  ;;  %14224 = vmatpush3.msra.mxu1 %v581_v26 }
  0x7d   :  { %14214 = vmatprep.mubr.msk.f32.mxu0 %vm16047_vm0, %v19642_v0  ;;  %14225 = vmatprep.mubr.msk.f32.mxu1 %vm16047_vm0, %v19642_v0 }
  0x7e   :  { %14228 = vmatprep.subr.mxu0 %v19642_v0  ;;  %14239 = vmatprep.subr.mxu1 %v19642_v0 }
  0x7f   :  { %14215 = vmatmul.mubr.msk.f32.vlgmr.msra.gmra.mxu0 %vm175_vm1, %v16181_v9  ;;  %14226 = vmatmul.mubr.msk.f32.vlgmr.msra.gmra.mxu1 %vm175_vm1, %v16183_v10 }
  0x80   :  { %14229 = vmatpush3.msra.mxu0 %v741_v27  ;;  %14240 = vmatpush3.msra.mxu1 %v736_v28 }
  0x81   :  { %14230 = vmatprep.subr.mxu0 %v19642_v0  ;;  %14241 = vmatprep.subr.mxu1 %v19642_v0 }
  0x82   :  { %14231 = vmatpush3.msra.mxu0 %v740_v29  ;;  %14242 = vmatpush3.msra.mxu1 %v735_v30  ;;  %v154_v29 = vld [vmem:[#allocation5 + $0x8] sm:$0xff] }
  0x83   :  { %14232 = vmatprep.subr.mxu0 %v19642_v0  ;;  %14243 = vmatprep.subr.mxu1 %v19642_v0 }
  0x84   :  { %14233 = vmatpush3.msra.mxu0 %v739_v31  ;;  %14244 = vmatpush3.msra.mxu1 %v734_v32 }
  0x85   :  { %14234 = vmatprep.subr.mxu0 %v19642_v0  ;;  %14245 = vmatprep.subr.mxu1 %v19642_v0 }
  0x86   :  { %14235 = vmatpush3.msra.mxu0 %v738_v33  ;;  %14236 = vmatprep.mubr.msk.f32.mxu0 %vm16047_vm0, %v19642_v0 }
  0x87   :  { %14246 = vmatpush3.msra.mxu1 %v733_v34  ;;  %14247 = vmatprep.mubr.msk.f32.mxu1 %vm16047_vm0, %v19642_v0 }
  0x88   :  { %14237 = vmatmul.mubr.msk.f32.vlgmr.msra.gmra.mxu0 %vm175_vm1, %v16181_v9  ;;  %14248 = vmatmul.mubr.msk.f32.vlgmr.msra.gmra.mxu1 %vm175_vm1, %v16183_v10 }
  0x89   :  { %14250 = vmatprep.subr.mxu0 %v19642_v0  ;;  %14258 = vmatprep.mubr.msk.f32.mxu0 %vm16047_vm0, %v19642_v0 }
  0x8a   :  { %14261 = vmatprep.subr.mxu1 %v19642_v0  ;;  %14269 = vmatprep.mubr.msk.f32.mxu1 %vm16047_vm0, %v19642_v0 }
  0x8b   :  { %14251 = vmatpush3.msra.mxu0 %v1782_v35 }
  0x8c   :  { %14252 = vmatprep.subr.mxu0 %v19642_v0 }
  0x8d   :  { %14253 = vmatpush3.msra.mxu0 %v1781_v36  ;;  %v16048_v36 = vmov 1966171168  }
  0x8e   :  { %14254 = vmatprep.subr.mxu0 %v19642_v0 }
  0x8f   :  { %14255 = vmatpush3.msra.mxu0 %v1780_v37  ;;  %v905_v37 = vunpack.c.l.s4 %v16048_v36 }
  0x90   :  { %14256 = vmatprep.subr.mxu0 %v19642_v0 }
  0x91   :  { %14257 = vmatpush3.msra.mxu0 %v1779_v38  ;;  %v907_v38 = vlaneseq  ;;  %v906_v39 = vunpack.c.0.s8 %v905_v37  ;;  %v16356_v37 = vld [vmem:[#allocation19 + $0x38] sm:$0xff] }
  0x92   :  { %14272 = vmatprep.subr.mxu0 %v19642_v0 }
  0x93   :  { %v16281_v40 = vshrl.u32 %v907_v38, 7 }
  0x95   :  { %v16284_v42 = vsub.s32 %v906_v39, %v16281_v40  ;;  %v16293_v46 = vsub.s32 0, %v16281_v40 }
  0x97   :  { %19684 = vst [vmem:[#allocation28_spill] sm:$0xff] %v16284_v42 }
 0x12a   :  { %v339_v55 = vpop.f32.mrf.mxu0  ;;  %v412_v57 = vpop.f32.mrf.mxu1 }
 0x12b   :  { %v413_v58 = vadd.f32 %v412_v57, %v339_v55  ;;  %v16305_v55 = vld [vmem:[#allocation19 + $0x10] sm:$0xff] }
 0x12c   :  { %v14172_v59 = vpop.f32.mrf.mxu0  ;;  %v14183_v60 = vpop.f32.mrf.mxu1 }
 0x12d   :  { %v416_v61 = vadd.f32 %v13547_v56, %v413_v58  ;;  %v16307_v56 = vld [vmem:[#allocation19 + $0x40] sm:$0xff]  ;;  %v16312_v60 = vld [vmem:[#allocation19 + $0x48] sm:$0xff] }
 0x12f   :  { %v13564_v62 = vmul.f32 -1.442695, %v416_v61 }
 0x131   :  { %15226 = vpow2.f32 %v13564_v62 }
 0x134   :  { %v499_v63 = vpop.f32.mrf.mxu0  ;;  %v569_v2 = vpop.f32.mrf.mxu1 }
 0x135   :  { %v570_v3 = vadd.f32 %v569_v2, %v499_v63 }
 0x136   :  { %v14194_v4 = vpop.f32.mrf.mxu0  ;;  %v14205_v5 = vpop.f32.mrf.mxu1 }
 0x137   :  { %v573_v6 = vadd.f32 %v13549_v1, %v570_v3  ;;  %v16318_v3 = vld [vmem:[#allocation19 + $0x8] sm:$0xff] }
 0x139   :  { %v13567_v7 = vmul.f32 -1.442695, %v573_v6  ;;  %v16322_v6 = vld [vmem:[#allocation19 + $0x50] sm:$0xff] }
 0x13b   :  { %15228 = vpow2.f32 %v13567_v7 }
 0x13e   :  { %v15227_v10 = vpop.eup %15226 }
 0x13f   :  { %v656_v8 = vpop.f32.mrf.mxu0  ;;  %v726_v9 = vpop.f32.mrf.mxu1  ;;  %v420_v15 = vadd.f32 1.0, %v15227_v10 }
 0x140   :  { %v727_v11 = vadd.f32 %v726_v9, %v656_v8 }
 0x141   :  { %v14216_v12 = vpop.f32.mrf.mxu0  ;;  %v14227_v13 = vpop.f32.mrf.mxu1  ;;  %15230 = vrcp.f32 %v420_v15  ;;  %v16332_v15 = vld [vmem:[#allocation19 + $0x60] sm:$0xff] }
 0x142   :  { %v730_v16 = vadd.f32 %v13551_v14, %v727_v11  ;;  %v16328_v11 = vld [vmem:[#allocation19 + $0x20] sm:$0xff] }
 0x144   :  { %15232 = vtanh.f32 %v730_v16 }
 0x148   :  { %v15229_v17 = vpop.eup %15228  ;;  %v808_v18 = vpop.f32.mrf.mxu0 }
 0x149   :  { %v878_v20 = vpop.f32.mrf.mxu1  ;;  %v577_v21 = vadd.f32 1.0, %v15229_v17 }
 0x14a   :  { %v879_v22 = vadd.f32 %v878_v20, %v808_v18  ;;  %v14238_v23 = vpop.f32.mrf.mxu0  ;;  %v16337_v20 = vld [vmem:[#allocation19 + $0x28] sm:$0xff] }
 0x14b   :  { %v14249_v24 = vpop.f32.mrf.mxu1  ;;  %15234 = vrcp.f32 %v577_v21 }
 0x14c   :  { %v882_v25 = vadd.f32 %v13553_v19, %v879_v22  ;;  %v16342_v24 = vld [vmem:[#allocation19 + $0x18] sm:$0xff] }
 0x14e   :  { %v13572_v26 = vmul.f32 -1.442695, %v882_v25  ;;  %v15231_v27 = vpop.eup %15230 }
 0x150   :  { %15236 = vpow2.f32 %v13572_v26 }
 0x151   :  { %v15233_v28 = vpop.eup %15232 }
 0x152   :  { %v890_v32 = vmul.f32 %v15233_v28, %v15231_v27 }
 0x158   :  { %v15235_v30 = vpop.eup %15234 }
 0x159   :  { %v889_v31 = vmul.f32 %v15235_v30, %v154_v29  ;;  %v16347_v29 = vld [vmem:[#allocation19 + $0x30] sm:$0xff] }
 0x15b   :  { %v16277_v33 = vadd.f32 %v890_v32, %v889_v31  ;;  %v16351_v32 = vld [vmem:[#allocation19 + $0x58] sm:$0xff] }
 0x15d   :  { %19683 = vst [vmem:[#allocation27_spill] sm:$0xff] %v16277_v33  ;;  %v15237_v34 = vpop.eup %15236  ;;  %15238 = vtanh.f32 %v16277_v33 }
 0x15e   :  { %v886_v35 = vadd.f32 1.0, %v15237_v34 }
 0x160   :  { %15240 = vrcp.f32 %v886_v35 }
 0x16a   :  { %v15239_v41 = vpop.eup %15238 }
 0x16d   :  { %v15241_v43 = vpop.eup %15240 }
 0x16e   :  { %v16286_v44 = vmul.f32 %v15241_v43, %v15239_v41  ;;  %v16360_v43 = vld [vmem:[#allocation19 + $0x68] sm:$0xff] }
 0x170   :  { %14259 = vmatmul.mubr.msk.f32.vlgmr.msra.gmra.mxu0 %vm175_vm1, %v16286_v44  ;;  %v910_v45 = vrot.slane %v16286_v44, %v16284_v42  ;;  %v903_v47 = vcombine.high %v16286_v44, %v16286_v44 }
 0x171   :  { %14280 = vmatprep.mubr.msk.f32.mxu0 %vm16047_vm0, %v19642_v0 }
 0x172   :  { %v926_v48 = vrot.slane %v910_v45, %v16284_v42  ;;  %v918_v49 = vcombine.high %v910_v45, %v910_v45  ;;  %v917_v51 = vrot.slane %v903_v47, %v16284_v42 }
 0x174   :  { %v955_v52 = vrot.slane %v926_v48, %v16293_v46  ;;  %v948_v53 = vcombine.high %v926_v48, %v926_v48  ;;  %v940_v54 = vrot.slane %v918_v49, %v16284_v42  ;;  %v933_v61 = vrot.slane %v917_v51, %v16284_v42  ;;  %v16364_v48 = vld [vmem:[#allocation19 + $0x70] sm:$0xff] }
 0x175   :  { %v919_v2 = vcombine.high %v917_v51, %v917_v51 }
 0x176   :  { %v992_v57 = vmul.f32 %v955_v52, %v16300_v50  ;;  %v963_v58 = vrot.slane %v948_v53, %v16293_v46  ;;  %v959_v59 = vrot.slane %v940_v54, %v16293_v46  ;;  %v1395_v1 = vmul.f32 %v16307_v56, %v955_v52  ;;  %v16368_v52 = vld [vmem:[#allocation19 + $0x78] sm:$0xff] }
 0x177   :  { %v971_v9 = vrot.slane %v933_v61, %v16293_v46  ;;  %v947_v10 = vrot.slane %v919_v2, %v16284_v42  ;;  %v950_v14 = vcombine.high %v940_v54, %v940_v54  ;;  %v949_v19 = vcombine.high %v933_v61, %v933_v61 }
 0x178   :  { %v1000_v62 = vsel %vm175_vm1, %v992_v57, 0.0  ;;  %v994_v63 = vmul.f32 %v963_v58, %v16305_v55  ;;  %v1396_v5 = vmul.f32 %v16312_v60, %v959_v59  ;;  %v1403_v7 = vsel %vm175_vm1, %v1395_v1, 0.0 }
 0x179   :  { %1001 = vadd.xlane.f32.xlu0 %v1000_v62  ;;  %v993_v8 = vmul.f32 %v959_v59, %v16318_v3  ;;  %v1397_v13 = vmul.f32 %v16322_v6, %v963_v58  ;;  %v996_v17 = vmul.f32 %v971_v9, %v16328_v11  ;;  %v975_v18 = vrot.slane %v947_v10, %v16293_v46 }
 0x17a   :  { %v1006_v4 = vsel %vm175_vm1, %v994_v63, 0.0  ;;  %v1406_v12 = vsel %vm175_vm1, %v1396_v5, 0.0  ;;  %v1399_v22 = vmul.f32 %v16332_v15, %v971_v9  ;;  %v967_v23 = vrot.slane %v950_v14, %v16293_v46 }
 0x17b   :  { %1007 = vadd.xlane.f32.xlu1 %v1006_v4  ;;  %v1003_v16 = vsel %vm175_vm1, %v993_v8, 0.0  ;;  %v1409_v21 = vsel %vm175_vm1, %v1397_v13, 0.0  ;;  %v1012_v25 = vsel %vm175_vm1, %v996_v17, 0.0  ;;  %v997_v26 = vmul.f32 %v975_v18, %v16337_v20 }
 0x17c   :  { %v979_v27 = vrot.slane %v949_v19, %v16293_v46  ;;  %v951_v28 = vcombine.high %v947_v10, %v947_v10  ;;  %v1415_v30 = vsel %vm175_vm1, %v1399_v22, 0.0  ;;  %v995_v31 = vmul.f32 %v967_v23, %v16342_v24 }
 0x17d   :  { %1404 = vadd.xlane.f32.xlu0 %v1403_v7  ;;  %v1015_v34 = vsel %vm175_vm1, %v997_v26, 0.0  ;;  %v1398_v41 = vmul.f32 %v16351_v32, %v967_v23  ;;  %v1400_v51 = vmul.f32 %v16360_v43, %v975_v18  ;;  %v1033_v4 = vand.u32 127, %v907_v38 }
 0x17e   :  { %v998_v35 = vmul.f32 %v979_v27, %v16347_v29  ;;  %v983_v36 = vrot.slane %v951_v28, %v16293_v46  ;;  %v1009_v39 = vsel %vm175_vm1, %v995_v31, 0.0  ;;  %v1401_v54 = vmul.f32 %v16364_v48, %v979_v27 }
 0x17f   :  { %1407 = vadd.xlane.f32.xlu1 %v1406_v12  ;;  %v1412_v49 = vsel %vm175_vm1, %v1398_v41, 0.0  ;;  %v1418_v57 = vsel %vm175_vm1, %v1400_v51, 0.0  ;;  %v16390_v8 = vsub.s32 %v1033_v4, %v16281_v40 }
 0x180   :  { %v1018_v45 = vsel %vm175_vm1, %v998_v35, 0.0  ;;  %v999_v47 = vmul.f32 %v983_v36, %v16356_v37  ;;  %v1402_v58 = vmul.f32 %v16368_v52, %v983_v36  ;;  %v1421_v59 = vsel %vm175_vm1, %v1401_v54, 0.0 }
 0x181   :  { %1004 = vadd.xlane.f32.xlu0 %v1003_v16 }
 0x182   :  { %v1021_v53 = vsel %vm175_vm1, %v999_v47, 0.0  ;;  %v1424_v61 = vsel %vm175_vm1, %v1402_v58, 0.0 }
 0x183   :  { %1410 = vadd.xlane.f32.xlu1 %v1409_v21 }
 0x185   :  { %1013 = vadd.xlane.f32.xlu0 %v1012_v25 }
 0x187   :  { %1416 = vadd.xlane.f32.xlu1 %v1415_v30 }
 0x189   :  { %1016 = vadd.xlane.f32.xlu0 %v1015_v34 }
 0x18b   :  { %1010 = vadd.xlane.f32.xlu1 %v1009_v39 }
 0x18d   :  { %1019 = vadd.xlane.f32.xlu0 %v1018_v45 }
 0x18f   :  { %1413 = vadd.xlane.f32.xlu1 %v1412_v49 }
 0x191   :  { %1022 = vadd.xlane.f32.xlu0 %v1021_v53 }
 0x193   :  { %1419 = vadd.xlane.f32.xlu1 %v1418_v57 }
 0x195   :  { %1422 = vadd.xlane.f32.xlu0 %v1421_v59 }
 0x197   :  { %1425 = vadd.xlane.f32.xlu1 %v1424_v61 }
 0x202   :  { %v16376_v62 = vpop.xlane.xlu0 %1001 }
 0x203   :  { %v1037_v13 = vrot.slane %v16376_v62, %v16390_v8 }
 0x204   :  { %v16378_v63 = vpop.xlane.xlu1 %1007 }
 0x205   :  { %v1045_v16 = vrot.slane %v16378_v63, %v16390_v8 }
 0x206   :  { %v16380_v1 = vpop.xlane.xlu0 %1404 }
 0x207   :  { %v1438_v26 = vrot.slane %v16380_v1, %v16390_v8 }
 0x208   :  { %v16382_v2 = vpop.xlane.xlu1 %1407 }
 0x209   :  { %v1442_v18 = vrot.slane %v16382_v2, %v16390_v8 }
 0x20a   :  { %v16385_v5 = vpop.xlane.xlu0 %1004 }
 0x20b   :  { %v1041_v10 = vrot.slane %v16385_v5, %v16390_v8  ;;  %v1467_v35 = vsel %vm1066_vm2, %v1442_v18, %v1438_v26  ;;  %v16049_v26 = vmov 0  }
 0x20c   :  { %v16387_v7 = vpop.xlane.xlu1 %1410  ;;  %15225 = vset.pattern.permute.xlu1 %v16049_v26  ;;  %15224 = vset.pattern.permute.xlu0 %v16049_v26 }
 0x20d   :  { %v1067_v38 = vsel %vm1066_vm2, %v1041_v10, %v1037_v13  ;;  %v1446_v21 = vrot.slane %v16387_v7, %v16390_v8 }
 0x20e   :  { %v16392_v9 = vpop.xlane.xlu0 %1013  ;;  %v1069_v23 = vsel %vm1068_vm3, %v1045_v16, %v1067_v38 }
 0x20f   :  { %v1053_v22 = vrot.slane %v16392_v9, %v16390_v8  ;;  %v1468_v41 = vsel %vm1068_vm3, %v1446_v21, %v1467_v35 }
 0x210   :  { %v16396_v12 = vpop.xlane.xlu1 %1416 }
 0x211   :  { %v1454_v51 = vrot.slane %v16396_v12, %v16390_v8 }
 0x212   :  { %v16400_v14 = vpop.xlane.xlu0 %1016 }
 0x213   :  { %v1057_v27 = vrot.slane %v16400_v14, %v16390_v8 }
 0x214   :  { %v1011_v17 = vpop.xlane.xlu1 %1010 }
 0x215   :  { %v1049_v19 = vrot.slane %v1011_v17, %v16390_v8 }
 0x216   :  { %v16413_v25 = vpop.xlane.xlu0 %1019 }
 0x217   :  { %v1071_v28 = vsel %vm1070_vm4, %v1049_v19, %v1069_v23  ;;  %v1061_v30 = vrot.slane %v16413_v25, %v16390_v8 }
 0x218   :  { %v1414_v31 = vpop.xlane.xlu1 %1413  ;;  %v1073_v34 = vsel %vm1072_vm5, %v1053_v22, %v1071_v28  ;;  %v16454_v28 = vsub.s32 2, %v16281_v40 }
 0x219   :  { %v1450_v36 = vrot.slane %v1414_v31, %v16390_v8  ;;  %v1075_v39 = vsel %vm1074_vm6, %v1057_v27, %v1073_v34  ;;  %v16451_v27 = vsub.s32 1, %v16281_v40 }
 0x21a   :  { %v16427_v45 = vpop.xlane.xlu0 %1022  ;;  %v1077_v54 = vsel %vm1076_vm7, %v1061_v30, %v1075_v39  ;;  %v16457_v30 = vsub.s32 3, %v16281_v40 }
 0x21b   :  { %v1469_v47 = vsel %vm1070_vm4, %v1450_v36, %v1468_v41  ;;  %v1065_v49 = vrot.slane %v16427_v45, %v16390_v8 }
 0x21c   :  { %v1420_v53 = vpop.xlane.xlu1 %1419  ;;  %v1470_v4 = vsel %vm1072_vm5, %v1454_v51, %v1469_v47 }
 0x21d   :  { %v1458_v57 = vrot.slane %v1420_v53, %v16390_v8  ;;  %v1079_v58 = vsel %vm1078_vm8, %v1065_v49, %v1077_v54 }
 0x21e   :  { %v16437_v59 = vpop.xlane.xlu0 %1422  ;;  %v1082_v61 = vsel %vm1081_vm9, %v1079_v58, -inf }
 0x21f   :  { %v1462_v10 = vrot.slane %v16437_v59, %v16390_v8  ;;  %1083 = vmax.xlane.f32.xlu0 %v1082_v61  ;;  %v1471_v13 = vsel %vm1074_vm6, %v1458_v57, %v1470_v4  ;;  %v16475_v61 = vsub.s32 4, %v16281_v40 }
 0x220   :  { %v1426_v38 = vpop.xlane.xlu1 %1425 }
 0x221   :  { %v1466_v16 = vrot.slane %v1426_v38, %v16390_v8  ;;  %v1472_v18 = vsel %vm1076_vm7, %v1462_v10, %v1471_v13  ;;  %19686 = vst [vmem:[#allocation30_spill] sm:$0xff] %v16475_v61 }
 0x223   :  { %v1473_v19 = vsel %vm1078_vm8, %v1466_v16, %v1472_v18 }
 0x224   :  { %v1475_v21 = vsel %vm1081_vm9, %v1473_v19, -inf }
 0x225   :  { %1476 = vmax.xlane.f32.xlu1 %v1475_v21 }
 0x230   :  { %v16448_v22 = vpop.f32.mrf.mxu0 }
 0x231   :  { %19685 = vst [vmem:[#allocation29_spill] sm:$0xff] %v16448_v22 }
 0x232   :  { %v14260_v23 = vpop.f32.mrf.mxu0 }
 0x2a8   :  { %v16459_v34 = vpop.xlane.xlu0 %1083 }
 0x2a9   :  { %v1089_v35 = vrot.slane %v16459_v34, %v16293_v46  ;;  %v1093_v36 = vrot.slane %v16459_v34, %v16451_v27  ;;  %v1097_v39 = vrot.slane %v16459_v34, %v16454_v28  ;;  %v1101_v41 = vrot.slane %v16459_v34, %v16457_v30 }
 0x2ab   :  { %v1126_v47 = vsub.f32 %v16376_v62, %v1089_v35  ;;  %v1127_v49 = vsub.f32 %v16385_v5, %v1093_v36  ;;  %v1128_v51 = vsub.f32 %v16378_v63, %v1097_v39  ;;  %v1129_v4 = vsub.f32 %v1011_v17, %v1101_v41 }
 0x2ac   :  { %v16484_v5 = vsub.s32 5, %v16281_v40  ;;  %v16493_v35 = vsub.s32 7, %v16281_v40  ;;  %v1105_v36 = vrot.slane %v16459_v34, %v16475_v61 }
 0x2ad   :  { %v1134_v54 = vmul.f32 1.442695, %v1126_v47  ;;  %v1136_v57 = vmul.f32 1.442695, %v1127_v49  ;;  %v1138_v10 = vmul.f32 1.442695, %v1128_v51 }
 0x2ae   :  { %v16472_v58 = vpop.xlane.xlu1 %1476  ;;  %19687 = vst [vmem:[#allocation31_spill] sm:$0xff] %v16484_v5  ;;  %v1140_v18 = vmul.f32 1.442695, %v1129_v4  ;;  %19688 = vst [vmem:[#allocation32_spill] sm:$0xff] %v16493_v35 }
 0x2af   :  { %15242 = vpow2.f32 %v1134_v54  ;;  %v1482_v13 = vrot.slane %v16472_v58, %v16293_v46  ;;  %v1494_v62 = vrot.slane %v16472_v58, %v16457_v30  ;;  %v1498_v63 = vrot.slane %v16472_v58, %v16475_v61 }
 0x2b0   :  { %15244 = vpow2.f32 %v1136_v57  ;;  %v1486_v17 = vrot.slane %v16472_v58, %v16451_v27  ;;  %v1502_v21 = vrot.slane %v16472_v58, %v16484_v5  ;;  %v1510_v41 = vrot.slane %v16472_v58, %v16493_v35 }
 0x2b1   :  { %v1522_v16 = vsub.f32 %v1414_v31, %v1494_v62  ;;  %15246 = vpow2.f32 %v1138_v10  ;;  %v1519_v19 = vsub.f32 %v16380_v1, %v1482_v13  ;;  %v1523_v23 = vsub.f32 %v16396_v12, %v1498_v63 }
 0x2b2   :  { %15248 = vpow2.f32 %v1140_v18  ;;  %v1520_v31 = vsub.f32 %v16382_v2, %v1486_v17  ;;  %v1524_v1 = vsub.f32 %v1420_v53, %v1502_v21  ;;  %v1130_v12 = vsub.f32 %v16392_v9, %v1105_v36 }
 0x2b3   :  { %v1533_v26 = vmul.f32 1.442695, %v1522_v16  ;;  %v1527_v39 = vmul.f32 1.442695, %v1519_v19  ;;  %v1535_v47 = vmul.f32 1.442695, %v1523_v23  ;;  %v1490_v51 = vrot.slane %v16472_v58, %v16454_v28 }
 0x2b4   :  { %v1529_v54 = vmul.f32 1.442695, %v1520_v31  ;;  %v1526_v2 = vsub.f32 %v1426_v38, %v1510_v41  ;;  %v1537_v4 = vmul.f32 1.442695, %v1524_v1  ;;  %v16510_v53 = vsub.s32 6, %v16281_v40 }
 0x2b5   :  { %15250 = vpow2.f32 %v1533_v26  ;;  %v1109_v9 = vrot.slane %v16459_v34, %v16484_v5  ;;  %v1142_v10 = vmul.f32 1.442695, %v1130_v12  ;;  %v1521_v13 = vsub.f32 %v16387_v7, %v1490_v51 }
 0x2b6   :  { %15252 = vpow2.f32 %v1527_v39  ;;  %19689 = vst [vmem:[#allocation33_spill] sm:$0xff] %v16510_v53  ;;  %v1541_v63 = vmul.f32 1.442695, %v1526_v2  ;;  %v1113_v38 = vrot.slane %v16459_v34, %v16510_v53  ;;  %v1117_v17 = vrot.slane %v16459_v34, %v16493_v35 }
 0x2b7   :  { %15254 = vpow2.f32 %v1535_v47  ;;  %v1131_v16 = vsub.f32 %v16400_v14, %v1109_v9  ;;  %v1531_v40 = vmul.f32 1.442695, %v1521_v13  ;;  %v1506_v31 = vrot.slane %v16472_v58, %v16510_v53 }
 0x2b8   :  { %15256 = vpow2.f32 %v1529_v54  ;;  %v1132_v19 = vsub.f32 %v16413_v25, %v1113_v38  ;;  %v1133_v26 = vsub.f32 %v16427_v45, %v1117_v17 }
 0x2b9   :  { %15258 = vpow2.f32 %v1537_v4  ;;  %v1144_v21 = vmul.f32 1.442695, %v1131_v16  ;;  %v1525_v41 = vsub.f32 %v16437_v59, %v1506_v31 }
 0x2ba   :  { %15260 = vpow2.f32 %v1142_v10  ;;  %v1146_v36 = vmul.f32 1.442695, %v1132_v19  ;;  %v1148_v39 = vmul.f32 1.442695, %v1133_v26 }
 0x2bb   :  { %15262 = vpow2.f32 %v1541_v63  ;;  %v1539_v58 = vmul.f32 1.442695, %v1525_v41 }
 0x2bc   :  { %v16500_v49 = vpop.eup %15242  ;;  %15264 = vpow2.f32 %v1531_v40 }
 0x2bd   :  { %v16505_v57 = vpop.eup %15244  ;;  %1159 = vperm.xlu0 %15224, %v16500_v49   ;;  %15266 = vpow2.f32 %v1144_v21 }
 0x2be   :  { %1162 = vperm.xlu1 %15225, %v16505_v57   ;;  %v16515_v62 = vpop.eup %15246  ;;  %15268 = vpow2.f32 %v1146_v36 }
 0x2bf   :  { %v16521_v18 = vpop.eup %15248  ;;  %15270 = vpow2.f32 %v1148_v39 }
 0x2c0   :  { %15272 = vpow2.f32 %v1539_v58 }
 0x2c2   :  { %1165 = vperm.xlu1 %15225, %v16515_v62   ;;  %v16524_v7 = vpop.eup %15250 }
 0x2c3   :  { %1561 = vperm.xlu0 %15224, %v16524_v7   ;;  %v16530_v23 = vpop.eup %15252 }
 0x2c4   :  { %v16533_v14 = vpop.eup %15254 }
 0x2c5   :  { %v16539_v25 = vpop.eup %15256 }
 0x2c6   :  { %1168 = vperm.xlu1 %15225, %v16521_v18   ;;  %v16542_v34 = vpop.eup %15258 }
 0x2c7   :  { %1564 = vperm.xlu0 %15224, %v16533_v14   ;;  %v16546_v45 = vpop.eup %15260 }
 0x2c8   :  { %v16549_v1 = vpop.eup %15262 }
 0x2c9   :  { %v16552_v47 = vpop.eup %15264 }
 0x2ca   :  { %1552 = vperm.xlu1 %15225, %v16530_v23   ;;  %v16555_v12 = vpop.eup %15266 }
 0x2cb   :  { %1567 = vperm.xlu0 %15224, %v16542_v34   ;;  %v16558_v59 = vpop.eup %15268 }
 0x2cc   :  { %v16561_v51 = vpop.eup %15270 }
 0x2cd   :  { %v16564_v54 = vpop.eup %15272 }
 0x2ce   :  { %1555 = vperm.xlu1 %15225, %v16539_v25  }
 0x2cf   :  { %1573 = vperm.xlu0 %15224, %v16549_v1  }
 0x2d2   :  { %1171 = vperm.xlu1 %15225, %v16546_v45  }
 0x2d6   :  { %1558 = vperm.xlu1 %15225, %v16552_v47  }
 0x2da   :  { %1174 = vperm.xlu1 %15225, %v16555_v12  }
 0x2de   :  { %1177 = vperm.xlu1 %15225, %v16558_v59  }
 0x2e2   :  { %1180 = vperm.xlu1 %15225, %v16561_v51  }
 0x2e6   :  { %1570 = vperm.xlu1 %15225, %v16564_v54  }
 0x338   :  { %v1160_v63 = vpop.permute.xlu0 %1159 }
 0x339   :  { %v1163_v2 = vpop.permute.xlu1 %1162  ;;  %v1185_v36 = vrot.slane %v1160_v63, %v16390_v8 }
 0x33a   :  { %v1189_v26 = vrot.slane %v1163_v2, %v16390_v8 }
 0x33d   :  { %v1166_v4 = vpop.permute.xlu1 %1165 }
 0x33e   :  { %v1562_v16 = vpop.permute.xlu0 %1561  ;;  %v1193_v39 = vrot.slane %v1166_v4, %v16390_v8 }
 0x33f   :  { %v1590_v4 = vrot.slane %v1562_v16, %v16390_v8 }
 0x341   :  { %v1169_v9 = vpop.permute.xlu1 %1168 }
 0x342   :  { %v1565_v17 = vpop.permute.xlu0 %1564  ;;  %v1197_v58 = vrot.slane %v1169_v9, %v16390_v8 }
 0x345   :  { %v1553_v10 = vpop.permute.xlu1 %1552 }
 0x346   :  { %v1578_v41 = vrot.slane %v1553_v10, %v16390_v8  ;;  %v1568_v22 = vpop.permute.xlu0 %1567 }
 0x349   :  { %v1556_v13 = vpop.permute.xlu1 %1555 }
 0x34a   :  { %v1582_v19 = vrot.slane %v1556_v13, %v16390_v8  ;;  %v1214_v13 = vsel %vm1066_vm2, %v1189_v26, %v1185_v36  ;;  %v1594_v26 = vrot.slane %v1565_v17, %v16390_v8 }
 0x34c   :  { %v1607_v0 = vsel %vm1066_vm2, %v1582_v19, %v1578_v41 }
 0x34d   :  { %v1172_v38 = vpop.permute.xlu1 %1171 }
 0x34e   :  { %v1201_v33 = vrot.slane %v1172_v38, %v16390_v8 }
 0x351   :  { %v1559_v40 = vpop.permute.xlu1 %1558 }
 0x352   :  { %v1586_v31 = vrot.slane %v1559_v40, %v16390_v8  ;;  %v1215_v40 = vsel %vm1068_vm3, %v1193_v39, %v1214_v13  ;;  %v1598_v39 = vrot.slane %v1568_v22, %v16390_v8 }
 0x353   :  { %v1216_v9 = vsel %vm1070_vm4, %v1197_v58, %v1215_v40 }
 0x354   :  { %v1608_v2 = vsel %vm1068_vm3, %v1586_v31, %v1607_v0  ;;  %v1217_v19 = vsel %vm1072_vm5, %v1201_v33, %v1216_v9  ;;  %v1574_v31 = vpop.permute.xlu0 %1573 }
 0x355   :  { %v1175_v21 = vpop.permute.xlu1 %1174  ;;  %v1609_v38 = vsel %vm1070_vm4, %v1590_v4, %v1608_v2  ;;  %v1606_v17 = vrot.slane %v1574_v31, %v16390_v8 }
 0x356   :  { %v1205_v63 = vrot.slane %v1175_v21, %v16390_v8 }
 0x358   :  { %v1218_v0 = vsel %vm1074_vm6, %v1205_v63, %v1217_v19 }
 0x359   :  { %v1178_v42 = vpop.permute.xlu1 %1177 }
 0x35a   :  { %v1209_v10 = vrot.slane %v1178_v42, %v16390_v8  ;;  %v1610_v42 = vsel %vm1072_vm5, %v1594_v26, %v1609_v38 }
 0x35b   :  { %v1611_v2 = vsel %vm1074_vm6, %v1598_v39, %v1610_v42 }
 0x35c   :  { %v1219_v21 = vsel %vm1076_vm7, %v1209_v10, %v1218_v0 }
 0x35d   :  { %v1181_v41 = vpop.permute.xlu1 %1180 }
 0x35e   :  { %v1213_v36 = vrot.slane %v1181_v41, %v16390_v8 }
 0x360   :  { %v1220_v16 = vsel %vm1078_vm8, %v1213_v36, %v1219_v21 }
 0x361   :  { %v1571_v58 = vpop.permute.xlu1 %1570  ;;  %v1222_v33 = vsel %vm1081_vm9, %v1220_v16, 0.0 }
 0x362   :  { %v1602_v13 = vrot.slane %v1571_v58, %v16390_v8  ;;  %1223 = vadd.xlane.f32.xlu1 %v1222_v33 }
 0x364   :  { %v1612_v63 = vsel %vm1076_vm7, %v1602_v13, %v1611_v2 }
 0x365   :  { %v1613_v40 = vsel %vm1078_vm8, %v1606_v17, %v1612_v63 }
 0x366   :  { %v1615_v4 = vsel %vm1081_vm9, %v1613_v40, 0.0 }
 0x367   :  { %1616 = vadd.xlane.f32.xlu0 %v1615_v4 }
 0x3eb   :  { %v1224_v10 = vpop.xlane.xlu1 %1223 }
 0x3ec   :  { %v1233_v22 = vrot.slane %v1224_v10, %v16451_v27  ;;  %v1229_v9 = vrot.slane %v1224_v10, %v16293_v46  ;;  %v1237_v19 = vrot.slane %v1224_v10, %v16454_v28  ;;  %v1241_v38 = vrot.slane %v1224_v10, %v16457_v30 }
 0x3ed   :  { %v1245_v0 = vrot.slane %v1224_v10, %v16475_v61  ;;  %v1249_v31 = vrot.slane %v1224_v10, %v16484_v5  ;;  %v1253_v33 = vrot.slane %v1224_v10, %v16510_v53 }
 0x3ee   :  { %15274 = vrcp.f32 %v1233_v22 }
 0x3ef   :  { %15276 = vrcp.f32 %v1229_v9 }
 0x3f0   :  { %v1617_v41 = vpop.xlane.xlu0 %1616  ;;  %15278 = vrcp.f32 %v1237_v19 }
 0x3f1   :  { %15280 = vrcp.f32 %v1241_v38  ;;  %v1626_v26 = vrot.slane %v1617_v41, %v16451_v27  ;;  %v1622_v36 = vrot.slane %v1617_v41, %v16293_v46  ;;  %v1630_v21 = vrot.slane %v1617_v41, %v16454_v28 }
 0x3f2   :  { %v1634_v16 = vrot.slane %v1617_v41, %v16457_v30  ;;  %v1638_v2 = vrot.slane %v1617_v41, %v16475_v61 }
 0x3f3   :  { %15282 = vrcp.f32 %v1622_v36 }
 0x3f4   :  { %15284 = vrcp.f32 %v1626_v26 }
 0x3f5   :  { %15286 = vrcp.f32 %v1245_v0 }
 0x3f6   :  { %15288 = vrcp.f32 %v1630_v21 }
 0x3f7   :  { %15290 = vrcp.f32 %v1249_v31 }
 0x3f8   :  { %15292 = vrcp.f32 %v1634_v16 }
 0x3f9   :  { %15294 = vrcp.f32 %v1253_v33 }
 0x3fa   :  { %15296 = vrcp.f32 %v1638_v2  ;;  %v1859_v2 = vld [vmem:[#allocation11 + $0x30] sm:$0xff] }
 0x3fb   :  { %v15275_v42 = vpop.eup %15274 }
 0x3fc   :  { %v15277_v39 = vpop.eup %15276  ;;  %v16610_v58 = vmul.f32 %v15275_v42, %v16505_v57  ;;  %v1257_v57 = vrot.slane %v1224_v10, %v16493_v35 }
 0x3fd   :  { %v15279_v13 = vpop.eup %15278  ;;  %v16614_v17 = vmul.f32 %v15277_v39, %v16500_v49  ;;  %v1642_v49 = vrot.slane %v1617_v41, %v16484_v5 }
 0x3fe   :  { %v15281_v63 = vpop.eup %15280  ;;  %1289 = vperm.xlu1 %15225, %v16610_v58   ;;  %v16620_v40 = vmul.f32 %v15279_v13, %v16515_v62  ;;  %15298 = vrcp.f32 %v1257_v57  ;;  %v1646_v62 = vrot.slane %v1617_v41, %v16510_v53  ;;  %v1953_v57 = vld [vmem:[#allocation11 + $0x58] sm:$0xff] }
 0x3ff   :  { %1284 = vperm.xlu0 %15224, %v16614_v17   ;;  %v16624_v22 = vmul.f32 %v15281_v63, %v16521_v18  ;;  %15300 = vrcp.f32 %v1642_v49  ;;  %v1650_v18 = vrot.slane %v1617_v41, %v16493_v35  ;;  %v1858_v63 = vld [vmem:[#allocation11 + $0x28] sm:$0xff]  ;;  %14273 = vmatpush3.msra.mxu0 %v1953_v57  ;;  %v1950_v49 = vld [vmem:[#allocation11 + $0x40] sm:$0xff] }
 0x400   :  { %v15283_v4 = vpop.eup %15282  ;;  %15302 = vrcp.f32 %v1646_v62 }
 0x401   :  { %v15285_v9 = vpop.eup %15284  ;;  %v16630_v19 = vmul.f32 %v15283_v4, %v16530_v23  ;;  %15304 = vrcp.f32 %v1650_v18  ;;  %v1952_v4 = vld [vmem:[#allocation11 + $0x50] sm:$0xff] }
 0x402   :  { %1294 = vperm.xlu1 %15225, %v16620_v40   ;;  %v15287_v38 = vpop.eup %15286  ;;  %v16634_v10 = vmul.f32 %v15285_v9, %v16539_v25 }
 0x403   :  { %1299 = vperm.xlu0 %15224, %v16624_v22   ;;  %v15289_v26 = vpop.eup %15288  ;;  %v16640_v36 = vmul.f32 %v15287_v38, %v16546_v45 }
 0x404   :  { %v15291_v23 = vpop.eup %15290  ;;  %v16643_v0 = vmul.f32 %v15289_v26, %v16552_v47 }
 0x405   :  { %v15293_v21 = vpop.eup %15292  ;;  %v16648_v25 = vmul.f32 %v15291_v23, %v16555_v12 }
 0x406   :  { %1677 = vperm.xlu1 %15225, %v16630_v19   ;;  %v15295_v41 = vpop.eup %15294  ;;  %v16651_v31 = vmul.f32 %v15293_v21, %v16524_v7 }
 0x407   :  { %1682 = vperm.xlu0 %15224, %v16634_v10   ;;  %v15297_v45 = vpop.eup %15296  ;;  %v16656_v47 = vmul.f32 %v15295_v41, %v16558_v59 }
 0x408   :  { %v16659_v42 = vmul.f32 %v15297_v45, %v16533_v14 }
 0x40a   :  { %1304 = vperm.xlu1 %15225, %v16640_v36  }
 0x40b   :  { %1687 = vperm.xlu0 %15224, %v16643_v0   ;;  %v15299_v16 = vpop.eup %15298 }
 0x40c   :  { %v15301_v39 = vpop.eup %15300  ;;  %v16664_v7 = vmul.f32 %v15299_v16, %v16561_v51  ;;  %v1860_v51 = vld [vmem:[#allocation11 + $0x38] sm:$0xff] }
 0x40d   :  { %v15303_v12 = vpop.eup %15302  ;;  %v16667_v33 = vmul.f32 %v15301_v39, %v16542_v34  ;;  %14262 = vmatpush3.msra.mxu1 %v1860_v51  ;;  %v19690_v34 = vmov 0.0  }
 0x40e   :  { %1309 = vperm.xlu1 %15225, %v16648_v25   ;;  %v15305_v13 = vpop.eup %15304  ;;  %v16672_v14 = vmul.f32 %v15303_v12, %v16564_v54  ;;  %14263 = vmatprep.subr.mxu1 %v19690_v34  ;;  %v1857_v54 = vld [vmem:[#allocation11 + $0x20] sm:$0xff] }
 0x40f   :  { %1692 = vperm.xlu0 %15224, %v16651_v31   ;;  %v16675_v59 = vmul.f32 %v15305_v13, %v16549_v1  ;;  %14264 = vmatpush3.msra.mxu1 %v1859_v2  ;;  %v1951_v1 = vld [vmem:[#allocation11 + $0x48] sm:$0xff] }
 0x410   :  { %14265 = vmatprep.subr.mxu1 %v19690_v34  ;;  %14274 = vmatprep.subr.mxu0 %v19690_v34 }
 0x411   :  { %14266 = vmatpush3.msra.mxu1 %v1858_v63  ;;  %14275 = vmatpush3.msra.mxu0 %v1952_v4 }
 0x412   :  { %1314 = vperm.xlu1 %15225, %v16656_v47   ;;  %14267 = vmatprep.subr.mxu1 %v19690_v34 }
 0x413   :  { %1697 = vperm.xlu0 %15224, %v16659_v42   ;;  %14276 = vmatprep.subr.mxu0 %v19690_v34 }
 0x414   :  { %14268 = vmatpush3.msra.mxu1 %v1857_v54  ;;  %14277 = vmatpush3.msra.mxu0 %v1951_v1 }
 0x415   :  { %14283 = vmatprep.subr.mxu1 %v19690_v34  ;;  %14278 = vmatprep.subr.mxu0 %v19690_v34 }
 0x416   :  { %1319 = vperm.xlu1 %15225, %v16664_v7   ;;  %14279 = vmatpush3.msra.mxu0 %v1950_v49 }
 0x417   :  { %1702 = vperm.xlu0 %15224, %v16667_v33   ;;  %14294 = vmatprep.subr.mxu0 %v19690_v34 }
 0x41a   :  { %1707 = vperm.xlu1 %15225, %v16672_v14  }
 0x41b   :  { %1712 = vperm.xlu0 %15224, %v16675_v59  }
 0x479   :  { %v1290_v9 = vpop.permute.xlu1 %1289 }
 0x47a   :  { %v1323_v62 = vmul.f32 %v1290_v9, %v16318_v3  ;;  %v1285_v38 = vpop.permute.xlu0 %1284 }
 0x47b   :  { %v1322_v18 = vmul.f32 %v1285_v38, %v16300_v50 }
 0x47c   :  { %v1337_v26 = vsel %vm175_vm1, %v1323_v62, 0.0 }
 0x47d   :  { %v1338_v23 = vrot.slane %v1337_v26, 4  ;;  %v1330_v21 = vsel %vm175_vm1, %v1322_v18, 0.0  ;;  %v1295_v41 = vpop.permute.xlu1 %1294 }
 0x47e   :  { %v1331_v45 = vrot.slane %v1330_v21, 4  ;;  %v1324_v16 = vmul.f32 %v1295_v41, %v16305_v55  ;;  %v1300_v39 = vpop.permute.xlu0 %1299 }
 0x47f   :  { %v1339_v12 = vadd.f32 %v1338_v23, %v1337_v26  ;;  %v1325_v13 = vmul.f32 %v1300_v39, %v16342_v24 }
 0x480   :  { %v1332_v51 = vadd.f32 %v1331_v45, %v1330_v21  ;;  %v1344_v2 = vsel %vm175_vm1, %v1324_v16, 0.0 }
 0x481   :  { %v1340_v3 = vrot.slane %v1339_v12, 2  ;;  %v1345_v63 = vrot.slane %v1344_v2, 4  ;;  %v1351_v50 = vsel %vm175_vm1, %v1325_v13, 0.0  ;;  %v1678_v57 = vpop.permute.xlu1 %1677 }
 0x482   :  { %v1333_v4 = vrot.slane %v1332_v51, 2  ;;  %v1352_v54 = vrot.slane %v1351_v50, 4  ;;  %v1715_v1 = vmul.f32 %v1678_v57, %v16307_v56  ;;  %v1683_v49 = vpop.permute.xlu0 %1682 }
 0x483   :  { %v1346_v9 = vadd.f32 %v1345_v63, %v1344_v2  ;;  %v1716_v55 = vmul.f32 %v1683_v49, %v16312_v60  ;;  %v1341_v62 = vadd.f32 %v1340_v3, %v1339_v12 }
 0x484   :  { %v1334_v38 = vadd.f32 %v1333_v4, %v1332_v51  ;;  %v1353_v18 = vadd.f32 %v1352_v54, %v1351_v50  ;;  %v1723_v24 = vsel %vm175_vm1, %v1715_v1, 0.0 }
 0x485   :  { %v1347_v26 = vrot.slane %v1346_v9, 2  ;;  %v1724_v23 = vrot.slane %v1723_v24, 4  ;;  %v1730_v21 = vsel %vm175_vm1, %v1716_v55, 0.0  ;;  %v1305_v41 = vpop.permute.xlu1 %1304  ;;  %v1342_v60 = vrot.slane %v1341_v62, 1 }
 0x486   :  { %v1354_v45 = vrot.slane %v1353_v18, 2  ;;  %v1731_v16 = vrot.slane %v1730_v21, 4  ;;  %v1326_v39 = vmul.f32 %v1305_v41, %v16328_v11  ;;  %v1688_v13 = vpop.permute.xlu0 %1687  ;;  %v1335_v12 = vrot.slane %v1334_v38, 1 }
 0x487   :  { %v1348_v56 = vadd.f32 %v1347_v26, %v1346_v9  ;;  %v1725_v57 = vadd.f32 %v1724_v23, %v1723_v24  ;;  %v1717_v2 = vmul.f32 %v1688_v13, %v16322_v6  ;;  %v1343_v9 = vadd.f32 %v1342_v60, %v1341_v62 }
 0x488   :  { %v1358_v51 = vsel %vm175_vm1, %v1326_v39, 0.0  ;;  %v1355_v3 = vadd.f32 %v1354_v45, %v1353_v18  ;;  %v1732_v63 = vadd.f32 %v1731_v16, %v1730_v21  ;;  %v1336_v24 = vadd.f32 %v1335_v12, %v1334_v38 }
 0x489   :  { %v1359_v50 = vrot.slane %v1358_v51, 4  ;;  %v1737_v4 = vsel %vm175_vm1, %v1717_v2, 0.0  ;;  %v1310_v54 = vpop.permute.xlu1 %1309  ;;  %v1726_v1 = vrot.slane %v1725_v57, 2  ;;  %v1349_v35 = vrot.slane %v1348_v56, 1 }
 0x48a   :  { %v1738_v49 = vrot.slane %v1737_v4, 4  ;;  %v1693_v55 = vpop.permute.xlu0 %1692  ;;  %v1327_v11 = vmul.f32 %v1310_v54, %v16337_v20  ;;  %v1356_v23 = vrot.slane %v1355_v3, 1  ;;  %v1733_v41 = vrot.slane %v1732_v63, 2 }
 0x48b   :  { %v1360_v26 = vadd.f32 %v1359_v50, %v1358_v51  ;;  %v1718_v6 = vmul.f32 %v1693_v55, %v16351_v32  ;;  %v1727_v45 = vadd.f32 %v1726_v1, %v1725_v57  ;;  %v1350_v2 = vadd.f32 %v1349_v35, %v1348_v56 }
 0x48c   :  { %v1365_v18 = vsel %vm175_vm1, %v1327_v11, 0.0  ;;  %v1739_v16 = vadd.f32 %v1738_v49, %v1737_v4  ;;  %v1869_v20 = vsel %vm1066_vm2, %v1343_v9, %v1336_v24  ;;  %v1357_v32 = vadd.f32 %v1356_v23, %v1355_v3 }
 0x48d   :  { %v1315_v21 = vpop.permute.xlu1 %1314  ;;  %v1366_v39 = vrot.slane %v1365_v18, 4  ;;  %v1744_v53 = vsel %vm175_vm1, %v1718_v6, 0.0  ;;  %v1361_v62 = vrot.slane %v1360_v26, 2  ;;  %v1734_v12 = vadd.f32 %v1733_v41, %v1732_v63 }
 0x48e   :  { %v1698_v13 = vpop.permute.xlu0 %1697  ;;  %v1328_v5 = vmul.f32 %v1315_v21, %v16347_v29  ;;  %v1745_v60 = vrot.slane %v1744_v53, 4  ;;  %v1728_v4 = vrot.slane %v1727_v45, 1  ;;  %v1740_v54 = vrot.slane %v1739_v16, 2 }
 0x48f   :  { %v1367_v38 = vadd.f32 %v1366_v39, %v1365_v18  ;;  %v1719_v50 = vmul.f32 %v1698_v13, %v16332_v15  ;;  %v1870_v49 = vsel %vm1068_vm3, %v1350_v2, %v1869_v20  ;;  %v1362_v9 = vadd.f32 %v1361_v62, %v1360_v26 }
 0x490   :  { %v1372_v51 = vsel %vm175_vm1, %v1328_v5, 0.0  ;;  %v1746_v35 = vadd.f32 %v1745_v60, %v1744_v53  ;;  %v1735_v5 = vrot.slane %v1734_v12, 1  ;;  %v1729_v53 = vadd.f32 %v1728_v4, %v1727_v45 }
 0x491   :  { %v1320_v57 = vpop.permute.xlu1 %1319  ;;  %v1368_v1 = vrot.slane %v1367_v38, 2  ;;  %v1373_v29 = vrot.slane %v1372_v51, 4  ;;  %v1751_v55 = vsel %vm175_vm1, %v1719_v50, 0.0  ;;  %v1741_v18 = vadd.f32 %v1740_v54, %v1739_v16 }
 0x492   :  { %v1703_v56 = vpop.permute.xlu0 %1702  ;;  %v1329_v11 = vmul.f32 %v1320_v57, %v16356_v37  ;;  %v1747_v63 = vrot.slane %v1746_v35, 2  ;;  %v1752_v24 = vrot.slane %v1751_v55, 4  ;;  %v1363_v62 = vrot.slane %v1362_v9, 1 }
 0x493   :  { %v1369_v3 = vadd.f32 %v1368_v1, %v1367_v38  ;;  %v1374_v6 = vadd.f32 %v1373_v29, %v1372_v51  ;;  %v1720_v23 = vmul.f32 %v1703_v56, %v16360_v43  ;;  %v1742_v16 = vrot.slane %v1741_v18, 1 }
 0x494   :  { %v1379_v15 = vsel %vm175_vm1, %v1329_v11, 0.0  ;;  %v1748_v21 = vadd.f32 %v1747_v63, %v1746_v35  ;;  %v1753_v39 = vadd.f32 %v1752_v24, %v1751_v55 }
 0x495   :  { %v1708_v41 = vpop.permute.xlu1 %1707  ;;  %v1375_v2 = vrot.slane %v1374_v6, 2  ;;  %v1380_v20 = vrot.slane %v1379_v15, 4  ;;  %v1758_v37 = vsel %vm175_vm1, %v1720_v23, 0.0  ;;  %v1370_v38 = vrot.slane %v1369_v3, 1 }
 0x496   :  { %v1713_v13 = vpop.permute.xlu0 %1712  ;;  %v1721_v26 = vmul.f32 %v1708_v41, %v16364_v48  ;;  %v1754_v60 = vrot.slane %v1753_v39, 2  ;;  %v1759_v51 = vrot.slane %v1758_v37, 4  ;;  %v1749_v35 = vrot.slane %v1748_v21, 1 }
 0x497   :  { %v1376_v50 = vadd.f32 %v1375_v2, %v1374_v6  ;;  %v1381_v57 = vadd.f32 %v1380_v20, %v1379_v15  ;;  %v1722_v45 = vmul.f32 %v1713_v13, %v16368_v52  ;;  %v1364_v48 = vadd.f32 %v1363_v62, %v1362_v9 }
 0x498   :  { %v1765_v43 = vsel %vm175_vm1, %v1721_v26, 0.0  ;;  %v1755_v4 = vadd.f32 %v1754_v60, %v1753_v39  ;;  %v1760_v54 = vadd.f32 %v1759_v51, %v1758_v37  ;;  %v1736_v23 = vadd.f32 %v1735_v5, %v1734_v12 }
 0x499   :  { %v1766_v1 = vrot.slane %v1765_v43, 4  ;;  %v1377_v56 = vrot.slane %v1376_v50, 1  ;;  %v1382_v29 = vrot.slane %v1381_v57, 2  ;;  %v1772_v55 = vsel %vm175_vm1, %v1722_v45, 0.0 }
 0x49a   :  { %v1756_v11 = vrot.slane %v1755_v4, 1  ;;  %v1761_v63 = vrot.slane %v1760_v54, 2  ;;  %v1371_v6 = vadd.f32 %v1370_v38, %v1369_v3  ;;  %v1773_v41 = vrot.slane %v1772_v55, 4 }
 0x49b   :  { %v1767_v24 = vadd.f32 %v1766_v1, %v1765_v43  ;;  %v1383_v15 = vadd.f32 %v1382_v29, %v1381_v57  ;;  %v1743_v2 = vadd.f32 %v1742_v16, %v1741_v18  ;;  %v1378_v20 = vadd.f32 %v1377_v56, %v1376_v50  ;;  %v2057_v29 = vld [vmem:[#allocation14] sm:$0xff] }
 0x49c   :  { %v1762_v52 = vadd.f32 %v1761_v63, %v1760_v54  ;;  %v1871_v39 = vsel %vm1070_vm4, %v1357_v32, %v1870_v49  ;;  %v1750_v37 = vadd.f32 %v1749_v35, %v1748_v21  ;;  %v1774_v60 = vadd.f32 %v1773_v41, %v1772_v55  ;;  %v2060_v49 = vld [vmem:[#allocation14 + $0x18] sm:$0xff]  ;;  %v2222_v63 = vld [vmem:[#allocation14 + $0x30] sm:$0xff]  ;;  %v2378_v41 = vld [vmem:[#allocation14 + $0x48] sm:$0xff] }
 0x49d   :  { %v1768_v13 = vrot.slane %v1767_v24, 2  ;;  %v1384_v26 = vrot.slane %v1383_v15, 1  ;;  %v1757_v51 = vadd.f32 %v1756_v11, %v1755_v4  ;;  %v1872_v9 = vsel %vm1072_vm5, %v1364_v48, %v1871_v39  ;;  %v156_v48 = vld [vmem:[#allocation5 + $0x10] sm:$0xff]  ;;  %v2223_v11 = vld [vmem:[#allocation14 + $0x38] sm:$0xff]  ;;  %v2529_v39 = vld [vmem:[#allocation14 + $0x60] sm:$0xff] }
 0x49e   :  { %v1763_v61 = vrot.slane %v1762_v52, 1  ;;  %v1962_v62 = vsel %vm1066_vm2, %v1736_v23, %v1729_v53  ;;  %v1775_v3 = vrot.slane %v1774_v60, 2  ;;  %v1873_v5 = vsel %vm1074_vm6, %v1371_v6, %v1872_v9  ;;  %v2059_v53 = vld [vmem:[#allocation14 + $0x10] sm:$0xff]  ;;  %v2220_v23 = vld [vmem:[#allocation14 + $0x20] sm:$0xff]  ;;  %v2380_v6 = vld [vmem:[#allocation14 + $0x58] sm:$0xff] }
 0x49f   :  { %v1769_v45 = vadd.f32 %v1768_v13, %v1767_v24  ;;  %v1385_v12 = vadd.f32 %v1384_v26, %v1383_v15  ;;  %v1963_v18 = vsel %vm1068_vm3, %v1743_v2, %v1962_v62  ;;  %v1874_v32 = vsel %vm1076_vm7, %v1378_v20, %v1873_v5  ;;  %v2221_v24 = vld [vmem:[#allocation14 + $0x28] sm:$0xff]  ;;  %v2379_v15 = vld [vmem:[#allocation14 + $0x50] sm:$0xff]  ;;  %v2377_v2 = vld [vmem:[#allocation14 + $0x40] sm:$0xff] }
 0x4a0   :  { %v1764_v38 = vadd.f32 %v1763_v61, %v1762_v52  ;;  %v1964_v21 = vsel %vm1070_vm4, %v1750_v37, %v1963_v18  ;;  %v1776_v57 = vadd.f32 %v1775_v3, %v1774_v60  ;;  %v2058_v61 = vld [vmem:[#allocation14 + $0x8] sm:$0xff]  ;;  %v2532_v20 = vld [vmem:[#allocation14 + $0x78] sm:$0xff]  ;;  %v2531_v52 = vld [vmem:[#allocation14 + $0x70] sm:$0xff] }
 0x4a1   :  { %v1770_v50 = vrot.slane %v1769_v45, 1  ;;  %v1875_v43 = vsel %vm1078_vm8, %v1385_v12, %v1874_v32  ;;  %v1965_v4 = vsel %vm1072_vm5, %v1757_v51, %v1964_v21  ;;  %v2530_v13 = vld [vmem:[#allocation14 + $0x68] sm:$0xff]  ;;  %v2937_v37 = vld [vmem:[#allocation10 + $0x18] sm:$0xff]  ;;  %v2936_v26 = vld [vmem:[#allocation10 + $0x10] sm:$0xff] }
 0x4a2   :  { %14270 = vmatmul.mubr.msk.f32.vlgmr.msra.gmra.mxu1 %vm175_vm1, %v1875_v43  ;;  %v1777_v54 = vrot.slane %v1776_v57, 1  ;;  %v1966_v1 = vsel %vm1074_vm6, %v1764_v38, %v1965_v4  ;;  %v2935_v60 = vld [vmem:[#allocation10 + $0x8] sm:$0xff]  ;;  %v2934_v51 = vld [vmem:[#allocation10] sm:$0xff]  ;;  %v3094_v9 = vld [vmem:[#allocation10 + $0x30] sm:$0xff] }
 0x4a3   :  { %v1771_v16 = vadd.f32 %v1770_v50, %v1769_v45  ;;  %14284 = vmatpush3.msra.mxu1 %v2060_v49  ;;  %14291 = vmatprep.mubr.msk.f32.mxu1 %vm16047_vm0, %v19690_v34  ;;  %v3095_v45 = vld [vmem:[#allocation10 + $0x38] sm:$0xff]  ;;  %v3093_v62 = vld [vmem:[#allocation10 + $0x28] sm:$0xff]  ;;  %v3092_v12 = vld [vmem:[#allocation10 + $0x20] sm:$0xff] }
 0x4a4   :  { %14285 = vmatprep.subr.mxu1 %v19690_v34  ;;  %v1778_v56 = vadd.f32 %v1777_v54, %v1776_v57  ;;  %v3250_v3 = vld [vmem:[#allocation10 + $0x58] sm:$0xff]  ;;  %v3249_v5 = vld [vmem:[#allocation10 + $0x50] sm:$0xff]  ;;  %v3248_v18 = vld [vmem:[#allocation10 + $0x48] sm:$0xff] }
 0x4a5   :  { %v1967_v35 = vsel %vm1076_vm7, %v1771_v16, %v1966_v1  ;;  %14286 = vmatpush3.msra.mxu1 %v2059_v53  ;;  %v3247_v38 = vld [vmem:[#allocation10 + $0x40] sm:$0xff]  ;;  %v3400_v50 = vld [vmem:[#allocation10 + $0x78] sm:$0xff]  ;;  %v3399_v32 = vld [vmem:[#allocation10 + $0x70] sm:$0xff] }
 0x4a6   :  { %14287 = vmatprep.subr.mxu1 %v19690_v34  ;;  %v1968_v55 = vsel %vm1078_vm8, %v1778_v56, %v1967_v35  ;;  %v3398_v49 = vld [vmem:[#allocation10 + $0x68] sm:$0xff]  ;;  %v3397_v21 = vld [vmem:[#allocation10 + $0x60] sm:$0xff]  ;;  %v13561_v57 = vld [vmem:[%s19635_s7] ss:$0 sm:$0xff] }
 0x4a7   :  { %14288 = vmatpush3.msra.mxu1 %v2058_v61  ;;  %14281 = vmatmul.mubr.msk.f32.vlgmr.msra.gmra.mxu0 %vm175_vm1, %v1968_v55  ;;  %v19691_v53 = vld [vmem:[#allocation29_spill] sm:$0xff] }
 0x4a8   :  { %14289 = vmatprep.subr.mxu1 %v19690_v34  ;;  %14302 = vmatprep.mubr.msk.f32.mxu0 %vm16047_vm0, %v19690_v34  ;;  %v1855_v4 = vadd.f32 %v13561_v57, %v19691_v53  ;;  %v2372_v53 = vld [vmem:[#allocation13 + $0x40] sm:$0xff] }
 0x4a9   :  { %14290 = vmatpush3.msra.mxu1 %v2057_v29 }
 0x4aa   :  { %14305 = vmatprep.subr.mxu1 %v19690_v34  ;;  %14292 = vmatmul.mubr.msk.f32.vlgmr.msra.gmra.mxu1 %vm175_vm1, %v156_v48 }
 0x4ab   :  { %14306 = vmatpush3.msra.mxu1 %v2223_v11  ;;  %14313 = vmatprep.mubr.msk.f32.mxu1 %vm16047_vm0, %v19690_v34 }
 0x4ac   :  { %14307 = vmatprep.subr.mxu1 %v19690_v34 }
 0x4ad   :  { %14308 = vmatpush3.msra.mxu1 %v2222_v63  ;;  %v2686_v63 = vsub.f32 1.0, %v16610_v58  ;;  %v2691_v58 = vsub.f32 1.0, %v16656_v47 }
 0x4ae   :  { %14309 = vmatprep.subr.mxu1 %v19690_v34 }
 0x4af   :  { %14310 = vmatpush3.msra.mxu1 %v2221_v24 }
 0x4b0   :  { %14311 = vmatprep.subr.mxu1 %v19690_v34 }
 0x4b1   :  { %14312 = vmatpush3.msra.mxu1 %v2220_v23  ;;  %v2687_v23 = vsub.f32 1.0, %v16620_v40 }
 0x4b2   :  { %14327 = vmatprep.subr.mxu1 %v19690_v34  ;;  %14314 = vmatmul.mubr.msk.f32.vlgmr.msra.gmra.mxu1 %vm175_vm1, %v156_v48 }
 0x4b3   :  { %14328 = vmatpush3.msra.mxu1 %v2380_v6  ;;  %14335 = vmatprep.mubr.msk.f32.mxu1 %vm16047_vm0, %v19690_v34 }
 0x4b4   :  { %14329 = vmatprep.subr.mxu1 %v19690_v34 }
 0x4b5   :  { %14330 = vmatpush3.msra.mxu1 %v2379_v15  ;;  %v2847_v15 = vsub.f32 1.0, %v16630_v19  ;;  %v2853_v19 = vsub.f32 1.0, %v16672_v14  ;;  %v2685_v14 = vsub.f32 1.0, %v16614_v17  ;;  %v2849_v17 = vsub.f32 1.0, %v16643_v0  ;;  %v2217_v0 = vld [vmem:[#allocation13 + $0x30] sm:$0xff] }
 0x4b6   :  { %14331 = vmatprep.subr.mxu1 %v19690_v34 }
 0x4b7   :  { %14332 = vmatpush3.msra.mxu1 %v2378_v41 }
 0x4b8   :  { %14333 = vmatprep.subr.mxu1 %v19690_v34 }
 0x4b9   :  { %14334 = vmatpush3.msra.mxu1 %v2377_v2  ;;  %v2689_v2 = vsub.f32 1.0, %v16640_v36 }
 0x4ba   :  { %14349 = vmatprep.subr.mxu1 %v19690_v34  ;;  %14336 = vmatmul.mubr.msk.f32.vlgmr.msra.gmra.mxu1 %vm175_vm1, %v156_v48 }
 0x4bb   :  { %14350 = vmatpush3.msra.mxu1 %v2532_v20  ;;  %14357 = vmatprep.mubr.msk.f32.mxu1 %vm16047_vm0, %v19690_v34 }
 0x4bc   :  { %14351 = vmatprep.subr.mxu1 %v19690_v34 }
 0x4bd   :  { %14352 = vmatpush3.msra.mxu1 %v2531_v52  ;;  %v2690_v52 = vsub.f32 1.0, %v16648_v25 }
 0x4be   :  { %14353 = vmatprep.subr.mxu1 %v19690_v34 }
 0x4bf   :  { %14354 = vmatpush3.msra.mxu1 %v2530_v13 }
 0x4c0   :  { %14355 = vmatprep.subr.mxu1 %v19690_v34 }
 0x4c1   :  { %14356 = vmatpush3.msra.mxu1 %v2529_v39  ;;  %v2692_v39 = vsub.f32 1.0, %v16664_v7  ;;  %v2056_v7 = vld [vmem:[#allocation13 + $0x18] sm:$0xff] }
 0x4c2   :  { %14371 = vmatprep.subr.mxu1 %v19690_v34  ;;  %14358 = vmatmul.mubr.msk.f32.vlgmr.msra.gmra.mxu1 %vm175_vm1, %v156_v48 }
 0x4c3   :  { %14372 = vmatpush3.msra.mxu1 %v2937_v37  ;;  %14379 = vmatprep.mubr.msk.f32.mxu1 %vm16047_vm0, %v19690_v34 }
 0x4c4   :  { %14373 = vmatprep.subr.mxu1 %v19690_v34  ;;  %14295 = vmatpush3.msra.mxu0 %v2056_v7 }
 0x4c5   :  { %14374 = vmatpush3.msra.mxu1 %v2936_v26  ;;  %14296 = vmatprep.subr.mxu0 %v19690_v34 }
 0x4c6   :  { %14375 = vmatprep.subr.mxu1 %v19690_v34 }
 0x4c7   :  { %14376 = vmatpush3.msra.mxu1 %v2935_v60 }
 0x4c8   :  { %14377 = vmatprep.subr.mxu1 %v19690_v34 }
 0x4c9   :  { %14378 = vmatpush3.msra.mxu1 %v2934_v51 }
 0x4ca   :  { %14380 = vmatmul.mubr.msk.f32.vlgmr.msra.gmra.mxu1 %vm175_vm1, %v16286_v44  ;;  %14393 = vmatprep.subr.mxu1 %v19690_v34 }
 0x4cb   :  { %14394 = vmatpush3.msra.mxu1 %v3095_v45  ;;  %14401 = vmatprep.mubr.msk.f32.mxu1 %vm16047_vm0, %v19690_v34 }
 0x4cc   :  { %14395 = vmatprep.subr.mxu1 %v19690_v34 }
 0x4cd   :  { %14396 = vmatpush3.msra.mxu1 %v3094_v9 }
 0x4ce   :  { %14397 = vmatprep.subr.mxu1 %v19690_v34 }
 0x4cf   :  { %14398 = vmatpush3.msra.mxu1 %v3093_v62 }
 0x4d0   :  { %14399 = vmatprep.subr.mxu1 %v19690_v34 }
 0x4d1   :  { %14400 = vmatpush3.msra.mxu1 %v3092_v12  ;;  %v2055_v12 = vld [vmem:[#allocation13 + $0x10] sm:$0xff] }
 0x4d2   :  { %14402 = vmatmul.mubr.msk.f32.vlgmr.msra.gmra.mxu1 %vm175_vm1, %v16286_v44  ;;  %14415 = vmatprep.subr.mxu1 %v19690_v34 }
 0x4d3   :  { %14416 = vmatpush3.msra.mxu1 %v3250_v3  ;;  %14423 = vmatprep.mubr.msk.f32.mxu1 %vm16047_vm0, %v19690_v34  ;;  %v2054_v3 = vld [vmem:[#allocation13 + $0x8] sm:$0xff] }
 0x4d4   :  { %14417 = vmatprep.subr.mxu1 %v19690_v34  ;;  %14297 = vmatpush3.msra.mxu0 %v2055_v12 }
 0x4d5   :  { %14418 = vmatpush3.msra.mxu1 %v3249_v5  ;;  %14298 = vmatprep.subr.mxu0 %v19690_v34  ;;  %v2053_v5 = vld [vmem:[#allocation13] sm:$0xff] }
 0x4d6   :  { %14419 = vmatprep.subr.mxu1 %v19690_v34  ;;  %14299 = vmatpush3.msra.mxu0 %v2054_v3 }
 0x4d7   :  { %14420 = vmatpush3.msra.mxu1 %v3248_v18  ;;  %14300 = vmatprep.subr.mxu0 %v19690_v34  ;;  %v2688_v18 = vsub.f32 1.0, %v16624_v22  ;;  %v2854_v22 = vsub.f32 1.0, %v16675_v59  ;;  %v2374_v59 = vld [vmem:[#allocation13 + $0x50] sm:$0xff] }
 0x4d8   :  { %14421 = vmatprep.subr.mxu1 %v19690_v34  ;;  %14301 = vmatpush3.msra.mxu0 %v2053_v5  ;;  %v13556_v5 = vld [vmem:[%s19638_s10 + $0x1] ss:$0 sm:$0xff] }
 0x4d9   :  { %14422 = vmatpush3.msra.mxu1 %v3247_v38  ;;  %14316 = vmatprep.subr.mxu0 %v19690_v34  ;;  %v2848_v38 = vsub.f32 1.0, %v16634_v10 }
 0x4da   :  { %14424 = vmatmul.mubr.msk.f32.vlgmr.msra.gmra.mxu1 %vm175_vm1, %v16286_v44  ;;  %14437 = vmatprep.subr.mxu1 %v19690_v34 }
 0x4db   :  { %14438 = vmatpush3.msra.mxu1 %v3400_v50  ;;  %14445 = vmatprep.mubr.msk.f32.mxu1 %vm16047_vm0, %v19690_v34  ;;  %v2850_v50 = vsub.f32 1.0, %v16651_v31  ;;  %v2216_v31 = vld [vmem:[#allocation13 + $0x28] sm:$0xff] }
 0x4dc   :  { %14439 = vmatprep.subr.mxu1 %v19690_v34 }
 0x4dd   :  { %14440 = vmatpush3.msra.mxu1 %v3399_v32  ;;  %v2851_v32 = vsub.f32 1.0, %v16659_v42  ;;  %v2215_v42 = vld [vmem:[#allocation13 + $0x20] sm:$0xff] }
 0x4de   :  { %14441 = vmatprep.subr.mxu1 %v19690_v34 }
 0x4df   :  { %14442 = vmatpush3.msra.mxu1 %v3398_v49  ;;  %v2852_v49 = vsub.f32 1.0, %v16667_v33  ;;  %v2375_v33 = vld [vmem:[#allocation13 + $0x58] sm:$0xff] }
 0x4e0   :  { %14443 = vmatprep.subr.mxu1 %v19690_v34 }
 0x4e1   :  { %14444 = vmatpush3.msra.mxu1 %v3397_v21 }
 0x4e2   :  { %14446 = vmatmul.mubr.msk.f32.vlgmr.msra.gmra.mxu1 %vm175_vm1, %v16286_v44  ;;  %14459 = vmatprep.subr.mxu1 %v19690_v34 }
 0x4e3   :  { %14467 = vmatprep.mubr.msk.f32.mxu1 %vm16047_vm0, %v19690_v34 }
 0x562   :  { %v1944_v43 = vpop.f32.mrf.mxu1 }
 0x563   :  { %v1948_v54 = vadd.f32 %v1944_v43, %v1855_v4  ;;  %v2218_v43 = vld [vmem:[#allocation13 + $0x38] sm:$0xff] }
 0x564   :  { %v14271_v16 = vpop.f32.mrf.mxu1  ;;  %v2527_v4 = vld [vmem:[#allocation13 + $0x78] sm:$0xff] }
 0x565   :  { %v2373_v16 = vld [vmem:[#allocation13 + $0x48] sm:$0xff] }
 0x567   :  { %v2037_v1 = vpop.f32.mrf.mxu0 }
 0x568   :  { %v2041_v61 = vadd.f32 %v2037_v1, %v1948_v54  ;;  %v2526_v54 = vld [vmem:[#allocation13 + $0x70] sm:$0xff]  ;;  %v2525_v1 = vld [vmem:[#allocation13 + $0x68] sm:$0xff] }
 0x569   :  { %v14282_v35 = vpop.f32.mrf.mxu0 }
 0x56a   :  { %v16803_v56 = vpop.f32.mrf.mxu1  ;;  %v2042_v44 = vsel %vm175_vm1, %v2041_v61, -inf  ;;  %v2933_v35 = vld [vmem:[#allocation8 + $0x18] sm:$0xff] }
 0x56b   :  { %2043 = vmax.xlane.f32.xlu1 %v2042_v44  ;;  %v2932_v44 = vld [vmem:[#allocation8 + $0x10] sm:$0xff] }
 0x56c   :  { %v14293_v29 = vpop.f32.mrf.mxu1 }
 0x56d   :  { %v2931_v29 = vld [vmem:[#allocation8 + $0x8] sm:$0xff] }
 0x572   :  { %v16806_v55 = vpop.f32.mrf.mxu1 }
 0x574   :  { %v14315_v48 = vpop.f32.mrf.mxu1 }
 0x575   :  { %v2930_v48 = vld [vmem:[#allocation8] sm:$0xff] }
 0x57a   :  { %v16808_v11 = vpop.f32.mrf.mxu1 }
 0x57c   :  { %v14337_v24 = vpop.f32.mrf.mxu1  ;;  %2798 = vperm.xlu1 %15225, %v2686_v63   ;;  %v2929_v63 = vld [vmem:[#allocation2 + $0x8] sm:$0xff] }
 0x57d   :  { %v3091_v24 = vld [vmem:[#allocation8 + $0x38] sm:$0xff] }
 0x580   :  { %2803 = vperm.xlu1 %15225, %v2687_v23   ;;  %v3090_v23 = vld [vmem:[#allocation8 + $0x30] sm:$0xff] }
 0x582   :  { %v16812_v6 = vpop.f32.mrf.mxu1 }
 0x584   :  { %v14359_v41 = vpop.f32.mrf.mxu1  ;;  %2873 = vperm.xlu1 %15225, %v2847_v15   ;;  %v3089_v15 = vld [vmem:[#allocation8 + $0x28] sm:$0xff] }
 0x585   :  { %v3088_v41 = vld [vmem:[#allocation8 + $0x20] sm:$0xff] }
 0x588   :  { %2813 = vperm.xlu1 %15225, %v2689_v2   ;;  %v3246_v2 = vld [vmem:[#allocation8 + $0x58] sm:$0xff] }
 0x58a   :  { %v16816_v20 = vpop.f32.mrf.mxu1 }
 0x58c   :  { %v14381_v13 = vpop.f32.mrf.mxu1  ;;  %2818 = vperm.xlu1 %15225, %v2690_v52   ;;  %v3245_v52 = vld [vmem:[#allocation8 + $0x50] sm:$0xff] }
 0x58d   :  { %v3244_v13 = vld [vmem:[#allocation8 + $0x48] sm:$0xff] }
 0x590   :  { %2823 = vperm.xlu1 %15225, %v2691_v58   ;;  %v3243_v58 = vld [vmem:[#allocation8 + $0x40] sm:$0xff] }
 0x592   :  { %v16820_v40 = vpop.f32.mrf.mxu1 }
 0x594   :  { %v14403_v37 = vpop.f32.mrf.mxu1  ;;  %2828 = vperm.xlu1 %15225, %v2692_v39   ;;  %v3396_v39 = vld [vmem:[#allocation8 + $0x78] sm:$0xff] }
 0x595   :  { %v3395_v37 = vld [vmem:[#allocation8 + $0x70] sm:$0xff] }
 0x598   :  { %2903 = vperm.xlu1 %15225, %v2853_v19   ;;  %v3394_v19 = vld [vmem:[#allocation8 + $0x68] sm:$0xff] }
 0x59a   :  { %v16824_v36 = vpop.f32.mrf.mxu1 }
 0x59c   :  { %v14425_v26 = vpop.f32.mrf.mxu1 }
 0x59d   :  { %v3393_v26 = vld [vmem:[#allocation8 + $0x60] sm:$0xff] }
 0x5a2   :  { %v16826_v60 = vpop.f32.mrf.mxu1 }
 0x5a4   :  { %v14447_v25 = vpop.f32.mrf.mxu1 }
 0x5a5   :  { %v4430_v25 = vld [vmem:[#allocation11 + $0x18] sm:$0xff] }
 0x5a6   :  { %14460 = vmatpush3.msra.mxu1 %v4430_v25 }
 0x5a7   :  { %14461 = vmatprep.subr.mxu1 %v19690_v34 }
 0x5f4   :  { %v2044_v51 = vpop.xlane.xlu1 %2043 }
 0x5f5   :  { %v2045_v45 = vsub.f32 %v2041_v61, %v2044_v51  ;;  %v2524_v61 = vld [vmem:[#allocation13 + $0x60] sm:$0xff]  ;;  %v4429_v51 = vld [vmem:[#allocation11 + $0x10] sm:$0xff] }
 0x5f6   :  { %14462 = vmatpush3.msra.mxu1 %v4429_v51 }
 0x5f7   :  { %v2046_v9 = vmul.f32 1.442695, %v2045_v45  ;;  %v4428_v45 = vld [vmem:[#allocation11 + $0x8] sm:$0xff]  ;;  %14463 = vmatprep.subr.mxu1 %v19690_v34 }
 0x5f8   :  { %14464 = vmatpush3.msra.mxu1 %v4428_v45 }
 0x5f9   :  { %15306 = vpow2.f32 %v2046_v9  ;;  %v4427_v9 = vld [vmem:[#allocation11] sm:$0xff]  ;;  %14465 = vmatprep.subr.mxu1 %v19690_v34 }
 0x5fa   :  { %14466 = vmatpush3.msra.mxu1 %v4427_v9 }
 0x5fb   :  { %14481 = vmatprep.subr.mxu1 %v19690_v34 }
 0x606   :  { %v15307_v47 = vpop.eup %15306 }
 0x607   :  { %v2048_v62 = vsel %vm175_vm1, %v15307_v47, 0.0 }
 0x608   :  { %2049 = vadd.xlane.f32.xlu0 %v2048_v62 }
 0x61e   :  { %2793 = vperm.xlu0 %15224, %v2685_v14  }
 0x622   :  { %2808 = vperm.xlu0 %15224, %v2688_v18  }
 0x626   :  { %2878 = vperm.xlu0 %15224, %v2848_v38  }
 0x62a   :  { %2883 = vperm.xlu0 %15224, %v2849_v17  }
 0x62e   :  { %2888 = vperm.xlu0 %15224, %v2850_v50  }
 0x632   :  { %2893 = vperm.xlu0 %15224, %v2851_v32  }
 0x636   :  { %2898 = vperm.xlu0 %15224, %v2852_v49  }
 0x63a   :  { %2908 = vperm.xlu0 %15224, %v2854_v22  }
 0x691   :  { %v2050_v21 = vpop.xlane.xlu0 %2049 }
 0x692   :  { %15308 = vrcp.f32 %v2050_v21 }
 0x69f   :  { %v15309_v57 = vpop.eup %15308 }
 0x6a0   :  { %v2052_v10 = vmul.f32 %v15309_v57, %v15307_v47  ;;  %v13554_v47 = vld [vmem:[%s19638_s10] ss:$0 sm:$0xff]  ;;  %v13558_v57 = vld [vmem:[%s19638_s10 + $0x2] ss:$0 sm:$0xff] }
 0x6a2   :  { %14303 = vmatmul.mubr.msk.f32.vlgmr.msra.gmra.mxu0 %vm175_vm1, %v2052_v10 }
 0x6a3   :  { %14317 = vmatpush3.msra.mxu0 %v2218_v43  ;;  %14324 = vmatprep.mubr.msk.f32.mxu0 %vm16047_vm0, %v19690_v34 }
 0x6a4   :  { %14318 = vmatprep.subr.mxu0 %v19690_v34 }
 0x6a5   :  { %14319 = vmatpush3.msra.mxu0 %v2217_v0 }
 0x6a6   :  { %14320 = vmatprep.subr.mxu0 %v19690_v34 }
 0x6a7   :  { %14321 = vmatpush3.msra.mxu0 %v2216_v31 }
 0x6a8   :  { %14322 = vmatprep.subr.mxu0 %v19690_v34 }
 0x6a9   :  { %14323 = vmatpush3.msra.mxu0 %v2215_v42 }
 0x6aa   :  { %14325 = vmatmul.mubr.msk.f32.vlgmr.msra.gmra.mxu0 %vm175_vm1, %v2052_v10  ;;  %14338 = vmatprep.subr.mxu0 %v19690_v34 }
 0x6ab   :  { %14339 = vmatpush3.msra.mxu0 %v2375_v33  ;;  %14346 = vmatprep.mubr.msk.f32.mxu0 %vm16047_vm0, %v19690_v34 }
 0x6ac   :  { %14340 = vmatprep.subr.mxu0 %v19690_v34 }
 0x6ad   :  { %14341 = vmatpush3.msra.mxu0 %v2374_v59 }
 0x6ae   :  { %14342 = vmatprep.subr.mxu0 %v19690_v34 }
 0x6af   :  { %14343 = vmatpush3.msra.mxu0 %v2373_v16 }
 0x6b0   :  { %14344 = vmatprep.subr.mxu0 %v19690_v34 }
 0x6b1   :  { %14345 = vmatpush3.msra.mxu0 %v2372_v53 }
 0x6b2   :  { %14347 = vmatmul.mubr.msk.f32.vlgmr.msra.gmra.mxu0 %vm175_vm1, %v2052_v10  ;;  %14360 = vmatprep.subr.mxu0 %v19690_v34 }
 0x6b3   :  { %14361 = vmatpush3.msra.mxu0 %v2527_v4  ;;  %14368 = vmatprep.mubr.msk.f32.mxu0 %vm16047_vm0, %v19690_v34 }
 0x6b4   :  { %14362 = vmatprep.subr.mxu0 %v19690_v34 }
 0x6b5   :  { %14363 = vmatpush3.msra.mxu0 %v2526_v54 }
 0x6b6   :  { %14364 = vmatprep.subr.mxu0 %v19690_v34 }
 0x6b7   :  { %14365 = vmatpush3.msra.mxu0 %v2525_v1  ;;  %v15726_v1 = vld [vmem:[%s19633_s5] ss:$0 sm:$0xff] }
 0x6b8   :  { %14366 = vmatprep.subr.mxu0 %v19690_v34 }
 0x6b9   :  { %14367 = vmatpush3.msra.mxu0 %v2524_v61 }
 0x6ba   :  { %14369 = vmatmul.mubr.msk.f32.vlgmr.msra.gmra.mxu0 %vm175_vm1, %v2052_v10  ;;  %14382 = vmatprep.subr.mxu0 %v19690_v34  ;;  %v13560_v10 = vld [vmem:[%s19638_s10 + $0x3] ss:$0 sm:$0xff] }
 0x6bb   :  { %14383 = vmatpush3.msra.mxu0 %v2933_v35  ;;  %14390 = vmatprep.mubr.msk.f32.mxu0 %vm16047_vm0, %v19690_v34  ;;  %v16917_v35 = vpop.permute.xlu1 %2798 }
 0x6bc   :  { %14384 = vmatprep.subr.mxu0 %v19690_v34 }
 0x6bd   :  { %14385 = vmatpush3.msra.mxu0 %v2932_v44 }
 0x6be   :  { %14386 = vmatprep.subr.mxu0 %v19690_v34 }
 0x6bf   :  { %14387 = vmatpush3.msra.mxu0 %v2931_v29  ;;  %v16919_v29 = vpop.permute.xlu0 %2793 }
 0x6c0   :  { %14388 = vmatprep.subr.mxu0 %v19690_v34 }
 0x6c1   :  { %14389 = vmatpush3.msra.mxu0 %v2930_v48 }
 0x6c2   :  { %14391 = vmatmul.mubr.msk.f32.vlgmr.msra.gmra.mxu0 %vm175_vm1, %v2929_v63  ;;  %14404 = vmatprep.subr.mxu0 %v19690_v34 }
 0x6c3   :  { %14405 = vmatpush3.msra.mxu0 %v3091_v24  ;;  %14412 = vmatprep.mubr.msk.f32.mxu0 %vm16047_vm0, %v19690_v34  ;;  %v158_v24 = vld [vmem:[#allocation5 + $0x18] sm:$0xff] }
 0x6c4   :  { %14406 = vmatprep.subr.mxu0 %v19690_v34 }
 0x6c5   :  { %14407 = vmatpush3.msra.mxu0 %v3090_v23 }
 0x6c6   :  { %14408 = vmatprep.subr.mxu0 %v19690_v34 }
 0x6c7   :  { %14409 = vmatpush3.msra.mxu0 %v3089_v15 }
 0x6c8   :  { %14410 = vmatprep.subr.mxu0 %v19690_v34 }
 0x6c9   :  { %14411 = vmatpush3.msra.mxu0 %v3088_v41 }
 0x6ca   :  { %14413 = vmatmul.mubr.msk.f32.vlgmr.msra.gmra.mxu0 %vm175_vm1, %v2929_v63  ;;  %14426 = vmatprep.subr.mxu0 %v19690_v34 }
 0x6cb   :  { %14427 = vmatpush3.msra.mxu0 %v3246_v2  ;;  %14434 = vmatprep.mubr.msk.f32.mxu0 %vm16047_vm0, %v19690_v34 }
 0x6cc   :  { %14428 = vmatprep.subr.mxu0 %v19690_v34 }
 0x6cd   :  { %14429 = vmatpush3.msra.mxu0 %v3245_v52 }
 0x6ce   :  { %14430 = vmatprep.subr.mxu0 %v19690_v34 }
 0x6cf   :  { %14431 = vmatpush3.msra.mxu0 %v3244_v13  ;;  %v16925_v13 = vpop.permute.xlu1 %2803 }
 0x6d0   :  { %14432 = vmatprep.subr.mxu0 %v19690_v34 }
 0x6d1   :  { %14433 = vmatpush3.msra.mxu0 %v3243_v58 }
 0x6d2   :  { %14435 = vmatmul.mubr.msk.f32.vlgmr.msra.gmra.mxu0 %vm175_vm1, %v2929_v63  ;;  %14448 = vmatprep.subr.mxu0 %v19690_v34 }
 0x6d3   :  { %14449 = vmatpush3.msra.mxu0 %v3396_v39  ;;  %14456 = vmatprep.mubr.msk.f32.mxu0 %vm16047_vm0, %v19690_v34  ;;  %v2874_v9 = vpop.permute.xlu1 %2873 }
 0x6d4   :  { %14450 = vmatprep.subr.mxu0 %v19690_v34 }
 0x6d5   :  { %14451 = vmatpush3.msra.mxu0 %v3395_v37 }
 0x6d6   :  { %14452 = vmatprep.subr.mxu0 %v19690_v34 }
 0x6d7   :  { %14453 = vmatpush3.msra.mxu0 %v3394_v19 }
 0x6d8   :  { %14454 = vmatprep.subr.mxu0 %v19690_v34 }
 0x6d9   :  { %14455 = vmatpush3.msra.mxu0 %v3393_v26  ;;  %v16927_v26 = vpop.permute.xlu0 %2808 }
 0x6da   :  { %14457 = vmatmul.mubr.msk.f32.vlgmr.msra.gmra.mxu0 %vm175_vm1, %v2929_v63  ;;  %14470 = vmatprep.subr.mxu0 %v19690_v34 }
 0x6db   :  { %14478 = vmatprep.mubr.msk.f32.mxu0 %vm16047_vm0, %v19690_v34 }
 0x762   :  { %v2203_v62 = vpop.f32.mrf.mxu0 }
 0x763   :  { %v2204_v7 = vadd.f32 %v2203_v62, %v16803_v56  ;;  %v15728_v62 = vld [vmem:[%s19633_s5 + $0x2] ss:$0 sm:$0xff] }
 0x764   :  { %v14304_v12 = vpop.f32.mrf.mxu0 }
 0x765   :  { %v2207_v14 = vadd.f32 %v13554_v47, %v2204_v7  ;;  %v16936_v12 = vpop.permute.xlu0 %2878 }
 0x767   :  { %v13578_v3 = vmul.f32 -1.442695, %v2207_v14 }
 0x769   :  { %15310 = vpow2.f32 %v13578_v3 }
 0x76a   :  { %v2360_v18 = vpop.f32.mrf.mxu0 }
 0x76b   :  { %v2361_v38 = vadd.f32 %v2360_v18, %v16806_v55 }
 0x76c   :  { %v14326_v17 = vpop.f32.mrf.mxu0 }
 0x76d   :  { %v2364_v50 = vadd.f32 %v13556_v5, %v2361_v38  ;;  %v16938_v5 = vpop.permute.xlu1 %2813  ;;  %v15729_v17 = vld [vmem:[%s19633_s5 + $0x3] ss:$0 sm:$0xff] }
 0x76f   :  { %v13581_v32 = vmul.f32 -1.442695, %v2364_v50 }
 0x771   :  { %15312 = vpow2.f32 %v13581_v32 }
 0x772   :  { %v2517_v49 = vpop.f32.mrf.mxu0 }
 0x773   :  { %v2518_v56 = vadd.f32 %v2517_v49, %v16808_v11 }
 0x774   :  { %v14348_v22 = vpop.f32.mrf.mxu0 }
 0x775   :  { %v2521_v31 = vadd.f32 %v13558_v57, %v2518_v56  ;;  %v16946_v57 = vpop.permute.xlu1 %2818 }
 0x776   :  { %v15311_v21 = vpop.eup %15310 }
 0x777   :  { %v2211_v0 = vadd.f32 1.0, %v15311_v21 }
 0x779   :  { %15314 = vrcp.f32 %v2211_v0  ;;  %v19693_v0 = vld [vmem:[#allocation28_spill] sm:$0xff] }
 0x77a   :  { %v2669_v43 = vpop.f32.mrf.mxu0  ;;  %15316 = vtanh.f32 %v2521_v31 }
 0x77b   :  { %v2670_v55 = vadd.f32 %v2669_v43, %v16812_v6 }
 0x77c   :  { %v14370_v42 = vpop.f32.mrf.mxu0 }
 0x77d   :  { %v2673_v33 = vadd.f32 %v13560_v10, %v2670_v55 }
 0x77e   :  { %v15313_v59 = vpop.eup %15312 }
 0x77f   :  { %v2368_v16 = vadd.f32 1.0, %v15313_v59  ;;  %v13586_v53 = vmul.f32 -1.442695, %v2673_v33 }
 0x781   :  { %15318 = vrcp.f32 %v2368_v16 }
 0x782   :  { %15320 = vpow2.f32 %v13586_v53  ;;  %v3077_v11 = vpop.f32.mrf.mxu0  ;;  %v16960_v53 = vpop.permute.xlu1 %2823 }
 0x783   :  { %v3078_v4 = vadd.f32 %v3077_v11, %v16816_v20  ;;  %v15727_v20 = vld [vmem:[%s19633_s5 + $0x1] ss:$0 sm:$0xff] }
 0x784   :  { %v14392_v54 = vpop.f32.mrf.mxu0 }
 0x785   :  { %v3081_v61 = vadd.f32 %v15726_v1, %v3078_v4 }
 0x786   :  { %v15315_v63 = vpop.eup %15314 }
 0x787   :  { %v13589_v6 = vmul.f32 -1.442695, %v3081_v61  ;;  %v15317_v15 = vpop.eup %15316  ;;  %v2855_v61 = vld [vmem:[#allocation19 + $0x40] sm:$0xff] }
 0x788   :  { %v2681_v39 = vmul.f32 %v15317_v15, %v15315_v63 }
 0x789   :  { %15322 = vpow2.f32 %v13589_v6 }
 0x78a   :  { %v3232_v44 = vpop.f32.mrf.mxu0 }
 0x78b   :  { %v3233_v48 = vadd.f32 %v3232_v44, %v16820_v40 }
 0x78c   :  { %v14414_v23 = vpop.f32.mrf.mxu0 }
 0x78d   :  { %v3236_v41 = vadd.f32 %v15727_v20, %v3233_v48  ;;  %v2856_v20 = vld [vmem:[#allocation19 + $0x48] sm:$0xff] }
 0x78e   :  { %v15319_v2 = vpop.eup %15318 }
 0x78f   :  { %v15321_v52 = vpop.eup %15320  ;;  %v2680_v58 = vmul.f32 %v15319_v2, %v158_v24  ;;  %v13592_v37 = vmul.f32 -1.442695, %v3236_v41  ;;  %v15730_v41 = vld [vmem:[#allocation19] sm:$0xff] }
 0x790   :  { %v2677_v19 = vadd.f32 1.0, %v15321_v52 }
 0x791   :  { %v16929_v40 = vadd.f32 %v2681_v39, %v2680_v58  ;;  %15324 = vpow2.f32 %v13592_v37  ;;  %v2857_v39 = vld [vmem:[#allocation19 + $0x50] sm:$0xff] }
 0x792   :  { %15326 = vrcp.f32 %v2677_v19  ;;  %v3387_v25 = vpop.f32.mrf.mxu0  ;;  %v2859_v19 = vld [vmem:[#allocation19 + $0x60] sm:$0xff] }
 0x793   :  { %19692 = vst [vmem:[#allocation29_spill] sm:$0xff] %v16929_v40  ;;  %15328 = vtanh.f32 %v16929_v40  ;;  %v3388_v51 = vadd.f32 %v3387_v25, %v16824_v36  ;;  %v16941_v36 = vpop.permute.xlu0 %2883 }
 0x794   :  { %v14436_v45 = vpop.f32.mrf.mxu0 }
 0x795   :  { %v3391_v7 = vadd.f32 %v15728_v62, %v3388_v51 }
 0x796   :  { %v15323_v47 = vpop.eup %15322 }
 0x797   :  { %v3085_v14 = vadd.f32 1.0, %v15323_v47 }
 0x799   :  { %15330 = vrcp.f32 %v3085_v14  ;;  %v15731_v14 = vld [vmem:[#allocation19 + $0x8] sm:$0xff] }
 0x79a   :  { %15332 = vtanh.f32 %v3391_v7  ;;  %v3537_v3 = vpop.f32.mrf.mxu0 }
 0x79b   :  { %v3538_v18 = vadd.f32 %v3537_v3, %v16826_v60  ;;  %v16950_v60 = vpop.permute.xlu0 %2888 }
 0x79c   :  { %v14458_v38 = vpop.f32.mrf.mxu0 }
 0x79d   :  { %v3541_v50 = vadd.f32 %v15729_v17, %v3538_v18  ;;  %v2829_v38 = vpop.permute.xlu1 %2828  ;;  %v15732_v17 = vld [vmem:[#allocation19 + $0x10] sm:$0xff] }
 0x79e   :  { %v15325_v32 = vpop.eup %15324 }
 0x79f   :  { %v15327_v49 = vpop.eup %15326  ;;  %v3240_v22 = vadd.f32 1.0, %v15325_v32  ;;  %v13597_v21 = vmul.f32 -1.442695, %v3541_v50  ;;  %v2894_v48 = vpop.permute.xlu0 %2893 }
 0x7a0   :  { %v15329_v56 = vpop.eup %15328 }
 0x7a1   :  { %v16948_v10 = vmul.f32 %v15329_v56, %v15327_v49  ;;  %15334 = vrcp.f32 %v3240_v22  ;;  %v15733_v49 = vld [vmem:[#allocation19 + $0x20] sm:$0xff] }
 0x7a2   :  { %15336 = vpow2.f32 %v13597_v21 }
 0x7a3   :  { %v2694_v43 = vcombine.high %v16948_v10, %v16948_v10  ;;  %v2701_v55 = vrot.slane %v16948_v10, %v19693_v0  ;;  %2927 = vst.msk [vmem:[#allocation16] sm:$0xff] %vm175_vm1, %v16948_v10 }
 0x7a5   :  { %v2708_v31 = vrot.slane %v2694_v43, %v19693_v0  ;;  %v2709_v42 = vcombine.high %v2701_v55, %v2701_v55  ;;  %v2717_v33 = vrot.slane %v2701_v55, %v19693_v0 }
 0x7a6   :  { %v15331_v59 = vpop.eup %15330 }
 0x7a7   :  { %v15333_v16 = vpop.eup %15332  ;;  %v2710_v11 = vcombine.high %v2708_v31, %v2708_v31  ;;  %v2724_v4 = vrot.slane %v2708_v31, %v19693_v0  ;;  %v2731_v54 = vrot.slane %v2709_v42, %v19693_v0  ;;  %v2739_v1 = vcombine.high %v2717_v33, %v2717_v33  ;;  %v15735_v31 = vld [vmem:[#allocation19 + $0x28] sm:$0xff] }
 0x7a8   :  { %v3549_v6 = vmul.f32 %v15333_v16, %v15331_v59  ;;  %v2746_v44 = vrot.slane %v2717_v33, %v16293_v46  ;;  %v2858_v33 = vld [vmem:[#allocation19 + $0x58] sm:$0xff]  ;;  %v2860_v59 = vld [vmem:[#allocation19 + $0x68] sm:$0xff] }
 0x7a9   :  { %v16966_v63 = vrot.slane %v2710_v11, %v19693_v0  ;;  %v2740_v24 = vcombine.high %v2724_v4, %v2724_v4  ;;  %v2741_v23 = vcombine.high %v2731_v54, %v2731_v54  ;;  %v2750_v15 = vrot.slane %v2731_v54, %v16293_v46  ;;  %v2899_v11 = vpop.permute.xlu0 %2898 }
 0x7aa   :  { %v2783_v2 = vadd.f32 %v15730_v41, %v2746_v44  ;;  %v2863_v52 = vadd.f32 %v2855_v61, %v2746_v44  ;;  %v2754_v58 = vrot.slane %v2739_v1, %v16293_v46  ;;  %v2762_v37 = vrot.slane %v2724_v4, %v16293_v46  ;;  %v19694_v4 = vld [vmem:[#allocation27_spill] sm:$0xff]  ;;  %v2862_v41 = vld [vmem:[#allocation19 + $0x78] sm:$0xff] }
 0x7ab   :  { %v2742_v25 = vcombine.high %v16966_v63, %v16966_v63  ;;  %v2758_v51 = vrot.slane %v2741_v23, %v16293_v46  ;;  %v2766_v45 = vrot.slane %v16966_v63, %v16293_v46  ;;  %v2770_v47 = vrot.slane %v2740_v24, %v16293_v46  ;;  %v2861_v63 = vld [vmem:[#allocation19 + $0x70] sm:$0xff] }
 0x7ac   :  { %v2911_v62 = vmul.f32 %v2874_v9, %v2863_v52  ;;  %v2831_v7 = vmul.f32 %v16919_v29, %v2783_v2  ;;  %v2784_v3 = vadd.f32 %v15731_v14, %v2750_v15  ;;  %v2864_v18 = vadd.f32 %v2856_v20, %v2750_v15  ;;  %v15734_v29 = vld [vmem:[#allocation19 + $0x18] sm:$0xff] }
 0x7ad   :  { %v2785_v50 = vadd.f32 %v15732_v17, %v2754_v58  ;;  %v2865_v32 = vadd.f32 %v2857_v39, %v2754_v58  ;;  %v2787_v22 = vadd.f32 %v15733_v49, %v2762_v37  ;;  %v2867_v21 = vadd.f32 %v2859_v19, %v2762_v37  ;;  %v15737_v58 = vld [vmem:[#allocation19 + $0x38] sm:$0xff] }
 0x7ae   :  { %v15335_v56 = vpop.eup %15334  ;;  %2919 = vst.msk [vmem:[#allocation19 + $0x40] sm:$0xff] %vm175_vm1, %v2911_v62  ;;  %2839 = vst.msk [vmem:[#allocation19] sm:$0xff] %vm175_vm1, %v2831_v7  ;;  %v2912_v43 = vmul.f32 %v16936_v12, %v2864_v18  ;;  %v2832_v9 = vmul.f32 %v16917_v35, %v2784_v3  ;;  %v2786_v55 = vadd.f32 %v15734_v29, %v2758_v51 }
 0x7af   :  { %v2788_v42 = vadd.f32 %v15735_v31, %v2766_v45  ;;  %v15337_v16 = vpop.eup %15336  ;;  %v3548_v54 = vmul.f32 %v15335_v56, %v19694_v4  ;;  %v2913_v1 = vmul.f32 %v16941_v36, %v2865_v32  ;;  %v2833_v61 = vmul.f32 %v16925_v13, %v2785_v50  ;;  %v15736_v36 = vld [vmem:[#allocation19 + $0x30] sm:$0xff] }
 0x7b0   :  { %v2915_v44 = vmul.f32 %v2894_v48, %v2867_v21  ;;  %v3545_v24 = vadd.f32 1.0, %v15337_v16  ;;  %2920 = vst.msk [vmem:[#allocation19 + $0x48] sm:$0xff] %vm175_vm1, %v2912_v43  ;;  %2840 = vst.msk [vmem:[#allocation19 + $0x8] sm:$0xff] %vm175_vm1, %v2832_v9  ;;  %v2835_v35 = vmul.f32 %v16938_v5, %v2787_v22  ;;  %v2834_v12 = vmul.f32 %v16927_v26, %v2786_v55 }
 0x7b1   :  { %v2836_v23 = vmul.f32 %v16946_v57, %v2788_v42  ;;  %v16990_v15 = vadd.f32 %v3549_v6, %v3548_v54  ;;  %2921 = vst.msk [vmem:[#allocation19 + $0x50] sm:$0xff] %vm175_vm1, %v2913_v1  ;;  %2841 = vst.msk [vmem:[#allocation19 + $0x10] sm:$0xff] %vm175_vm1, %v2833_v61  ;;  %v2866_v13 = vadd.f32 %v2858_v33, %v2758_v51  ;;  %v2904_v57 = vpop.permute.xlu1 %2903  ;;  %v2909_v51 = vpop.permute.xlu0 %2908 }
 0x7b2   :  { %2923 = vst.msk [vmem:[#allocation19 + $0x60] sm:$0xff] %vm175_vm1, %v2915_v44  ;;  %v2789_v48 = vadd.f32 %v15736_v36, %v2770_v47  ;;  %v2868_v20 = vadd.f32 %v2860_v59, %v2766_v45  ;;  %15338 = vrcp.f32 %v3545_v24  ;;  %2843 = vst.msk [vmem:[#allocation19 + $0x20] sm:$0xff] %vm175_vm1, %v2835_v35  ;;  %v2774_v26 = vrot.slane %v2742_v25, %v16293_v46 }
 0x7b3   :  { %19695 = vst [vmem:[#allocation27_spill] sm:$0xff] %v16990_v15  ;;  %2842 = vst.msk [vmem:[#allocation19 + $0x18] sm:$0xff] %vm175_vm1, %v2834_v12  ;;  %v2869_v5 = vadd.f32 %v2861_v63, %v2770_v47  ;;  %15340 = vtanh.f32 %v16990_v15  ;;  %v2914_v6 = vmul.f32 %v16950_v60, %v2866_v13 }
 0x7b4   :  { %2844 = vst.msk [vmem:[#allocation19 + $0x28] sm:$0xff] %vm175_vm1, %v2836_v23  ;;  %v2837_v2 = vmul.f32 %v16960_v53, %v2789_v48  ;;  %v2916_v52 = vmul.f32 %v2899_v11, %v2868_v20  ;;  %v2790_v39 = vadd.f32 %v15737_v58, %v2774_v26  ;;  %v2870_v37 = vadd.f32 %v2862_v41, %v2774_v26 }
 0x7b5   :  { %v2917_v19 = vmul.f32 %v2904_v57, %v2869_v5  ;;  %2922 = vst.msk [vmem:[#allocation19 + $0x58] sm:$0xff] %vm175_vm1, %v2914_v6  ;;  %v17022_v32 = vld [vmem:[#allocation19 + $0x40] sm:$0xff] }
 0x7b6   :  { %2845 = vst.msk [vmem:[#allocation19 + $0x30] sm:$0xff] %vm175_vm1, %v2837_v2  ;;  %2924 = vst.msk [vmem:[#allocation19 + $0x68] sm:$0xff] %vm175_vm1, %v2916_v52  ;;  %v2838_v25 = vmul.f32 %v2829_v38, %v2790_v39  ;;  %v2918_v45 = vmul.f32 %v2909_v51, %v2870_v37  ;;  %v17024_v49 = vld [vmem:[#allocation19] sm:$0xff] }
 0x7b7   :  { %2925 = vst.msk [vmem:[#allocation19 + $0x70] sm:$0xff] %vm175_vm1, %v2917_v19  ;;  %v17029_v43 = vld [vmem:[#allocation19 + $0x48] sm:$0xff] }
 0x7b8   :  { %2846 = vst.msk [vmem:[#allocation19 + $0x38] sm:$0xff] %vm175_vm1, %v2838_v25  ;;  %2926 = vst.msk [vmem:[#allocation19 + $0x78] sm:$0xff] %vm175_vm1, %v2918_v45  ;;  %v17031_v9 = vld [vmem:[#allocation19 + $0x8] sm:$0xff]  ;;  %v17039_v11 = vld [vmem:[#allocation19 + $0x50] sm:$0xff] }
 0x7b9   :  { %v17041_v4 = vld [vmem:[#allocation19 + $0x10] sm:$0xff]  ;;  %v17049_v12 = vld [vmem:[#allocation19 + $0x60] sm:$0xff] }
 0x7ba   :  { %v17051_v23 = vld [vmem:[#allocation19 + $0x20] sm:$0xff]  ;;  %v17061_v2 = vld [vmem:[#allocation19 + $0x18] sm:$0xff] }
 0x7bb   :  { %v17063_v52 = vld [vmem:[#allocation19 + $0x28] sm:$0xff] }
 0x7bc   :  { %v17068_v51 = vld [vmem:[#allocation19 + $0x58] sm:$0xff] }
 0x7bd   :  { %v17071_v45 = vld [vmem:[#allocation19 + $0x30] sm:$0xff] }
 0x7bf   :  { %v15339_v60 = vpop.eup %15338 }
 0x7c0   :  { %v15341_v53 = vpop.eup %15340 }
 0x7c1   :  { %v17008_v47 = vmul.f32 %v15341_v53, %v15339_v60 }
 0x7c3   :  { %19696 = vst [vmem:[#allocation34_spill] sm:$0xff] %v17008_v47  ;;  %14468 = vmatmul.mubr.msk.f32.vlgmr.msra.gmra.mxu1 %vm175_vm1, %v17008_v47  ;;  %v3569_v62 = vrot.slane %v17008_v47, %v19693_v0  ;;  %v3562_v7 = vcombine.high %v17008_v47, %v17008_v47 }
 0x7c4   :  { %14489 = vmatprep.mubr.msk.f32.mxu1 %vm16047_vm0, %v19690_v34 }
 0x7c5   :  { %v3585_v14 = vrot.slane %v3569_v62, %v19693_v0  ;;  %v3577_v3 = vcombine.high %v3569_v62, %v3569_v62  ;;  %v3576_v18 = vrot.slane %v3562_v7, %v19693_v0 }
 0x7c7   :  { %v3614_v38 = vrot.slane %v3585_v14, %v16293_v46  ;;  %v3599_v17 = vrot.slane %v3577_v3, %v19693_v0  ;;  %v3607_v50 = vcombine.high %v3585_v14, %v3585_v14  ;;  %v3592_v55 = vrot.slane %v3576_v18, %v19693_v0  ;;  %v17077_v14 = vld [vmem:[#allocation19 + $0x68] sm:$0xff]  ;;  %v17079_v3 = vld [vmem:[#allocation19 + $0x38] sm:$0xff] }
 0x7c8   :  { %v3578_v31 = vcombine.high %v3576_v18, %v3576_v18 }
 0x7c9   :  { %v4043_v22 = vmul.f32 %v17022_v32, %v3614_v38  ;;  %v3651_v21 = vmul.f32 %v3614_v38, %v17024_v49  ;;  %v3618_v56 = vrot.slane %v3599_v17, %v16293_v46  ;;  %v3622_v29 = vrot.slane %v3607_v50, %v16293_v46 }
 0x7ca   :  { %v3630_v54 = vrot.slane %v3592_v55, %v16293_v46  ;;  %v3609_v1 = vcombine.high %v3599_v17, %v3599_v17  ;;  %v3606_v61 = vrot.slane %v3578_v31, %v19693_v0  ;;  %v3608_v48 = vcombine.high %v3592_v55, %v3592_v55 }
 0x7cb   :  { %v4051_v42 = vsel %vm175_vm1, %v4043_v22, 0.0  ;;  %v3659_v33 = vsel %vm175_vm1, %v3651_v21, 0.0  ;;  %v4044_v59 = vmul.f32 %v17029_v43, %v3618_v56  ;;  %v3652_v16 = vmul.f32 %v3618_v56, %v17031_v9  ;;  %v17085_v22 = vld [vmem:[#allocation19 + $0x78] sm:$0xff]  ;;  %v17087_v21 = vld [vmem:[#allocation19 + $0x70] sm:$0xff] }
 0x7cc   :  { %4052 = vadd.xlane.f32.xlu0 %v4051_v42  ;;  %3660 = vadd.xlane.f32.xlu1 %v3659_v33  ;;  %v4045_v24 = vmul.f32 %v17039_v11, %v3622_v29  ;;  %v3653_v35 = vmul.f32 %v3622_v29, %v17041_v4  ;;  %v4047_v13 = vmul.f32 %v17049_v12, %v3630_v54 }
 0x7cd   :  { %v4054_v44 = vsel %vm175_vm1, %v4044_v59, 0.0  ;;  %v3662_v63 = vsel %vm175_vm1, %v3652_v16, 0.0  ;;  %v3655_v36 = vmul.f32 %v3630_v54, %v17051_v23  ;;  %v3626_v26 = vrot.slane %v3609_v1, %v16293_v46 }
 0x7ce   :  { %v4057_v20 = vsel %vm175_vm1, %v4045_v24, 0.0  ;;  %v3665_v41 = vsel %vm175_vm1, %v3653_v35, 0.0  ;;  %v3634_v5 = vrot.slane %v3606_v61, %v16293_v46  ;;  %v4063_v57 = vsel %vm175_vm1, %v4047_v13, 0.0 }
 0x7cf   :  { %v3671_v6 = vsel %vm175_vm1, %v3655_v36, 0.0  ;;  %v3654_v58 = vmul.f32 %v3626_v26, %v17061_v2  ;;  %v3638_v37 = vrot.slane %v3608_v48, %v16293_v46  ;;  %v3610_v19 = vcombine.high %v3606_v61, %v3606_v61 }
 0x7d0   :  { %4055 = vadd.xlane.f32.xlu1 %v4054_v44  ;;  %3663 = vadd.xlane.f32.xlu0 %v3662_v63  ;;  %v3656_v39 = vmul.f32 %v3634_v5, %v17063_v52  ;;  %v4046_v25 = vmul.f32 %v17068_v51, %v3626_v26  ;;  %v4048_v17 = vmul.f32 %v17077_v14, %v3634_v5 }
 0x7d1   :  { %v3668_v60 = vsel %vm175_vm1, %v3654_v58, 0.0  ;;  %v3657_v62 = vmul.f32 %v3638_v37, %v17071_v45  ;;  %v3642_v7 = vrot.slane %v3610_v19, %v16293_v46  ;;  %v4049_v31 = vmul.f32 %v17087_v21, %v3638_v37 }
 0x7d2   :  { %v3674_v53 = vsel %vm175_vm1, %v3656_v39, 0.0  ;;  %v4060_v18 = vsel %vm175_vm1, %v4046_v25, 0.0  ;;  %v4066_v56 = vsel %vm175_vm1, %v4048_v17, 0.0 }
 0x7d3   :  { %v3677_v38 = vsel %vm175_vm1, %v3657_v62, 0.0  ;;  %v3658_v50 = vmul.f32 %v3642_v7, %v17079_v3  ;;  %v4050_v55 = vmul.f32 %v17085_v22, %v3642_v7  ;;  %v4069_v33 = vsel %vm175_vm1, %v4049_v31, 0.0 }
 0x7d4   :  { %4058 = vadd.xlane.f32.xlu1 %v4057_v20  ;;  %3666 = vadd.xlane.f32.xlu0 %v3665_v41 }
 0x7d5   :  { %v3680_v29 = vsel %vm175_vm1, %v3658_v50, 0.0  ;;  %v4072_v42 = vsel %vm175_vm1, %v4050_v55, 0.0 }
 0x7d8   :  { %4064 = vadd.xlane.f32.xlu1 %v4063_v57  ;;  %3672 = vadd.xlane.f32.xlu0 %v3671_v6 }
 0x7dc   :  { %3669 = vadd.xlane.f32.xlu1 %v3668_v60  ;;  %3675 = vadd.xlane.f32.xlu0 %v3674_v53 }
 0x7e0   :  { %4061 = vadd.xlane.f32.xlu1 %v4060_v18  ;;  %3678 = vadd.xlane.f32.xlu0 %v3677_v38 }
 0x7e4   :  { %4067 = vadd.xlane.f32.xlu1 %v4066_v56  ;;  %3681 = vadd.xlane.f32.xlu0 %v3680_v29 }
 0x7e8   :  { %4073 = vadd.xlane.f32.xlu1 %v4072_v42  ;;  %4070 = vadd.xlane.f32.xlu0 %v4069_v33 }
 0x855   :  { %v17095_v59 = vpop.xlane.xlu0 %4052  ;;  %v3661_v16 = vpop.xlane.xlu1 %3660 }
 0x856   :  { %v3694_v36 = vrot.slane %v3661_v16, %v16390_v8  ;;  %v4086_v53 = vrot.slane %v17095_v59, %v16390_v8 }
 0x859   :  { %v17097_v54 = vpop.xlane.xlu1 %4055  ;;  %v3664_v1 = vpop.xlane.xlu0 %3663 }
 0x85a   :  { %v3698_v35 = vrot.slane %v3664_v1, %v16390_v8  ;;  %v4090_v58 = vrot.slane %v17097_v54, %v16390_v8 }
 0x85c   :  { %v3723_v41 = vsel %vm1066_vm2, %v3698_v35, %v3694_v36  ;;  %v4115_v38 = vsel %vm1066_vm2, %v4090_v58, %v4086_v53 }
 0x85d   :  { %v17099_v61 = vpop.xlane.xlu1 %4058  ;;  %v3667_v44 = vpop.xlane.xlu0 %3666 }
 0x85e   :  { %v3702_v13 = vrot.slane %v3667_v44, %v16390_v8  ;;  %v4094_v25 = vrot.slane %v17099_v61, %v16390_v8 }
 0x860   :  { %v3724_v5 = vsel %vm1068_vm3, %v3702_v13, %v3723_v41  ;;  %v4116_v56 = vsel %vm1068_vm3, %v4094_v25, %v4115_v38 }
 0x861   :  { %v17101_v63 = vpop.xlane.xlu1 %4064  ;;  %v17103_v24 = vpop.xlane.xlu0 %3672 }
 0x862   :  { %v3710_v57 = vrot.slane %v17103_v24, %v16390_v8  ;;  %v4102_v33 = vrot.slane %v17101_v63, %v16390_v8 }
 0x865   :  { %v3670_v48 = vpop.xlane.xlu1 %3669  ;;  %v17108_v20 = vpop.xlane.xlu0 %3675 }
 0x866   :  { %v3706_v26 = vrot.slane %v3670_v48, %v16390_v8  ;;  %v3714_v60 = vrot.slane %v17108_v20, %v16390_v8 }
 0x868   :  { %v3725_v6 = vsel %vm1070_vm4, %v3706_v26, %v3724_v5 }
 0x869   :  { %v17118_v39 = vpop.xlane.xlu1 %4061  ;;  %v17120_v37 = vpop.xlane.xlu0 %3678  ;;  %v3726_v19 = vsel %vm1072_vm5, %v3710_v57, %v3725_v6 }
 0x86a   :  { %v4098_v62 = vrot.slane %v17118_v39, %v16390_v8  ;;  %v3718_v7 = vrot.slane %v17120_v37, %v16390_v8  ;;  %v3727_v18 = vsel %vm1074_vm6, %v3714_v60, %v3726_v19 }
 0x86c   :  { %v4117_v55 = vsel %vm1070_vm4, %v4098_v62, %v4116_v56  ;;  %v3728_v42 = vsel %vm1076_vm7, %v3718_v7, %v3727_v18 }
 0x86d   :  { %v17135_v17 = vpop.xlane.xlu1 %4067  ;;  %v17137_v50 = vpop.xlane.xlu0 %3681  ;;  %v4118_v57 = vsel %vm1072_vm5, %v4102_v33, %v4117_v55 }
 0x86e   :  { %v3722_v29 = vrot.slane %v17137_v50, %v16390_v8  ;;  %v4106_v31 = vrot.slane %v17135_v17, %v16390_v8 }
 0x870   :  { %v3729_v35 = vsel %vm1078_vm8, %v3722_v29, %v3728_v42  ;;  %v4119_v6 = vsel %vm1074_vm6, %v4106_v31, %v4118_v57 }
 0x871   :  { %v17149_v13 = vpop.xlane.xlu1 %4073  ;;  %v17151_v36 = vpop.xlane.xlu0 %4070  ;;  %v3731_v41 = vsel %vm1081_vm9, %v3729_v35, -inf }
 0x872   :  { %v4114_v26 = vrot.slane %v17149_v13, %v16390_v8  ;;  %v4110_v5 = vrot.slane %v17151_v36, %v16390_v8  ;;  %3732 = vmax.xlane.f32.xlu0 %v3731_v41 }
 0x874   :  { %v4120_v58 = vsel %vm1076_vm7, %v4110_v5, %v4119_v6  ;;  %v19698_v5 = vld [vmem:[#allocation30_spill] sm:$0xff] }
 0x875   :  { %v4121_v19 = vsel %vm1078_vm8, %v4114_v26, %v4120_v58 }
 0x876   :  { %v4123_v25 = vsel %vm1081_vm9, %v4121_v19, -inf }
 0x877   :  { %4124 = vmax.xlane.f32.xlu1 %v4123_v25 }
 0x883   :  { %v17163_v60 = vpop.f32.mrf.mxu1 }
 0x884   :  { %19697 = vst [vmem:[#allocation35_spill] sm:$0xff] %v17163_v60 }
 0x885   :  { %v14469_v53 = vpop.f32.mrf.mxu1 }
 0x8fb   :  { %v3733_v62 = vpop.xlane.xlu0 %3732 }
 0x8fc   :  { %v3738_v7 = vrot.slane %v3733_v62, %v16293_v46  ;;  %v3742_v18 = vrot.slane %v3733_v62, %v16451_v27  ;;  %v3746_v38 = vrot.slane %v3733_v62, %v16454_v28  ;;  %v3750_v56 = vrot.slane %v3733_v62, %v16457_v30 }
 0x8fd   :  { %v3754_v57 = vrot.slane %v3733_v62, %v19698_v5 }
 0x8fe   :  { %v3775_v29 = vsub.f32 %v3661_v16, %v3738_v7  ;;  %v3776_v55 = vsub.f32 %v3664_v1, %v3742_v18  ;;  %v3778_v31 = vsub.f32 %v3670_v48, %v3750_v56  ;;  %v3777_v42 = vsub.f32 %v3667_v44, %v3746_v38  ;;  %v19699_v44 = vld [vmem:[#allocation31_spill] sm:$0xff] }
 0x8ff   :  { %v3758_v48 = vrot.slane %v3733_v62, %v19699_v44  ;;  %v3779_v53 = vsub.f32 %v17103_v24, %v3754_v57 }
 0x900   :  { %v3783_v33 = vmul.f32 1.442695, %v3775_v29  ;;  %v3785_v35 = vmul.f32 1.442695, %v3776_v55  ;;  %v4125_v41 = vpop.xlane.xlu1 %4124  ;;  %v3789_v6 = vmul.f32 1.442695, %v3778_v31 }
 0x901   :  { %v4130_v26 = vrot.slane %v4125_v41, %v16293_v46  ;;  %v4134_v58 = vrot.slane %v4125_v41, %v16451_v27  ;;  %v3787_v19 = vmul.f32 1.442695, %v3777_v42  ;;  %v4138_v25 = vrot.slane %v4125_v41, %v16454_v28  ;;  %v19700_v29 = vld [vmem:[#allocation33_spill] sm:$0xff] }
 0x902   :  { %15342 = vpow2.f32 %v3783_v33  ;;  %v4142_v7 = vrot.slane %v4125_v41, %v16457_v30  ;;  %v3762_v55 = vrot.slane %v3733_v62, %v19700_v29  ;;  %v3780_v31 = vsub.f32 %v17108_v20, %v3758_v48  ;;  %v19701_v33 = vld [vmem:[#allocation32_spill] sm:$0xff] }
 0x903   :  { %15344 = vpow2.f32 %v3785_v35  ;;  %v4167_v16 = vsub.f32 %v17095_v59, %v4130_v26  ;;  %v4168_v1 = vsub.f32 %v17097_v54, %v4134_v58  ;;  %v4169_v18 = vsub.f32 %v17099_v61, %v4138_v25 }
 0x904   :  { %15346 = vpow2.f32 %v3789_v6  ;;  %v3791_v42 = vmul.f32 1.442695, %v3779_v53  ;;  %v4146_v59 = vrot.slane %v4125_v41, %v19698_v5  ;;  %v4170_v54 = vsub.f32 %v17118_v39, %v4142_v7 }
 0x905   :  { %15348 = vpow2.f32 %v3787_v19  ;;  %v4175_v38 = vmul.f32 1.442695, %v4167_v16  ;;  %v4177_v56 = vmul.f32 1.442695, %v4168_v1  ;;  %v4179_v24 = vmul.f32 1.442695, %v4169_v18 }
 0x906   :  { %v3766_v35 = vrot.slane %v3733_v62, %v19701_v33  ;;  %v3781_v26 = vsub.f32 %v17120_v37, %v3762_v55  ;;  %v3793_v61 = vmul.f32 1.442695, %v3780_v31  ;;  %v4150_v6 = vrot.slane %v4125_v41, %v19699_v44 }
 0x907   :  { %15350 = vpow2.f32 %v4175_v38  ;;  %v4171_v20 = vsub.f32 %v17101_v63, %v4146_v59  ;;  %v4181_v58 = vmul.f32 1.442695, %v4170_v54  ;;  %v4154_v62 = vrot.slane %v4125_v41, %v19700_v29 }
 0x908   :  { %15352 = vpow2.f32 %v4177_v56  ;;  %v3782_v39 = vsub.f32 %v17137_v50, %v3766_v35  ;;  %v3795_v37 = vmul.f32 1.442695, %v3781_v26  ;;  %v4158_v16 = vrot.slane %v4125_v41, %v19701_v33 }
 0x909   :  { %15354 = vpow2.f32 %v3791_v42  ;;  %v4172_v63 = vsub.f32 %v17135_v17, %v4150_v6  ;;  %v4183_v1 = vmul.f32 1.442695, %v4171_v20  ;;  %v4173_v53 = vsub.f32 %v17151_v36, %v4154_v62 }
 0x90a   :  { %15356 = vpow2.f32 %v4179_v24  ;;  %v3797_v50 = vmul.f32 1.442695, %v3782_v39  ;;  %v4174_v18 = vsub.f32 %v17149_v13, %v4158_v16 }
 0x90b   :  { %15358 = vpow2.f32 %v3793_v61  ;;  %v4185_v41 = vmul.f32 1.442695, %v4172_v63  ;;  %v4187_v17 = vmul.f32 1.442695, %v4173_v53 }
 0x90c   :  { %15360 = vpow2.f32 %v4181_v58  ;;  %v4189_v55 = vmul.f32 1.442695, %v4174_v18 }
 0x90d   :  { %15362 = vpow2.f32 %v3795_v37 }
 0x90e   :  { %15364 = vpow2.f32 %v4183_v1 }
 0x90f   :  { %v17185_v57 = vpop.eup %15342  ;;  %15366 = vpow2.f32 %v3797_v50 }
 0x910   :  { %v17189_v19 = vpop.eup %15344  ;;  %3808 = vperm.xlu0 %15224, %v17185_v57   ;;  %15368 = vpow2.f32 %v4185_v41 }
 0x911   :  { %3811 = vperm.xlu1 %15225, %v17189_v19   ;;  %v17195_v25 = vpop.eup %15346  ;;  %15370 = vpow2.f32 %v4187_v17 }
 0x912   :  { %v17199_v48 = vpop.eup %15348  ;;  %15372 = vpow2.f32 %v4189_v55 }
 0x914   :  { %3817 = vperm.xlu0 %15224, %v17195_v25   ;;  %v17204_v7 = vpop.eup %15350 }
 0x915   :  { %3814 = vperm.xlu1 %15225, %v17199_v48   ;;  %v17207_v38 = vpop.eup %15352 }
 0x916   :  { %v17211_v56 = vpop.eup %15354 }
 0x917   :  { %v17213_v31 = vpop.eup %15356 }
 0x918   :  { %4203 = vperm.xlu0 %15224, %v17207_v38   ;;  %v17217_v13 = vpop.eup %15358 }
 0x919   :  { %4200 = vperm.xlu1 %15225, %v17204_v7   ;;  %v17219_v36 = vpop.eup %15360 }
 0x91a   :  { %v17223_v42 = vpop.eup %15362 }
 0x91b   :  { %v17225_v59 = vpop.eup %15364 }
 0x91c   :  { %4206 = vperm.xlu0 %15224, %v17213_v31   ;;  %v17229_v54 = vpop.eup %15366 }
 0x91d   :  { %3820 = vperm.xlu1 %15225, %v17211_v56   ;;  %v17231_v24 = vpop.eup %15368 }
 0x91e   :  { %v17235_v35 = vpop.eup %15370 }
 0x91f   :  { %v17237_v26 = vpop.eup %15372 }
 0x920   :  { %4209 = vperm.xlu0 %15224, %v17219_v36  }
 0x921   :  { %3823 = vperm.xlu1 %15225, %v17217_v13  }
 0x924   :  { %4212 = vperm.xlu0 %15224, %v17225_v59  }
 0x925   :  { %3826 = vperm.xlu1 %15225, %v17223_v42  }
 0x928   :  { %4215 = vperm.xlu0 %15224, %v17231_v24  }
 0x929   :  { %3829 = vperm.xlu1 %15225, %v17229_v54  }
 0x92c   :  { %4221 = vperm.xlu0 %15224, %v17237_v26  }
 0x92d   :  { %4218 = vperm.xlu1 %15225, %v17235_v35  }
 0x98b   :  { %v3809_v61 = vpop.permute.xlu0 %3808 }
 0x98c   :  { %v3812_v6 = vpop.permute.xlu1 %3811  ;;  %v3834_v1 = vrot.slane %v3809_v61, %v16390_v8 }
 0x98d   :  { %v3838_v63 = vrot.slane %v3812_v6, %v16390_v8 }
 0x98f   :  { %v3818_v20 = vpop.permute.xlu0 %3817  ;;  %v3863_v41 = vsel %vm1066_vm2, %v3838_v63, %v3834_v1 }
 0x990   :  { %v3815_v58 = vpop.permute.xlu1 %3814  ;;  %v3846_v17 = vrot.slane %v3818_v20, %v16390_v8 }
 0x991   :  { %v3842_v50 = vrot.slane %v3815_v58, %v16390_v8 }
 0x993   :  { %v4204_v37 = vpop.permute.xlu0 %4203  ;;  %v3864_v55 = vsel %vm1068_vm3, %v3842_v50, %v3863_v41 }
 0x994   :  { %v4201_v39 = vpop.permute.xlu1 %4200  ;;  %v4230_v61 = vrot.slane %v4204_v37, %v16390_v8  ;;  %v3865_v47 = vsel %vm1070_vm4, %v3846_v17, %v3864_v55 }
 0x995   :  { %v4226_v6 = vrot.slane %v4201_v39, %v16390_v8 }
 0x997   :  { %v4207_v16 = vpop.permute.xlu0 %4206  ;;  %v4255_v37 = vsel %vm1066_vm2, %v4230_v61, %v4226_v6 }
 0x998   :  { %v3821_v62 = vpop.permute.xlu1 %3820  ;;  %v4234_v63 = vrot.slane %v4207_v16, %v16390_v8 }
 0x999   :  { %v3850_v15 = vrot.slane %v3821_v62, %v16390_v8 }
 0x99a   :  { %v4256_v16 = vsel %vm1068_vm3, %v4234_v63, %v4255_v37 }
 0x99b   :  { %v4210_v18 = vpop.permute.xlu0 %4209  ;;  %v3866_v20 = vsel %vm1072_vm5, %v3850_v15, %v3865_v47 }
 0x99c   :  { %v3824_v53 = vpop.permute.xlu1 %3823  ;;  %v4238_v1 = vrot.slane %v4210_v18, %v16390_v8 }
 0x99d   :  { %v3854_v60 = vrot.slane %v3824_v53, %v16390_v8 }
 0x99e   :  { %v4257_v47 = vsel %vm1070_vm4, %v4238_v1, %v4256_v16 }
 0x99f   :  { %v4213_v40 = vpop.permute.xlu0 %4212  ;;  %v3867_v41 = vsel %vm1074_vm6, %v3854_v60, %v3866_v20 }
 0x9a0   :  { %v3827_v0 = vpop.permute.xlu1 %3826  ;;  %v4242_v53 = vrot.slane %v4213_v40, %v16390_v8 }
 0x9a1   :  { %v3858_v58 = vrot.slane %v3827_v0, %v16390_v8 }
 0x9a2   :  { %v4258_v40 = vsel %vm1072_vm5, %v4242_v53, %v4257_v47 }
 0x9a3   :  { %v4216_v62 = vpop.permute.xlu0 %4215  ;;  %v3868_v17 = vsel %vm1076_vm7, %v3858_v58, %v3867_v41 }
 0x9a4   :  { %v3830_v50 = vpop.permute.xlu1 %3829  ;;  %v4246_v0 = vrot.slane %v4216_v62, %v16390_v8 }
 0x9a5   :  { %v3862_v39 = vrot.slane %v3830_v50, %v16390_v8 }
 0x9a6   :  { %v4259_v61 = vsel %vm1074_vm6, %v4246_v0, %v4258_v40 }
 0x9a7   :  { %v3869_v15 = vsel %vm1078_vm8, %v3862_v39, %v3868_v17  ;;  %v4222_v55 = vpop.permute.xlu0 %4221 }
 0x9a8   :  { %v4219_v18 = vpop.permute.xlu1 %4218  ;;  %v3871_v60 = vsel %vm1081_vm9, %v3869_v15, 0.0  ;;  %v4254_v6 = vrot.slane %v4222_v55, %v16390_v8 }
 0x9a9   :  { %v4250_v20 = vrot.slane %v4219_v18, %v16390_v8  ;;  %3872 = vadd.xlane.f32.xlu1 %v3871_v60 }
 0x9ab   :  { %v4260_v58 = vsel %vm1076_vm7, %v4250_v20, %v4259_v61 }
 0x9ac   :  { %v4261_v63 = vsel %vm1078_vm8, %v4254_v6, %v4260_v58 }
 0x9ad   :  { %v4263_v50 = vsel %vm1081_vm9, %v4261_v63, 0.0 }
 0x9ae   :  { %4264 = vadd.xlane.f32.xlu0 %v4263_v50 }
 0xa32   :  { %v3873_v1 = vpop.xlane.xlu1 %3872 }
 0xa33   :  { %v3882_v62 = vrot.slane %v3873_v1, %v16451_v27  ;;  %v3878_v41 = vrot.slane %v3873_v1, %v16293_v46  ;;  %v3886_v53 = vrot.slane %v3873_v1, %v16454_v28  ;;  %v3890_v39 = vrot.slane %v3873_v1, %v16457_v30 }
 0xa34   :  { %v3894_v16 = vrot.slane %v3873_v1, %v19698_v5  ;;  %v3898_v47 = vrot.slane %v3873_v1, %v19699_v44  ;;  %v3902_v20 = vrot.slane %v3873_v1, %v19700_v29 }
 0xa35   :  { %15374 = vrcp.f32 %v3882_v62 }
 0xa36   :  { %15376 = vrcp.f32 %v3878_v41 }
 0xa37   :  { %v4265_v37 = vpop.xlane.xlu0 %4264  ;;  %15378 = vrcp.f32 %v3886_v53 }
 0xa38   :  { %15380 = vrcp.f32 %v3890_v39  ;;  %v4274_v0 = vrot.slane %v4265_v37, %v16451_v27  ;;  %v4270_v17 = vrot.slane %v4265_v37, %v16293_v46  ;;  %v4278_v15 = vrot.slane %v4265_v37, %v16454_v28 }
 0xa39   :  { %v4282_v18 = vrot.slane %v4265_v37, %v16457_v30  ;;  %v4286_v58 = vrot.slane %v4265_v37, %v19698_v5 }
 0xa3a   :  { %15382 = vrcp.f32 %v4270_v17 }
 0xa3b   :  { %15384 = vrcp.f32 %v4274_v0 }
 0xa3c   :  { %15386 = vrcp.f32 %v3894_v16 }
 0xa3d   :  { %15388 = vrcp.f32 %v4278_v15 }
 0xa3e   :  { %15390 = vrcp.f32 %v3898_v47 }
 0xa3f   :  { %15392 = vrcp.f32 %v4282_v18 }
 0xa40   :  { %15394 = vrcp.f32 %v3902_v20 }
 0xa41   :  { %15396 = vrcp.f32 %v4286_v58 }
 0xa42   :  { %v15375_v55 = vpop.eup %15374 }
 0xa43   :  { %v15377_v60 = vpop.eup %15376  ;;  %v17284_v40 = vmul.f32 %v15375_v55, %v17189_v19  ;;  %v3906_v19 = vrot.slane %v3873_v1, %v19701_v33 }
 0xa44   :  { %v15379_v6 = vpop.eup %15378  ;;  %v17288_v61 = vmul.f32 %v15377_v60, %v17185_v57  ;;  %v4290_v57 = vrot.slane %v4265_v37, %v19699_v44 }
 0xa45   :  { %v15381_v63 = vpop.eup %15380  ;;  %3938 = vperm.xlu1 %15225, %v17284_v40   ;;  %v17294_v50 = vmul.f32 %v15379_v6, %v17199_v48  ;;  %15398 = vrcp.f32 %v3906_v19  ;;  %v4294_v48 = vrot.slane %v4265_v37, %v19700_v29  ;;  %v4599_v19 = vld [vmem:[#allocation11 + $0x58] sm:$0xff] }
 0xa46   :  { %3933 = vperm.xlu0 %15224, %v17288_v61   ;;  %v17298_v41 = vmul.f32 %v15381_v63, %v17195_v25  ;;  %15400 = vrcp.f32 %v4290_v57  ;;  %v4298_v25 = vrot.slane %v4265_v37, %v19701_v33  ;;  %v4506_v63 = vld [vmem:[#allocation11 + $0x30] sm:$0xff]  ;;  %14482 = vmatpush3.msra.mxu1 %v4599_v19  ;;  %v4596_v57 = vld [vmem:[#allocation11 + $0x40] sm:$0xff] }
 0xa47   :  { %v15383_v62 = vpop.eup %15382  ;;  %15402 = vrcp.f32 %v4294_v48  ;;  %14483 = vmatprep.subr.mxu1 %v19690_v34 }
 0xa48   :  { %v15385_v53 = vpop.eup %15384  ;;  %v17304_v39 = vmul.f32 %v15383_v62, %v17204_v7  ;;  %15404 = vrcp.f32 %v4298_v25  ;;  %v4598_v62 = vld [vmem:[#allocation11 + $0x50] sm:$0xff] }
 0xa49   :  { %3943 = vperm.xlu1 %15225, %v17294_v50   ;;  %v15387_v0 = vpop.eup %15386  ;;  %v17308_v1 = vmul.f32 %v15385_v53, %v17207_v38  ;;  %14484 = vmatpush3.msra.mxu1 %v4598_v62 }
 0xa4a   :  { %3948 = vperm.xlu0 %15224, %v17298_v41   ;;  %v15389_v17 = vpop.eup %15388  ;;  %v17314_v16 = vmul.f32 %v15387_v0, %v17211_v56  ;;  %14485 = vmatprep.subr.mxu1 %v19690_v34 }
 0xa4b   :  { %v15391_v7 = vpop.eup %15390  ;;  %v17317_v15 = vmul.f32 %v15389_v17, %v17213_v31 }
 0xa4c   :  { %v15393_v47 = vpop.eup %15392  ;;  %v17322_v38 = vmul.f32 %v15391_v7, %v17217_v13 }
 0xa4d   :  { %4325 = vperm.xlu1 %15225, %v17304_v39   ;;  %v15395_v37 = vpop.eup %15394  ;;  %v17325_v18 = vmul.f32 %v15393_v47, %v17219_v36 }
 0xa4e   :  { %4330 = vperm.xlu0 %15224, %v17308_v1   ;;  %v15397_v56 = vpop.eup %15396  ;;  %v17330_v31 = vmul.f32 %v15395_v37, %v17223_v42 }
 0xa4f   :  { %v17333_v60 = vmul.f32 %v15397_v56, %v17225_v59 }
 0xa51   :  { %3953 = vperm.xlu1 %15225, %v17314_v16  }
 0xa52   :  { %4335 = vperm.xlu0 %15224, %v17317_v15   ;;  %v15399_v55 = vpop.eup %15398 }
 0xa53   :  { %v15401_v20 = vpop.eup %15400  ;;  %v17338_v13 = vmul.f32 %v15399_v55, %v17229_v54  ;;  %v4507_v54 = vld [vmem:[#allocation11 + $0x38] sm:$0xff] }
 0xa54   :  { %v15403_v36 = vpop.eup %15402  ;;  %v17341_v6 = vmul.f32 %v15401_v20, %v17231_v24  ;;  %14471 = vmatpush3.msra.mxu0 %v4507_v54  ;;  %v4505_v24 = vld [vmem:[#allocation11 + $0x28] sm:$0xff] }
 0xa55   :  { %3958 = vperm.xlu1 %15225, %v17322_v38   ;;  %v15405_v58 = vpop.eup %15404  ;;  %v17346_v42 = vmul.f32 %v15403_v36, %v17235_v35  ;;  %14472 = vmatprep.subr.mxu0 %v19690_v34  ;;  %v4504_v35 = vld [vmem:[#allocation11 + $0x20] sm:$0xff] }
 0xa56   :  { %4340 = vperm.xlu0 %15224, %v17325_v18   ;;  %v17349_v59 = vmul.f32 %v15405_v58, %v17237_v26  ;;  %14473 = vmatpush3.msra.mxu0 %v4506_v63  ;;  %v4597_v26 = vld [vmem:[#allocation11 + $0x48] sm:$0xff] }
 0xa57   :  { %14474 = vmatprep.subr.mxu0 %v19690_v34  ;;  %14486 = vmatpush3.msra.mxu1 %v4597_v26 }
 0xa58   :  { %14475 = vmatpush3.msra.mxu0 %v4505_v24  ;;  %14487 = vmatprep.subr.mxu1 %v19690_v34 }
 0xa59   :  { %3963 = vperm.xlu1 %15225, %v17330_v31   ;;  %14476 = vmatprep.subr.mxu0 %v19690_v34 }
 0xa5a   :  { %4345 = vperm.xlu0 %15224, %v17333_v60   ;;  %14477 = vmatpush3.msra.mxu0 %v4504_v35 }
 0xa5b   :  { %14492 = vmatprep.subr.mxu0 %v19690_v34  ;;  %14488 = vmatpush3.msra.mxu1 %v4596_v57 }
 0xa5c   :  { %14503 = vmatprep.subr.mxu1 %v19690_v34 }
 0xa5d   :  { %3968 = vperm.xlu1 %15225, %v17338_v13  }
 0xa5e   :  { %4350 = vperm.xlu0 %15224, %v17341_v6  }
 0xa61   :  { %4355 = vperm.xlu1 %15225, %v17346_v42  }
 0xa62   :  { %4360 = vperm.xlu0 %15224, %v17349_v59  }
 0xac0   :  { %v3939_v53 = vpop.permute.xlu1 %3938 }
 0xac1   :  { %v3972_v48 = vmul.f32 %v3939_v53, %v17031_v9  ;;  %v3934_v0 = vpop.permute.xlu0 %3933 }
 0xac2   :  { %v3971_v25 = vmul.f32 %v3934_v0, %v17024_v49 }
 0xac3   :  { %v3986_v17 = vsel %vm175_vm1, %v3972_v48, 0.0 }
 0xac4   :  { %v3987_v7 = vrot.slane %v3986_v17, 4  ;;  %v3979_v47 = vsel %vm175_vm1, %v3971_v25, 0.0  ;;  %v3944_v37 = vpop.permute.xlu1 %3943 }
 0xac5   :  { %v3980_v56 = vrot.slane %v3979_v47, 4  ;;  %v3973_v55 = vmul.f32 %v3944_v37, %v17041_v4  ;;  %v3949_v20 = vpop.permute.xlu0 %3948 }
 0xac6   :  { %v3988_v36 = vadd.f32 %v3987_v7, %v3986_v17  ;;  %v3974_v58 = vmul.f32 %v3949_v20, %v17061_v2 }
 0xac7   :  { %v3981_v54 = vadd.f32 %v3980_v56, %v3979_v47  ;;  %v3993_v63 = vsel %vm175_vm1, %v3973_v55, 0.0 }
 0xac8   :  { %v3989_v9 = vrot.slane %v3988_v36, 2  ;;  %v3994_v24 = vrot.slane %v3993_v63, 4  ;;  %v4000_v49 = vsel %vm175_vm1, %v3974_v58, 0.0  ;;  %v4326_v19 = vpop.permute.xlu1 %4325 }
 0xac9   :  { %v3982_v62 = vrot.slane %v3981_v54, 2  ;;  %v4001_v35 = vrot.slane %v4000_v49, 4  ;;  %v4363_v26 = vmul.f32 %v4326_v19, %v17022_v32  ;;  %v4331_v57 = vpop.permute.xlu0 %4330 }
 0xaca   :  { %v3995_v53 = vadd.f32 %v3994_v24, %v3993_v63  ;;  %v4364_v4 = vmul.f32 %v4331_v57, %v17029_v43  ;;  %v3990_v48 = vadd.f32 %v3989_v9, %v3988_v36 }
 0xacb   :  { %v3983_v0 = vadd.f32 %v3982_v62, %v3981_v54  ;;  %v4002_v25 = vadd.f32 %v4001_v35, %v4000_v49  ;;  %v4371_v2 = vsel %vm175_vm1, %v4363_v26, 0.0 }
 0xacc   :  { %v3996_v17 = vrot.slane %v3995_v53, 2  ;;  %v4372_v7 = vrot.slane %v4371_v2, 4  ;;  %v4378_v47 = vsel %vm175_vm1, %v4364_v4, 0.0  ;;  %v3954_v37 = vpop.permute.xlu1 %3953  ;;  %v3991_v43 = vrot.slane %v3990_v48, 1 }
 0xacd   :  { %v4003_v56 = vrot.slane %v4002_v25, 2  ;;  %v4379_v55 = vrot.slane %v4378_v47, 4  ;;  %v3975_v20 = vmul.f32 %v3954_v37, %v17051_v23  ;;  %v4336_v58 = vpop.permute.xlu0 %4335  ;;  %v3984_v36 = vrot.slane %v3983_v0, 1 }
 0xace   :  { %v3997_v32 = vadd.f32 %v3996_v17, %v3995_v53  ;;  %v4373_v19 = vadd.f32 %v4372_v7, %v4371_v2  ;;  %v4365_v63 = vmul.f32 %v4336_v58, %v17039_v11  ;;  %v3992_v53 = vadd.f32 %v3991_v43, %v3990_v48 }
 0xacf   :  { %v4007_v54 = vsel %vm175_vm1, %v3975_v20, 0.0  ;;  %v4004_v9 = vadd.f32 %v4003_v56, %v4002_v25  ;;  %v4380_v24 = vadd.f32 %v4379_v55, %v4378_v47  ;;  %v3985_v2 = vadd.f32 %v3984_v36, %v3983_v0 }
 0xad0   :  { %v4008_v49 = vrot.slane %v4007_v54, 4  ;;  %v4385_v62 = vsel %vm175_vm1, %v4365_v63, 0.0  ;;  %v3959_v35 = vpop.permute.xlu1 %3958  ;;  %v4374_v26 = vrot.slane %v4373_v19, 2  ;;  %v3998_v33 = vrot.slane %v3997_v32, 1 }
 0xad1   :  { %v4386_v57 = vrot.slane %v4385_v62, 4  ;;  %v4341_v4 = vpop.permute.xlu0 %4340  ;;  %v3976_v23 = vmul.f32 %v3959_v35, %v17063_v52  ;;  %v4005_v7 = vrot.slane %v4004_v9, 1  ;;  %v4381_v37 = vrot.slane %v4380_v24, 2 }
 0xad2   :  { %v4009_v17 = vadd.f32 %v4008_v49, %v4007_v54  ;;  %v4366_v11 = vmul.f32 %v4341_v4, %v17068_v51  ;;  %v4375_v56 = vadd.f32 %v4374_v26, %v4373_v19  ;;  %v3999_v63 = vadd.f32 %v3998_v33, %v3997_v32 }
 0xad3   :  { %v4014_v25 = vsel %vm175_vm1, %v3976_v23, 0.0  ;;  %v4387_v55 = vadd.f32 %v4386_v57, %v4385_v62  ;;  %v4516_v52 = vsel %vm1066_vm2, %v3992_v53, %v3985_v2  ;;  %v4006_v51 = vadd.f32 %v4005_v7, %v4004_v9 }
 0xad4   :  { %v3964_v47 = vpop.permute.xlu1 %3963  ;;  %v4015_v20 = vrot.slane %v4014_v25, 4  ;;  %v4392_v29 = vsel %vm175_vm1, %v4366_v11, 0.0  ;;  %v4010_v48 = vrot.slane %v4009_v17, 2  ;;  %v4382_v36 = vadd.f32 %v4381_v37, %v4380_v24 }
 0xad5   :  { %v4346_v58 = vpop.permute.xlu0 %4345  ;;  %v3977_v44 = vmul.f32 %v3964_v47, %v17071_v45  ;;  %v4393_v43 = vrot.slane %v4392_v29, 4  ;;  %v4376_v62 = vrot.slane %v4375_v56, 1  ;;  %v4388_v35 = vrot.slane %v4387_v55, 2 }
 0xad6   :  { %v4016_v0 = vadd.f32 %v4015_v20, %v4014_v25  ;;  %v4367_v49 = vmul.f32 %v4346_v58, %v17049_v12  ;;  %v4517_v57 = vsel %vm1068_vm3, %v3999_v63, %v4516_v52  ;;  %v4011_v53 = vadd.f32 %v4010_v48, %v4009_v17 }
 0xad7   :  { %v4021_v54 = vsel %vm175_vm1, %v3977_v44, 0.0  ;;  %v4394_v33 = vadd.f32 %v4393_v43, %v4392_v29  ;;  %v4383_v44 = vrot.slane %v4382_v36, 1  ;;  %v4377_v29 = vadd.f32 %v4376_v62, %v4375_v56 }
 0xad8   :  { %v3969_v19 = vpop.permute.xlu1 %3968  ;;  %v4017_v26 = vrot.slane %v4016_v0, 2  ;;  %v4022_v45 = vrot.slane %v4021_v54, 4  ;;  %v4399_v4 = vsel %vm175_vm1, %v4367_v49, 0.0  ;;  %v4389_v25 = vadd.f32 %v4388_v35, %v4387_v55 }
 0xad9   :  { %v4351_v32 = vpop.permute.xlu0 %4350  ;;  %v3978_v23 = vmul.f32 %v3969_v19, %v17079_v3  ;;  %v4395_v24 = vrot.slane %v4394_v33, 2  ;;  %v4400_v2 = vrot.slane %v4399_v4, 4  ;;  %v4012_v48 = vrot.slane %v4011_v53, 1 }
 0xada   :  { %v4018_v9 = vadd.f32 %v4017_v26, %v4016_v0  ;;  %v4023_v11 = vadd.f32 %v4022_v45, %v4021_v54  ;;  %v4368_v7 = vmul.f32 %v4351_v32, %v17077_v14  ;;  %v4390_v55 = vrot.slane %v4389_v25, 1 }
 0xadb   :  { %v4028_v12 = vsel %vm175_vm1, %v3978_v23, 0.0  ;;  %v4396_v47 = vadd.f32 %v4395_v24, %v4394_v33  ;;  %v4401_v20 = vadd.f32 %v4400_v2, %v4399_v4 }
 0xadc   :  { %v4356_v37 = vpop.permute.xlu1 %4355  ;;  %v4024_v63 = vrot.slane %v4023_v11, 2  ;;  %v4029_v52 = vrot.slane %v4028_v12, 4  ;;  %v4406_v3 = vsel %vm175_vm1, %v4368_v7, 0.0  ;;  %v4019_v0 = vrot.slane %v4018_v9, 1 }
 0xadd   :  { %v4361_v58 = vpop.permute.xlu0 %4360  ;;  %v4369_v17 = vmul.f32 %v4356_v37, %v17087_v21  ;;  %v4402_v43 = vrot.slane %v4401_v20, 2  ;;  %v4407_v54 = vrot.slane %v4406_v3, 4  ;;  %v4397_v33 = vrot.slane %v4396_v47, 1 }
 0xade   :  { %v4025_v49 = vadd.f32 %v4024_v63, %v4023_v11  ;;  %v4030_v19 = vadd.f32 %v4029_v52, %v4028_v12  ;;  %v4370_v56 = vmul.f32 %v4361_v58, %v17085_v22  ;;  %v4013_v21 = vadd.f32 %v4012_v48, %v4011_v53 }
 0xadf   :  { %v4413_v14 = vsel %vm175_vm1, %v4369_v17, 0.0  ;;  %v4403_v62 = vadd.f32 %v4402_v43, %v4401_v20  ;;  %v4408_v35 = vadd.f32 %v4407_v54, %v4406_v3  ;;  %v4384_v7 = vadd.f32 %v4383_v44, %v4382_v36 }
 0xae0   :  { %v4414_v26 = vrot.slane %v4413_v14, 4  ;;  %v4026_v32 = vrot.slane %v4025_v49, 1  ;;  %v4031_v45 = vrot.slane %v4030_v19, 2  ;;  %v4420_v4 = vsel %vm175_vm1, %v4370_v56, 0.0 }
 0xae1   :  { %v4404_v23 = vrot.slane %v4403_v62, 1  ;;  %v4409_v24 = vrot.slane %v4408_v35, 2  ;;  %v4020_v11 = vadd.f32 %v4019_v0, %v4018_v9  ;;  %v4421_v37 = vrot.slane %v4420_v4, 4 }
 0xae2   :  { %v4415_v2 = vadd.f32 %v4414_v26, %v4413_v14  ;;  %v4032_v12 = vadd.f32 %v4031_v45, %v4030_v19  ;;  %v4391_v63 = vadd.f32 %v4390_v55, %v4389_v25  ;;  %v4027_v52 = vadd.f32 %v4026_v32, %v4025_v49  ;;  %v4703_v45 = vld [vmem:[#allocation14] sm:$0xff] }
 0xae3   :  { %v4410_v22 = vadd.f32 %v4409_v24, %v4408_v35  ;;  %v4518_v20 = vsel %vm1070_vm4, %v4006_v51, %v4517_v57  ;;  %v4398_v3 = vadd.f32 %v4397_v33, %v4396_v47  ;;  %v4422_v43 = vadd.f32 %v4421_v37, %v4420_v4  ;;  %v4706_v57 = vld [vmem:[#allocation14 + $0x18] sm:$0xff]  ;;  %v4864_v24 = vld [vmem:[#allocation14 + $0x28] sm:$0xff]  ;;  %v5018_v37 = vld [vmem:[#allocation14 + $0x40] sm:$0xff] }
 0xae4   :  { %v4416_v58 = vrot.slane %v4415_v2, 2  ;;  %v4033_v17 = vrot.slane %v4032_v12, 1  ;;  %v4405_v54 = vadd.f32 %v4404_v23, %v4403_v62  ;;  %v4519_v53 = vsel %vm1072_vm5, %v4013_v21, %v4518_v20  ;;  %v4866_v21 = vld [vmem:[#allocation14 + $0x38] sm:$0xff]  ;;  %v4865_v23 = vld [vmem:[#allocation14 + $0x30] sm:$0xff] }
 0xae5   :  { %v4411_v5 = vrot.slane %v4410_v22, 1  ;;  %v4608_v48 = vsel %vm1066_vm2, %v4384_v7, %v4377_v29  ;;  %v4423_v9 = vrot.slane %v4422_v43, 2  ;;  %v4520_v44 = vsel %vm1074_vm6, %v4020_v11, %v4519_v53  ;;  %v4705_v29 = vld [vmem:[#allocation14 + $0x10] sm:$0xff]  ;;  %v5021_v7 = vld [vmem:[#allocation14 + $0x58] sm:$0xff]  ;;  %v5733_v53 = vld [vmem:[#allocation10 + $0x28] sm:$0xff] }
 0xae6   :  { %v4417_v56 = vadd.f32 %v4416_v58, %v4415_v2  ;;  %v4034_v36 = vadd.f32 %v4033_v17, %v4032_v12  ;;  %v4609_v25 = vsel %vm1068_vm3, %v4391_v63, %v4608_v48  ;;  %v4521_v51 = vsel %vm1076_vm7, %v4027_v52, %v4520_v44  ;;  %v4863_v2 = vld [vmem:[#allocation14 + $0x20] sm:$0xff]  ;;  %v5020_v11 = vld [vmem:[#allocation14 + $0x50] sm:$0xff]  ;;  %v5019_v12 = vld [vmem:[#allocation14 + $0x48] sm:$0xff] }
 0xae7   :  { %v4412_v0 = vadd.f32 %v4411_v5, %v4410_v22  ;;  %v4610_v47 = vsel %vm1070_vm4, %v4398_v3, %v4609_v25  ;;  %v4424_v19 = vadd.f32 %v4423_v9, %v4422_v43  ;;  %v4704_v5 = vld [vmem:[#allocation14 + $0x8] sm:$0xff]  ;;  %v5171_v63 = vld [vmem:[#allocation14 + $0x78] sm:$0xff]  ;;  %v5170_v52 = vld [vmem:[#allocation14 + $0x70] sm:$0xff] }
 0xae8   :  { %v4418_v49 = vrot.slane %v4417_v56, 1  ;;  %v4522_v14 = vsel %vm1078_vm8, %v4034_v36, %v4521_v51  ;;  %v4611_v62 = vsel %vm1072_vm5, %v4405_v54, %v4610_v47  ;;  %v5169_v22 = vld [vmem:[#allocation14 + $0x68] sm:$0xff]  ;;  %v5168_v58 = vld [vmem:[#allocation14 + $0x60] sm:$0xff]  ;;  %v5577_v20 = vld [vmem:[#allocation10 + $0x18] sm:$0xff] }
 0xae9   :  { %14479 = vmatmul.mubr.msk.f32.vlgmr.msra.gmra.mxu0 %vm175_vm1, %v4522_v14  ;;  %v4425_v35 = vrot.slane %v4424_v19, 1  ;;  %v4612_v26 = vsel %vm1074_vm6, %v4412_v0, %v4611_v62  ;;  %v5576_v3 = vld [vmem:[#allocation10 + $0x10] sm:$0xff]  ;;  %v5575_v17 = vld [vmem:[#allocation10 + $0x8] sm:$0xff]  ;;  %v5574_v43 = vld [vmem:[#allocation10] sm:$0xff] }
 0xaea   :  { %v4419_v55 = vadd.f32 %v4418_v49, %v4417_v56  ;;  %14493 = vmatpush3.msra.mxu0 %v4706_v57  ;;  %14500 = vmatprep.mubr.msk.f32.mxu0 %vm16047_vm0, %v19690_v34  ;;  %v5735_v54 = vld [vmem:[#allocation10 + $0x38] sm:$0xff]  ;;  %v5734_v56 = vld [vmem:[#allocation10 + $0x30] sm:$0xff]  ;;  %v5732_v48 = vld [vmem:[#allocation10 + $0x20] sm:$0xff] }
 0xaeb   :  { %14494 = vmatprep.subr.mxu0 %v19690_v34  ;;  %v4426_v32 = vadd.f32 %v4425_v35, %v4424_v19  ;;  %v5890_v36 = vld [vmem:[#allocation10 + $0x58] sm:$0xff]  ;;  %v5889_v9 = vld [vmem:[#allocation10 + $0x50] sm:$0xff]  ;;  %v5888_v44 = vld [vmem:[#allocation10 + $0x48] sm:$0xff] }
 0xaec   :  { %v4613_v33 = vsel %vm1076_vm7, %v4419_v55, %v4612_v26  ;;  %14495 = vmatpush3.msra.mxu0 %v4705_v29  ;;  %v5887_v25 = vld [vmem:[#allocation10 + $0x40] sm:$0xff]  ;;  %v6040_v0 = vld [vmem:[#allocation10 + $0x78] sm:$0xff]  ;;  %v6039_v49 = vld [vmem:[#allocation10 + $0x70] sm:$0xff] }
 0xaed   :  { %14496 = vmatprep.subr.mxu0 %v19690_v34  ;;  %v4614_v4 = vsel %vm1078_vm8, %v4426_v32, %v4613_v33  ;;  %v6038_v51 = vld [vmem:[#allocation10 + $0x68] sm:$0xff]  ;;  %v6037_v57 = vld [vmem:[#allocation10 + $0x60] sm:$0xff]  ;;  %v15738_v14 = vld [vmem:[%s19635_s7] ss:$0 sm:$0xff] }
 0xaee   :  { %14497 = vmatpush3.msra.mxu0 %v4704_v5  ;;  %14490 = vmatmul.mubr.msk.f32.vlgmr.msra.gmra.mxu1 %vm175_vm1, %v4614_v4  ;;  %v19703_v55 = vld [vmem:[#allocation35_spill] sm:$0xff] }
 0xaef   :  { %14498 = vmatprep.subr.mxu0 %v19690_v34  ;;  %14511 = vmatprep.mubr.msk.f32.mxu1 %vm16047_vm0, %v19690_v34  ;;  %v4503_v29 = vadd.f32 %v15738_v14, %v19703_v55  ;;  %v5015_v14 = vld [vmem:[#allocation13 + $0x48] sm:$0xff]  ;;  %v5014_v55 = vld [vmem:[#allocation13 + $0x40] sm:$0xff] }
 0xaf0   :  { %14499 = vmatpush3.msra.mxu0 %v4703_v45 }
 0xaf1   :  { %14501 = vmatmul.mubr.msk.f32.vlgmr.msra.gmra.mxu0 %vm175_vm1, %v16948_v10  ;;  %14514 = vmatprep.subr.mxu0 %v19690_v34 }
 0xaf2   :  { %14515 = vmatpush3.msra.mxu0 %v4866_v21  ;;  %14522 = vmatprep.mubr.msk.f32.mxu0 %vm16047_vm0, %v19690_v34 }
 0xaf3   :  { %14516 = vmatprep.subr.mxu0 %v19690_v34 }
 0xaf4   :  { %14517 = vmatpush3.msra.mxu0 %v4865_v23 }
 0xaf5   :  { %14518 = vmatprep.subr.mxu0 %v19690_v34 }
 0xaf6   :  { %14519 = vmatpush3.msra.mxu0 %v4864_v24  ;;  %v5325_v24 = vsub.f32 1.0, %v17284_v40  ;;  %v5330_v40 = vsub.f32 1.0, %v17330_v31 }
 0xaf7   :  { %14520 = vmatprep.subr.mxu0 %v19690_v34 }
 0xaf8   :  { %14521 = vmatpush3.msra.mxu0 %v4863_v2 }
 0xaf9   :  { %14523 = vmatmul.mubr.msk.f32.vlgmr.msra.gmra.mxu0 %vm175_vm1, %v16948_v10  ;;  %14536 = vmatprep.subr.mxu0 %v19690_v34 }
 0xafa   :  { %14537 = vmatpush3.msra.mxu0 %v5021_v7  ;;  %14544 = vmatprep.mubr.msk.f32.mxu0 %vm16047_vm0, %v19690_v34  ;;  %v5326_v7 = vsub.f32 1.0, %v17294_v50 }
 0xafb   :  { %14538 = vmatprep.subr.mxu0 %v19690_v34 }
 0xafc   :  { %14539 = vmatpush3.msra.mxu0 %v5020_v11 }
 0xafd   :  { %14540 = vmatprep.subr.mxu0 %v19690_v34 }
 0xafe   :  { %14541 = vmatpush3.msra.mxu0 %v5019_v12  ;;  %v5486_v12 = vsub.f32 1.0, %v17304_v39  ;;  %v5492_v39 = vsub.f32 1.0, %v17346_v42  ;;  %v5324_v42 = vsub.f32 1.0, %v17288_v61  ;;  %v5488_v61 = vsub.f32 1.0, %v17317_v15  ;;  %v4861_v15 = vld [vmem:[#allocation13 + $0x30] sm:$0xff] }
 0xaff   :  { %14542 = vmatprep.subr.mxu0 %v19690_v34 }
 0xb00   :  { %14543 = vmatpush3.msra.mxu0 %v5018_v37 }
 0xb01   :  { %14545 = vmatmul.mubr.msk.f32.vlgmr.msra.gmra.mxu0 %vm175_vm1, %v16948_v10  ;;  %14558 = vmatprep.subr.mxu0 %v19690_v34 }
 0xb02   :  { %14559 = vmatpush3.msra.mxu0 %v5171_v63  ;;  %14566 = vmatprep.mubr.msk.f32.mxu0 %vm16047_vm0, %v19690_v34  ;;  %v5328_v63 = vsub.f32 1.0, %v17314_v16 }
 0xb03   :  { %14560 = vmatprep.subr.mxu0 %v19690_v34 }
 0xb04   :  { %14561 = vmatpush3.msra.mxu0 %v5170_v52 }
 0xb05   :  { %14562 = vmatprep.subr.mxu0 %v19690_v34 }
 0xb06   :  { %14563 = vmatpush3.msra.mxu0 %v5169_v22  ;;  %v5329_v22 = vsub.f32 1.0, %v17322_v38 }
 0xb07   :  { %14564 = vmatprep.subr.mxu0 %v19690_v34 }
 0xb08   :  { %14565 = vmatpush3.msra.mxu0 %v5168_v58 }
 0xb09   :  { %14567 = vmatmul.mubr.msk.f32.vlgmr.msra.gmra.mxu0 %vm175_vm1, %v16948_v10  ;;  %14580 = vmatprep.subr.mxu0 %v19690_v34  ;;  %v19702_v10 = vld [vmem:[#allocation34_spill] sm:$0xff] }
 0xb0a   :  { %14581 = vmatpush3.msra.mxu0 %v5577_v20  ;;  %14588 = vmatprep.mubr.msk.f32.mxu0 %vm16047_vm0, %v19690_v34  ;;  %v5331_v20 = vsub.f32 1.0, %v17338_v13  ;;  %v4702_v13 = vld [vmem:[#allocation13 + $0x18] sm:$0xff] }
 0xb0b   :  { %14582 = vmatprep.subr.mxu0 %v19690_v34  ;;  %14504 = vmatpush3.msra.mxu1 %v4702_v13 }
 0xb0c   :  { %14583 = vmatpush3.msra.mxu0 %v5576_v3  ;;  %14505 = vmatprep.subr.mxu1 %v19690_v34 }
 0xb0d   :  { %14584 = vmatprep.subr.mxu0 %v19690_v34 }
 0xb0e   :  { %14585 = vmatpush3.msra.mxu0 %v5575_v17 }
 0xb0f   :  { %14586 = vmatprep.subr.mxu0 %v19690_v34 }
 0xb10   :  { %14587 = vmatpush3.msra.mxu0 %v5574_v43 }
 0xb11   :  { %14589 = vmatmul.mubr.msk.f32.vlgmr.msra.gmra.mxu0 %vm175_vm1, %v19702_v10  ;;  %14602 = vmatprep.subr.mxu0 %v19690_v34 }
 0xb12   :  { %14603 = vmatpush3.msra.mxu0 %v5735_v54  ;;  %14610 = vmatprep.mubr.msk.f32.mxu0 %vm16047_vm0, %v19690_v34 }
 0xb13   :  { %14604 = vmatprep.subr.mxu0 %v19690_v34 }
 0xb14   :  { %14605 = vmatpush3.msra.mxu0 %v5734_v56 }
 0xb15   :  { %14606 = vmatprep.subr.mxu0 %v19690_v34 }
 0xb16   :  { %14607 = vmatpush3.msra.mxu0 %v5733_v53 }
 0xb17   :  { %14608 = vmatprep.subr.mxu0 %v19690_v34 }
 0xb18   :  { %14609 = vmatpush3.msra.mxu0 %v5732_v48  ;;  %v4701_v48 = vld [vmem:[#allocation13 + $0x10] sm:$0xff] }
 0xb19   :  { %14611 = vmatmul.mubr.msk.f32.vlgmr.msra.gmra.mxu0 %vm175_vm1, %v19702_v10  ;;  %14624 = vmatprep.subr.mxu0 %v19690_v34 }
 0xb1a   :  { %14625 = vmatpush3.msra.mxu0 %v5890_v36  ;;  %14632 = vmatprep.mubr.msk.f32.mxu0 %vm16047_vm0, %v19690_v34  ;;  %v4700_v36 = vld [vmem:[#allocation13 + $0x8] sm:$0xff] }
 0xb1b   :  { %14626 = vmatprep.subr.mxu0 %v19690_v34  ;;  %14506 = vmatpush3.msra.mxu1 %v4701_v48  ;;  %v15739_v48 = vld [vmem:[%s19638_s10] ss:$0 sm:$0xff] }
 0xb1c   :  { %14627 = vmatpush3.msra.mxu0 %v5889_v9  ;;  %14507 = vmatprep.subr.mxu1 %v19690_v34  ;;  %v4699_v9 = vld [vmem:[#allocation13] sm:$0xff] }
 0xb1d   :  { %14628 = vmatprep.subr.mxu0 %v19690_v34  ;;  %14508 = vmatpush3.msra.mxu1 %v4700_v36 }
 0xb1e   :  { %14629 = vmatpush3.msra.mxu0 %v5888_v44  ;;  %14509 = vmatprep.subr.mxu1 %v19690_v34  ;;  %v5327_v44 = vsub.f32 1.0, %v17298_v41  ;;  %v5493_v41 = vsub.f32 1.0, %v17349_v59  ;;  %v5016_v59 = vld [vmem:[#allocation13 + $0x50] sm:$0xff] }
 0xb1f   :  { %14630 = vmatprep.subr.mxu0 %v19690_v34  ;;  %14510 = vmatpush3.msra.mxu1 %v4699_v9 }
 0xb20   :  { %14631 = vmatpush3.msra.mxu0 %v5887_v25  ;;  %14525 = vmatprep.subr.mxu1 %v19690_v34  ;;  %v5487_v25 = vsub.f32 1.0, %v17308_v1 }
 0xb21   :  { %14633 = vmatmul.mubr.msk.f32.vlgmr.msra.gmra.mxu0 %vm175_vm1, %v19702_v10  ;;  %14646 = vmatprep.subr.mxu0 %v19690_v34 }
 0xb22   :  { %14647 = vmatpush3.msra.mxu0 %v6040_v0  ;;  %14654 = vmatprep.mubr.msk.f32.mxu0 %vm16047_vm0, %v19690_v34  ;;  %v5489_v0 = vsub.f32 1.0, %v17325_v18  ;;  %v4860_v18 = vld [vmem:[#allocation13 + $0x28] sm:$0xff] }
 0xb23   :  { %14648 = vmatprep.subr.mxu0 %v19690_v34 }
 0xb24   :  { %14649 = vmatpush3.msra.mxu0 %v6039_v49  ;;  %v5490_v49 = vsub.f32 1.0, %v17333_v60  ;;  %v4859_v60 = vld [vmem:[#allocation13 + $0x20] sm:$0xff] }
 0xb25   :  { %14650 = vmatprep.subr.mxu0 %v19690_v34 }
 0xb26   :  { %14651 = vmatpush3.msra.mxu0 %v6038_v51  ;;  %v5491_v51 = vsub.f32 1.0, %v17341_v6  ;;  %v5017_v6 = vld [vmem:[#allocation13 + $0x58] sm:$0xff] }
 0xb27   :  { %14652 = vmatprep.subr.mxu0 %v19690_v34 }
 0xb28   :  { %14653 = vmatpush3.msra.mxu0 %v6037_v57 }
 0xb29   :  { %14655 = vmatmul.mubr.msk.f32.vlgmr.msra.gmra.mxu0 %vm175_vm1, %v19702_v10  ;;  %14668 = vmatprep.subr.mxu0 %v19690_v34 }
 0xb2a   :  { %14676 = vmatprep.mubr.msk.f32.mxu0 %vm16047_vm0, %v19690_v34 }
 0xba9   :  { %v4591_v47 = vpop.f32.mrf.mxu0 }
 0xbaa   :  { %v4595_v62 = vadd.f32 %v4591_v47, %v4503_v29  ;;  %v5167_v29 = vld [vmem:[#allocation13 + $0x78] sm:$0xff] }
 0xbab   :  { %v14480_v19 = vpop.f32.mrf.mxu0 }
 0xbac   :  { %v4862_v19 = vld [vmem:[#allocation13 + $0x38] sm:$0xff] }
 0xbae   :  { %v4683_v35 = vpop.f32.mrf.mxu1 }
 0xbaf   :  { %v4687_v26 = vadd.f32 %v4683_v35, %v4595_v62  ;;  %v5166_v62 = vld [vmem:[#allocation13 + $0x70] sm:$0xff]  ;;  %v5165_v35 = vld [vmem:[#allocation13 + $0x68] sm:$0xff] }
 0xbb0   :  { %v14491_v5 = vpop.f32.mrf.mxu1 }
 0xbb1   :  { %v17481_v33 = vpop.f32.mrf.mxu0  ;;  %v4688_v32 = vsel %vm175_vm1, %v4687_v26, -inf  ;;  %v5573_v5 = vld [vmem:[#allocation8 + $0x18] sm:$0xff] }
 0xbb2   :  { %4689 = vmax.xlane.f32.xlu1 %v4688_v32  ;;  %v5572_v32 = vld [vmem:[#allocation8 + $0x10] sm:$0xff] }
 0xbb3   :  { %v14502_v45 = vpop.f32.mrf.mxu0 }
 0xbb4   :  { %v5571_v45 = vld [vmem:[#allocation8 + $0x8] sm:$0xff] }
 0xbb9   :  { %v17484_v4 = vpop.f32.mrf.mxu0 }
 0xbbb   :  { %v14524_v21 = vpop.f32.mrf.mxu0 }
 0xbbc   :  { %v5570_v21 = vld [vmem:[#allocation8] sm:$0xff] }
 0xbc1   :  { %v17486_v23 = vpop.f32.mrf.mxu0 }
 0xbc3   :  { %v14546_v2 = vpop.f32.mrf.mxu0  ;;  %5437 = vperm.xlu1 %15225, %v5325_v24   ;;  %v5569_v24 = vld [vmem:[#allocation2 + $0x10] sm:$0xff] }
 0xbc4   :  { %v5731_v2 = vld [vmem:[#allocation8 + $0x38] sm:$0xff] }
 0xbc7   :  { %5442 = vperm.xlu1 %15225, %v5326_v7   ;;  %v5730_v7 = vld [vmem:[#allocation8 + $0x30] sm:$0xff] }
 0xbc9   :  { %v17490_v11 = vpop.f32.mrf.mxu0 }
 0xbcb   :  { %v14568_v37 = vpop.f32.mrf.mxu0  ;;  %5512 = vperm.xlu1 %15225, %v5486_v12   ;;  %v5729_v12 = vld [vmem:[#allocation8 + $0x28] sm:$0xff] }
 0xbcc   :  { %v5728_v37 = vld [vmem:[#allocation8 + $0x20] sm:$0xff] }
 0xbcf   :  { %5452 = vperm.xlu1 %15225, %v5328_v63   ;;  %v5886_v63 = vld [vmem:[#allocation8 + $0x58] sm:$0xff] }
 0xbd1   :  { %v17494_v52 = vpop.f32.mrf.mxu0 }
 0xbd3   :  { %v14590_v58 = vpop.f32.mrf.mxu0  ;;  %5457 = vperm.xlu1 %15225, %v5329_v22   ;;  %v5885_v22 = vld [vmem:[#allocation8 + $0x50] sm:$0xff] }
 0xbd4   :  { %v5884_v58 = vld [vmem:[#allocation8 + $0x48] sm:$0xff] }
 0xbd7   :  { %5462 = vperm.xlu1 %15225, %v5330_v40   ;;  %v5883_v40 = vld [vmem:[#allocation8 + $0x40] sm:$0xff] }
 0xbd9   :  { %v17498_v50 = vpop.f32.mrf.mxu0 }
 0xbdb   :  { %v14612_v3 = vpop.f32.mrf.mxu0  ;;  %5467 = vperm.xlu1 %15225, %v5331_v20   ;;  %v6036_v20 = vld [vmem:[#allocation8 + $0x78] sm:$0xff] }
 0xbdc   :  { %v6035_v3 = vld [vmem:[#allocation8 + $0x70] sm:$0xff] }
 0xbdf   :  { %5542 = vperm.xlu1 %15225, %v5492_v39   ;;  %v6034_v39 = vld [vmem:[#allocation8 + $0x68] sm:$0xff] }
 0xbe1   :  { %v17502_v16 = vpop.f32.mrf.mxu0 }
 0xbe3   :  { %v14634_v17 = vpop.f32.mrf.mxu0 }
 0xbe4   :  { %v6033_v17 = vld [vmem:[#allocation8 + $0x60] sm:$0xff] }
 0xbe9   :  { %v17504_v43 = vpop.f32.mrf.mxu0 }
 0xbeb   :  { %v14656_v38 = vpop.f32.mrf.mxu0 }
 0xbec   :  { %v7070_v38 = vld [vmem:[#allocation11 + $0x18] sm:$0xff] }
 0xbed   :  { %14669 = vmatpush3.msra.mxu0 %v7070_v38 }
 0xbee   :  { %14670 = vmatprep.subr.mxu0 %v19690_v34 }
 0xc3b   :  { %v4690_v54 = vpop.xlane.xlu1 %4689 }
 0xc3c   :  { %v4691_v10 = vsub.f32 %v4687_v26, %v4690_v54  ;;  %v5164_v26 = vld [vmem:[#allocation13 + $0x60] sm:$0xff]  ;;  %v7069_v54 = vld [vmem:[#allocation11 + $0x10] sm:$0xff] }
 0xc3d   :  { %14671 = vmatpush3.msra.mxu0 %v7069_v54 }
 0xc3e   :  { %v4692_v56 = vmul.f32 1.442695, %v4691_v10  ;;  %v7068_v10 = vld [vmem:[#allocation11 + $0x8] sm:$0xff]  ;;  %14672 = vmatprep.subr.mxu0 %v19690_v34 }
 0xc3f   :  { %14673 = vmatpush3.msra.mxu0 %v7068_v10 }
 0xc40   :  { %15406 = vpow2.f32 %v4692_v56  ;;  %v7067_v56 = vld [vmem:[#allocation11] sm:$0xff]  ;;  %14674 = vmatprep.subr.mxu0 %v19690_v34 }
 0xc41   :  { %14675 = vmatpush3.msra.mxu0 %v7067_v56 }
 0xc42   :  { %14690 = vmatprep.subr.mxu0 %v19690_v34 }
 0xc4d   :  { %v15407_v31 = vpop.eup %15406 }
 0xc4e   :  { %v4694_v53 = vsel %vm175_vm1, %v15407_v31, 0.0 }
 0xc4f   :  { %4695 = vadd.xlane.f32.xlu0 %v4694_v53 }
 0xc65   :  { %5432 = vperm.xlu0 %15224, %v5324_v42  }
 0xc69   :  { %5447 = vperm.xlu0 %15224, %v5327_v44  }
 0xc6d   :  { %5517 = vperm.xlu0 %15224, %v5487_v25  }
 0xc71   :  { %5522 = vperm.xlu0 %15224, %v5488_v61   ;;  %v15740_v61 = vld [vmem:[%s19638_s10 + $0x1] ss:$0 sm:$0xff] }
 0xc75   :  { %5527 = vperm.xlu0 %15224, %v5489_v0  }
 0xc79   :  { %5532 = vperm.xlu0 %15224, %v5490_v49  }
 0xc7d   :  { %5537 = vperm.xlu0 %15224, %v5491_v51  }
 0xc81   :  { %5547 = vperm.xlu0 %15224, %v5493_v41  }
 0xcd8   :  { %v4696_v57 = vpop.xlane.xlu0 %4695 }
 0xcd9   :  { %15408 = vrcp.f32 %v4696_v57 }
 0xce6   :  { %v15409_v47 = vpop.eup %15408 }
 0xce7   :  { %v4698_v1 = vmul.f32 %v15409_v47, %v15407_v31 }
 0xce9   :  { %14512 = vmatmul.mubr.msk.f32.vlgmr.msra.gmra.mxu1 %vm175_vm1, %v4698_v1 }
 0xcea   :  { %14526 = vmatpush3.msra.mxu1 %v4862_v19  ;;  %14533 = vmatprep.mubr.msk.f32.mxu1 %vm16047_vm0, %v19690_v34 }
 0xceb   :  { %14527 = vmatprep.subr.mxu1 %v19690_v34 }
 0xcec   :  { %14528 = vmatpush3.msra.mxu1 %v4861_v15 }
 0xced   :  { %14529 = vmatprep.subr.mxu1 %v19690_v34 }
 0xcee   :  { %14530 = vmatpush3.msra.mxu1 %v4860_v18 }
 0xcef   :  { %14531 = vmatprep.subr.mxu1 %v19690_v34 }
 0xcf0   :  { %14532 = vmatpush3.msra.mxu1 %v4859_v60  ;;  %v15742_v60 = vld [vmem:[%s19638_s10 + $0x3] ss:$0 sm:$0xff] }
 0xcf1   :  { %14534 = vmatmul.mubr.msk.f32.vlgmr.msra.gmra.mxu1 %vm175_vm1, %v4698_v1  ;;  %14547 = vmatprep.subr.mxu1 %v19690_v34 }
 0xcf2   :  { %14548 = vmatpush3.msra.mxu1 %v5017_v6  ;;  %14555 = vmatprep.mubr.msk.f32.mxu1 %vm16047_vm0, %v19690_v34 }
 0xcf3   :  { %14549 = vmatprep.subr.mxu1 %v19690_v34 }
 0xcf4   :  { %14550 = vmatpush3.msra.mxu1 %v5016_v59 }
 0xcf5   :  { %14551 = vmatprep.subr.mxu1 %v19690_v34 }
 0xcf6   :  { %14552 = vmatpush3.msra.mxu1 %v5015_v14 }
 0xcf7   :  { %14553 = vmatprep.subr.mxu1 %v19690_v34 }
 0xcf8   :  { %14554 = vmatpush3.msra.mxu1 %v5014_v55 }
 0xcf9   :  { %14556 = vmatmul.mubr.msk.f32.vlgmr.msra.gmra.mxu1 %vm175_vm1, %v4698_v1  ;;  %14569 = vmatprep.subr.mxu1 %v19690_v34 }
 0xcfa   :  { %14570 = vmatpush3.msra.mxu1 %v5167_v29  ;;  %14577 = vmatprep.mubr.msk.f32.mxu1 %vm16047_vm0, %v19690_v34 }
 0xcfb   :  { %14571 = vmatprep.subr.mxu1 %v19690_v34 }
 0xcfc   :  { %14572 = vmatpush3.msra.mxu1 %v5166_v62  ;;  %v15743_v62 = vld [vmem:[%s19633_s5] ss:$0 sm:$0xff] }
 0xcfd   :  { %14573 = vmatprep.subr.mxu1 %v19690_v34 }
 0xcfe   :  { %14574 = vmatpush3.msra.mxu1 %v5165_v35 }
 0xcff   :  { %14575 = vmatprep.subr.mxu1 %v19690_v34 }
 0xd00   :  { %14576 = vmatpush3.msra.mxu1 %v5164_v26 }
 0xd01   :  { %14578 = vmatmul.mubr.msk.f32.vlgmr.msra.gmra.mxu1 %vm175_vm1, %v4698_v1  ;;  %14591 = vmatprep.subr.mxu1 %v19690_v34 }
 0xd02   :  { %14592 = vmatpush3.msra.mxu1 %v5573_v5  ;;  %14599 = vmatprep.mubr.msk.f32.mxu1 %vm16047_vm0, %v19690_v34  ;;  %v17595_v5 = vpop.permute.xlu0 %5432 }
 0xd03   :  { %14593 = vmatprep.subr.mxu1 %v19690_v34 }
 0xd04   :  { %14594 = vmatpush3.msra.mxu1 %v5572_v32 }
 0xd05   :  { %14595 = vmatprep.subr.mxu1 %v19690_v34 }
 0xd06   :  { %14596 = vmatpush3.msra.mxu1 %v5571_v45  ;;  %v17597_v45 = vpop.permute.xlu1 %5437 }
 0xd07   :  { %14597 = vmatprep.subr.mxu1 %v19690_v34 }
 0xd08   :  { %14598 = vmatpush3.msra.mxu1 %v5570_v21 }
 0xd09   :  { %14600 = vmatmul.mubr.msk.f32.vlgmr.msra.gmra.mxu1 %vm175_vm1, %v5569_v24  ;;  %14613 = vmatprep.subr.mxu1 %v19690_v34 }
 0xd0a   :  { %14614 = vmatpush3.msra.mxu1 %v5731_v2  ;;  %14621 = vmatprep.mubr.msk.f32.mxu1 %vm16047_vm0, %v19690_v34 }
 0xd0b   :  { %14615 = vmatprep.subr.mxu1 %v19690_v34 }
 0xd0c   :  { %14616 = vmatpush3.msra.mxu1 %v5730_v7 }
 0xd0d   :  { %14617 = vmatprep.subr.mxu1 %v19690_v34 }
 0xd0e   :  { %14618 = vmatpush3.msra.mxu1 %v5729_v12 }
 0xd0f   :  { %14619 = vmatprep.subr.mxu1 %v19690_v34 }
 0xd10   :  { %14620 = vmatpush3.msra.mxu1 %v5728_v37 }
 0xd11   :  { %14622 = vmatmul.mubr.msk.f32.vlgmr.msra.gmra.mxu1 %vm175_vm1, %v5569_v24  ;;  %14635 = vmatprep.subr.mxu1 %v19690_v34 }
 0xd12   :  { %14636 = vmatpush3.msra.mxu1 %v5886_v63  ;;  %14643 = vmatprep.mubr.msk.f32.mxu1 %vm16047_vm0, %v19690_v34 }
 0xd13   :  { %14637 = vmatprep.subr.mxu1 %v19690_v34 }
 0xd14   :  { %14638 = vmatpush3.msra.mxu1 %v5885_v22  ;;  %v17603_v22 = vpop.permute.xlu0 %5447 }
 0xd15   :  { %14639 = vmatprep.subr.mxu1 %v19690_v34 }
 0xd16   :  { %14640 = vmatpush3.msra.mxu1 %v5884_v58  ;;  %v19704_v58 = vld [vmem:[#allocation29_spill] sm:$0xff] }
 0xd17   :  { %14641 = vmatprep.subr.mxu1 %v19690_v34 }
 0xd18   :  { %14642 = vmatpush3.msra.mxu1 %v5883_v40  ;;  %v17612_v56 = vpop.permute.xlu0 %5517 }
 0xd19   :  { %14644 = vmatmul.mubr.msk.f32.vlgmr.msra.gmra.mxu1 %vm175_vm1, %v5569_v24  ;;  %14657 = vmatprep.subr.mxu1 %v19690_v34 }
 0xd1a   :  { %14658 = vmatpush3.msra.mxu1 %v6036_v20  ;;  %14665 = vmatprep.mubr.msk.f32.mxu1 %vm16047_vm0, %v19690_v34 }
 0xd1b   :  { %14659 = vmatprep.subr.mxu1 %v19690_v34 }
 0xd1c   :  { %14660 = vmatpush3.msra.mxu1 %v6035_v3 }
 0xd1d   :  { %14661 = vmatprep.subr.mxu1 %v19690_v34 }
 0xd1e   :  { %14662 = vmatpush3.msra.mxu1 %v6034_v39 }
 0xd1f   :  { %14663 = vmatprep.subr.mxu1 %v19690_v34 }
 0xd20   :  { %14664 = vmatpush3.msra.mxu1 %v6033_v17  ;;  %v17606_v17 = vpop.permute.xlu1 %5442 }
 0xd21   :  { %14666 = vmatmul.mubr.msk.f32.vlgmr.msra.gmra.mxu1 %vm175_vm1, %v5569_v24  ;;  %14679 = vmatprep.subr.mxu1 %v19690_v34 }
 0xd22   :  { %14687 = vmatprep.mubr.msk.f32.mxu1 %vm16047_vm0, %v19690_v34 }
 0xda9   :  { %v4848_v31 = vpop.f32.mrf.mxu1 }
 0xdaa   :  { %v4849_v53 = vadd.f32 %v4848_v31, %v17481_v33 }
 0xdab   :  { %v14513_v13 = vpop.f32.mrf.mxu1 }
 0xdac   :  { %v4852_v42 = vadd.f32 %v15739_v48, %v4849_v53  ;;  %v15745_v53 = vld [vmem:[%s19633_s5 + $0x2] ss:$0 sm:$0xff]  ;;  %v5513_v48 = vpop.permute.xlu1 %5512 }
 0xdae   :  { %v13603_v36 = vmul.f32 -1.442695, %v4852_v42 }
 0xdb0   :  { %15410 = vpow2.f32 %v13603_v36 }
 0xdb1   :  { %v5003_v9 = vpop.f32.mrf.mxu1 }
 0xdb2   :  { %v5004_v44 = vadd.f32 %v5003_v9, %v17484_v4  ;;  %v15741_v4 = vld [vmem:[%s19638_s10 + $0x2] ss:$0 sm:$0xff]  ;;  %v17617_v9 = vpop.permute.xlu0 %5522 }
 0xdb3   :  { %v14535_v25 = vpop.f32.mrf.mxu1 }
 0xdb4   :  { %v5007_v0 = vadd.f32 %v15740_v61, %v5004_v44  ;;  %v15746_v61 = vld [vmem:[%s19633_s5 + $0x3] ss:$0 sm:$0xff] }
 0xdb6   :  { %v13606_v49 = vmul.f32 -1.442695, %v5007_v0 }
 0xdb8   :  { %15412 = vpow2.f32 %v13606_v49 }
 0xdb9   :  { %v5158_v33 = vpop.f32.mrf.mxu1 }
 0xdba   :  { %v5159_v57 = vadd.f32 %v5158_v33, %v17486_v23 }
 0xdbb   :  { %v14557_v51 = vpop.f32.mrf.mxu1 }
 0xdbc   :  { %v5162_v15 = vadd.f32 %v15741_v4, %v5159_v57  ;;  %v19706_v4 = vld [vmem:[#allocation28_spill] sm:$0xff] }
 0xdbd   :  { %v15411_v41 = vpop.eup %15410 }
 0xdbe   :  { %v4856_v1 = vadd.f32 1.0, %v15411_v41 }
 0xdc0   :  { %15414 = vrcp.f32 %v4856_v1 }
 0xdc1   :  { %v5308_v47 = vpop.f32.mrf.mxu1  ;;  %15416 = vtanh.f32 %v5162_v15 }
 0xdc2   :  { %v5309_v19 = vadd.f32 %v5308_v47, %v17490_v11  ;;  %v17625_v47 = vpop.permute.xlu0 %5527 }
 0xdc3   :  { %v14579_v18 = vpop.f32.mrf.mxu1 }
 0xdc4   :  { %v5312_v6 = vadd.f32 %v15742_v60, %v5309_v19 }
 0xdc5   :  { %v15413_v59 = vpop.eup %15412 }
 0xdc6   :  { %v5011_v14 = vadd.f32 1.0, %v15413_v59  ;;  %v13611_v55 = vmul.f32 -1.442695, %v5312_v6 }
 0xdc8   :  { %15418 = vrcp.f32 %v5011_v14 }
 0xdc9   :  { %15420 = vpow2.f32 %v13611_v55  ;;  %v5717_v23 = vpop.f32.mrf.mxu1  ;;  %v5533_v55 = vpop.permute.xlu0 %5532 }
 0xdca   :  { %v5718_v11 = vadd.f32 %v5717_v23, %v17494_v52  ;;  %v15744_v52 = vld [vmem:[%s19633_s5 + $0x1] ss:$0 sm:$0xff] }
 0xdcb   :  { %v14601_v29 = vpop.f32.mrf.mxu1 }
 0xdcc   :  { %v5721_v35 = vadd.f32 %v15743_v62, %v5718_v11 }
 0xdcd   :  { %v15415_v24 = vpop.eup %15414 }
 0xdce   :  { %v13614_v26 = vmul.f32 -1.442695, %v5721_v35  ;;  %v15417_v7 = vpop.eup %15416 }
 0xdcf   :  { %v5320_v20 = vmul.f32 %v15417_v7, %v15415_v24  ;;  %v5494_v7 = vld [vmem:[#allocation19 + $0x40] sm:$0xff] }
 0xdd0   :  { %15422 = vpow2.f32 %v13614_v26 }
 0xdd1   :  { %v5872_v32 = vpop.f32.mrf.mxu1 }
 0xdd2   :  { %v5873_v21 = vadd.f32 %v5872_v32, %v17498_v50 }
 0xdd3   :  { %v14623_v2 = vpop.f32.mrf.mxu1 }
 0xdd4   :  { %v5876_v12 = vadd.f32 %v15744_v52, %v5873_v21 }
 0xdd5   :  { %v15419_v37 = vpop.eup %15418 }
 0xdd6   :  { %v15421_v63 = vpop.eup %15420  ;;  %v5319_v40 = vmul.f32 %v15419_v37, %v19704_v58  ;;  %v13617_v3 = vmul.f32 -1.442695, %v5876_v12  ;;  %v15747_v12 = vld [vmem:[#allocation19] sm:$0xff] }
 0xdd7   :  { %v5316_v39 = vadd.f32 1.0, %v15421_v63 }
 0xdd8   :  { %v17608_v50 = vadd.f32 %v5320_v20, %v5319_v40  ;;  %15424 = vpow2.f32 %v13617_v3 }
 0xdd9   :  { %15426 = vrcp.f32 %v5316_v39  ;;  %v6027_v38 = vpop.f32.mrf.mxu1 }
 0xdda   :  { %19705 = vst [vmem:[#allocation34_spill] sm:$0xff] %v17608_v50  ;;  %15428 = vtanh.f32 %v17608_v50  ;;  %v6028_v54 = vadd.f32 %v6027_v38, %v17502_v16  ;;  %v17620_v16 = vpop.permute.xlu1 %5452 }
 0xddb   :  { %v14645_v10 = vpop.f32.mrf.mxu1 }
 0xddc   :  { %v6031_v13 = vadd.f32 %v15745_v53, %v6028_v54  ;;  %v5495_v54 = vld [vmem:[#allocation19 + $0x48] sm:$0xff] }
 0xddd   :  { %v15423_v31 = vpop.eup %15422  ;;  %v15748_v53 = vld [vmem:[#allocation19 + $0x8] sm:$0xff] }
 0xdde   :  { %v5725_v42 = vadd.f32 1.0, %v15423_v31 }
 0xde0   :  { %15430 = vrcp.f32 %v5725_v42 }
 0xde1   :  { %15432 = vtanh.f32 %v6031_v13  ;;  %v6177_v36 = vpop.f32.mrf.mxu1 }
 0xde2   :  { %v6178_v44 = vadd.f32 %v6177_v36, %v17504_v43  ;;  %v17629_v43 = vpop.permute.xlu1 %5457  ;;  %v5496_v36 = vld [vmem:[#allocation19 + $0x50] sm:$0xff] }
 0xde3   :  { %v14667_v25 = vpop.f32.mrf.mxu1 }
 0xde4   :  { %v6181_v0 = vadd.f32 %v15746_v61, %v6178_v44  ;;  %v5538_v44 = vpop.permute.xlu0 %5537  ;;  %v15749_v61 = vld [vmem:[#allocation19 + $0x10] sm:$0xff] }
 0xde5   :  { %v15425_v49 = vpop.eup %15424 }
 0xde6   :  { %v15427_v33 = vpop.eup %15426  ;;  %v5880_v51 = vadd.f32 1.0, %v15425_v49  ;;  %v13622_v41 = vmul.f32 -1.442695, %v6181_v0  ;;  %v17642_v32 = vpop.permute.xlu1 %5462 }
 0xde7   :  { %v15429_v57 = vpop.eup %15428 }
 0xde8   :  { %v17627_v1 = vmul.f32 %v15429_v57, %v15427_v33  ;;  %15434 = vrcp.f32 %v5880_v51  ;;  %v15750_v33 = vld [vmem:[#allocation19 + $0x20] sm:$0xff] }
 0xde9   :  { %15436 = vpow2.f32 %v13622_v41  ;;  %v5498_v41 = vld [vmem:[#allocation19 + $0x60] sm:$0xff] }
 0xdea   :  { %v5333_v19 = vcombine.high %v17627_v1, %v17627_v1  ;;  %v5340_v15 = vrot.slane %v17627_v1, %v19706_v4  ;;  %5567 = vst.msk [vmem:[#allocation16 + $0x8] sm:$0xff] %vm175_vm1, %v17627_v1 }
 0xdec   :  { %v5347_v18 = vrot.slane %v5333_v19, %v19706_v4  ;;  %v5348_v60 = vcombine.high %v5340_v15, %v5340_v15  ;;  %v5356_v6 = vrot.slane %v5340_v15, %v19706_v4  ;;  %v15751_v15 = vld [vmem:[#allocation19 + $0x18] sm:$0xff] }
 0xded   :  { %v15431_v59 = vpop.eup %15430 }
 0xdee   :  { %v15433_v14 = vpop.eup %15432  ;;  %v5349_v23 = vcombine.high %v5347_v18, %v5347_v18  ;;  %v5363_v11 = vrot.slane %v5347_v18, %v19706_v4  ;;  %v5370_v29 = vrot.slane %v5348_v60, %v19706_v4  ;;  %v5378_v62 = vcombine.high %v5356_v6, %v5356_v6 }
 0xdef   :  { %v6189_v35 = vmul.f32 %v15433_v14, %v15431_v59  ;;  %v5385_v26 = vrot.slane %v5356_v6, %v16293_v46  ;;  %v5468_v6 = vpop.permute.xlu1 %5467  ;;  %v19707_v59 = vld [vmem:[#allocation27_spill] sm:$0xff] }
 0xdf0   :  { %v5377_v21 = vrot.slane %v5349_v23, %v19706_v4  ;;  %v5379_v24 = vcombine.high %v5363_v11, %v5363_v11  ;;  %v5380_v2 = vcombine.high %v5370_v29, %v5370_v29  ;;  %v5389_v52 = vrot.slane %v5370_v29, %v16293_v46 }
 0xdf1   :  { %v5422_v37 = vadd.f32 %v15747_v12, %v5385_v26  ;;  %v5502_v63 = vadd.f32 %v5494_v7, %v5385_v26  ;;  %v5393_v58 = vrot.slane %v5378_v62, %v16293_v46  ;;  %v5401_v40 = vrot.slane %v5363_v11, %v16293_v46  ;;  %v15752_v26 = vld [vmem:[#allocation19 + $0x28] sm:$0xff] }
 0xdf2   :  { %v5381_v20 = vcombine.high %v5377_v21, %v5377_v21  ;;  %v5397_v3 = vrot.slane %v5380_v2, %v16293_v46  ;;  %v5405_v39 = vrot.slane %v5377_v21, %v16293_v46  ;;  %v17651_v38 = vrot.slane %v5379_v24, %v16293_v46  ;;  %v5497_v24 = vld [vmem:[#allocation19 + $0x58] sm:$0xff]  ;;  %v5499_v2 = vld [vmem:[#allocation19 + $0x68] sm:$0xff] }
 0xdf3   :  { %v5550_v10 = vmul.f32 %v5513_v48, %v5502_v63  ;;  %v5470_v31 = vmul.f32 %v17595_v5, %v5422_v37  ;;  %v5423_v13 = vadd.f32 %v15748_v53, %v5389_v52  ;;  %v5503_v42 = vadd.f32 %v5495_v54, %v5389_v52  ;;  %v5548_v63 = vpop.permute.xlu0 %5547 }
 0xdf4   :  { %v5413_v25 = vrot.slane %v5381_v20, %v16293_v46  ;;  %v5424_v0 = vadd.f32 %v15749_v61, %v5393_v58  ;;  %v5504_v49 = vadd.f32 %v5496_v36, %v5393_v58  ;;  %v5426_v51 = vadd.f32 %v15750_v33, %v5401_v40 }
 0xdf5   :  { %v15435_v57 = vpop.eup %15434  ;;  %5558 = vst.msk [vmem:[#allocation19 + $0x40] sm:$0xff] %vm175_vm1, %v5550_v10  ;;  %5478 = vst.msk [vmem:[#allocation19] sm:$0xff] %vm175_vm1, %v5470_v31  ;;  %v5551_v5 = vmul.f32 %v17612_v56, %v5503_v42  ;;  %v5471_v48 = vmul.f32 %v17597_v45, %v5423_v13  ;;  %v5506_v19 = vadd.f32 %v5498_v41, %v5401_v40  ;;  %v5543_v31 = vpop.permute.xlu1 %5542 }
 0xdf6   :  { %v5425_v18 = vadd.f32 %v15751_v15, %v5397_v3  ;;  %v15437_v60 = vpop.eup %15436  ;;  %v6188_v14 = vmul.f32 %v15435_v57, %v19707_v59  ;;  %v5552_v23 = vmul.f32 %v17617_v9, %v5504_v49  ;;  %v5472_v11 = vmul.f32 %v17606_v17, %v5424_v0  ;;  %v15753_v9 = vld [vmem:[#allocation19 + $0x30] sm:$0xff] }
 0xdf7   :  { %v5474_v29 = vmul.f32 %v17620_v16, %v5426_v51  ;;  %v6185_v62 = vadd.f32 1.0, %v15437_v60  ;;  %5559 = vst.msk [vmem:[#allocation19 + $0x48] sm:$0xff] %vm175_vm1, %v5551_v5  ;;  %5479 = vst.msk [vmem:[#allocation19 + $0x8] sm:$0xff] %vm175_vm1, %v5471_v48  ;;  %v5554_v56 = vmul.f32 %v5533_v55, %v5506_v19  ;;  %v5427_v21 = vadd.f32 %v15752_v26, %v5405_v39  ;;  %v5501_v55 = vld [vmem:[#allocation19 + $0x78] sm:$0xff] }
 0xdf8   :  { %v5473_v45 = vmul.f32 %v17603_v22, %v5425_v18  ;;  %v17666_v7 = vadd.f32 %v6189_v35, %v6188_v14  ;;  %5560 = vst.msk [vmem:[#allocation19 + $0x50] sm:$0xff] %vm175_vm1, %v5552_v23  ;;  %5480 = vst.msk [vmem:[#allocation19 + $0x10] sm:$0xff] %vm175_vm1, %v5472_v11  ;;  %v5505_v17 = vadd.f32 %v5497_v24, %v5397_v3  ;;  %v15754_v35 = vld [vmem:[#allocation19 + $0x38] sm:$0xff]  ;;  %v5500_v3 = vld [vmem:[#allocation19 + $0x70] sm:$0xff] }
 0xdf9   :  { %5482 = vst.msk [vmem:[#allocation19 + $0x20] sm:$0xff] %vm175_vm1, %v5474_v29  ;;  %v5428_v16 = vadd.f32 %v15753_v9, %v17651_v38  ;;  %v5507_v52 = vadd.f32 %v5499_v2, %v5405_v39  ;;  %15438 = vrcp.f32 %v6185_v62  ;;  %5562 = vst.msk [vmem:[#allocation19 + $0x60] sm:$0xff] %vm175_vm1, %v5554_v56  ;;  %v5475_v22 = vmul.f32 %v17629_v43, %v5427_v21 }
 0xdfa   :  { %19708 = vst [vmem:[#allocation35_spill] sm:$0xff] %v17666_v7  ;;  %5481 = vst.msk [vmem:[#allocation19 + $0x18] sm:$0xff] %vm175_vm1, %v5473_v45  ;;  %v5429_v12 = vadd.f32 %v15754_v35, %v5413_v25  ;;  %v5509_v37 = vadd.f32 %v5501_v55, %v5413_v25  ;;  %15440 = vtanh.f32 %v17666_v7  ;;  %v5553_v58 = vmul.f32 %v17625_v47, %v5505_v17 }
 0xdfb   :  { %v5476_v40 = vmul.f32 %v17642_v32, %v5428_v16  ;;  %v5555_v20 = vmul.f32 %v5538_v44, %v5507_v52  ;;  %5483 = vst.msk [vmem:[#allocation19 + $0x28] sm:$0xff] %vm175_vm1, %v5475_v22  ;;  %v5508_v10 = vadd.f32 %v5500_v3, %v17651_v38 }
 0xdfc   :  { %v5477_v39 = vmul.f32 %v5468_v6, %v5429_v12  ;;  %v5557_v54 = vmul.f32 %v5548_v63, %v5509_v37  ;;  %5561 = vst.msk [vmem:[#allocation19 + $0x58] sm:$0xff] %vm175_vm1, %v5553_v58  ;;  %v17700_v49 = vld [vmem:[#allocation19 + $0x40] sm:$0xff] }
 0xdfd   :  { %5484 = vst.msk [vmem:[#allocation19 + $0x30] sm:$0xff] %vm175_vm1, %v5476_v40  ;;  %5563 = vst.msk [vmem:[#allocation19 + $0x68] sm:$0xff] %vm175_vm1, %v5555_v20  ;;  %v5556_v47 = vmul.f32 %v5543_v31, %v5508_v10  ;;  %v17702_v33 = vld [vmem:[#allocation19] sm:$0xff] }
 0xdfe   :  { %5485 = vst.msk [vmem:[#allocation19 + $0x38] sm:$0xff] %vm175_vm1, %v5477_v39  ;;  %5565 = vst.msk [vmem:[#allocation19 + $0x78] sm:$0xff] %vm175_vm1, %v5557_v54  ;;  %v17707_v5 = vld [vmem:[#allocation19 + $0x48] sm:$0xff] }
 0xdff   :  { %5564 = vst.msk [vmem:[#allocation19 + $0x70] sm:$0xff] %vm175_vm1, %v5556_v47  ;;  %v17709_v48 = vld [vmem:[#allocation19 + $0x8] sm:$0xff]  ;;  %v17717_v23 = vld [vmem:[#allocation19 + $0x50] sm:$0xff] }
 0xe00   :  { %v17719_v11 = vld [vmem:[#allocation19 + $0x10] sm:$0xff]  ;;  %v17727_v2 = vld [vmem:[#allocation19 + $0x60] sm:$0xff] }
 0xe01   :  { %v17729_v17 = vld [vmem:[#allocation19 + $0x20] sm:$0xff]  ;;  %v17739_v58 = vld [vmem:[#allocation19 + $0x18] sm:$0xff] }
 0xe02   :  { %v17741_v40 = vld [vmem:[#allocation19 + $0x28] sm:$0xff] }
 0xe03   :  { %v17746_v10 = vld [vmem:[#allocation19 + $0x58] sm:$0xff] }
 0xe04   :  { %v17749_v47 = vld [vmem:[#allocation19 + $0x30] sm:$0xff] }
 0xe06   :  { %v15439_v43 = vpop.eup %15438 }
 0xe07   :  { %v15441_v32 = vpop.eup %15440 }
 0xe08   :  { %v17686_v53 = vmul.f32 %v15441_v32, %v15439_v43 }
 0xe0a   :  { %19709 = vst [vmem:[#allocation29_spill] sm:$0xff] %v17686_v53  ;;  %14677 = vmatmul.mubr.msk.f32.vlgmr.msra.gmra.mxu0 %vm175_vm1, %v17686_v53  ;;  %v6209_v38 = vrot.slane %v17686_v53, %v19706_v4  ;;  %v6202_v13 = vcombine.high %v17686_v53, %v17686_v53 }
 0xe0b   :  { %14698 = vmatprep.mubr.msk.f32.mxu0 %vm16047_vm0, %v19690_v34 }
 0xe0c   :  { %v6225_v42 = vrot.slane %v6209_v38, %v19706_v4  ;;  %v6217_v36 = vcombine.high %v6209_v38, %v6209_v38  ;;  %v6216_v44 = vrot.slane %v6202_v13, %v19706_v4 }
 0xe0e   :  { %v6254_v25 = vrot.slane %v6225_v42, %v16293_v46  ;;  %v6239_v61 = vrot.slane %v6217_v36, %v19706_v4  ;;  %v6247_v0 = vcombine.high %v6225_v42, %v6225_v42  ;;  %v6232_v15 = vrot.slane %v6216_v44, %v19706_v4  ;;  %v17755_v42 = vld [vmem:[#allocation19 + $0x68] sm:$0xff]  ;;  %v17757_v36 = vld [vmem:[#allocation19 + $0x38] sm:$0xff] }
 0xe0f   :  { %v6218_v18 = vcombine.high %v6216_v44, %v6216_v44 }
 0xe10   :  { %v6683_v51 = vmul.f32 %v17700_v49, %v6254_v25  ;;  %v6291_v41 = vmul.f32 %v6254_v25, %v17702_v33  ;;  %v6258_v57 = vrot.slane %v6239_v61, %v16293_v46  ;;  %v6262_v19 = vrot.slane %v6247_v0, %v16293_v46 }
 0xe11   :  { %v6270_v29 = vrot.slane %v6232_v15, %v16293_v46  ;;  %v6249_v62 = vcombine.high %v6239_v61, %v6239_v61  ;;  %v6246_v56 = vrot.slane %v6218_v18, %v19706_v4  ;;  %v6248_v52 = vcombine.high %v6232_v15, %v6232_v15 }
 0xe12   :  { %v6691_v60 = vsel %vm175_vm1, %v6683_v51, 0.0  ;;  %v6299_v6 = vsel %vm175_vm1, %v6291_v41, 0.0  ;;  %v6684_v59 = vmul.f32 %v17707_v5, %v6258_v57  ;;  %v6292_v14 = vmul.f32 %v6258_v57, %v17709_v48  ;;  %v17763_v51 = vld [vmem:[#allocation19 + $0x78] sm:$0xff]  ;;  %v17765_v41 = vld [vmem:[#allocation19 + $0x70] sm:$0xff] }
 0xe13   :  { %6692 = vadd.xlane.f32.xlu0 %v6691_v60  ;;  %6300 = vadd.xlane.f32.xlu1 %v6299_v6  ;;  %v6685_v21 = vmul.f32 %v17717_v23, %v6262_v19  ;;  %v6293_v24 = vmul.f32 %v6262_v19, %v17719_v11  ;;  %v6687_v9 = vmul.f32 %v17727_v2, %v6270_v29 }
 0xe14   :  { %v6694_v45 = vsel %vm175_vm1, %v6684_v59, 0.0  ;;  %v6302_v26 = vsel %vm175_vm1, %v6292_v14, 0.0  ;;  %v6295_v16 = vmul.f32 %v6270_v29, %v17729_v17  ;;  %v6266_v35 = vrot.slane %v6249_v62, %v16293_v46 }
 0xe15   :  { %v6697_v55 = vsel %vm175_vm1, %v6685_v21, 0.0  ;;  %v6305_v22 = vsel %vm175_vm1, %v6293_v24, 0.0  ;;  %v6274_v12 = vrot.slane %v6246_v56, %v16293_v46  ;;  %v6703_v37 = vsel %vm175_vm1, %v6687_v9, 0.0 }
 0xe16   :  { %v6311_v63 = vsel %vm175_vm1, %v6295_v16, 0.0  ;;  %v6294_v20 = vmul.f32 %v6266_v35, %v17739_v58  ;;  %v6278_v39 = vrot.slane %v6248_v52, %v16293_v46  ;;  %v6250_v54 = vcombine.high %v6246_v56, %v6246_v56 }
 0xe17   :  { %6695 = vadd.xlane.f32.xlu1 %v6694_v45  ;;  %6303 = vadd.xlane.f32.xlu0 %v6302_v26  ;;  %v6296_v3 = vmul.f32 %v6274_v12, %v17741_v40  ;;  %v6686_v31 = vmul.f32 %v17746_v10, %v6266_v35  ;;  %v6688_v61 = vmul.f32 %v17755_v42, %v6274_v12 }
 0xe18   :  { %v6308_v43 = vsel %vm175_vm1, %v6294_v20, 0.0  ;;  %v6297_v38 = vmul.f32 %v6278_v39, %v17749_v47  ;;  %v6282_v13 = vrot.slane %v6250_v54, %v16293_v46  ;;  %v6689_v18 = vmul.f32 %v17765_v41, %v6278_v39 }
 0xe19   :  { %v6314_v32 = vsel %vm175_vm1, %v6296_v3, 0.0  ;;  %v6700_v44 = vsel %vm175_vm1, %v6686_v31, 0.0  ;;  %v6706_v57 = vsel %vm175_vm1, %v6688_v61, 0.0 }
 0xe1a   :  { %v6317_v25 = vsel %vm175_vm1, %v6297_v38, 0.0  ;;  %v6298_v0 = vmul.f32 %v6282_v13, %v17757_v36  ;;  %v6690_v15 = vmul.f32 %v17763_v51, %v6282_v13  ;;  %v6709_v6 = vsel %vm175_vm1, %v6689_v18, 0.0 }
 0xe1b   :  { %6698 = vadd.xlane.f32.xlu1 %v6697_v55  ;;  %6306 = vadd.xlane.f32.xlu0 %v6305_v22 }
 0xe1c   :  { %v6320_v19 = vsel %vm175_vm1, %v6298_v0, 0.0  ;;  %v6712_v60 = vsel %vm175_vm1, %v6690_v15, 0.0 }
 0xe1f   :  { %6704 = vadd.xlane.f32.xlu1 %v6703_v37  ;;  %6312 = vadd.xlane.f32.xlu0 %v6311_v63 }
 0xe23   :  { %6309 = vadd.xlane.f32.xlu1 %v6308_v43  ;;  %6315 = vadd.xlane.f32.xlu0 %v6314_v32 }
 0xe27   :  { %6701 = vadd.xlane.f32.xlu1 %v6700_v44  ;;  %6318 = vadd.xlane.f32.xlu0 %v6317_v25 }
 0xe2b   :  { %6707 = vadd.xlane.f32.xlu1 %v6706_v57  ;;  %6321 = vadd.xlane.f32.xlu0 %v6320_v19 }
 0xe2f   :  { %6713 = vadd.xlane.f32.xlu1 %v6712_v60  ;;  %6710 = vadd.xlane.f32.xlu0 %v6709_v6 }
 0xe9c   :  { %v17773_v59 = vpop.xlane.xlu0 %6692  ;;  %v6301_v14 = vpop.xlane.xlu1 %6300 }
 0xe9d   :  { %v6334_v16 = vrot.slane %v6301_v14, %v16390_v8  ;;  %v6726_v32 = vrot.slane %v17773_v59, %v16390_v8 }
 0xea0   :  { %v17775_v29 = vpop.xlane.xlu1 %6695  ;;  %v6304_v62 = vpop.xlane.xlu0 %6303 }
 0xea1   :  { %v6338_v24 = vrot.slane %v6304_v62, %v16390_v8  ;;  %v6730_v20 = vrot.slane %v17775_v29, %v16390_v8 }
 0xea3   :  { %v6363_v22 = vsel %vm1066_vm2, %v6338_v24, %v6334_v16  ;;  %v6755_v25 = vsel %vm1066_vm2, %v6730_v20, %v6726_v32 }
 0xea4   :  { %v17777_v56 = vpop.xlane.xlu1 %6698  ;;  %v6307_v45 = vpop.xlane.xlu0 %6306 }
 0xea5   :  { %v6342_v9 = vrot.slane %v6307_v45, %v16390_v8  ;;  %v6734_v31 = vrot.slane %v17777_v56, %v16390_v8 }
 0xea7   :  { %v6364_v12 = vsel %vm1068_vm3, %v6342_v9, %v6363_v22  ;;  %v6756_v57 = vsel %vm1068_vm3, %v6734_v31, %v6755_v25 }
 0xea8   :  { %v17779_v26 = vpop.xlane.xlu1 %6704  ;;  %v17781_v21 = vpop.xlane.xlu0 %6312 }
 0xea9   :  { %v6350_v37 = vrot.slane %v17781_v21, %v16390_v8  ;;  %v6742_v6 = vrot.slane %v17779_v26, %v16390_v8 }
 0xeac   :  { %v6310_v52 = vpop.xlane.xlu1 %6309  ;;  %v17786_v55 = vpop.xlane.xlu0 %6315 }
 0xead   :  { %v6346_v35 = vrot.slane %v6310_v52, %v16390_v8  ;;  %v6354_v43 = vrot.slane %v17786_v55, %v16390_v8 }
 0xeaf   :  { %v6365_v63 = vsel %vm1070_vm4, %v6346_v35, %v6364_v12 }
 0xeb0   :  { %v17796_v3 = vpop.xlane.xlu1 %6701  ;;  %v17798_v39 = vpop.xlane.xlu0 %6318  ;;  %v6366_v54 = vsel %vm1072_vm5, %v6350_v37, %v6365_v63 }
 0xeb1   :  { %v6738_v38 = vrot.slane %v17796_v3, %v16390_v8  ;;  %v6358_v13 = vrot.slane %v17798_v39, %v16390_v8  ;;  %v6367_v44 = vsel %vm1074_vm6, %v6354_v43, %v6366_v54 }
 0xeb3   :  { %v6757_v15 = vsel %vm1070_vm4, %v6738_v38, %v6756_v57  ;;  %v6368_v60 = vsel %vm1076_vm7, %v6358_v13, %v6367_v44 }
 0xeb4   :  { %v17813_v61 = vpop.xlane.xlu1 %6707  ;;  %v17815_v0 = vpop.xlane.xlu0 %6321  ;;  %v6758_v37 = vsel %vm1072_vm5, %v6742_v6, %v6757_v15 }
 0xeb5   :  { %v6362_v19 = vrot.slane %v17815_v0, %v16390_v8  ;;  %v6746_v18 = vrot.slane %v17813_v61, %v16390_v8 }
 0xeb7   :  { %v6369_v24 = vsel %vm1078_vm8, %v6362_v19, %v6368_v60  ;;  %v6759_v63 = vsel %vm1074_vm6, %v6746_v18, %v6758_v37 }
 0xeb8   :  { %v17827_v9 = vpop.xlane.xlu1 %6713  ;;  %v17829_v16 = vpop.xlane.xlu0 %6710  ;;  %v6371_v22 = vsel %vm1081_vm9, %v6369_v24, -inf }
 0xeb9   :  { %v6754_v35 = vrot.slane %v17827_v9, %v16390_v8  ;;  %v6750_v12 = vrot.slane %v17829_v16, %v16390_v8  ;;  %6372 = vmax.xlane.f32.xlu0 %v6371_v22 }
 0xebb   :  { %v6760_v20 = vsel %vm1076_vm7, %v6750_v12, %v6759_v63  ;;  %v19711_v12 = vld [vmem:[#allocation30_spill] sm:$0xff] }
 0xebc   :  { %v6761_v54 = vsel %vm1078_vm8, %v6754_v35, %v6760_v20 }
 0xebd   :  { %v6763_v31 = vsel %vm1081_vm9, %v6761_v54, -inf }
 0xebe   :  { %6764 = vmax.xlane.f32.xlu1 %v6763_v31 }
 0xeca   :  { %v17841_v43 = vpop.f32.mrf.mxu0 }
 0xecb   :  { %19710 = vst [vmem:[#allocation27_spill] sm:$0xff] %v17841_v43 }
 0xecc   :  { %v14678_v32 = vpop.f32.mrf.mxu0 }
 0xf42   :  { %v6373_v38 = vpop.xlane.xlu0 %6372 }
 0xf43   :  { %v6378_v13 = vrot.slane %v6373_v38, %v16293_v46  ;;  %v6382_v44 = vrot.slane %v6373_v38, %v16451_v27  ;;  %v6386_v25 = vrot.slane %v6373_v38, %v16454_v28  ;;  %v6390_v57 = vrot.slane %v6373_v38, %v16457_v30 }
 0xf44   :  { %v6394_v37 = vrot.slane %v6373_v38, %v19711_v12 }
 0xf45   :  { %v6415_v19 = vsub.f32 %v6301_v14, %v6378_v13  ;;  %v6416_v15 = vsub.f32 %v6304_v62, %v6382_v44  ;;  %v6418_v18 = vsub.f32 %v6310_v52, %v6390_v57  ;;  %v6417_v60 = vsub.f32 %v6307_v45, %v6386_v25  ;;  %v19712_v45 = vld [vmem:[#allocation31_spill] sm:$0xff] }
 0xf46   :  { %v6398_v52 = vrot.slane %v6373_v38, %v19712_v45  ;;  %v6419_v32 = vsub.f32 %v17781_v21, %v6394_v37 }
 0xf47   :  { %v6423_v6 = vmul.f32 1.442695, %v6415_v19  ;;  %v6425_v24 = vmul.f32 1.442695, %v6416_v15  ;;  %v6765_v22 = vpop.xlane.xlu1 %6764  ;;  %v6429_v63 = vmul.f32 1.442695, %v6418_v18 }
 0xf48   :  { %v6770_v35 = vrot.slane %v6765_v22, %v16293_v46  ;;  %v6774_v20 = vrot.slane %v6765_v22, %v16451_v27  ;;  %v6427_v54 = vmul.f32 1.442695, %v6417_v60  ;;  %v6778_v31 = vrot.slane %v6765_v22, %v16454_v28  ;;  %v19713_v19 = vld [vmem:[#allocation33_spill] sm:$0xff] }
 0xf49   :  { %15442 = vpow2.f32 %v6423_v6  ;;  %v6782_v13 = vrot.slane %v6765_v22, %v16457_v30  ;;  %v6402_v15 = vrot.slane %v6373_v38, %v19713_v19  ;;  %v6420_v18 = vsub.f32 %v17786_v55, %v6398_v52  ;;  %v19714_v6 = vld [vmem:[#allocation32_spill] sm:$0xff] }
 0xf4a   :  { %15444 = vpow2.f32 %v6425_v24  ;;  %v6807_v14 = vsub.f32 %v17773_v59, %v6770_v35  ;;  %v6808_v62 = vsub.f32 %v17775_v29, %v6774_v20  ;;  %v6809_v44 = vsub.f32 %v17777_v56, %v6778_v31 }
 0xf4b   :  { %15446 = vpow2.f32 %v6429_v63  ;;  %v6431_v60 = vmul.f32 1.442695, %v6419_v32  ;;  %v6786_v59 = vrot.slane %v6765_v22, %v19711_v12  ;;  %v6810_v29 = vsub.f32 %v17796_v3, %v6782_v13 }
 0xf4c   :  { %15448 = vpow2.f32 %v6427_v54  ;;  %v6815_v25 = vmul.f32 1.442695, %v6807_v14  ;;  %v6817_v57 = vmul.f32 1.442695, %v6808_v62  ;;  %v6819_v21 = vmul.f32 1.442695, %v6809_v44 }
 0xf4d   :  { %v6406_v24 = vrot.slane %v6373_v38, %v19714_v6  ;;  %v6421_v35 = vsub.f32 %v17798_v39, %v6402_v15  ;;  %v6433_v56 = vmul.f32 1.442695, %v6420_v18  ;;  %v6790_v63 = vrot.slane %v6765_v22, %v19712_v45 }
 0xf4e   :  { %15450 = vpow2.f32 %v6815_v25  ;;  %v6811_v55 = vsub.f32 %v17779_v26, %v6786_v59  ;;  %v6821_v20 = vmul.f32 1.442695, %v6810_v29  ;;  %v6794_v38 = vrot.slane %v6765_v22, %v19713_v19 }
 0xf4f   :  { %15452 = vpow2.f32 %v6817_v57  ;;  %v6422_v3 = vsub.f32 %v17815_v0, %v6406_v24  ;;  %v6435_v39 = vmul.f32 1.442695, %v6421_v35  ;;  %v6798_v14 = vrot.slane %v6765_v22, %v19714_v6 }
 0xf50   :  { %15454 = vpow2.f32 %v6431_v60  ;;  %v6812_v26 = vsub.f32 %v17813_v61, %v6790_v63  ;;  %v6823_v62 = vmul.f32 1.442695, %v6811_v55  ;;  %v6813_v32 = vsub.f32 %v17829_v16, %v6794_v38 }
 0xf51   :  { %15456 = vpow2.f32 %v6819_v21  ;;  %v6437_v0 = vmul.f32 1.442695, %v6422_v3  ;;  %v6814_v44 = vsub.f32 %v17827_v9, %v6798_v14 }
 0xf52   :  { %15458 = vpow2.f32 %v6433_v56  ;;  %v6825_v22 = vmul.f32 1.442695, %v6812_v26  ;;  %v6827_v61 = vmul.f32 1.442695, %v6813_v32 }
 0xf53   :  { %15460 = vpow2.f32 %v6821_v20  ;;  %v6829_v15 = vmul.f32 1.442695, %v6814_v44 }
 0xf54   :  { %15462 = vpow2.f32 %v6435_v39 }
 0xf55   :  { %15464 = vpow2.f32 %v6823_v62 }
 0xf56   :  { %v17863_v37 = vpop.eup %15442  ;;  %15466 = vpow2.f32 %v6437_v0 }
 0xf57   :  { %v17867_v54 = vpop.eup %15444  ;;  %6448 = vperm.xlu0 %15224, %v17863_v37   ;;  %15468 = vpow2.f32 %v6825_v22 }
 0xf58   :  { %6451 = vperm.xlu1 %15225, %v17867_v54   ;;  %v17873_v31 = vpop.eup %15446  ;;  %15470 = vpow2.f32 %v6827_v61 }
 0xf59   :  { %v17877_v52 = vpop.eup %15448  ;;  %15472 = vpow2.f32 %v6829_v15 }
 0xf5b   :  { %6457 = vperm.xlu0 %15224, %v17873_v31   ;;  %v17882_v13 = vpop.eup %15450 }
 0xf5c   :  { %6454 = vperm.xlu1 %15225, %v17877_v52   ;;  %v17885_v25 = vpop.eup %15452 }
 0xf5d   :  { %v17889_v57 = vpop.eup %15454 }
 0xf5e   :  { %v17891_v18 = vpop.eup %15456 }
 0xf5f   :  { %6843 = vperm.xlu0 %15224, %v17885_v25   ;;  %v17895_v9 = vpop.eup %15458 }
 0xf60   :  { %6840 = vperm.xlu1 %15225, %v17882_v13   ;;  %v17897_v16 = vpop.eup %15460 }
 0xf61   :  { %v17901_v60 = vpop.eup %15462 }
 0xf62   :  { %v17903_v59 = vpop.eup %15464 }
 0xf63   :  { %6846 = vperm.xlu0 %15224, %v17891_v18   ;;  %v17907_v29 = vpop.eup %15466 }
 0xf64   :  { %6460 = vperm.xlu1 %15225, %v17889_v57   ;;  %v17909_v21 = vpop.eup %15468 }
 0xf65   :  { %v17913_v24 = vpop.eup %15470 }
 0xf66   :  { %v17915_v35 = vpop.eup %15472 }
 0xf67   :  { %6849 = vperm.xlu0 %15224, %v17897_v16  }
 0xf68   :  { %6463 = vperm.xlu1 %15225, %v17895_v9  }
 0xf6b   :  { %6852 = vperm.xlu0 %15224, %v17903_v59  }
 0xf6c   :  { %6466 = vperm.xlu1 %15225, %v17901_v60  }
 0xf6f   :  { %6855 = vperm.xlu0 %15224, %v17909_v21  }
 0xf70   :  { %6469 = vperm.xlu1 %15225, %v17907_v29  }
 0xf73   :  { %6861 = vperm.xlu0 %15224, %v17915_v35  }
 0xf74   :  { %6858 = vperm.xlu1 %15225, %v17913_v24  }
 0xfd2   :  { %v6449_v56 = vpop.permute.xlu0 %6448 }
 0xfd3   :  { %v6452_v63 = vpop.permute.xlu1 %6451  ;;  %v6474_v62 = vrot.slane %v6449_v56, %v16390_v8 }
 0xfd4   :  { %v6478_v26 = vrot.slane %v6452_v63, %v16390_v8 }
 0xfd6   :  { %v6458_v55 = vpop.permute.xlu0 %6457  ;;  %v6503_v22 = vsel %vm1066_vm2, %v6478_v26, %v6474_v62 }
 0xfd7   :  { %v6455_v20 = vpop.permute.xlu1 %6454  ;;  %v6486_v61 = vrot.slane %v6458_v55, %v16390_v8 }
 0xfd8   :  { %v6482_v0 = vrot.slane %v6455_v20, %v16390_v8 }
 0xfda   :  { %v6844_v39 = vpop.permute.xlu0 %6843  ;;  %v6504_v15 = vsel %vm1068_vm3, %v6482_v0, %v6503_v22 }
 0xfdb   :  { %v6841_v3 = vpop.permute.xlu1 %6840  ;;  %v6870_v56 = vrot.slane %v6844_v39, %v16390_v8  ;;  %v6505_v53 = vsel %vm1070_vm4, %v6486_v61, %v6504_v15 }
 0xfdc   :  { %v6866_v63 = vrot.slane %v6841_v3, %v16390_v8 }
 0xfde   :  { %v6847_v14 = vpop.permute.xlu0 %6846  ;;  %v6895_v39 = vsel %vm1066_vm2, %v6870_v56, %v6866_v63 }
 0xfdf   :  { %v6461_v38 = vpop.permute.xlu1 %6460  ;;  %v6874_v26 = vrot.slane %v6847_v14, %v16390_v8 }
 0xfe0   :  { %v6490_v7 = vrot.slane %v6461_v38, %v16390_v8 }
 0xfe1   :  { %v6896_v14 = vsel %vm1068_vm3, %v6874_v26, %v6895_v39 }
 0xfe2   :  { %v6850_v44 = vpop.permute.xlu0 %6849  ;;  %v6506_v55 = vsel %vm1072_vm5, %v6490_v7, %v6505_v53 }
 0xfe3   :  { %v6464_v32 = vpop.permute.xlu1 %6463  ;;  %v6878_v62 = vrot.slane %v6850_v44, %v16390_v8 }
 0xfe4   :  { %v6494_v43 = vrot.slane %v6464_v32, %v16390_v8 }
 0xfe5   :  { %v6897_v53 = vsel %vm1070_vm4, %v6878_v62, %v6896_v14 }
 0xfe6   :  { %v6853_v50 = vpop.permute.xlu0 %6852  ;;  %v6507_v22 = vsel %vm1074_vm6, %v6494_v43, %v6506_v55 }
 0xfe7   :  { %v6467_v4 = vpop.permute.xlu1 %6466  ;;  %v6882_v32 = vrot.slane %v6853_v50, %v16390_v8 }
 0xfe8   :  { %v6498_v20 = vrot.slane %v6467_v4, %v16390_v8 }
 0xfe9   :  { %v6898_v50 = vsel %vm1072_vm5, %v6882_v32, %v6897_v53 }
 0xfea   :  { %v6856_v38 = vpop.permute.xlu0 %6855  ;;  %v6508_v61 = vsel %vm1076_vm7, %v6498_v20, %v6507_v22 }
 0xfeb   :  { %v6470_v0 = vpop.permute.xlu1 %6469  ;;  %v6886_v4 = vrot.slane %v6856_v38, %v16390_v8 }
 0xfec   :  { %v6502_v3 = vrot.slane %v6470_v0, %v16390_v8 }
 0xfed   :  { %v6899_v56 = vsel %vm1074_vm6, %v6886_v4, %v6898_v50 }
 0xfee   :  { %v6509_v7 = vsel %vm1078_vm8, %v6502_v3, %v6508_v61  ;;  %v6862_v15 = vpop.permute.xlu0 %6861 }
 0xfef   :  { %v6859_v44 = vpop.permute.xlu1 %6858  ;;  %v6511_v43 = vsel %vm1081_vm9, %v6509_v7, 0.0  ;;  %v6894_v63 = vrot.slane %v6862_v15, %v16390_v8 }
 0xff0   :  { %v6890_v55 = vrot.slane %v6859_v44, %v16390_v8  ;;  %6512 = vadd.xlane.f32.xlu1 %v6511_v43 }
 0xff2   :  { %v6900_v20 = vsel %vm1076_vm7, %v6890_v55, %v6899_v56 }
 0xff3   :  { %v6901_v26 = vsel %vm1078_vm8, %v6894_v63, %v6900_v20 }
 0xff4   :  { %v6903_v0 = vsel %vm1081_vm9, %v6901_v26, 0.0 }
 0xff5   :  { %6904 = vadd.xlane.f32.xlu0 %v6903_v0 }
0x1079   :  { %v6513_v62 = vpop.xlane.xlu1 %6512 }
0x107a   :  { %v6522_v38 = vrot.slane %v6513_v62, %v16451_v27  ;;  %v6518_v22 = vrot.slane %v6513_v62, %v16293_v46  ;;  %v6526_v32 = vrot.slane %v6513_v62, %v16454_v28  ;;  %v6530_v3 = vrot.slane %v6513_v62, %v16457_v30 }
0x107b   :  { %v6534_v14 = vrot.slane %v6513_v62, %v19711_v12  ;;  %v6538_v53 = vrot.slane %v6513_v62, %v19712_v45  ;;  %v6542_v55 = vrot.slane %v6513_v62, %v19713_v19 }
0x107c   :  { %15474 = vrcp.f32 %v6522_v38 }
0x107d   :  { %15476 = vrcp.f32 %v6518_v22 }
0x107e   :  { %v6905_v39 = vpop.xlane.xlu0 %6904  ;;  %15478 = vrcp.f32 %v6526_v32 }
0x107f   :  { %15480 = vrcp.f32 %v6530_v3  ;;  %v6914_v4 = vrot.slane %v6905_v39, %v16451_v27  ;;  %v6910_v61 = vrot.slane %v6905_v39, %v16293_v46  ;;  %v6918_v7 = vrot.slane %v6905_v39, %v16454_v28 }
0x1080   :  { %v6922_v44 = vrot.slane %v6905_v39, %v16457_v30  ;;  %v6926_v20 = vrot.slane %v6905_v39, %v19711_v12 }
0x1081   :  { %15482 = vrcp.f32 %v6910_v61 }
0x1082   :  { %15484 = vrcp.f32 %v6914_v4 }
0x1083   :  { %15486 = vrcp.f32 %v6534_v14 }
0x1084   :  { %15488 = vrcp.f32 %v6918_v7 }
0x1085   :  { %15490 = vrcp.f32 %v6538_v53 }
0x1086   :  { %15492 = vrcp.f32 %v6922_v44 }
0x1087   :  { %15494 = vrcp.f32 %v6542_v55 }
0x1088   :  { %15496 = vrcp.f32 %v6926_v20 }
0x1089   :  { %v15475_v15 = vpop.eup %15474 }
0x108a   :  { %v15477_v43 = vpop.eup %15476  ;;  %v17962_v50 = vmul.f32 %v15475_v15, %v17867_v54  ;;  %v6546_v54 = vrot.slane %v6513_v62, %v19714_v6 }
0x108b   :  { %v15479_v63 = vpop.eup %15478  ;;  %v17966_v56 = vmul.f32 %v15477_v43, %v17863_v37  ;;  %v6930_v37 = vrot.slane %v6905_v39, %v19712_v45 }
0x108c   :  { %v15481_v26 = vpop.eup %15480  ;;  %6578 = vperm.xlu1 %15225, %v17962_v50   ;;  %v17972_v0 = vmul.f32 %v15479_v63, %v17877_v52  ;;  %15498 = vrcp.f32 %v6546_v54  ;;  %v6934_v52 = vrot.slane %v6905_v39, %v19713_v19  ;;  %v7239_v54 = vld [vmem:[#allocation11 + $0x58] sm:$0xff] }
0x108d   :  { %6573 = vperm.xlu0 %15224, %v17966_v56   ;;  %v17976_v22 = vmul.f32 %v15481_v26, %v17873_v31  ;;  %15500 = vrcp.f32 %v6930_v37  ;;  %v6938_v31 = vrot.slane %v6905_v39, %v19714_v6  ;;  %v7146_v26 = vld [vmem:[#allocation11 + $0x30] sm:$0xff]  ;;  %14691 = vmatpush3.msra.mxu0 %v7239_v54  ;;  %v7236_v37 = vld [vmem:[#allocation11 + $0x40] sm:$0xff] }
0x108e   :  { %v15483_v38 = vpop.eup %15482  ;;  %15502 = vrcp.f32 %v6934_v52  ;;  %14692 = vmatprep.subr.mxu0 %v19690_v34 }
0x108f   :  { %v15485_v32 = vpop.eup %15484  ;;  %v17982_v3 = vmul.f32 %v15483_v38, %v17882_v13  ;;  %15504 = vrcp.f32 %v6938_v31  ;;  %v7238_v38 = vld [vmem:[#allocation11 + $0x50] sm:$0xff] }
0x1090   :  { %6583 = vperm.xlu1 %15225, %v17972_v0   ;;  %v15487_v4 = vpop.eup %15486  ;;  %v17986_v62 = vmul.f32 %v15485_v32, %v17885_v25  ;;  %14693 = vmatpush3.msra.mxu0 %v7238_v38 }
0x1091   :  { %6588 = vperm.xlu0 %15224, %v17976_v22   ;;  %v15489_v61 = vpop.eup %15488  ;;  %v17992_v14 = vmul.f32 %v15487_v4, %v17889_v57  ;;  %14694 = vmatprep.subr.mxu0 %v19690_v34 }
0x1092   :  { %v15491_v13 = vpop.eup %15490  ;;  %v17995_v7 = vmul.f32 %v15489_v61, %v17891_v18 }
0x1093   :  { %v15493_v53 = vpop.eup %15492  ;;  %v18000_v25 = vmul.f32 %v15491_v13, %v17895_v9 }
0x1094   :  { %6965 = vperm.xlu1 %15225, %v17982_v3   ;;  %v15495_v39 = vpop.eup %15494  ;;  %v18003_v44 = vmul.f32 %v15493_v53, %v17897_v16 }
0x1095   :  { %6970 = vperm.xlu0 %15224, %v17986_v62   ;;  %v15497_v57 = vpop.eup %15496  ;;  %v18008_v18 = vmul.f32 %v15495_v39, %v17901_v60 }
0x1096   :  { %v18011_v43 = vmul.f32 %v15497_v57, %v17903_v59 }
0x1098   :  { %6593 = vperm.xlu1 %15225, %v17992_v14  }
0x1099   :  { %6975 = vperm.xlu0 %15224, %v17995_v7   ;;  %v15499_v15 = vpop.eup %15498 }
0x109a   :  { %v15501_v55 = vpop.eup %15500  ;;  %v18016_v9 = vmul.f32 %v15499_v15, %v17907_v29  ;;  %v7147_v29 = vld [vmem:[#allocation11 + $0x38] sm:$0xff] }
0x109b   :  { %v15503_v16 = vpop.eup %15502  ;;  %v18019_v63 = vmul.f32 %v15501_v55, %v17909_v21  ;;  %14680 = vmatpush3.msra.mxu1 %v7147_v29  ;;  %v7145_v21 = vld [vmem:[#allocation11 + $0x28] sm:$0xff] }
0x109c   :  { %6598 = vperm.xlu1 %15225, %v18000_v25   ;;  %v15505_v20 = vpop.eup %15504  ;;  %v18024_v60 = vmul.f32 %v15503_v16, %v17913_v24  ;;  %14681 = vmatprep.subr.mxu1 %v19690_v34  ;;  %v7144_v24 = vld [vmem:[#allocation11 + $0x20] sm:$0xff] }
0x109d   :  { %6980 = vperm.xlu0 %15224, %v18003_v44   ;;  %v18027_v59 = vmul.f32 %v15505_v20, %v17915_v35  ;;  %14682 = vmatpush3.msra.mxu1 %v7146_v26  ;;  %v7237_v35 = vld [vmem:[#allocation11 + $0x48] sm:$0xff] }
0x109e   :  { %14683 = vmatprep.subr.mxu1 %v19690_v34  ;;  %14695 = vmatpush3.msra.mxu0 %v7237_v35 }
0x109f   :  { %14684 = vmatpush3.msra.mxu1 %v7145_v21  ;;  %14696 = vmatprep.subr.mxu0 %v19690_v34 }
0x10a0   :  { %6603 = vperm.xlu1 %15225, %v18008_v18   ;;  %14685 = vmatprep.subr.mxu1 %v19690_v34 }
0x10a1   :  { %6985 = vperm.xlu0 %15224, %v18011_v43   ;;  %14686 = vmatpush3.msra.mxu1 %v7144_v24 }
0x10a2   :  { %14701 = vmatprep.subr.mxu1 %v19690_v34  ;;  %14697 = vmatpush3.msra.mxu0 %v7236_v37 }
0x10a3   :  { %14712 = vmatprep.subr.mxu0 %v19690_v34 }
0x10a4   :  { %6608 = vperm.xlu1 %15225, %v18016_v9  }
0x10a5   :  { %6990 = vperm.xlu0 %15224, %v18019_v63  }
0x10a8   :  { %6995 = vperm.xlu1 %15225, %v18024_v60  }
0x10a9   :  { %7000 = vperm.xlu0 %15224, %v18027_v59  }
0x1107   :  { %v6579_v32 = vpop.permute.xlu1 %6578 }
0x1108   :  { %v6612_v52 = vmul.f32 %v6579_v32, %v17709_v48  ;;  %v6574_v4 = vpop.permute.xlu0 %6573 }
0x1109   :  { %v6611_v31 = vmul.f32 %v6574_v4, %v17702_v33 }
0x110a   :  { %v6626_v61 = vsel %vm175_vm1, %v6612_v52, 0.0 }
0x110b   :  { %v6627_v13 = vrot.slane %v6626_v61, 4  ;;  %v6619_v53 = vsel %vm175_vm1, %v6611_v31, 0.0  ;;  %v6584_v39 = vpop.permute.xlu1 %6583 }
0x110c   :  { %v6620_v57 = vrot.slane %v6619_v53, 4  ;;  %v6613_v15 = vmul.f32 %v6584_v39, %v17719_v11  ;;  %v6589_v55 = vpop.permute.xlu0 %6588 }
0x110d   :  { %v6628_v16 = vadd.f32 %v6627_v13, %v6626_v61  ;;  %v6614_v20 = vmul.f32 %v6589_v55, %v17739_v58 }
0x110e   :  { %v6621_v29 = vadd.f32 %v6620_v57, %v6619_v53  ;;  %v6633_v26 = vsel %vm175_vm1, %v6613_v15, 0.0 }
0x110f   :  { %v6629_v48 = vrot.slane %v6628_v16, 2  ;;  %v6634_v21 = vrot.slane %v6633_v26, 4  ;;  %v6640_v33 = vsel %vm175_vm1, %v6614_v20, 0.0  ;;  %v6966_v54 = vpop.permute.xlu1 %6965 }
0x1110   :  { %v6622_v38 = vrot.slane %v6621_v29, 2  ;;  %v6641_v24 = vrot.slane %v6640_v33, 4  ;;  %v7003_v35 = vmul.f32 %v6966_v54, %v17700_v49  ;;  %v6971_v37 = vpop.permute.xlu0 %6970 }
0x1111   :  { %v6635_v32 = vadd.f32 %v6634_v21, %v6633_v26  ;;  %v7004_v11 = vmul.f32 %v6971_v37, %v17707_v5  ;;  %v6630_v52 = vadd.f32 %v6629_v48, %v6628_v16 }
0x1112   :  { %v6623_v4 = vadd.f32 %v6622_v38, %v6621_v29  ;;  %v6642_v31 = vadd.f32 %v6641_v24, %v6640_v33  ;;  %v7011_v58 = vsel %vm175_vm1, %v7003_v35, 0.0 }
0x1113   :  { %v6636_v61 = vrot.slane %v6635_v32, 2  ;;  %v7012_v13 = vrot.slane %v7011_v58, 4  ;;  %v7018_v53 = vsel %vm175_vm1, %v7004_v11, 0.0  ;;  %v6594_v39 = vpop.permute.xlu1 %6593  ;;  %v6631_v5 = vrot.slane %v6630_v52, 1 }
0x1114   :  { %v6643_v57 = vrot.slane %v6642_v31, 2  ;;  %v7019_v15 = vrot.slane %v7018_v53, 4  ;;  %v6615_v55 = vmul.f32 %v6594_v39, %v17729_v17  ;;  %v6976_v20 = vpop.permute.xlu0 %6975  ;;  %v6624_v16 = vrot.slane %v6623_v4, 1 }
0x1115   :  { %v6637_v49 = vadd.f32 %v6636_v61, %v6635_v32  ;;  %v7013_v54 = vadd.f32 %v7012_v13, %v7011_v58  ;;  %v7005_v26 = vmul.f32 %v6976_v20, %v17717_v23  ;;  %v6632_v32 = vadd.f32 %v6631_v5, %v6630_v52 }
0x1116   :  { %v6647_v29 = vsel %vm175_vm1, %v6615_v55, 0.0  ;;  %v6644_v48 = vadd.f32 %v6643_v57, %v6642_v31  ;;  %v7020_v21 = vadd.f32 %v7019_v15, %v7018_v53  ;;  %v6625_v58 = vadd.f32 %v6624_v16, %v6623_v4 }
0x1117   :  { %v6648_v33 = vrot.slane %v6647_v29, 4  ;;  %v7025_v38 = vsel %vm175_vm1, %v7005_v26, 0.0  ;;  %v6599_v24 = vpop.permute.xlu1 %6598  ;;  %v7014_v35 = vrot.slane %v7013_v54, 2  ;;  %v6638_v6 = vrot.slane %v6637_v49, 1 }
0x1118   :  { %v7026_v37 = vrot.slane %v7025_v38, 4  ;;  %v6981_v11 = vpop.permute.xlu0 %6980  ;;  %v6616_v17 = vmul.f32 %v6599_v24, %v17741_v40  ;;  %v6645_v13 = vrot.slane %v6644_v48, 1  ;;  %v7021_v39 = vrot.slane %v7020_v21, 2 }
0x1119   :  { %v6649_v61 = vadd.f32 %v6648_v33, %v6647_v29  ;;  %v7006_v23 = vmul.f32 %v6981_v11, %v17746_v10  ;;  %v7015_v57 = vadd.f32 %v7014_v35, %v7013_v54  ;;  %v6639_v26 = vadd.f32 %v6638_v6, %v6637_v49 }
0x111a   :  { %v6654_v31 = vsel %vm175_vm1, %v6616_v17, 0.0  ;;  %v7027_v15 = vadd.f32 %v7026_v37, %v7025_v38  ;;  %v7156_v40 = vsel %vm1066_vm2, %v6632_v32, %v6625_v58  ;;  %v6646_v10 = vadd.f32 %v6645_v13, %v6644_v48 }
0x111b   :  { %v6604_v53 = vpop.permute.xlu1 %6603  ;;  %v6655_v55 = vrot.slane %v6654_v31, 4  ;;  %v7032_v19 = vsel %vm175_vm1, %v7006_v23, 0.0  ;;  %v6650_v52 = vrot.slane %v6649_v61, 2  ;;  %v7022_v16 = vadd.f32 %v7021_v39, %v7020_v21 }
0x111c   :  { %v6986_v20 = vpop.permute.xlu0 %6985  ;;  %v6617_v45 = vmul.f32 %v6604_v53, %v17749_v47  ;;  %v7033_v5 = vrot.slane %v7032_v19, 4  ;;  %v7016_v38 = vrot.slane %v7015_v57, 1  ;;  %v7028_v24 = vrot.slane %v7027_v15, 2 }
0x111d   :  { %v6656_v4 = vadd.f32 %v6655_v55, %v6654_v31  ;;  %v7007_v33 = vmul.f32 %v6986_v20, %v17727_v2  ;;  %v7157_v37 = vsel %vm1068_vm3, %v6639_v26, %v7156_v40  ;;  %v6651_v32 = vadd.f32 %v6650_v52, %v6649_v61 }
0x111e   :  { %v6661_v29 = vsel %vm175_vm1, %v6617_v45, 0.0  ;;  %v7034_v6 = vadd.f32 %v7033_v5, %v7032_v19  ;;  %v7023_v45 = vrot.slane %v7022_v16, 1  ;;  %v7017_v19 = vadd.f32 %v7016_v38, %v7015_v57 }
0x111f   :  { %v6609_v54 = vpop.permute.xlu1 %6608  ;;  %v6657_v35 = vrot.slane %v6656_v4, 2  ;;  %v6662_v47 = vrot.slane %v6661_v29, 4  ;;  %v7039_v11 = vsel %vm175_vm1, %v7007_v33, 0.0  ;;  %v7029_v31 = vadd.f32 %v7028_v24, %v7027_v15 }
0x1120   :  { %v6991_v49 = vpop.permute.xlu0 %6990  ;;  %v6618_v17 = vmul.f32 %v6609_v54, %v17757_v36  ;;  %v7035_v21 = vrot.slane %v7034_v6, 2  ;;  %v7040_v58 = vrot.slane %v7039_v11, 4  ;;  %v6652_v52 = vrot.slane %v6651_v32, 1 }
0x1121   :  { %v6658_v48 = vadd.f32 %v6657_v35, %v6656_v4  ;;  %v6663_v23 = vadd.f32 %v6662_v47, %v6661_v29  ;;  %v7008_v13 = vmul.f32 %v6991_v49, %v17755_v42  ;;  %v7030_v15 = vrot.slane %v7029_v31, 1 }
0x1122   :  { %v6668_v2 = vsel %vm175_vm1, %v6618_v17, 0.0  ;;  %v7036_v53 = vadd.f32 %v7035_v21, %v7034_v6  ;;  %v7041_v55 = vadd.f32 %v7040_v58, %v7039_v11 }
0x1123   :  { %v6996_v39 = vpop.permute.xlu1 %6995  ;;  %v6664_v26 = vrot.slane %v6663_v23, 2  ;;  %v6669_v40 = vrot.slane %v6668_v2, 4  ;;  %v7046_v36 = vsel %vm175_vm1, %v7008_v13, 0.0  ;;  %v6659_v4 = vrot.slane %v6658_v48, 1 }
0x1124   :  { %v7001_v20 = vpop.permute.xlu0 %7000  ;;  %v7009_v61 = vmul.f32 %v6996_v39, %v17765_v41  ;;  %v7042_v5 = vrot.slane %v7041_v55, 2  ;;  %v7047_v29 = vrot.slane %v7046_v36, 4  ;;  %v7037_v6 = vrot.slane %v7036_v53, 1 }
0x1125   :  { %v6665_v33 = vadd.f32 %v6664_v26, %v6663_v23  ;;  %v6670_v54 = vadd.f32 %v6669_v40, %v6668_v2  ;;  %v7010_v57 = vmul.f32 %v7001_v20, %v17763_v51  ;;  %v6653_v41 = vadd.f32 %v6652_v52, %v6651_v32 }
0x1126   :  { %v7053_v42 = vsel %vm175_vm1, %v7009_v61, 0.0  ;;  %v7043_v38 = vadd.f32 %v7042_v5, %v7041_v55  ;;  %v7048_v24 = vadd.f32 %v7047_v29, %v7046_v36  ;;  %v7024_v13 = vadd.f32 %v7023_v45, %v7022_v16 }
0x1127   :  { %v7054_v35 = vrot.slane %v7053_v42, 4  ;;  %v6666_v49 = vrot.slane %v6665_v33, 1  ;;  %v6671_v47 = vrot.slane %v6670_v54, 2  ;;  %v7060_v11 = vsel %vm175_vm1, %v7010_v57, 0.0 }
0x1128   :  { %v7044_v17 = vrot.slane %v7043_v38, 1  ;;  %v7049_v21 = vrot.slane %v7048_v24, 2  ;;  %v6660_v23 = vadd.f32 %v6659_v4, %v6658_v48  ;;  %v7061_v39 = vrot.slane %v7060_v11, 4 }
0x1129   :  { %v7055_v58 = vadd.f32 %v7054_v35, %v7053_v42  ;;  %v6672_v2 = vadd.f32 %v6671_v47, %v6670_v54  ;;  %v7031_v26 = vadd.f32 %v7030_v15, %v7029_v31  ;;  %v6667_v40 = vadd.f32 %v6666_v49, %v6665_v33  ;;  %v7343_v47 = vld [vmem:[#allocation14] sm:$0xff] }
0x112a   :  { %v7050_v51 = vadd.f32 %v7049_v21, %v7048_v24  ;;  %v7158_v55 = vsel %vm1070_vm4, %v6646_v10, %v7157_v37  ;;  %v7038_v36 = vadd.f32 %v7037_v6, %v7036_v53  ;;  %v7062_v5 = vadd.f32 %v7061_v39, %v7060_v11  ;;  %v7346_v37 = vld [vmem:[#allocation14 + $0x18] sm:$0xff]  ;;  %v7504_v21 = vld [vmem:[#allocation14 + $0x28] sm:$0xff]  ;;  %v7658_v39 = vld [vmem:[#allocation14 + $0x40] sm:$0xff] }
0x112b   :  { %v7056_v20 = vrot.slane %v7055_v58, 2  ;;  %v6673_v61 = vrot.slane %v6672_v2, 1  ;;  %v7045_v29 = vadd.f32 %v7044_v17, %v7043_v38  ;;  %v7159_v32 = vsel %vm1072_vm5, %v6653_v41, %v7158_v55  ;;  %v7506_v41 = vld [vmem:[#allocation14 + $0x38] sm:$0xff]  ;;  %v7505_v17 = vld [vmem:[#allocation14 + $0x30] sm:$0xff] }
0x112c   :  { %v7051_v12 = vrot.slane %v7050_v51, 1  ;;  %v7248_v52 = vsel %vm1066_vm2, %v7024_v13, %v7017_v19  ;;  %v7063_v48 = vrot.slane %v7062_v5, 2  ;;  %v7160_v45 = vsel %vm1074_vm6, %v6660_v23, %v7159_v32  ;;  %v7345_v19 = vld [vmem:[#allocation14 + $0x10] sm:$0xff]  ;;  %v7661_v13 = vld [vmem:[#allocation14 + $0x58] sm:$0xff]  ;;  %v8373_v32 = vld [vmem:[#allocation10 + $0x28] sm:$0xff] }
0x112d   :  { %v7057_v57 = vadd.f32 %v7056_v20, %v7055_v58  ;;  %v6674_v16 = vadd.f32 %v6673_v61, %v6672_v2  ;;  %v7249_v31 = vsel %vm1068_vm3, %v7031_v26, %v7248_v52  ;;  %v7161_v10 = vsel %vm1076_vm7, %v6667_v40, %v7160_v45  ;;  %v7503_v58 = vld [vmem:[#allocation14 + $0x20] sm:$0xff]  ;;  %v7660_v23 = vld [vmem:[#allocation14 + $0x50] sm:$0xff]  ;;  %v7659_v2 = vld [vmem:[#allocation14 + $0x48] sm:$0xff] }
0x112e   :  { %v7052_v4 = vadd.f32 %v7051_v12, %v7050_v51  ;;  %v7250_v53 = vsel %vm1070_vm4, %v7038_v36, %v7249_v31  ;;  %v7064_v54 = vadd.f32 %v7063_v48, %v7062_v5  ;;  %v7344_v12 = vld [vmem:[#allocation14 + $0x8] sm:$0xff]  ;;  %v7811_v26 = vld [vmem:[#allocation14 + $0x78] sm:$0xff]  ;;  %v7810_v40 = vld [vmem:[#allocation14 + $0x70] sm:$0xff] }
0x112f   :  { %v7058_v33 = vrot.slane %v7057_v57, 1  ;;  %v7162_v42 = vsel %vm1078_vm8, %v6674_v16, %v7161_v10  ;;  %v7251_v38 = vsel %vm1072_vm5, %v7045_v29, %v7250_v53  ;;  %v7809_v51 = vld [vmem:[#allocation14 + $0x68] sm:$0xff]  ;;  %v7808_v20 = vld [vmem:[#allocation14 + $0x60] sm:$0xff]  ;;  %v8217_v55 = vld [vmem:[#allocation10 + $0x18] sm:$0xff] }
0x1130   :  { %14688 = vmatmul.mubr.msk.f32.vlgmr.msra.gmra.mxu1 %vm175_vm1, %v7162_v42  ;;  %v7065_v24 = vrot.slane %v7064_v54, 1  ;;  %v7252_v35 = vsel %vm1074_vm6, %v7052_v4, %v7251_v38  ;;  %v8216_v36 = vld [vmem:[#allocation10 + $0x10] sm:$0xff]  ;;  %v8215_v61 = vld [vmem:[#allocation10 + $0x8] sm:$0xff]  ;;  %v8214_v5 = vld [vmem:[#allocation10] sm:$0xff] }
0x1131   :  { %v7059_v15 = vadd.f32 %v7058_v33, %v7057_v57  ;;  %14702 = vmatpush3.msra.mxu1 %v7346_v37  ;;  %14709 = vmatprep.mubr.msk.f32.mxu1 %vm16047_vm0, %v19690_v34  ;;  %v8375_v29 = vld [vmem:[#allocation10 + $0x38] sm:$0xff]  ;;  %v8374_v57 = vld [vmem:[#allocation10 + $0x30] sm:$0xff]  ;;  %v8372_v52 = vld [vmem:[#allocation10 + $0x20] sm:$0xff] }
0x1132   :  { %14703 = vmatprep.subr.mxu1 %v19690_v34  ;;  %v7066_v49 = vadd.f32 %v7065_v24, %v7064_v54  ;;  %v8530_v16 = vld [vmem:[#allocation10 + $0x58] sm:$0xff]  ;;  %v8529_v48 = vld [vmem:[#allocation10 + $0x50] sm:$0xff]  ;;  %v8528_v45 = vld [vmem:[#allocation10 + $0x48] sm:$0xff] }
0x1133   :  { %v7253_v6 = vsel %vm1076_vm7, %v7059_v15, %v7252_v35  ;;  %14704 = vmatpush3.msra.mxu1 %v7345_v19  ;;  %v8527_v31 = vld [vmem:[#allocation10 + $0x40] sm:$0xff]  ;;  %v8680_v4 = vld [vmem:[#allocation10 + $0x78] sm:$0xff]  ;;  %v8679_v33 = vld [vmem:[#allocation10 + $0x70] sm:$0xff] }
0x1134   :  { %14705 = vmatprep.subr.mxu1 %v19690_v34  ;;  %v7254_v11 = vsel %vm1078_vm8, %v7066_v49, %v7253_v6  ;;  %v8678_v10 = vld [vmem:[#allocation10 + $0x68] sm:$0xff]  ;;  %v8677_v37 = vld [vmem:[#allocation10 + $0x60] sm:$0xff]  ;;  %v15755_v42 = vld [vmem:[%s19635_s7] ss:$0 sm:$0xff] }
0x1135   :  { %14706 = vmatpush3.msra.mxu1 %v7344_v12  ;;  %14699 = vmatmul.mubr.msk.f32.vlgmr.msra.gmra.mxu0 %vm175_vm1, %v7254_v11  ;;  %v19716_v15 = vld [vmem:[#allocation27_spill] sm:$0xff] }
0x1136   :  { %14707 = vmatprep.subr.mxu1 %v19690_v34  ;;  %14720 = vmatprep.mubr.msk.f32.mxu0 %vm16047_vm0, %v19690_v34  ;;  %v7143_v19 = vadd.f32 %v15755_v42, %v19716_v15  ;;  %v7655_v42 = vld [vmem:[#allocation13 + $0x48] sm:$0xff]  ;;  %v7654_v15 = vld [vmem:[#allocation13 + $0x40] sm:$0xff] }
0x1137   :  { %14708 = vmatpush3.msra.mxu1 %v7343_v47 }
0x1138   :  { %14710 = vmatmul.mubr.msk.f32.vlgmr.msra.gmra.mxu1 %vm175_vm1, %v17627_v1  ;;  %14723 = vmatprep.subr.mxu1 %v19690_v34 }
0x1139   :  { %14724 = vmatpush3.msra.mxu1 %v7506_v41  ;;  %14731 = vmatprep.mubr.msk.f32.mxu1 %vm16047_vm0, %v19690_v34 }
0x113a   :  { %14725 = vmatprep.subr.mxu1 %v19690_v34 }
0x113b   :  { %14726 = vmatpush3.msra.mxu1 %v7505_v17 }
0x113c   :  { %14727 = vmatprep.subr.mxu1 %v19690_v34 }
0x113d   :  { %14728 = vmatpush3.msra.mxu1 %v7504_v21  ;;  %v7965_v21 = vsub.f32 1.0, %v17962_v50  ;;  %v7970_v50 = vsub.f32 1.0, %v18008_v18 }
0x113e   :  { %14729 = vmatprep.subr.mxu1 %v19690_v34 }
0x113f   :  { %14730 = vmatpush3.msra.mxu1 %v7503_v58 }
0x1140   :  { %14732 = vmatmul.mubr.msk.f32.vlgmr.msra.gmra.mxu1 %vm175_vm1, %v17627_v1  ;;  %14745 = vmatprep.subr.mxu1 %v19690_v34 }
0x1141   :  { %14746 = vmatpush3.msra.mxu1 %v7661_v13  ;;  %14753 = vmatprep.mubr.msk.f32.mxu1 %vm16047_vm0, %v19690_v34  ;;  %v7966_v13 = vsub.f32 1.0, %v17972_v0 }
0x1142   :  { %14747 = vmatprep.subr.mxu1 %v19690_v34 }
0x1143   :  { %14748 = vmatpush3.msra.mxu1 %v7660_v23 }
0x1144   :  { %14749 = vmatprep.subr.mxu1 %v19690_v34 }
0x1145   :  { %14750 = vmatpush3.msra.mxu1 %v7659_v2  ;;  %v8126_v2 = vsub.f32 1.0, %v17982_v3  ;;  %v8132_v3 = vsub.f32 1.0, %v18024_v60  ;;  %v7964_v60 = vsub.f32 1.0, %v17966_v56  ;;  %v8128_v56 = vsub.f32 1.0, %v17995_v7  ;;  %v7501_v7 = vld [vmem:[#allocation13 + $0x30] sm:$0xff] }
0x1146   :  { %14751 = vmatprep.subr.mxu1 %v19690_v34 }
0x1147   :  { %14752 = vmatpush3.msra.mxu1 %v7658_v39 }
0x1148   :  { %14754 = vmatmul.mubr.msk.f32.vlgmr.msra.gmra.mxu1 %vm175_vm1, %v17627_v1  ;;  %14767 = vmatprep.subr.mxu1 %v19690_v34 }
0x1149   :  { %14768 = vmatpush3.msra.mxu1 %v7811_v26  ;;  %14775 = vmatprep.mubr.msk.f32.mxu1 %vm16047_vm0, %v19690_v34  ;;  %v7968_v26 = vsub.f32 1.0, %v17992_v14 }
0x114a   :  { %14769 = vmatprep.subr.mxu1 %v19690_v34 }
0x114b   :  { %14770 = vmatpush3.msra.mxu1 %v7810_v40 }
0x114c   :  { %14771 = vmatprep.subr.mxu1 %v19690_v34 }
0x114d   :  { %14772 = vmatpush3.msra.mxu1 %v7809_v51  ;;  %v7969_v51 = vsub.f32 1.0, %v18000_v25 }
0x114e   :  { %14773 = vmatprep.subr.mxu1 %v19690_v34 }
0x114f   :  { %14774 = vmatpush3.msra.mxu1 %v7808_v20 }
0x1150   :  { %14776 = vmatmul.mubr.msk.f32.vlgmr.msra.gmra.mxu1 %vm175_vm1, %v17627_v1  ;;  %14789 = vmatprep.subr.mxu1 %v19690_v34  ;;  %v19715_v1 = vld [vmem:[#allocation29_spill] sm:$0xff] }
0x1151   :  { %14790 = vmatpush3.msra.mxu1 %v8217_v55  ;;  %14797 = vmatprep.mubr.msk.f32.mxu1 %vm16047_vm0, %v19690_v34  ;;  %v7971_v55 = vsub.f32 1.0, %v18016_v9  ;;  %v7342_v9 = vld [vmem:[#allocation13 + $0x18] sm:$0xff] }
0x1152   :  { %14791 = vmatprep.subr.mxu1 %v19690_v34  ;;  %14713 = vmatpush3.msra.mxu0 %v7342_v9 }
0x1153   :  { %14792 = vmatpush3.msra.mxu1 %v8216_v36  ;;  %14714 = vmatprep.subr.mxu0 %v19690_v34 }
0x1154   :  { %14793 = vmatprep.subr.mxu1 %v19690_v34 }
0x1155   :  { %14794 = vmatpush3.msra.mxu1 %v8215_v61 }
0x1156   :  { %14795 = vmatprep.subr.mxu1 %v19690_v34 }
0x1157   :  { %14796 = vmatpush3.msra.mxu1 %v8214_v5 }
0x1158   :  { %14798 = vmatmul.mubr.msk.f32.vlgmr.msra.gmra.mxu1 %vm175_vm1, %v19715_v1  ;;  %14811 = vmatprep.subr.mxu1 %v19690_v34 }
0x1159   :  { %14812 = vmatpush3.msra.mxu1 %v8375_v29  ;;  %14819 = vmatprep.mubr.msk.f32.mxu1 %vm16047_vm0, %v19690_v34 }
0x115a   :  { %14813 = vmatprep.subr.mxu1 %v19690_v34 }
0x115b   :  { %14814 = vmatpush3.msra.mxu1 %v8374_v57 }
0x115c   :  { %14815 = vmatprep.subr.mxu1 %v19690_v34 }
0x115d   :  { %14816 = vmatpush3.msra.mxu1 %v8373_v32 }
0x115e   :  { %14817 = vmatprep.subr.mxu1 %v19690_v34 }
0x115f   :  { %14818 = vmatpush3.msra.mxu1 %v8372_v52  ;;  %v7341_v52 = vld [vmem:[#allocation13 + $0x10] sm:$0xff] }
0x1160   :  { %14820 = vmatmul.mubr.msk.f32.vlgmr.msra.gmra.mxu1 %vm175_vm1, %v19715_v1  ;;  %14833 = vmatprep.subr.mxu1 %v19690_v34 }
0x1161   :  { %14834 = vmatpush3.msra.mxu1 %v8530_v16  ;;  %14841 = vmatprep.mubr.msk.f32.mxu1 %vm16047_vm0, %v19690_v34  ;;  %v7340_v16 = vld [vmem:[#allocation13 + $0x8] sm:$0xff] }
0x1162   :  { %14835 = vmatprep.subr.mxu1 %v19690_v34  ;;  %14715 = vmatpush3.msra.mxu0 %v7341_v52  ;;  %v15756_v52 = vld [vmem:[%s19638_s10] ss:$0 sm:$0xff] }
0x1163   :  { %14836 = vmatpush3.msra.mxu1 %v8529_v48  ;;  %14716 = vmatprep.subr.mxu0 %v19690_v34  ;;  %v7339_v48 = vld [vmem:[#allocation13] sm:$0xff] }
0x1164   :  { %14837 = vmatprep.subr.mxu1 %v19690_v34  ;;  %14717 = vmatpush3.msra.mxu0 %v7340_v16 }
0x1165   :  { %14838 = vmatpush3.msra.mxu1 %v8528_v45  ;;  %14718 = vmatprep.subr.mxu0 %v19690_v34  ;;  %v7967_v45 = vsub.f32 1.0, %v17976_v22  ;;  %v8133_v22 = vsub.f32 1.0, %v18027_v59  ;;  %v7656_v59 = vld [vmem:[#allocation13 + $0x50] sm:$0xff] }
0x1166   :  { %14839 = vmatprep.subr.mxu1 %v19690_v34  ;;  %14719 = vmatpush3.msra.mxu0 %v7339_v48 }
0x1167   :  { %14840 = vmatpush3.msra.mxu1 %v8527_v31  ;;  %14734 = vmatprep.subr.mxu0 %v19690_v34  ;;  %v8127_v31 = vsub.f32 1.0, %v17986_v62 }
0x1168   :  { %14842 = vmatmul.mubr.msk.f32.vlgmr.msra.gmra.mxu1 %vm175_vm1, %v19715_v1  ;;  %14855 = vmatprep.subr.mxu1 %v19690_v34 }
0x1169   :  { %14856 = vmatpush3.msra.mxu1 %v8680_v4  ;;  %14863 = vmatprep.mubr.msk.f32.mxu1 %vm16047_vm0, %v19690_v34  ;;  %v8129_v4 = vsub.f32 1.0, %v18003_v44  ;;  %v7500_v44 = vld [vmem:[#allocation13 + $0x28] sm:$0xff] }
0x116a   :  { %14857 = vmatprep.subr.mxu1 %v19690_v34 }
0x116b   :  { %14858 = vmatpush3.msra.mxu1 %v8679_v33  ;;  %v8130_v33 = vsub.f32 1.0, %v18011_v43  ;;  %v7499_v43 = vld [vmem:[#allocation13 + $0x20] sm:$0xff] }
0x116c   :  { %14859 = vmatprep.subr.mxu1 %v19690_v34 }
0x116d   :  { %14860 = vmatpush3.msra.mxu1 %v8678_v10  ;;  %v8131_v10 = vsub.f32 1.0, %v18019_v63  ;;  %v7657_v63 = vld [vmem:[#allocation13 + $0x58] sm:$0xff] }
0x116e   :  { %14861 = vmatprep.subr.mxu1 %v19690_v34 }
0x116f   :  { %14862 = vmatpush3.msra.mxu1 %v8677_v37 }
0x1170   :  { %14864 = vmatmul.mubr.msk.f32.vlgmr.msra.gmra.mxu1 %vm175_vm1, %v19715_v1  ;;  %14877 = vmatprep.subr.mxu1 %v19690_v34 }
0x1171   :  { %14885 = vmatprep.mubr.msk.f32.mxu1 %vm16047_vm0, %v19690_v34 }
0x11f0   :  { %v7231_v53 = vpop.f32.mrf.mxu1 }
0x11f1   :  { %v7235_v38 = vadd.f32 %v7231_v53, %v7143_v19  ;;  %v7807_v19 = vld [vmem:[#allocation13 + $0x78] sm:$0xff] }
0x11f2   :  { %v14689_v54 = vpop.f32.mrf.mxu1 }
0x11f3   :  { %v7502_v54 = vld [vmem:[#allocation13 + $0x38] sm:$0xff] }
0x11f5   :  { %v7323_v24 = vpop.f32.mrf.mxu0 }
0x11f6   :  { %v7327_v35 = vadd.f32 %v7323_v24, %v7235_v38  ;;  %v7806_v38 = vld [vmem:[#allocation13 + $0x70] sm:$0xff]  ;;  %v7805_v24 = vld [vmem:[#allocation13 + $0x68] sm:$0xff] }
0x11f7   :  { %v14700_v12 = vpop.f32.mrf.mxu0 }
0x11f8   :  { %v18159_v6 = vpop.f32.mrf.mxu1  ;;  %v7328_v49 = vsel %vm175_vm1, %v7327_v35, -inf  ;;  %v8213_v12 = vld [vmem:[#allocation8 + $0x18] sm:$0xff] }
0x11f9   :  { %7329 = vmax.xlane.f32.xlu1 %v7328_v49  ;;  %v8212_v49 = vld [vmem:[#allocation8 + $0x10] sm:$0xff] }
0x11fa   :  { %v14711_v47 = vpop.f32.mrf.mxu1 }
0x11fb   :  { %v8211_v47 = vld [vmem:[#allocation8 + $0x8] sm:$0xff] }
0x1200   :  { %v18162_v11 = vpop.f32.mrf.mxu1 }
0x1202   :  { %v14733_v41 = vpop.f32.mrf.mxu1 }
0x1203   :  { %v8210_v41 = vld [vmem:[#allocation8] sm:$0xff] }
0x1208   :  { %v18164_v17 = vpop.f32.mrf.mxu1 }
0x120a   :  { %v14755_v58 = vpop.f32.mrf.mxu1  ;;  %8077 = vperm.xlu1 %15225, %v7965_v21   ;;  %v8209_v21 = vld [vmem:[#allocation2 + $0x18] sm:$0xff] }
0x120b   :  { %v8371_v58 = vld [vmem:[#allocation8 + $0x38] sm:$0xff] }
0x120e   :  { %8082 = vperm.xlu1 %15225, %v7966_v13   ;;  %v8370_v13 = vld [vmem:[#allocation8 + $0x30] sm:$0xff] }
0x1210   :  { %v18168_v23 = vpop.f32.mrf.mxu1 }
0x1212   :  { %v14777_v39 = vpop.f32.mrf.mxu1  ;;  %8152 = vperm.xlu1 %15225, %v8126_v2   ;;  %v8369_v2 = vld [vmem:[#allocation8 + $0x28] sm:$0xff] }
0x1213   :  { %v8368_v39 = vld [vmem:[#allocation8 + $0x20] sm:$0xff] }
0x1216   :  { %8092 = vperm.xlu1 %15225, %v7968_v26   ;;  %v8526_v26 = vld [vmem:[#allocation8 + $0x58] sm:$0xff] }
0x1218   :  { %v18172_v40 = vpop.f32.mrf.mxu1 }
0x121a   :  { %v14799_v20 = vpop.f32.mrf.mxu1  ;;  %8097 = vperm.xlu1 %15225, %v7969_v51   ;;  %v8525_v51 = vld [vmem:[#allocation8 + $0x50] sm:$0xff] }
0x121b   :  { %v8524_v20 = vld [vmem:[#allocation8 + $0x48] sm:$0xff] }
0x121e   :  { %8102 = vperm.xlu1 %15225, %v7970_v50   ;;  %v8523_v50 = vld [vmem:[#allocation8 + $0x40] sm:$0xff] }
0x1220   :  { %v18176_v0 = vpop.f32.mrf.mxu1 }
0x1222   :  { %v14821_v36 = vpop.f32.mrf.mxu1  ;;  %8107 = vperm.xlu1 %15225, %v7971_v55   ;;  %v8676_v55 = vld [vmem:[#allocation8 + $0x78] sm:$0xff] }
0x1223   :  { %v8675_v36 = vld [vmem:[#allocation8 + $0x70] sm:$0xff] }
0x1226   :  { %8182 = vperm.xlu1 %15225, %v8132_v3   ;;  %v8674_v3 = vld [vmem:[#allocation8 + $0x68] sm:$0xff] }
0x1228   :  { %v18180_v14 = vpop.f32.mrf.mxu1 }
0x122a   :  { %v14843_v61 = vpop.f32.mrf.mxu1 }
0x122b   :  { %v8673_v61 = vld [vmem:[#allocation8 + $0x60] sm:$0xff] }
0x1230   :  { %v18182_v5 = vpop.f32.mrf.mxu1 }
0x1232   :  { %v14865_v25 = vpop.f32.mrf.mxu1 }
0x1233   :  { %v9710_v25 = vld [vmem:[#allocation11 + $0x18] sm:$0xff] }
0x1234   :  { %14878 = vmatpush3.msra.mxu1 %v9710_v25 }
0x1235   :  { %14879 = vmatprep.subr.mxu1 %v19690_v34 }
0x1282   :  { %v7330_v29 = vpop.xlane.xlu1 %7329 }
0x1283   :  { %v7331_v1 = vsub.f32 %v7327_v35, %v7330_v29  ;;  %v7804_v35 = vld [vmem:[#allocation13 + $0x60] sm:$0xff]  ;;  %v9709_v29 = vld [vmem:[#allocation11 + $0x10] sm:$0xff] }
0x1284   :  { %14880 = vmatpush3.msra.mxu1 %v9709_v29 }
0x1285   :  { %v7332_v57 = vmul.f32 1.442695, %v7331_v1  ;;  %v9708_v1 = vld [vmem:[#allocation11 + $0x8] sm:$0xff]  ;;  %14881 = vmatprep.subr.mxu1 %v19690_v34 }
0x1286   :  { %14882 = vmatpush3.msra.mxu1 %v9708_v1 }
0x1287   :  { %15506 = vpow2.f32 %v7332_v57  ;;  %v9707_v57 = vld [vmem:[#allocation11] sm:$0xff]  ;;  %14883 = vmatprep.subr.mxu1 %v19690_v34 }
0x1288   :  { %14884 = vmatpush3.msra.mxu1 %v9707_v57 }
0x1289   :  { %14899 = vmatprep.subr.mxu1 %v19690_v34 }
0x1294   :  { %v15507_v18 = vpop.eup %15506 }
0x1295   :  { %v7334_v32 = vsel %vm175_vm1, %v15507_v18, 0.0 }
0x1296   :  { %7335 = vadd.xlane.f32.xlu0 %v7334_v32 }
0x12ac   :  { %8072 = vperm.xlu0 %15224, %v7964_v60  }
0x12b0   :  { %8087 = vperm.xlu0 %15224, %v7967_v45  }
0x12b4   :  { %8157 = vperm.xlu0 %15224, %v8127_v31  }
0x12b8   :  { %8162 = vperm.xlu0 %15224, %v8128_v56   ;;  %v15757_v56 = vld [vmem:[%s19638_s10 + $0x1] ss:$0 sm:$0xff] }
0x12bc   :  { %8167 = vperm.xlu0 %15224, %v8129_v4  }
0x12c0   :  { %8172 = vperm.xlu0 %15224, %v8130_v33  }
0x12c4   :  { %8177 = vperm.xlu0 %15224, %v8131_v10  }
0x12c8   :  { %8187 = vperm.xlu0 %15224, %v8133_v22  }
0x131f   :  { %v7336_v37 = vpop.xlane.xlu0 %7335 }
0x1320   :  { %15508 = vrcp.f32 %v7336_v37 }
0x132d   :  { %v15509_v53 = vpop.eup %15508 }
0x132e   :  { %v7338_v62 = vmul.f32 %v15509_v53, %v15507_v18 }
0x1330   :  { %14721 = vmatmul.mubr.msk.f32.vlgmr.msra.gmra.mxu0 %vm175_vm1, %v7338_v62 }
0x1331   :  { %14735 = vmatpush3.msra.mxu0 %v7502_v54  ;;  %14742 = vmatprep.mubr.msk.f32.mxu0 %vm16047_vm0, %v19690_v34 }
0x1332   :  { %14736 = vmatprep.subr.mxu0 %v19690_v34 }
0x1333   :  { %14737 = vmatpush3.msra.mxu0 %v7501_v7 }
0x1334   :  { %14738 = vmatprep.subr.mxu0 %v19690_v34 }
0x1335   :  { %14739 = vmatpush3.msra.mxu0 %v7500_v44 }
0x1336   :  { %14740 = vmatprep.subr.mxu0 %v19690_v34 }
0x1337   :  { %14741 = vmatpush3.msra.mxu0 %v7499_v43  ;;  %v15759_v43 = vld [vmem:[%s19638_s10 + $0x3] ss:$0 sm:$0xff] }
0x1338   :  { %14743 = vmatmul.mubr.msk.f32.vlgmr.msra.gmra.mxu0 %vm175_vm1, %v7338_v62  ;;  %14756 = vmatprep.subr.mxu0 %v19690_v34 }
0x1339   :  { %14757 = vmatpush3.msra.mxu0 %v7657_v63  ;;  %14764 = vmatprep.mubr.msk.f32.mxu0 %vm16047_vm0, %v19690_v34 }
0x133a   :  { %14758 = vmatprep.subr.mxu0 %v19690_v34 }
0x133b   :  { %14759 = vmatpush3.msra.mxu0 %v7656_v59 }
0x133c   :  { %14760 = vmatprep.subr.mxu0 %v19690_v34 }
0x133d   :  { %14761 = vmatpush3.msra.mxu0 %v7655_v42 }
0x133e   :  { %14762 = vmatprep.subr.mxu0 %v19690_v34 }
0x133f   :  { %14763 = vmatpush3.msra.mxu0 %v7654_v15 }
0x1340   :  { %14765 = vmatmul.mubr.msk.f32.vlgmr.msra.gmra.mxu0 %vm175_vm1, %v7338_v62  ;;  %14778 = vmatprep.subr.mxu0 %v19690_v34 }
0x1341   :  { %14779 = vmatpush3.msra.mxu0 %v7807_v19  ;;  %14786 = vmatprep.mubr.msk.f32.mxu0 %vm16047_vm0, %v19690_v34 }
0x1342   :  { %14780 = vmatprep.subr.mxu0 %v19690_v34 }
0x1343   :  { %14781 = vmatpush3.msra.mxu0 %v7806_v38  ;;  %v15760_v38 = vld [vmem:[%s19633_s5] ss:$0 sm:$0xff] }
0x1344   :  { %14782 = vmatprep.subr.mxu0 %v19690_v34 }
0x1345   :  { %14783 = vmatpush3.msra.mxu0 %v7805_v24 }
0x1346   :  { %14784 = vmatprep.subr.mxu0 %v19690_v34 }
0x1347   :  { %14785 = vmatpush3.msra.mxu0 %v7804_v35 }
0x1348   :  { %14787 = vmatmul.mubr.msk.f32.vlgmr.msra.gmra.mxu0 %vm175_vm1, %v7338_v62  ;;  %14800 = vmatprep.subr.mxu0 %v19690_v34 }
0x1349   :  { %14801 = vmatpush3.msra.mxu0 %v8213_v12  ;;  %14808 = vmatprep.mubr.msk.f32.mxu0 %vm16047_vm0, %v19690_v34  ;;  %v18273_v12 = vpop.permute.xlu0 %8072 }
0x134a   :  { %14802 = vmatprep.subr.mxu0 %v19690_v34 }
0x134b   :  { %14803 = vmatpush3.msra.mxu0 %v8212_v49 }
0x134c   :  { %14804 = vmatprep.subr.mxu0 %v19690_v34 }
0x134d   :  { %14805 = vmatpush3.msra.mxu0 %v8211_v47  ;;  %v18275_v47 = vpop.permute.xlu1 %8077 }
0x134e   :  { %14806 = vmatprep.subr.mxu0 %v19690_v34 }
0x134f   :  { %14807 = vmatpush3.msra.mxu0 %v8210_v41 }
0x1350   :  { %14809 = vmatmul.mubr.msk.f32.vlgmr.msra.gmra.mxu0 %vm175_vm1, %v8209_v21  ;;  %14822 = vmatprep.subr.mxu0 %v19690_v34 }
0x1351   :  { %14823 = vmatpush3.msra.mxu0 %v8371_v58  ;;  %14830 = vmatprep.mubr.msk.f32.mxu0 %vm16047_vm0, %v19690_v34 }
0x1352   :  { %14824 = vmatprep.subr.mxu0 %v19690_v34 }
0x1353   :  { %14825 = vmatpush3.msra.mxu0 %v8370_v13 }
0x1354   :  { %14826 = vmatprep.subr.mxu0 %v19690_v34 }
0x1355   :  { %14827 = vmatpush3.msra.mxu0 %v8369_v2 }
0x1356   :  { %14828 = vmatprep.subr.mxu0 %v19690_v34 }
0x1357   :  { %14829 = vmatpush3.msra.mxu0 %v8368_v39 }
0x1358   :  { %14831 = vmatmul.mubr.msk.f32.vlgmr.msra.gmra.mxu0 %vm175_vm1, %v8209_v21  ;;  %14844 = vmatprep.subr.mxu0 %v19690_v34 }
0x1359   :  { %14845 = vmatpush3.msra.mxu0 %v8526_v26  ;;  %14852 = vmatprep.mubr.msk.f32.mxu0 %vm16047_vm0, %v19690_v34 }
0x135a   :  { %14846 = vmatprep.subr.mxu0 %v19690_v34 }
0x135b   :  { %14847 = vmatpush3.msra.mxu0 %v8525_v51  ;;  %v18281_v51 = vpop.permute.xlu0 %8087 }
0x135c   :  { %14848 = vmatprep.subr.mxu0 %v19690_v34 }
0x135d   :  { %14849 = vmatpush3.msra.mxu0 %v8524_v20  ;;  %v19717_v20 = vld [vmem:[#allocation34_spill] sm:$0xff] }
0x135e   :  { %14850 = vmatprep.subr.mxu0 %v19690_v34 }
0x135f   :  { %14851 = vmatpush3.msra.mxu0 %v8523_v50  ;;  %v18290_v57 = vpop.permute.xlu0 %8157 }
0x1360   :  { %14853 = vmatmul.mubr.msk.f32.vlgmr.msra.gmra.mxu0 %vm175_vm1, %v8209_v21  ;;  %14866 = vmatprep.subr.mxu0 %v19690_v34 }
0x1361   :  { %14867 = vmatpush3.msra.mxu0 %v8676_v55  ;;  %14874 = vmatprep.mubr.msk.f32.mxu0 %vm16047_vm0, %v19690_v34 }
0x1362   :  { %14868 = vmatprep.subr.mxu0 %v19690_v34 }
0x1363   :  { %14869 = vmatpush3.msra.mxu0 %v8675_v36 }
0x1364   :  { %14870 = vmatprep.subr.mxu0 %v19690_v34 }
0x1365   :  { %14871 = vmatpush3.msra.mxu0 %v8674_v3 }
0x1366   :  { %14872 = vmatprep.subr.mxu0 %v19690_v34 }
0x1367   :  { %14873 = vmatpush3.msra.mxu0 %v8673_v61  ;;  %v18284_v61 = vpop.permute.xlu1 %8082 }
0x1368   :  { %14875 = vmatmul.mubr.msk.f32.vlgmr.msra.gmra.mxu0 %vm175_vm1, %v8209_v21  ;;  %14888 = vmatprep.subr.mxu0 %v19690_v34 }
0x1369   :  { %14896 = vmatprep.mubr.msk.f32.mxu0 %vm16047_vm0, %v19690_v34 }
0x13f0   :  { %v7488_v18 = vpop.f32.mrf.mxu0 }
0x13f1   :  { %v7489_v32 = vadd.f32 %v7488_v18, %v18159_v6 }
0x13f2   :  { %v14722_v9 = vpop.f32.mrf.mxu0 }
0x13f3   :  { %v7492_v60 = vadd.f32 %v15756_v52, %v7489_v32  ;;  %v15762_v32 = vld [vmem:[%s19633_s5 + $0x2] ss:$0 sm:$0xff]  ;;  %v8153_v52 = vpop.permute.xlu1 %8152 }
0x13f5   :  { %v13628_v16 = vmul.f32 -1.442695, %v7492_v60 }
0x13f7   :  { %15510 = vpow2.f32 %v13628_v16 }
0x13f8   :  { %v7643_v48 = vpop.f32.mrf.mxu0 }
0x13f9   :  { %v7644_v45 = vadd.f32 %v7643_v48, %v18162_v11  ;;  %v15758_v11 = vld [vmem:[%s19638_s10 + $0x2] ss:$0 sm:$0xff]  ;;  %v18295_v48 = vpop.permute.xlu0 %8162 }
0x13fa   :  { %v14744_v31 = vpop.f32.mrf.mxu0 }
0x13fb   :  { %v7647_v4 = vadd.f32 %v15757_v56, %v7644_v45  ;;  %v15763_v56 = vld [vmem:[%s19633_s5 + $0x3] ss:$0 sm:$0xff] }
0x13fd   :  { %v13631_v33 = vmul.f32 -1.442695, %v7647_v4 }
0x13ff   :  { %15512 = vpow2.f32 %v13631_v33 }
0x1400   :  { %v7798_v6 = vpop.f32.mrf.mxu0 }
0x1401   :  { %v7799_v37 = vadd.f32 %v7798_v6, %v18164_v17 }
0x1402   :  { %v14766_v10 = vpop.f32.mrf.mxu0 }
0x1403   :  { %v7802_v7 = vadd.f32 %v15758_v11, %v7799_v37  ;;  %v19719_v11 = vld [vmem:[#allocation28_spill] sm:$0xff] }
0x1404   :  { %v15511_v22 = vpop.eup %15510 }
0x1405   :  { %v7496_v62 = vadd.f32 1.0, %v15511_v22 }
0x1407   :  { %15514 = vrcp.f32 %v7496_v62 }
0x1408   :  { %v7948_v53 = vpop.f32.mrf.mxu0  ;;  %15516 = vtanh.f32 %v7802_v7 }
0x1409   :  { %v7949_v54 = vadd.f32 %v7948_v53, %v18168_v23  ;;  %v18303_v53 = vpop.permute.xlu0 %8167 }
0x140a   :  { %v14788_v44 = vpop.f32.mrf.mxu0 }
0x140b   :  { %v7952_v63 = vadd.f32 %v15759_v43, %v7949_v54 }
0x140c   :  { %v15513_v59 = vpop.eup %15512 }
0x140d   :  { %v7651_v42 = vadd.f32 1.0, %v15513_v59  ;;  %v13636_v15 = vmul.f32 -1.442695, %v7952_v63 }
0x140f   :  { %15518 = vrcp.f32 %v7651_v42 }
0x1410   :  { %15520 = vpow2.f32 %v13636_v15  ;;  %v8357_v17 = vpop.f32.mrf.mxu0  ;;  %v8173_v15 = vpop.permute.xlu0 %8172 }
0x1411   :  { %v8358_v23 = vadd.f32 %v8357_v17, %v18172_v40  ;;  %v15761_v40 = vld [vmem:[%s19633_s5 + $0x1] ss:$0 sm:$0xff] }
0x1412   :  { %v14810_v19 = vpop.f32.mrf.mxu0 }
0x1413   :  { %v8361_v24 = vadd.f32 %v15760_v38, %v8358_v23 }
0x1414   :  { %v15515_v21 = vpop.eup %15514 }
0x1415   :  { %v13639_v35 = vmul.f32 -1.442695, %v8361_v24  ;;  %v15517_v13 = vpop.eup %15516 }
0x1416   :  { %v7960_v55 = vmul.f32 %v15517_v13, %v15515_v21  ;;  %v8134_v13 = vld [vmem:[#allocation19 + $0x40] sm:$0xff] }
0x1417   :  { %15522 = vpow2.f32 %v13639_v35 }
0x1418   :  { %v8512_v49 = vpop.f32.mrf.mxu0 }
0x1419   :  { %v8513_v41 = vadd.f32 %v8512_v49, %v18176_v0 }
0x141a   :  { %v14832_v58 = vpop.f32.mrf.mxu0 }
0x141b   :  { %v8516_v2 = vadd.f32 %v15761_v40, %v8513_v41 }
0x141c   :  { %v15519_v39 = vpop.eup %15518 }
0x141d   :  { %v15521_v26 = vpop.eup %15520  ;;  %v7959_v50 = vmul.f32 %v15519_v39, %v19717_v20  ;;  %v13642_v36 = vmul.f32 -1.442695, %v8516_v2  ;;  %v15764_v2 = vld [vmem:[#allocation19] sm:$0xff] }
0x141e   :  { %v7956_v3 = vadd.f32 1.0, %v15521_v26 }
0x141f   :  { %v18286_v0 = vadd.f32 %v7960_v55, %v7959_v50  ;;  %15524 = vpow2.f32 %v13642_v36 }
0x1420   :  { %15526 = vrcp.f32 %v7956_v3  ;;  %v8667_v25 = vpop.f32.mrf.mxu0 }
0x1421   :  { %19718 = vst [vmem:[#allocation29_spill] sm:$0xff] %v18286_v0  ;;  %15528 = vtanh.f32 %v18286_v0  ;;  %v8668_v29 = vadd.f32 %v8667_v25, %v18180_v14  ;;  %v18298_v14 = vpop.permute.xlu1 %8092 }
0x1422   :  { %v14854_v1 = vpop.f32.mrf.mxu0 }
0x1423   :  { %v8671_v9 = vadd.f32 %v15762_v32, %v8668_v29  ;;  %v8135_v29 = vld [vmem:[#allocation19 + $0x48] sm:$0xff] }
0x1424   :  { %v15523_v18 = vpop.eup %15522  ;;  %v15765_v32 = vld [vmem:[#allocation19 + $0x8] sm:$0xff] }
0x1425   :  { %v8365_v60 = vadd.f32 1.0, %v15523_v18 }
0x1427   :  { %15530 = vrcp.f32 %v8365_v60 }
0x1428   :  { %15532 = vtanh.f32 %v8671_v9  ;;  %v8817_v16 = vpop.f32.mrf.mxu0 }
0x1429   :  { %v8818_v45 = vadd.f32 %v8817_v16, %v18182_v5  ;;  %v18307_v5 = vpop.permute.xlu1 %8097  ;;  %v8136_v16 = vld [vmem:[#allocation19 + $0x50] sm:$0xff] }
0x142a   :  { %v14876_v31 = vpop.f32.mrf.mxu0 }
0x142b   :  { %v8821_v4 = vadd.f32 %v15763_v56, %v8818_v45  ;;  %v8178_v45 = vpop.permute.xlu0 %8177  ;;  %v15766_v56 = vld [vmem:[#allocation19 + $0x10] sm:$0xff] }
0x142c   :  { %v15525_v33 = vpop.eup %15524 }
0x142d   :  { %v15527_v6 = vpop.eup %15526  ;;  %v8520_v10 = vadd.f32 1.0, %v15525_v33  ;;  %v13647_v22 = vmul.f32 -1.442695, %v8821_v4  ;;  %v18320_v49 = vpop.permute.xlu1 %8102 }
0x142e   :  { %v15529_v37 = vpop.eup %15528 }
0x142f   :  { %v18305_v62 = vmul.f32 %v15529_v37, %v15527_v6  ;;  %15534 = vrcp.f32 %v8520_v10  ;;  %v15767_v6 = vld [vmem:[#allocation19 + $0x20] sm:$0xff] }
0x1430   :  { %15536 = vpow2.f32 %v13647_v22  ;;  %v8138_v22 = vld [vmem:[#allocation19 + $0x60] sm:$0xff] }
0x1431   :  { %v7973_v54 = vcombine.high %v18305_v62, %v18305_v62  ;;  %v7980_v7 = vrot.slane %v18305_v62, %v19719_v11  ;;  %8207 = vst.msk [vmem:[#allocation16 + $0x10] sm:$0xff] %vm175_vm1, %v18305_v62 }
0x1433   :  { %v7987_v44 = vrot.slane %v7973_v54, %v19719_v11  ;;  %v7988_v43 = vcombine.high %v7980_v7, %v7980_v7  ;;  %v7996_v63 = vrot.slane %v7980_v7, %v19719_v11  ;;  %v15768_v7 = vld [vmem:[#allocation19 + $0x18] sm:$0xff] }
0x1434   :  { %v15531_v59 = vpop.eup %15530 }
0x1435   :  { %v15533_v42 = vpop.eup %15532  ;;  %v7989_v17 = vcombine.high %v7987_v44, %v7987_v44  ;;  %v8003_v23 = vrot.slane %v7987_v44, %v19719_v11  ;;  %v8010_v19 = vrot.slane %v7988_v43, %v19719_v11  ;;  %v8018_v38 = vcombine.high %v7996_v63, %v7996_v63 }
0x1436   :  { %v8829_v24 = vmul.f32 %v15533_v42, %v15531_v59  ;;  %v8025_v35 = vrot.slane %v7996_v63, %v16293_v46  ;;  %v8108_v63 = vpop.permute.xlu1 %8107  ;;  %v19720_v59 = vld [vmem:[#allocation35_spill] sm:$0xff] }
0x1437   :  { %v8017_v41 = vrot.slane %v7989_v17, %v19719_v11  ;;  %v8019_v21 = vcombine.high %v8003_v23, %v8003_v23  ;;  %v8020_v58 = vcombine.high %v8010_v19, %v8010_v19  ;;  %v8029_v40 = vrot.slane %v8010_v19, %v16293_v46 }
0x1438   :  { %v8062_v39 = vadd.f32 %v15764_v2, %v8025_v35  ;;  %v8142_v26 = vadd.f32 %v8134_v13, %v8025_v35  ;;  %v8033_v20 = vrot.slane %v8018_v38, %v16293_v46  ;;  %v8041_v50 = vrot.slane %v8003_v23, %v16293_v46  ;;  %v15769_v35 = vld [vmem:[#allocation19 + $0x28] sm:$0xff] }
0x1439   :  { %v8021_v55 = vcombine.high %v8017_v41, %v8017_v41  ;;  %v8037_v36 = vrot.slane %v8020_v58, %v16293_v46  ;;  %v8045_v3 = vrot.slane %v8017_v41, %v16293_v46  ;;  %v18329_v25 = vrot.slane %v8019_v21, %v16293_v46  ;;  %v8137_v21 = vld [vmem:[#allocation19 + $0x58] sm:$0xff]  ;;  %v8139_v58 = vld [vmem:[#allocation19 + $0x68] sm:$0xff] }
0x143a   :  { %v8190_v1 = vmul.f32 %v8153_v52, %v8142_v26  ;;  %v8110_v18 = vmul.f32 %v18273_v12, %v8062_v39  ;;  %v8063_v9 = vadd.f32 %v15765_v32, %v8029_v40  ;;  %v8143_v60 = vadd.f32 %v8135_v29, %v8029_v40  ;;  %v8188_v26 = vpop.permute.xlu0 %8187 }
0x143b   :  { %v8053_v31 = vrot.slane %v8021_v55, %v16293_v46  ;;  %v8064_v4 = vadd.f32 %v15766_v56, %v8033_v20  ;;  %v8144_v33 = vadd.f32 %v8136_v16, %v8033_v20  ;;  %v8066_v10 = vadd.f32 %v15767_v6, %v8041_v50 }
0x143c   :  { %v15535_v37 = vpop.eup %15534  ;;  %8198 = vst.msk [vmem:[#allocation19 + $0x40] sm:$0xff] %vm175_vm1, %v8190_v1  ;;  %8118 = vst.msk [vmem:[#allocation19] sm:$0xff] %vm175_vm1, %v8110_v18  ;;  %v8191_v12 = vmul.f32 %v18290_v57, %v8143_v60  ;;  %v8111_v52 = vmul.f32 %v18275_v47, %v8063_v9  ;;  %v8146_v54 = vadd.f32 %v8138_v22, %v8041_v50  ;;  %v8183_v18 = vpop.permute.xlu1 %8182 }
0x143d   :  { %v8065_v44 = vadd.f32 %v15768_v7, %v8037_v36  ;;  %v15537_v43 = vpop.eup %15536  ;;  %v8828_v42 = vmul.f32 %v15535_v37, %v19720_v59  ;;  %v8192_v17 = vmul.f32 %v18295_v48, %v8144_v33  ;;  %v8112_v23 = vmul.f32 %v18284_v61, %v8064_v4  ;;  %v15770_v48 = vld [vmem:[#allocation19 + $0x30] sm:$0xff] }
0x143e   :  { %v8114_v19 = vmul.f32 %v18298_v14, %v8066_v10  ;;  %v8825_v38 = vadd.f32 1.0, %v15537_v43  ;;  %8199 = vst.msk [vmem:[#allocation19 + $0x48] sm:$0xff] %vm175_vm1, %v8191_v12  ;;  %8119 = vst.msk [vmem:[#allocation19 + $0x8] sm:$0xff] %vm175_vm1, %v8111_v52  ;;  %v8194_v57 = vmul.f32 %v8173_v15, %v8146_v54  ;;  %v8067_v41 = vadd.f32 %v15769_v35, %v8045_v3  ;;  %v8141_v15 = vld [vmem:[#allocation19 + $0x78] sm:$0xff] }
0x143f   :  { %v8113_v47 = vmul.f32 %v18281_v51, %v8065_v44  ;;  %v18344_v13 = vadd.f32 %v8829_v24, %v8828_v42  ;;  %8200 = vst.msk [vmem:[#allocation19 + $0x50] sm:$0xff] %vm175_vm1, %v8192_v17  ;;  %8120 = vst.msk [vmem:[#allocation19 + $0x10] sm:$0xff] %vm175_vm1, %v8112_v23  ;;  %v8145_v61 = vadd.f32 %v8137_v21, %v8037_v36  ;;  %v15771_v24 = vld [vmem:[#allocation19 + $0x38] sm:$0xff]  ;;  %v8140_v36 = vld [vmem:[#allocation19 + $0x70] sm:$0xff] }
0x1440   :  { %8122 = vst.msk [vmem:[#allocation19 + $0x20] sm:$0xff] %vm175_vm1, %v8114_v19  ;;  %v8068_v14 = vadd.f32 %v15770_v48, %v18329_v25  ;;  %v8147_v40 = vadd.f32 %v8139_v58, %v8045_v3  ;;  %15538 = vrcp.f32 %v8825_v38  ;;  %8202 = vst.msk [vmem:[#allocation19 + $0x60] sm:$0xff] %vm175_vm1, %v8194_v57  ;;  %v8115_v51 = vmul.f32 %v18307_v5, %v8067_v41 }
0x1441   :  { %19721 = vst [vmem:[#allocation27_spill] sm:$0xff] %v18344_v13  ;;  %8121 = vst.msk [vmem:[#allocation19 + $0x18] sm:$0xff] %vm175_vm1, %v8113_v47  ;;  %v8069_v2 = vadd.f32 %v15771_v24, %v8053_v31  ;;  %v8149_v39 = vadd.f32 %v8141_v15, %v8053_v31  ;;  %15540 = vtanh.f32 %v18344_v13  ;;  %v8193_v20 = vmul.f32 %v18303_v53, %v8145_v61 }
0x1442   :  { %v8116_v50 = vmul.f32 %v18320_v49, %v8068_v14  ;;  %v8195_v55 = vmul.f32 %v8178_v45, %v8147_v40  ;;  %8123 = vst.msk [vmem:[#allocation19 + $0x28] sm:$0xff] %vm175_vm1, %v8115_v51  ;;  %v8148_v1 = vadd.f32 %v8140_v36, %v18329_v25 }
0x1443   :  { %v8117_v3 = vmul.f32 %v8108_v63, %v8069_v2  ;;  %v8197_v29 = vmul.f32 %v8188_v26, %v8149_v39  ;;  %8201 = vst.msk [vmem:[#allocation19 + $0x58] sm:$0xff] %vm175_vm1, %v8193_v20  ;;  %v18378_v33 = vld [vmem:[#allocation19 + $0x40] sm:$0xff] }
0x1444   :  { %8124 = vst.msk [vmem:[#allocation19 + $0x30] sm:$0xff] %vm175_vm1, %v8116_v50  ;;  %8203 = vst.msk [vmem:[#allocation19 + $0x68] sm:$0xff] %vm175_vm1, %v8195_v55  ;;  %v8196_v53 = vmul.f32 %v8183_v18, %v8148_v1  ;;  %v18380_v6 = vld [vmem:[#allocation19] sm:$0xff] }
0x1445   :  { %8125 = vst.msk [vmem:[#allocation19 + $0x38] sm:$0xff] %vm175_vm1, %v8117_v3  ;;  %8205 = vst.msk [vmem:[#allocation19 + $0x78] sm:$0xff] %vm175_vm1, %v8197_v29  ;;  %v18385_v12 = vld [vmem:[#allocation19 + $0x48] sm:$0xff] }
0x1446   :  { %8204 = vst.msk [vmem:[#allocation19 + $0x70] sm:$0xff] %vm175_vm1, %v8196_v53  ;;  %v18387_v52 = vld [vmem:[#allocation19 + $0x8] sm:$0xff]  ;;  %v18395_v17 = vld [vmem:[#allocation19 + $0x50] sm:$0xff] }
0x1447   :  { %v18397_v23 = vld [vmem:[#allocation19 + $0x10] sm:$0xff]  ;;  %v18405_v58 = vld [vmem:[#allocation19 + $0x60] sm:$0xff] }
0x1448   :  { %v18407_v61 = vld [vmem:[#allocation19 + $0x20] sm:$0xff]  ;;  %v18417_v20 = vld [vmem:[#allocation19 + $0x18] sm:$0xff] }
0x1449   :  { %v18419_v50 = vld [vmem:[#allocation19 + $0x28] sm:$0xff] }
0x144a   :  { %v18424_v1 = vld [vmem:[#allocation19 + $0x58] sm:$0xff] }
0x144b   :  { %v18427_v53 = vld [vmem:[#allocation19 + $0x30] sm:$0xff] }
0x144d   :  { %v15539_v5 = vpop.eup %15538 }
0x144e   :  { %v15541_v49 = vpop.eup %15540 }
0x144f   :  { %v18364_v32 = vmul.f32 %v15541_v49, %v15539_v5 }
0x1451   :  { %19722 = vst [vmem:[#allocation34_spill] sm:$0xff] %v18364_v32  ;;  %14886 = vmatmul.mubr.msk.f32.vlgmr.msra.gmra.mxu1 %vm175_vm1, %v18364_v32  ;;  %v8849_v25 = vrot.slane %v18364_v32, %v19719_v11  ;;  %v8842_v9 = vcombine.high %v18364_v32, %v18364_v32 }
0x1452   :  { %14907 = vmatprep.mubr.msk.f32.mxu1 %vm16047_vm0, %v19690_v34 }
0x1453   :  { %v8865_v60 = vrot.slane %v8849_v25, %v19719_v11  ;;  %v8857_v16 = vcombine.high %v8849_v25, %v8849_v25  ;;  %v8856_v45 = vrot.slane %v8842_v9, %v19719_v11 }
0x1455   :  { %v8894_v31 = vrot.slane %v8865_v60, %v16293_v46  ;;  %v8879_v56 = vrot.slane %v8857_v16, %v19719_v11  ;;  %v8887_v4 = vcombine.high %v8865_v60, %v8865_v60  ;;  %v8872_v7 = vrot.slane %v8856_v45, %v19719_v11  ;;  %v18433_v60 = vld [vmem:[#allocation19 + $0x68] sm:$0xff]  ;;  %v18435_v16 = vld [vmem:[#allocation19 + $0x38] sm:$0xff] }
0x1456   :  { %v8858_v44 = vcombine.high %v8856_v45, %v8856_v45 }
0x1457   :  { %v9323_v10 = vmul.f32 %v18378_v33, %v8894_v31  ;;  %v8931_v22 = vmul.f32 %v8894_v31, %v18380_v6  ;;  %v8898_v37 = vrot.slane %v8879_v56, %v16293_v46  ;;  %v8902_v54 = vrot.slane %v8887_v4, %v16293_v46 }
0x1458   :  { %v8910_v19 = vrot.slane %v8872_v7, %v16293_v46  ;;  %v8889_v38 = vcombine.high %v8879_v56, %v8879_v56  ;;  %v8886_v57 = vrot.slane %v8858_v44, %v19719_v11  ;;  %v8888_v40 = vcombine.high %v8872_v7, %v8872_v7 }
0x1459   :  { %v9331_v43 = vsel %vm175_vm1, %v9323_v10, 0.0  ;;  %v8939_v63 = vsel %vm175_vm1, %v8931_v22, 0.0  ;;  %v9324_v59 = vmul.f32 %v18385_v12, %v8898_v37  ;;  %v8932_v42 = vmul.f32 %v8898_v37, %v18387_v52  ;;  %v18441_v10 = vld [vmem:[#allocation19 + $0x78] sm:$0xff]  ;;  %v18443_v22 = vld [vmem:[#allocation19 + $0x70] sm:$0xff] }
0x145a   :  { %9332 = vadd.xlane.f32.xlu0 %v9331_v43  ;;  %8940 = vadd.xlane.f32.xlu1 %v8939_v63  ;;  %v9325_v41 = vmul.f32 %v18395_v17, %v8902_v54  ;;  %v8933_v21 = vmul.f32 %v8902_v54, %v18397_v23  ;;  %v9327_v48 = vmul.f32 %v18405_v58, %v8910_v19 }
0x145b   :  { %v9334_v47 = vsel %vm175_vm1, %v9324_v59, 0.0  ;;  %v8942_v35 = vsel %vm175_vm1, %v8932_v42, 0.0  ;;  %v8935_v14 = vmul.f32 %v8910_v19, %v18407_v61  ;;  %v8906_v24 = vrot.slane %v8889_v38, %v16293_v46 }
0x145c   :  { %v9337_v15 = vsel %vm175_vm1, %v9325_v41, 0.0  ;;  %v8945_v51 = vsel %vm175_vm1, %v8933_v21, 0.0  ;;  %v8914_v2 = vrot.slane %v8886_v57, %v16293_v46  ;;  %v9343_v39 = vsel %vm175_vm1, %v9327_v48, 0.0 }
0x145d   :  { %v8951_v26 = vsel %vm175_vm1, %v8935_v14, 0.0  ;;  %v8934_v55 = vmul.f32 %v8906_v24, %v18417_v20  ;;  %v8918_v3 = vrot.slane %v8888_v40, %v16293_v46  ;;  %v8890_v29 = vcombine.high %v8886_v57, %v8886_v57 }
0x145e   :  { %9335 = vadd.xlane.f32.xlu1 %v9334_v47  ;;  %8943 = vadd.xlane.f32.xlu0 %v8942_v35  ;;  %v8936_v36 = vmul.f32 %v8914_v2, %v18419_v50  ;;  %v9326_v18 = vmul.f32 %v18424_v1, %v8906_v24  ;;  %v9328_v56 = vmul.f32 %v18433_v60, %v8914_v2 }
0x145f   :  { %v8948_v5 = vsel %vm175_vm1, %v8934_v55, 0.0  ;;  %v8937_v25 = vmul.f32 %v8918_v3, %v18427_v53  ;;  %v8922_v9 = vrot.slane %v8890_v29, %v16293_v46  ;;  %v9329_v44 = vmul.f32 %v18443_v22, %v8918_v3 }
0x1460   :  { %v8954_v49 = vsel %vm175_vm1, %v8936_v36, 0.0  ;;  %v9340_v45 = vsel %vm175_vm1, %v9326_v18, 0.0  ;;  %v9346_v37 = vsel %vm175_vm1, %v9328_v56, 0.0 }
0x1461   :  { %v8957_v31 = vsel %vm175_vm1, %v8937_v25, 0.0  ;;  %v8938_v4 = vmul.f32 %v8922_v9, %v18435_v16  ;;  %v9330_v7 = vmul.f32 %v18441_v10, %v8922_v9  ;;  %v9349_v63 = vsel %vm175_vm1, %v9329_v44, 0.0 }
0x1462   :  { %9338 = vadd.xlane.f32.xlu1 %v9337_v15  ;;  %8946 = vadd.xlane.f32.xlu0 %v8945_v51 }
0x1463   :  { %v8960_v54 = vsel %vm175_vm1, %v8938_v4, 0.0  ;;  %v9352_v43 = vsel %vm175_vm1, %v9330_v7, 0.0 }
0x1466   :  { %9344 = vadd.xlane.f32.xlu1 %v9343_v39  ;;  %8952 = vadd.xlane.f32.xlu0 %v8951_v26 }
0x146a   :  { %8949 = vadd.xlane.f32.xlu1 %v8948_v5  ;;  %8955 = vadd.xlane.f32.xlu0 %v8954_v49 }
0x146e   :  { %9341 = vadd.xlane.f32.xlu1 %v9340_v45  ;;  %8958 = vadd.xlane.f32.xlu0 %v8957_v31 }
0x1472   :  { %9347 = vadd.xlane.f32.xlu1 %v9346_v37  ;;  %8961 = vadd.xlane.f32.xlu0 %v8960_v54 }
0x1476   :  { %9353 = vadd.xlane.f32.xlu1 %v9352_v43  ;;  %9350 = vadd.xlane.f32.xlu0 %v9349_v63 }
0x14e3   :  { %v18451_v59 = vpop.xlane.xlu0 %9332  ;;  %v8941_v42 = vpop.xlane.xlu1 %8940 }
0x14e4   :  { %v8974_v14 = vrot.slane %v8941_v42, %v16390_v8  ;;  %v9366_v49 = vrot.slane %v18451_v59, %v16390_v8 }
0x14e7   :  { %v18453_v19 = vpop.xlane.xlu1 %9335  ;;  %v8944_v38 = vpop.xlane.xlu0 %8943 }
0x14e8   :  { %v8978_v21 = vrot.slane %v8944_v38, %v16390_v8  ;;  %v9370_v55 = vrot.slane %v18453_v19, %v16390_v8 }
0x14ea   :  { %v9003_v51 = vsel %vm1066_vm2, %v8978_v21, %v8974_v14  ;;  %v9395_v31 = vsel %vm1066_vm2, %v9370_v55, %v9366_v49 }
0x14eb   :  { %v18455_v57 = vpop.xlane.xlu1 %9338  ;;  %v8947_v47 = vpop.xlane.xlu0 %8946 }
0x14ec   :  { %v8982_v48 = vrot.slane %v8947_v47, %v16390_v8  ;;  %v9374_v18 = vrot.slane %v18455_v57, %v16390_v8 }
0x14ee   :  { %v9004_v2 = vsel %vm1068_vm3, %v8982_v48, %v9003_v51  ;;  %v9396_v37 = vsel %vm1068_vm3, %v9374_v18, %v9395_v31 }
0x14ef   :  { %v18457_v35 = vpop.xlane.xlu1 %9344  ;;  %v18459_v41 = vpop.xlane.xlu0 %8952 }
0x14f0   :  { %v8990_v39 = vrot.slane %v18459_v41, %v16390_v8  ;;  %v9382_v63 = vrot.slane %v18457_v35, %v16390_v8 }
0x14f3   :  { %v8950_v40 = vpop.xlane.xlu1 %8949  ;;  %v18464_v15 = vpop.xlane.xlu0 %8955 }
0x14f4   :  { %v8986_v24 = vrot.slane %v8950_v40, %v16390_v8  ;;  %v8994_v5 = vrot.slane %v18464_v15, %v16390_v8 }
0x14f6   :  { %v9005_v26 = vsel %vm1070_vm4, %v8986_v24, %v9004_v2 }
0x14f7   :  { %v18474_v36 = vpop.xlane.xlu1 %9341  ;;  %v18476_v3 = vpop.xlane.xlu0 %8958  ;;  %v9006_v29 = vsel %vm1072_vm5, %v8990_v39, %v9005_v26 }
0x14f8   :  { %v9378_v25 = vrot.slane %v18474_v36, %v16390_v8  ;;  %v8998_v9 = vrot.slane %v18476_v3, %v16390_v8  ;;  %v9007_v45 = vsel %vm1074_vm6, %v8994_v5, %v9006_v29 }
0x14fa   :  { %v9397_v7 = vsel %vm1070_vm4, %v9378_v25, %v9396_v37  ;;  %v9008_v43 = vsel %vm1076_vm7, %v8998_v9, %v9007_v45 }
0x14fb   :  { %v18491_v56 = vpop.xlane.xlu1 %9347  ;;  %v18493_v4 = vpop.xlane.xlu0 %8961  ;;  %v9398_v39 = vsel %vm1072_vm5, %v9382_v63, %v9397_v7 }
0x14fc   :  { %v9002_v54 = vrot.slane %v18493_v4, %v16390_v8  ;;  %v9386_v44 = vrot.slane %v18491_v56, %v16390_v8 }
0x14fe   :  { %v9009_v21 = vsel %vm1078_vm8, %v9002_v54, %v9008_v43  ;;  %v9399_v26 = vsel %vm1074_vm6, %v9386_v44, %v9398_v39 }
0x14ff   :  { %v18505_v48 = vpop.xlane.xlu1 %9353  ;;  %v18507_v14 = vpop.xlane.xlu0 %9350  ;;  %v9011_v51 = vsel %vm1081_vm9, %v9009_v21, -inf }
0x1500   :  { %v9394_v24 = vrot.slane %v18505_v48, %v16390_v8  ;;  %v9390_v2 = vrot.slane %v18507_v14, %v16390_v8  ;;  %9012 = vmax.xlane.f32.xlu0 %v9011_v51 }
0x1502   :  { %v9400_v55 = vsel %vm1076_vm7, %v9390_v2, %v9399_v26  ;;  %v19724_v2 = vld [vmem:[#allocation30_spill] sm:$0xff] }
0x1503   :  { %v9401_v29 = vsel %vm1078_vm8, %v9394_v24, %v9400_v55 }
0x1504   :  { %v9403_v18 = vsel %vm1081_vm9, %v9401_v29, -inf }
0x1505   :  { %9404 = vmax.xlane.f32.xlu1 %v9403_v18 }
0x1511   :  { %v18519_v5 = vpop.f32.mrf.mxu1 }
0x1512   :  { %19723 = vst [vmem:[#allocation35_spill] sm:$0xff] %v18519_v5 }
0x1513   :  { %v14887_v49 = vpop.f32.mrf.mxu1 }
0x1589   :  { %v9013_v25 = vpop.xlane.xlu0 %9012 }
0x158a   :  { %v9018_v9 = vrot.slane %v9013_v25, %v16293_v46  ;;  %v9022_v45 = vrot.slane %v9013_v25, %v16451_v27  ;;  %v9026_v31 = vrot.slane %v9013_v25, %v16454_v28  ;;  %v9030_v37 = vrot.slane %v9013_v25, %v16457_v30 }
0x158b   :  { %v9034_v39 = vrot.slane %v9013_v25, %v19724_v2 }
0x158c   :  { %v9055_v54 = vsub.f32 %v8941_v42, %v9018_v9  ;;  %v9056_v7 = vsub.f32 %v8944_v38, %v9022_v45  ;;  %v9058_v44 = vsub.f32 %v8950_v40, %v9030_v37  ;;  %v9057_v43 = vsub.f32 %v8947_v47, %v9026_v31  ;;  %v19725_v47 = vld [vmem:[#allocation31_spill] sm:$0xff] }
0x158d   :  { %v9038_v40 = vrot.slane %v9013_v25, %v19725_v47  ;;  %v9059_v49 = vsub.f32 %v18459_v41, %v9034_v39 }
0x158e   :  { %v9063_v63 = vmul.f32 1.442695, %v9055_v54  ;;  %v9065_v21 = vmul.f32 1.442695, %v9056_v7  ;;  %v9405_v51 = vpop.xlane.xlu1 %9404  ;;  %v9069_v26 = vmul.f32 1.442695, %v9058_v44 }
0x158f   :  { %v9410_v24 = vrot.slane %v9405_v51, %v16293_v46  ;;  %v9414_v55 = vrot.slane %v9405_v51, %v16451_v27  ;;  %v9067_v29 = vmul.f32 1.442695, %v9057_v43  ;;  %v9418_v18 = vrot.slane %v9405_v51, %v16454_v28  ;;  %v19726_v54 = vld [vmem:[#allocation33_spill] sm:$0xff] }
0x1590   :  { %15542 = vpow2.f32 %v9063_v63  ;;  %v9422_v9 = vrot.slane %v9405_v51, %v16457_v30  ;;  %v9042_v7 = vrot.slane %v9013_v25, %v19726_v54  ;;  %v9060_v44 = vsub.f32 %v18464_v15, %v9038_v40  ;;  %v19727_v63 = vld [vmem:[#allocation32_spill] sm:$0xff] }
0x1591   :  { %15544 = vpow2.f32 %v9065_v21  ;;  %v9447_v42 = vsub.f32 %v18451_v59, %v9410_v24  ;;  %v9448_v38 = vsub.f32 %v18453_v19, %v9414_v55  ;;  %v9449_v45 = vsub.f32 %v18455_v57, %v9418_v18 }
0x1592   :  { %15546 = vpow2.f32 %v9069_v26  ;;  %v9071_v43 = vmul.f32 1.442695, %v9059_v49  ;;  %v9426_v59 = vrot.slane %v9405_v51, %v19724_v2  ;;  %v9450_v19 = vsub.f32 %v18474_v36, %v9422_v9 }
0x1593   :  { %15548 = vpow2.f32 %v9067_v29  ;;  %v9455_v31 = vmul.f32 1.442695, %v9447_v42  ;;  %v9457_v37 = vmul.f32 1.442695, %v9448_v38  ;;  %v9459_v41 = vmul.f32 1.442695, %v9449_v45 }
0x1594   :  { %v9046_v21 = vrot.slane %v9013_v25, %v19727_v63  ;;  %v9061_v24 = vsub.f32 %v18476_v3, %v9042_v7  ;;  %v9073_v57 = vmul.f32 1.442695, %v9060_v44  ;;  %v9430_v26 = vrot.slane %v9405_v51, %v19725_v47 }
0x1595   :  { %15550 = vpow2.f32 %v9455_v31  ;;  %v9451_v15 = vsub.f32 %v18457_v35, %v9426_v59  ;;  %v9461_v55 = vmul.f32 1.442695, %v9450_v19  ;;  %v9434_v25 = vrot.slane %v9405_v51, %v19726_v54 }
0x1596   :  { %15552 = vpow2.f32 %v9457_v37  ;;  %v9062_v36 = vsub.f32 %v18493_v4, %v9046_v21  ;;  %v9075_v3 = vmul.f32 1.442695, %v9061_v24  ;;  %v9438_v42 = vrot.slane %v9405_v51, %v19727_v63 }
0x1597   :  { %15554 = vpow2.f32 %v9071_v43  ;;  %v9452_v35 = vsub.f32 %v18491_v56, %v9430_v26  ;;  %v9463_v38 = vmul.f32 1.442695, %v9451_v15  ;;  %v9453_v49 = vsub.f32 %v18507_v14, %v9434_v25 }
0x1598   :  { %15556 = vpow2.f32 %v9459_v41  ;;  %v9077_v4 = vmul.f32 1.442695, %v9062_v36  ;;  %v9454_v45 = vsub.f32 %v18505_v48, %v9438_v42 }
0x1599   :  { %15558 = vpow2.f32 %v9073_v57  ;;  %v9465_v51 = vmul.f32 1.442695, %v9452_v35  ;;  %v9467_v56 = vmul.f32 1.442695, %v9453_v49 }
0x159a   :  { %15560 = vpow2.f32 %v9461_v55  ;;  %v9469_v7 = vmul.f32 1.442695, %v9454_v45 }
0x159b   :  { %15562 = vpow2.f32 %v9075_v3 }
0x159c   :  { %15564 = vpow2.f32 %v9463_v38 }
0x159d   :  { %v18541_v39 = vpop.eup %15542  ;;  %15566 = vpow2.f32 %v9077_v4 }
0x159e   :  { %v18545_v29 = vpop.eup %15544  ;;  %9088 = vperm.xlu0 %15224, %v18541_v39   ;;  %15568 = vpow2.f32 %v9465_v51 }
0x159f   :  { %9091 = vperm.xlu1 %15225, %v18545_v29   ;;  %v18551_v18 = vpop.eup %15546  ;;  %15570 = vpow2.f32 %v9467_v56 }
0x15a0   :  { %v18555_v40 = vpop.eup %15548  ;;  %15572 = vpow2.f32 %v9469_v7 }
0x15a2   :  { %9097 = vperm.xlu0 %15224, %v18551_v18   ;;  %v18560_v9 = vpop.eup %15550 }
0x15a3   :  { %9094 = vperm.xlu1 %15225, %v18555_v40   ;;  %v18563_v31 = vpop.eup %15552 }
0x15a4   :  { %v18567_v37 = vpop.eup %15554 }
0x15a5   :  { %v18569_v44 = vpop.eup %15556 }
0x15a6   :  { %9483 = vperm.xlu0 %15224, %v18563_v31   ;;  %v18573_v48 = vpop.eup %15558 }
0x15a7   :  { %9480 = vperm.xlu1 %15225, %v18560_v9   ;;  %v18575_v14 = vpop.eup %15560 }
0x15a8   :  { %v18579_v43 = vpop.eup %15562 }
0x15a9   :  { %v18581_v59 = vpop.eup %15564 }
0x15aa   :  { %9486 = vperm.xlu0 %15224, %v18569_v44   ;;  %v18585_v19 = vpop.eup %15566 }
0x15ab   :  { %9100 = vperm.xlu1 %15225, %v18567_v37   ;;  %v18587_v41 = vpop.eup %15568 }
0x15ac   :  { %v18591_v21 = vpop.eup %15570 }
0x15ad   :  { %v18593_v24 = vpop.eup %15572 }
0x15ae   :  { %9489 = vperm.xlu0 %15224, %v18575_v14  }
0x15af   :  { %9103 = vperm.xlu1 %15225, %v18573_v48  }
0x15b2   :  { %9492 = vperm.xlu0 %15224, %v18581_v59  }
0x15b3   :  { %9106 = vperm.xlu1 %15225, %v18579_v43  }
0x15b6   :  { %9495 = vperm.xlu0 %15224, %v18587_v41  }
0x15b7   :  { %9109 = vperm.xlu1 %15225, %v18585_v19  }
0x15ba   :  { %9501 = vperm.xlu0 %15224, %v18593_v24  }
0x15bb   :  { %9498 = vperm.xlu1 %15225, %v18591_v21  }
0x1619   :  { %v9089_v57 = vpop.permute.xlu0 %9088 }
0x161a   :  { %v9092_v26 = vpop.permute.xlu1 %9091  ;;  %v9114_v38 = vrot.slane %v9089_v57, %v16390_v8 }
0x161b   :  { %v9118_v35 = vrot.slane %v9092_v26, %v16390_v8 }
0x161d   :  { %v9098_v15 = vpop.permute.xlu0 %9097  ;;  %v9143_v51 = vsel %vm1066_vm2, %v9118_v35, %v9114_v38 }
0x161e   :  { %v9095_v55 = vpop.permute.xlu1 %9094  ;;  %v9126_v56 = vrot.slane %v9098_v15, %v16390_v8 }
0x161f   :  { %v9122_v4 = vrot.slane %v9095_v55, %v16390_v8 }
0x1621   :  { %v9484_v3 = vpop.permute.xlu0 %9483  ;;  %v9144_v7 = vsel %vm1068_vm3, %v9122_v4, %v9143_v51 }
0x1622   :  { %v9481_v36 = vpop.permute.xlu1 %9480  ;;  %v9510_v57 = vrot.slane %v9484_v3, %v16390_v8  ;;  %v9145_v32 = vsel %vm1070_vm4, %v9126_v56, %v9144_v7 }
0x1623   :  { %v9506_v26 = vrot.slane %v9481_v36, %v16390_v8 }
0x1625   :  { %v9487_v42 = vpop.permute.xlu0 %9486  ;;  %v9535_v3 = vsel %vm1066_vm2, %v9510_v57, %v9506_v26 }
0x1626   :  { %v9101_v25 = vpop.permute.xlu1 %9100  ;;  %v9514_v35 = vrot.slane %v9487_v42, %v16390_v8 }
0x1627   :  { %v9130_v13 = vrot.slane %v9101_v25, %v16390_v8 }
0x1628   :  { %v9536_v42 = vsel %vm1068_vm3, %v9514_v35, %v9535_v3 }
0x1629   :  { %v9490_v45 = vpop.permute.xlu0 %9489  ;;  %v9146_v15 = vsel %vm1072_vm5, %v9130_v13, %v9145_v32 }
0x162a   :  { %v9104_v49 = vpop.permute.xlu1 %9103  ;;  %v9518_v38 = vrot.slane %v9490_v45, %v16390_v8 }
0x162b   :  { %v9134_v5 = vrot.slane %v9104_v49, %v16390_v8 }
0x162c   :  { %v9537_v32 = vsel %vm1070_vm4, %v9518_v38, %v9536_v42 }
0x162d   :  { %v9493_v0 = vpop.permute.xlu0 %9492  ;;  %v9147_v51 = vsel %vm1074_vm6, %v9134_v5, %v9146_v15 }
0x162e   :  { %v9107_v11 = vpop.permute.xlu1 %9106  ;;  %v9522_v49 = vrot.slane %v9493_v0, %v16390_v8 }
0x162f   :  { %v9138_v55 = vrot.slane %v9107_v11, %v16390_v8 }
0x1630   :  { %v9538_v0 = vsel %vm1072_vm5, %v9522_v49, %v9537_v32 }
0x1631   :  { %v9496_v25 = vpop.permute.xlu0 %9495  ;;  %v9148_v56 = vsel %vm1076_vm7, %v9138_v55, %v9147_v51 }
0x1632   :  { %v9110_v4 = vpop.permute.xlu1 %9109  ;;  %v9526_v11 = vrot.slane %v9496_v25, %v16390_v8 }
0x1633   :  { %v9142_v36 = vrot.slane %v9110_v4, %v16390_v8 }
0x1634   :  { %v9539_v57 = vsel %vm1074_vm6, %v9526_v11, %v9538_v0 }
0x1635   :  { %v9149_v13 = vsel %vm1078_vm8, %v9142_v36, %v9148_v56  ;;  %v9502_v7 = vpop.permute.xlu0 %9501 }
0x1636   :  { %v9499_v45 = vpop.permute.xlu1 %9498  ;;  %v9151_v5 = vsel %vm1081_vm9, %v9149_v13, 0.0  ;;  %v9534_v26 = vrot.slane %v9502_v7, %v16390_v8 }
0x1637   :  { %v9530_v15 = vrot.slane %v9499_v45, %v16390_v8  ;;  %9152 = vadd.xlane.f32.xlu1 %v9151_v5 }
0x1639   :  { %v9540_v55 = vsel %vm1076_vm7, %v9530_v15, %v9539_v57 }
0x163a   :  { %v9541_v35 = vsel %vm1078_vm8, %v9534_v26, %v9540_v55 }
0x163b   :  { %v9543_v4 = vsel %vm1081_vm9, %v9541_v35, 0.0 }
0x163c   :  { %9544 = vadd.xlane.f32.xlu0 %v9543_v4 }
0x16c0   :  { %v9153_v38 = vpop.xlane.xlu1 %9152 }
0x16c1   :  { %v9162_v25 = vrot.slane %v9153_v38, %v16451_v27  ;;  %v9158_v51 = vrot.slane %v9153_v38, %v16293_v46  ;;  %v9166_v49 = vrot.slane %v9153_v38, %v16454_v28  ;;  %v9170_v36 = vrot.slane %v9153_v38, %v16457_v30 }
0x16c2   :  { %v9174_v42 = vrot.slane %v9153_v38, %v19724_v2  ;;  %v9178_v32 = vrot.slane %v9153_v38, %v19725_v47  ;;  %v9182_v15 = vrot.slane %v9153_v38, %v19726_v54 }
0x16c3   :  { %15574 = vrcp.f32 %v9162_v25 }
0x16c4   :  { %15576 = vrcp.f32 %v9158_v51 }
0x16c5   :  { %v9545_v3 = vpop.xlane.xlu0 %9544  ;;  %15578 = vrcp.f32 %v9166_v49 }
0x16c6   :  { %15580 = vrcp.f32 %v9170_v36  ;;  %v9554_v11 = vrot.slane %v9545_v3, %v16451_v27  ;;  %v9550_v56 = vrot.slane %v9545_v3, %v16293_v46  ;;  %v9558_v13 = vrot.slane %v9545_v3, %v16454_v28 }
0x16c7   :  { %v9562_v45 = vrot.slane %v9545_v3, %v16457_v30  ;;  %v9566_v55 = vrot.slane %v9545_v3, %v19724_v2 }
0x16c8   :  { %15582 = vrcp.f32 %v9550_v56 }
0x16c9   :  { %15584 = vrcp.f32 %v9554_v11 }
0x16ca   :  { %15586 = vrcp.f32 %v9174_v42 }
0x16cb   :  { %15588 = vrcp.f32 %v9558_v13 }
0x16cc   :  { %15590 = vrcp.f32 %v9178_v32 }
0x16cd   :  { %15592 = vrcp.f32 %v9562_v45 }
0x16ce   :  { %15594 = vrcp.f32 %v9182_v15 }
0x16cf   :  { %15596 = vrcp.f32 %v9566_v55 }
0x16d0   :  { %v15575_v7 = vpop.eup %15574 }
0x16d1   :  { %v15577_v5 = vpop.eup %15576  ;;  %v18640_v0 = vmul.f32 %v15575_v7, %v18545_v29  ;;  %v9186_v29 = vrot.slane %v9153_v38, %v19727_v63 }
0x16d2   :  { %v15579_v26 = vpop.eup %15578  ;;  %v18644_v57 = vmul.f32 %v15577_v5, %v18541_v39  ;;  %v9570_v39 = vrot.slane %v9545_v3, %v19725_v47 }
0x16d3   :  { %v15581_v35 = vpop.eup %15580  ;;  %9218 = vperm.xlu1 %15225, %v18640_v0   ;;  %v18650_v4 = vmul.f32 %v15579_v26, %v18555_v40  ;;  %15598 = vrcp.f32 %v9186_v29  ;;  %v9574_v40 = vrot.slane %v9545_v3, %v19726_v54  ;;  %v9879_v29 = vld [vmem:[#allocation11 + $0x58] sm:$0xff] }
0x16d4   :  { %9213 = vperm.xlu0 %15224, %v18644_v57   ;;  %v18654_v51 = vmul.f32 %v15581_v35, %v18551_v18  ;;  %15600 = vrcp.f32 %v9570_v39  ;;  %v9578_v18 = vrot.slane %v9545_v3, %v19727_v63  ;;  %v9786_v35 = vld [vmem:[#allocation11 + $0x30] sm:$0xff]  ;;  %14900 = vmatpush3.msra.mxu1 %v9879_v29  ;;  %v9876_v39 = vld [vmem:[#allocation11 + $0x40] sm:$0xff] }
0x16d5   :  { %v15583_v25 = vpop.eup %15582  ;;  %15602 = vrcp.f32 %v9574_v40  ;;  %14901 = vmatprep.subr.mxu1 %v19690_v34 }
0x16d6   :  { %v15585_v49 = vpop.eup %15584  ;;  %v18660_v36 = vmul.f32 %v15583_v25, %v18560_v9  ;;  %15604 = vrcp.f32 %v9578_v18  ;;  %v9878_v25 = vld [vmem:[#allocation11 + $0x50] sm:$0xff] }
0x16d7   :  { %9223 = vperm.xlu1 %15225, %v18650_v4   ;;  %v15587_v11 = vpop.eup %15586  ;;  %v18664_v38 = vmul.f32 %v15585_v49, %v18563_v31  ;;  %14902 = vmatpush3.msra.mxu1 %v9878_v25 }
0x16d8   :  { %9228 = vperm.xlu0 %15224, %v18654_v51   ;;  %v15589_v56 = vpop.eup %15588  ;;  %v18670_v42 = vmul.f32 %v15587_v11, %v18567_v37  ;;  %14903 = vmatprep.subr.mxu1 %v19690_v34 }
0x16d9   :  { %v15591_v9 = vpop.eup %15590  ;;  %v18673_v13 = vmul.f32 %v15589_v56, %v18569_v44 }
0x16da   :  { %v15593_v32 = vpop.eup %15592  ;;  %v18678_v31 = vmul.f32 %v15591_v9, %v18573_v48 }
0x16db   :  { %9605 = vperm.xlu1 %15225, %v18660_v36   ;;  %v15595_v3 = vpop.eup %15594  ;;  %v18681_v45 = vmul.f32 %v15593_v32, %v18575_v14 }
0x16dc   :  { %9610 = vperm.xlu0 %15224, %v18664_v38   ;;  %v15597_v37 = vpop.eup %15596  ;;  %v18686_v44 = vmul.f32 %v15595_v3, %v18579_v43 }
0x16dd   :  { %v18689_v5 = vmul.f32 %v15597_v37, %v18581_v59 }
0x16df   :  { %9233 = vperm.xlu1 %15225, %v18670_v42  }
0x16e0   :  { %9615 = vperm.xlu0 %15224, %v18673_v13   ;;  %v15599_v7 = vpop.eup %15598 }
0x16e1   :  { %v15601_v15 = vpop.eup %15600  ;;  %v18694_v48 = vmul.f32 %v15599_v7, %v18585_v19  ;;  %v9787_v19 = vld [vmem:[#allocation11 + $0x38] sm:$0xff] }
0x16e2   :  { %v15603_v14 = vpop.eup %15602  ;;  %v18697_v26 = vmul.f32 %v15601_v15, %v18587_v41  ;;  %14889 = vmatpush3.msra.mxu0 %v9787_v19  ;;  %v9785_v41 = vld [vmem:[#allocation11 + $0x28] sm:$0xff] }
0x16e3   :  { %9238 = vperm.xlu1 %15225, %v18678_v31   ;;  %v15605_v55 = vpop.eup %15604  ;;  %v18702_v43 = vmul.f32 %v15603_v14, %v18591_v21  ;;  %14890 = vmatprep.subr.mxu0 %v19690_v34  ;;  %v9784_v21 = vld [vmem:[#allocation11 + $0x20] sm:$0xff] }
0x16e4   :  { %9620 = vperm.xlu0 %15224, %v18681_v45   ;;  %v18705_v59 = vmul.f32 %v15605_v55, %v18593_v24  ;;  %14891 = vmatpush3.msra.mxu0 %v9786_v35  ;;  %v9877_v24 = vld [vmem:[#allocation11 + $0x48] sm:$0xff] }
0x16e5   :  { %14892 = vmatprep.subr.mxu0 %v19690_v34  ;;  %14904 = vmatpush3.msra.mxu1 %v9877_v24 }
0x16e6   :  { %14893 = vmatpush3.msra.mxu0 %v9785_v41  ;;  %14905 = vmatprep.subr.mxu1 %v19690_v34 }
0x16e7   :  { %9243 = vperm.xlu1 %15225, %v18686_v44   ;;  %14894 = vmatprep.subr.mxu0 %v19690_v34 }
0x16e8   :  { %9625 = vperm.xlu0 %15224, %v18689_v5   ;;  %14895 = vmatpush3.msra.mxu0 %v9784_v21 }
0x16e9   :  { %14910 = vmatprep.subr.mxu0 %v19690_v34  ;;  %14906 = vmatpush3.msra.mxu1 %v9876_v39 }
0x16ea   :  { %14921 = vmatprep.subr.mxu1 %v19690_v34 }
0x16eb   :  { %9248 = vperm.xlu1 %15225, %v18694_v48  }
0x16ec   :  { %9630 = vperm.xlu0 %15224, %v18697_v26  }
0x16ef   :  { %9635 = vperm.xlu1 %15225, %v18702_v43  }
0x16f0   :  { %9640 = vperm.xlu0 %15224, %v18705_v59  }
0x174e   :  { %v9219_v49 = vpop.permute.xlu1 %9218 }
0x174f   :  { %v9252_v40 = vmul.f32 %v9219_v49, %v18387_v52  ;;  %v9214_v11 = vpop.permute.xlu0 %9213 }
0x1750   :  { %v9251_v18 = vmul.f32 %v9214_v11, %v18380_v6 }
0x1751   :  { %v9266_v56 = vsel %vm175_vm1, %v9252_v40, 0.0 }
0x1752   :  { %v9267_v9 = vrot.slane %v9266_v56, 4  ;;  %v9259_v32 = vsel %vm175_vm1, %v9251_v18, 0.0  ;;  %v9224_v3 = vpop.permute.xlu1 %9223 }
0x1753   :  { %v9260_v37 = vrot.slane %v9259_v32, 4  ;;  %v9253_v7 = vmul.f32 %v9224_v3, %v18397_v23  ;;  %v9229_v15 = vpop.permute.xlu0 %9228 }
0x1754   :  { %v9268_v14 = vadd.f32 %v9267_v9, %v9266_v56  ;;  %v9254_v55 = vmul.f32 %v9229_v15, %v18417_v20 }
0x1755   :  { %v9261_v19 = vadd.f32 %v9260_v37, %v9259_v32  ;;  %v9273_v35 = vsel %vm175_vm1, %v9253_v7, 0.0 }
0x1756   :  { %v9269_v52 = vrot.slane %v9268_v14, 2  ;;  %v9274_v41 = vrot.slane %v9273_v35, 4  ;;  %v9280_v6 = vsel %vm175_vm1, %v9254_v55, 0.0  ;;  %v9606_v29 = vpop.permute.xlu1 %9605 }
0x1757   :  { %v9262_v25 = vrot.slane %v9261_v19, 2  ;;  %v9281_v21 = vrot.slane %v9280_v6, 4  ;;  %v9643_v24 = vmul.f32 %v9606_v29, %v18378_v33  ;;  %v9611_v39 = vpop.permute.xlu0 %9610 }
0x1758   :  { %v9275_v49 = vadd.f32 %v9274_v41, %v9273_v35  ;;  %v9644_v23 = vmul.f32 %v9611_v39, %v18385_v12  ;;  %v9270_v40 = vadd.f32 %v9269_v52, %v9268_v14 }
0x1759   :  { %v9263_v11 = vadd.f32 %v9262_v25, %v9261_v19  ;;  %v9282_v18 = vadd.f32 %v9281_v21, %v9280_v6  ;;  %v9651_v20 = vsel %vm175_vm1, %v9643_v24, 0.0 }
0x175a   :  { %v9276_v56 = vrot.slane %v9275_v49, 2  ;;  %v9652_v9 = vrot.slane %v9651_v20, 4  ;;  %v9658_v32 = vsel %vm175_vm1, %v9644_v23, 0.0  ;;  %v9234_v3 = vpop.permute.xlu1 %9233  ;;  %v9271_v12 = vrot.slane %v9270_v40, 1 }
0x175b   :  { %v9283_v37 = vrot.slane %v9282_v18, 2  ;;  %v9659_v7 = vrot.slane %v9658_v32, 4  ;;  %v9255_v15 = vmul.f32 %v9234_v3, %v18407_v61  ;;  %v9616_v55 = vpop.permute.xlu0 %9615  ;;  %v9264_v14 = vrot.slane %v9263_v11, 1 }
0x175c   :  { %v9277_v33 = vadd.f32 %v9276_v56, %v9275_v49  ;;  %v9653_v29 = vadd.f32 %v9652_v9, %v9651_v20  ;;  %v9645_v35 = vmul.f32 %v9616_v55, %v18395_v17  ;;  %v9272_v49 = vadd.f32 %v9271_v12, %v9270_v40 }
0x175d   :  { %v9287_v19 = vsel %vm175_vm1, %v9255_v15, 0.0  ;;  %v9284_v52 = vadd.f32 %v9283_v37, %v9282_v18  ;;  %v9660_v41 = vadd.f32 %v9659_v7, %v9658_v32  ;;  %v9265_v20 = vadd.f32 %v9264_v14, %v9263_v11 }
0x175e   :  { %v9288_v6 = vrot.slane %v9287_v19, 4  ;;  %v9665_v25 = vsel %vm175_vm1, %v9645_v35, 0.0  ;;  %v9239_v21 = vpop.permute.xlu1 %9238  ;;  %v9654_v24 = vrot.slane %v9653_v29, 2  ;;  %v9278_v63 = vrot.slane %v9277_v33, 1 }
0x175f   :  { %v9666_v39 = vrot.slane %v9665_v25, 4  ;;  %v9621_v23 = vpop.permute.xlu0 %9620  ;;  %v9256_v61 = vmul.f32 %v9239_v21, %v18419_v50  ;;  %v9285_v9 = vrot.slane %v9284_v52, 1  ;;  %v9661_v3 = vrot.slane %v9660_v41, 2 }
0x1760   :  { %v9289_v56 = vadd.f32 %v9288_v6, %v9287_v19  ;;  %v9646_v17 = vmul.f32 %v9621_v23, %v18424_v1  ;;  %v9655_v37 = vadd.f32 %v9654_v24, %v9653_v29  ;;  %v9279_v35 = vadd.f32 %v9278_v63, %v9277_v33 }
0x1761   :  { %v9294_v18 = vsel %vm175_vm1, %v9256_v61, 0.0  ;;  %v9667_v7 = vadd.f32 %v9666_v39, %v9665_v25  ;;  %v9796_v50 = vsel %vm1066_vm2, %v9272_v49, %v9265_v20  ;;  %v9286_v1 = vadd.f32 %v9285_v9, %v9284_v52 }
0x1762   :  { %v9244_v32 = vpop.permute.xlu1 %9243  ;;  %v9295_v15 = vrot.slane %v9294_v18, 4  ;;  %v9672_v54 = vsel %vm175_vm1, %v9646_v17, 0.0  ;;  %v9290_v40 = vrot.slane %v9289_v56, 2  ;;  %v9662_v14 = vadd.f32 %v9661_v3, %v9660_v41 }
0x1763   :  { %v9626_v55 = vpop.permute.xlu0 %9625  ;;  %v9257_v47 = vmul.f32 %v9244_v32, %v18427_v53  ;;  %v9673_v12 = vrot.slane %v9672_v54, 4  ;;  %v9656_v25 = vrot.slane %v9655_v37, 1  ;;  %v9668_v21 = vrot.slane %v9667_v7, 2 }
0x1764   :  { %v9296_v11 = vadd.f32 %v9295_v15, %v9294_v18  ;;  %v9647_v6 = vmul.f32 %v9626_v55, %v18405_v58  ;;  %v9797_v39 = vsel %vm1068_vm3, %v9279_v35, %v9796_v50  ;;  %v9291_v49 = vadd.f32 %v9290_v40, %v9289_v56 }
0x1765   :  { %v9301_v19 = vsel %vm175_vm1, %v9257_v47, 0.0  ;;  %v9674_v63 = vadd.f32 %v9673_v12, %v9672_v54  ;;  %v9663_v47 = vrot.slane %v9662_v14, 1  ;;  %v9657_v54 = vadd.f32 %v9656_v25, %v9655_v37 }
0x1766   :  { %v9249_v29 = vpop.permute.xlu1 %9248  ;;  %v9297_v24 = vrot.slane %v9296_v11, 2  ;;  %v9302_v53 = vrot.slane %v9301_v19, 4  ;;  %v9679_v23 = vsel %vm175_vm1, %v9647_v6, 0.0  ;;  %v9669_v18 = vadd.f32 %v9668_v21, %v9667_v7 }
0x1767   :  { %v9631_v33 = vpop.permute.xlu0 %9630  ;;  %v9258_v61 = vmul.f32 %v9249_v29, %v18435_v16  ;;  %v9675_v41 = vrot.slane %v9674_v63, 2  ;;  %v9680_v20 = vrot.slane %v9679_v23, 4  ;;  %v9292_v40 = vrot.slane %v9291_v49, 1 }
0x1768   :  { %v9298_v52 = vadd.f32 %v9297_v24, %v9296_v11  ;;  %v9303_v17 = vadd.f32 %v9302_v53, %v9301_v19  ;;  %v9648_v9 = vmul.f32 %v9631_v33, %v18433_v60  ;;  %v9670_v7 = vrot.slane %v9669_v18, 1 }
0x1769   :  { %v9308_v58 = vsel %vm175_vm1, %v9258_v61, 0.0  ;;  %v9676_v32 = vadd.f32 %v9675_v41, %v9674_v63  ;;  %v9681_v15 = vadd.f32 %v9680_v20, %v9679_v23 }
0x176a   :  { %v9636_v3 = vpop.permute.xlu1 %9635  ;;  %v9304_v35 = vrot.slane %v9303_v17, 2  ;;  %v9309_v50 = vrot.slane %v9308_v58, 4  ;;  %v9686_v16 = vsel %vm175_vm1, %v9648_v9, 0.0  ;;  %v9299_v11 = vrot.slane %v9298_v52, 1 }
0x176b   :  { %v9641_v55 = vpop.permute.xlu0 %9640  ;;  %v9649_v56 = vmul.f32 %v9636_v3, %v18443_v22  ;;  %v9682_v12 = vrot.slane %v9681_v15, 2  ;;  %v9687_v19 = vrot.slane %v9686_v16, 4  ;;  %v9677_v63 = vrot.slane %v9676_v32, 1 }
0x176c   :  { %v9305_v6 = vadd.f32 %v9304_v35, %v9303_v17  ;;  %v9310_v29 = vadd.f32 %v9309_v50, %v9308_v58  ;;  %v9650_v37 = vmul.f32 %v9641_v55, %v18441_v10  ;;  %v9293_v22 = vadd.f32 %v9292_v40, %v9291_v49 }
0x176d   :  { %v9693_v60 = vsel %vm175_vm1, %v9649_v56, 0.0  ;;  %v9683_v25 = vadd.f32 %v9682_v12, %v9681_v15  ;;  %v9688_v21 = vadd.f32 %v9687_v19, %v9686_v16  ;;  %v9664_v9 = vadd.f32 %v9663_v47, %v9662_v14 }
0x176e   :  { %v9694_v24 = vrot.slane %v9693_v60, 4  ;;  %v9306_v33 = vrot.slane %v9305_v6, 1  ;;  %v9311_v53 = vrot.slane %v9310_v29, 2  ;;  %v9700_v23 = vsel %vm175_vm1, %v9650_v37, 0.0 }
0x176f   :  { %v9684_v61 = vrot.slane %v9683_v25, 1  ;;  %v9689_v41 = vrot.slane %v9688_v21, 2  ;;  %v9300_v17 = vadd.f32 %v9299_v11, %v9298_v52  ;;  %v9701_v3 = vrot.slane %v9700_v23, 4 }
0x1770   :  { %v9695_v20 = vadd.f32 %v9694_v24, %v9693_v60  ;;  %v9312_v58 = vadd.f32 %v9311_v53, %v9310_v29  ;;  %v9671_v35 = vadd.f32 %v9670_v7, %v9669_v18  ;;  %v9307_v50 = vadd.f32 %v9306_v33, %v9305_v6  ;;  %v9984_v33 = vld [vmem:[#allocation14 + $0x8] sm:$0xff] }
0x1771   :  { %v9690_v10 = vadd.f32 %v9689_v41, %v9688_v21  ;;  %v9798_v15 = vsel %vm1070_vm4, %v9286_v1, %v9797_v39  ;;  %v9678_v16 = vadd.f32 %v9677_v63, %v9676_v32  ;;  %v9702_v12 = vadd.f32 %v9701_v3, %v9700_v23  ;;  %v9986_v39 = vld [vmem:[#allocation14 + $0x18] sm:$0xff]  ;;  %v10300_v3 = vld [vmem:[#allocation14 + $0x50] sm:$0xff] }
0x1772   :  { %v9696_v55 = vrot.slane %v9695_v20, 2  ;;  %v9313_v56 = vrot.slane %v9312_v58, 1  ;;  %v9799_v19 = vsel %vm1072_vm5, %v9293_v22, %v9798_v15  ;;  %v9685_v37 = vadd.f32 %v9684_v61, %v9683_v25  ;;  %v9983_v22 = vld [vmem:[#allocation14] sm:$0xff]  ;;  %v10146_v41 = vld [vmem:[#allocation14 + $0x38] sm:$0xff]  ;;  %v10449_v15 = vld [vmem:[#allocation14 + $0x68] sm:$0xff] }
0x1773   :  { %v9691_v49 = vrot.slane %v9690_v10, 1  ;;  %v9888_v60 = vsel %vm1066_vm2, %v9664_v9, %v9657_v54  ;;  %v9703_v52 = vrot.slane %v9702_v12, 2  ;;  %v9800_v47 = vsel %vm1074_vm6, %v9300_v17, %v9799_v19  ;;  %v9985_v54 = vld [vmem:[#allocation14 + $0x10] sm:$0xff]  ;;  %v10144_v9 = vld [vmem:[#allocation14 + $0x28] sm:$0xff]  ;;  %v10143_v17 = vld [vmem:[#allocation14 + $0x20] sm:$0xff] }
0x1774   :  { %v9697_v40 = vadd.f32 %v9696_v55, %v9695_v20  ;;  %v9314_v14 = vadd.f32 %v9313_v56, %v9312_v58  ;;  %v9889_v18 = vsel %vm1068_vm3, %v9671_v35, %v9888_v60  ;;  %v9801_v1 = vsel %vm1076_vm7, %v9307_v50, %v9800_v47  ;;  %v10145_v20 = vld [vmem:[#allocation14 + $0x30] sm:$0xff]  ;;  %v10301_v58 = vld [vmem:[#allocation14 + $0x58] sm:$0xff]  ;;  %v10299_v35 = vld [vmem:[#allocation14 + $0x48] sm:$0xff] }
0x1775   :  { %v9692_v11 = vadd.f32 %v9691_v49, %v9690_v10  ;;  %v9890_v32 = vsel %vm1070_vm4, %v9678_v16, %v9889_v18  ;;  %v9704_v29 = vadd.f32 %v9703_v52, %v9702_v12  ;;  %v10298_v50 = vld [vmem:[#allocation14 + $0x40] sm:$0xff]  ;;  %v10451_v10 = vld [vmem:[#allocation14 + $0x78] sm:$0xff]  ;;  %v10450_v55 = vld [vmem:[#allocation14 + $0x70] sm:$0xff] }
0x1776   :  { %v9698_v6 = vrot.slane %v9697_v40, 1  ;;  %v9802_v7 = vsel %vm1078_vm8, %v9314_v14, %v9801_v1  ;;  %v9891_v25 = vsel %vm1072_vm5, %v9685_v37, %v9890_v32  ;;  %v10448_v16 = vld [vmem:[#allocation14 + $0x60] sm:$0xff]  ;;  %v10857_v56 = vld [vmem:[#allocation10 + $0x18] sm:$0xff]  ;;  %v10856_v12 = vld [vmem:[#allocation10 + $0x10] sm:$0xff] }
0x1777   :  { %14897 = vmatmul.mubr.msk.f32.vlgmr.msra.gmra.mxu0 %vm175_vm1, %v9802_v7  ;;  %v9705_v24 = vrot.slane %v9704_v29, 1  ;;  %v9892_v63 = vsel %vm1074_vm6, %v9692_v11, %v9891_v25  ;;  %v10855_v19 = vld [vmem:[#allocation10 + $0x8] sm:$0xff]  ;;  %v10854_v37 = vld [vmem:[#allocation10] sm:$0xff]  ;;  %v11015_v49 = vld [vmem:[#allocation10 + $0x38] sm:$0xff] }
0x1778   :  { %v9699_v21 = vadd.f32 %v9698_v6, %v9697_v40  ;;  %14911 = vmatpush3.msra.mxu0 %v9986_v39  ;;  %14918 = vmatprep.mubr.msk.f32.mxu0 %vm16047_vm0, %v19690_v34  ;;  %v11014_v40 = vld [vmem:[#allocation10 + $0x30] sm:$0xff]  ;;  %v11013_v60 = vld [vmem:[#allocation10 + $0x28] sm:$0xff]  ;;  %v11012_v14 = vld [vmem:[#allocation10 + $0x20] sm:$0xff] }
0x1779   :  { %14912 = vmatprep.subr.mxu0 %v19690_v34  ;;  %v9706_v23 = vadd.f32 %v9705_v24, %v9704_v29  ;;  %v11170_v52 = vld [vmem:[#allocation10 + $0x58] sm:$0xff]  ;;  %v11169_v47 = vld [vmem:[#allocation10 + $0x50] sm:$0xff]  ;;  %v11168_v18 = vld [vmem:[#allocation10 + $0x48] sm:$0xff] }
0x177a   :  { %v9893_v53 = vsel %vm1076_vm7, %v9699_v21, %v9892_v63  ;;  %14913 = vmatpush3.msra.mxu0 %v9985_v54  ;;  %v11167_v11 = vld [vmem:[#allocation10 + $0x40] sm:$0xff]  ;;  %v11320_v6 = vld [vmem:[#allocation10 + $0x78] sm:$0xff]  ;;  %v11319_v1 = vld [vmem:[#allocation10 + $0x70] sm:$0xff] }
0x177b   :  { %14914 = vmatprep.subr.mxu0 %v19690_v34  ;;  %v9894_v61 = vsel %vm1078_vm8, %v9706_v23, %v9893_v53  ;;  %v11318_v39 = vld [vmem:[#allocation10 + $0x68] sm:$0xff]  ;;  %v11317_v32 = vld [vmem:[#allocation10 + $0x60] sm:$0xff]  ;;  %v15772_v25 = vld [vmem:[%s19635_s7] ss:$0 sm:$0xff] }
0x177c   :  { %14915 = vmatpush3.msra.mxu0 %v9984_v33  ;;  %14908 = vmatmul.mubr.msk.f32.vlgmr.msra.gmra.mxu1 %vm175_vm1, %v9894_v61  ;;  %v19729_v21 = vld [vmem:[#allocation35_spill] sm:$0xff] }
0x177d   :  { %14916 = vmatprep.subr.mxu0 %v19690_v34  ;;  %14929 = vmatprep.mubr.msk.f32.mxu1 %vm16047_vm0, %v19690_v34  ;;  %v9783_v54 = vadd.f32 %v15772_v25, %v19729_v21  ;;  %v10142_v25 = vld [vmem:[#allocation13 + $0x38] sm:$0xff]  ;;  %v10295_v21 = vld [vmem:[#allocation13 + $0x48] sm:$0xff] }
0x177e   :  { %14917 = vmatpush3.msra.mxu0 %v9983_v22 }
0x177f   :  { %14919 = vmatmul.mubr.msk.f32.vlgmr.msra.gmra.mxu0 %vm175_vm1, %v18305_v62  ;;  %14932 = vmatprep.subr.mxu0 %v19690_v34 }
0x1780   :  { %14933 = vmatpush3.msra.mxu0 %v10146_v41  ;;  %14940 = vmatprep.mubr.msk.f32.mxu0 %vm16047_vm0, %v19690_v34 }
0x1781   :  { %14934 = vmatprep.subr.mxu0 %v19690_v34 }
0x1782   :  { %14935 = vmatpush3.msra.mxu0 %v10145_v20 }
0x1783   :  { %14936 = vmatprep.subr.mxu0 %v19690_v34 }
0x1784   :  { %14937 = vmatpush3.msra.mxu0 %v10144_v9 }
0x1785   :  { %14938 = vmatprep.subr.mxu0 %v19690_v34 }
0x1786   :  { %14939 = vmatpush3.msra.mxu0 %v10143_v17  ;;  %v10605_v17 = vsub.f32 1.0, %v18640_v0  ;;  %v10610_v0 = vsub.f32 1.0, %v18686_v44 }
0x1787   :  { %14941 = vmatmul.mubr.msk.f32.vlgmr.msra.gmra.mxu0 %vm175_vm1, %v18305_v62  ;;  %14954 = vmatprep.subr.mxu0 %v19690_v34 }
0x1788   :  { %14955 = vmatpush3.msra.mxu0 %v10301_v58  ;;  %14962 = vmatprep.mubr.msk.f32.mxu0 %vm16047_vm0, %v19690_v34 }
0x1789   :  { %14956 = vmatprep.subr.mxu0 %v19690_v34 }
0x178a   :  { %14957 = vmatpush3.msra.mxu0 %v10300_v3  ;;  %v10606_v3 = vsub.f32 1.0, %v18650_v4 }
0x178b   :  { %14958 = vmatprep.subr.mxu0 %v19690_v34 }
0x178c   :  { %14959 = vmatpush3.msra.mxu0 %v10299_v35 }
0x178d   :  { %14960 = vmatprep.subr.mxu0 %v19690_v34 }
0x178e   :  { %14961 = vmatpush3.msra.mxu0 %v10298_v50  ;;  %v10766_v50 = vsub.f32 1.0, %v18660_v36  ;;  %v10772_v36 = vsub.f32 1.0, %v18702_v43  ;;  %v10604_v43 = vsub.f32 1.0, %v18644_v57  ;;  %v10768_v57 = vsub.f32 1.0, %v18673_v13  ;;  %v10141_v13 = vld [vmem:[#allocation13 + $0x30] sm:$0xff] }
0x178f   :  { %14963 = vmatmul.mubr.msk.f32.vlgmr.msra.gmra.mxu0 %vm175_vm1, %v18305_v62  ;;  %14976 = vmatprep.subr.mxu0 %v19690_v34 }
0x1790   :  { %14977 = vmatpush3.msra.mxu0 %v10451_v10  ;;  %14984 = vmatprep.mubr.msk.f32.mxu0 %vm16047_vm0, %v19690_v34 }
0x1791   :  { %14978 = vmatprep.subr.mxu0 %v19690_v34 }
0x1792   :  { %14979 = vmatpush3.msra.mxu0 %v10450_v55  ;;  %v10608_v55 = vsub.f32 1.0, %v18670_v42 }
0x1793   :  { %14980 = vmatprep.subr.mxu0 %v19690_v34 }
0x1794   :  { %14981 = vmatpush3.msra.mxu0 %v10449_v15 }
0x1795   :  { %14982 = vmatprep.subr.mxu0 %v19690_v34 }
0x1796   :  { %14983 = vmatpush3.msra.mxu0 %v10448_v16  ;;  %v10609_v16 = vsub.f32 1.0, %v18678_v31 }
0x1797   :  { %14985 = vmatmul.mubr.msk.f32.vlgmr.msra.gmra.mxu0 %vm175_vm1, %v18305_v62  ;;  %14998 = vmatprep.subr.mxu0 %v19690_v34  ;;  %v19728_v62 = vld [vmem:[#allocation34_spill] sm:$0xff] }
0x1798   :  { %14999 = vmatpush3.msra.mxu0 %v10857_v56  ;;  %15006 = vmatprep.mubr.msk.f32.mxu0 %vm16047_vm0, %v19690_v34 }
0x1799   :  { %15000 = vmatprep.subr.mxu0 %v19690_v34 }
0x179a   :  { %15001 = vmatpush3.msra.mxu0 %v10856_v12  ;;  %v10611_v12 = vsub.f32 1.0, %v18694_v48  ;;  %v9982_v48 = vld [vmem:[#allocation13 + $0x18] sm:$0xff] }
0x179b   :  { %15002 = vmatprep.subr.mxu0 %v19690_v34  ;;  %14922 = vmatpush3.msra.mxu1 %v9982_v48 }
0x179c   :  { %15003 = vmatpush3.msra.mxu0 %v10855_v19  ;;  %14923 = vmatprep.subr.mxu1 %v19690_v34 }
0x179d   :  { %15004 = vmatprep.subr.mxu0 %v19690_v34 }
0x179e   :  { %15005 = vmatpush3.msra.mxu0 %v10854_v37 }
0x179f   :  { %15007 = vmatmul.mubr.msk.f32.vlgmr.msra.gmra.mxu0 %vm175_vm1, %v19728_v62  ;;  %15020 = vmatprep.subr.mxu0 %v19690_v34 }
0x17a0   :  { %15021 = vmatpush3.msra.mxu0 %v11015_v49  ;;  %15028 = vmatprep.mubr.msk.f32.mxu0 %vm16047_vm0, %v19690_v34 }
0x17a1   :  { %15022 = vmatprep.subr.mxu0 %v19690_v34 }
0x17a2   :  { %15023 = vmatpush3.msra.mxu0 %v11014_v40 }
0x17a3   :  { %15024 = vmatprep.subr.mxu0 %v19690_v34 }
0x17a4   :  { %15025 = vmatpush3.msra.mxu0 %v11013_v60 }
0x17a5   :  { %15026 = vmatprep.subr.mxu0 %v19690_v34 }
0x17a6   :  { %15027 = vmatpush3.msra.mxu0 %v11012_v14 }
0x17a7   :  { %15029 = vmatmul.mubr.msk.f32.vlgmr.msra.gmra.mxu0 %vm175_vm1, %v19728_v62  ;;  %15042 = vmatprep.subr.mxu0 %v19690_v34 }
0x17a8   :  { %15043 = vmatpush3.msra.mxu0 %v11170_v52  ;;  %15050 = vmatprep.mubr.msk.f32.mxu0 %vm16047_vm0, %v19690_v34  ;;  %v9981_v52 = vld [vmem:[#allocation13 + $0x10] sm:$0xff] }
0x17a9   :  { %15044 = vmatprep.subr.mxu0 %v19690_v34  ;;  %14924 = vmatpush3.msra.mxu1 %v9981_v52 }
0x17aa   :  { %15045 = vmatpush3.msra.mxu0 %v11169_v47  ;;  %14925 = vmatprep.subr.mxu1 %v19690_v34  ;;  %v9980_v47 = vld [vmem:[#allocation13 + $0x8] sm:$0xff] }
0x17ab   :  { %15046 = vmatprep.subr.mxu0 %v19690_v34  ;;  %14926 = vmatpush3.msra.mxu1 %v9980_v47 }
0x17ac   :  { %15047 = vmatpush3.msra.mxu0 %v11168_v18  ;;  %v9979_v18 = vld [vmem:[#allocation13] sm:$0xff]  ;;  %14927 = vmatprep.subr.mxu1 %v19690_v34 }
0x17ad   :  { %15048 = vmatprep.subr.mxu0 %v19690_v34  ;;  %14928 = vmatpush3.msra.mxu1 %v9979_v18 }
0x17ae   :  { %15049 = vmatpush3.msra.mxu0 %v11167_v11  ;;  %v10607_v11 = vsub.f32 1.0, %v18654_v51  ;;  %14943 = vmatprep.subr.mxu1 %v19690_v34  ;;  %v10773_v51 = vsub.f32 1.0, %v18705_v59  ;;  %v10296_v59 = vld [vmem:[#allocation13 + $0x50] sm:$0xff] }
0x17af   :  { %15051 = vmatmul.mubr.msk.f32.vlgmr.msra.gmra.mxu0 %vm175_vm1, %v19728_v62  ;;  %15064 = vmatprep.subr.mxu0 %v19690_v34 }
0x17b0   :  { %15065 = vmatpush3.msra.mxu0 %v11320_v6  ;;  %15072 = vmatprep.mubr.msk.f32.mxu0 %vm16047_vm0, %v19690_v34  ;;  %v10767_v6 = vsub.f32 1.0, %v18664_v38 }
0x17b1   :  { %15066 = vmatprep.subr.mxu0 %v19690_v34 }
0x17b2   :  { %15067 = vmatpush3.msra.mxu0 %v11319_v1  ;;  %v10769_v1 = vsub.f32 1.0, %v18681_v45  ;;  %v10140_v45 = vld [vmem:[#allocation13 + $0x28] sm:$0xff] }
0x17b3   :  { %15068 = vmatprep.subr.mxu0 %v19690_v34 }
0x17b4   :  { %15069 = vmatpush3.msra.mxu0 %v11318_v39  ;;  %v10770_v39 = vsub.f32 1.0, %v18689_v5  ;;  %v10139_v5 = vld [vmem:[#allocation13 + $0x20] sm:$0xff] }
0x17b5   :  { %15070 = vmatprep.subr.mxu0 %v19690_v34 }
0x17b6   :  { %15071 = vmatpush3.msra.mxu0 %v11317_v32  ;;  %v10771_v32 = vsub.f32 1.0, %v18697_v26  ;;  %v10297_v26 = vld [vmem:[#allocation13 + $0x58] sm:$0xff] }
0x17b7   :  { %15073 = vmatmul.mubr.msk.f32.vlgmr.msra.gmra.mxu0 %vm175_vm1, %v19728_v62  ;;  %15086 = vmatprep.subr.mxu0 %v19690_v34 }
0x17b8   :  { %15094 = vmatprep.mubr.msk.f32.mxu0 %vm16047_vm0, %v19690_v34 }
0x1837   :  { %v9871_v29 = vpop.f32.mrf.mxu0 }
0x1838   :  { %v9875_v24 = vadd.f32 %v9871_v29, %v9783_v54  ;;  %v10294_v54 = vld [vmem:[#allocation13 + $0x40] sm:$0xff] }
0x1839   :  { %v14898_v7 = vpop.f32.mrf.mxu0 }
0x183c   :  { %v9963_v63 = vpop.f32.mrf.mxu1 }
0x183d   :  { %v9967_v33 = vadd.f32 %v9963_v63, %v9875_v24  ;;  %v10447_v24 = vld [vmem:[#allocation13 + $0x78] sm:$0xff]  ;;  %v10446_v63 = vld [vmem:[#allocation13 + $0x70] sm:$0xff] }
0x183e   :  { %v14909_v53 = vpop.f32.mrf.mxu1 }
0x183f   :  { %v18837_v23 = vpop.f32.mrf.mxu0  ;;  %v9968_v22 = vsel %vm175_vm1, %v9967_v33, -inf  ;;  %v10444_v53 = vld [vmem:[#allocation13 + $0x60] sm:$0xff] }
0x1840   :  { %9969 = vmax.xlane.f32.xlu1 %v9968_v22  ;;  %v10853_v22 = vld [vmem:[#allocation8 + $0x18] sm:$0xff] }
0x1841   :  { %v14920_v61 = vpop.f32.mrf.mxu0 }
0x1842   :  { %v10852_v61 = vld [vmem:[#allocation8 + $0x10] sm:$0xff] }
0x1847   :  { %v18840_v41 = vpop.f32.mrf.mxu0 }
0x1849   :  { %v14942_v20 = vpop.f32.mrf.mxu0 }
0x184a   :  { %v10851_v20 = vld [vmem:[#allocation8 + $0x8] sm:$0xff] }
0x184f   :  { %v18842_v9 = vpop.f32.mrf.mxu0 }
0x1851   :  { %v14964_v58 = vpop.f32.mrf.mxu0  ;;  %10717 = vperm.xlu1 %15225, %v10605_v17   ;;  %v10850_v17 = vld [vmem:[#allocation8] sm:$0xff] }
0x1852   :  { %v10849_v58 = vld [vmem:[#allocation2 + $0x20] sm:$0xff] }
0x1855   :  { %10722 = vperm.xlu1 %15225, %v10606_v3   ;;  %v11011_v3 = vld [vmem:[#allocation8 + $0x38] sm:$0xff] }
0x1857   :  { %v18846_v35 = vpop.f32.mrf.mxu0 }
0x1859   :  { %v14986_v10 = vpop.f32.mrf.mxu0  ;;  %10792 = vperm.xlu1 %15225, %v10766_v50   ;;  %v11010_v50 = vld [vmem:[#allocation8 + $0x30] sm:$0xff] }
0x185a   :  { %v11009_v10 = vld [vmem:[#allocation8 + $0x28] sm:$0xff] }
0x185d   :  { %10732 = vperm.xlu1 %15225, %v10608_v55   ;;  %v11008_v55 = vld [vmem:[#allocation8 + $0x20] sm:$0xff] }
0x185f   :  { %v18850_v15 = vpop.f32.mrf.mxu0 }
0x1861   :  { %v15008_v56 = vpop.f32.mrf.mxu0  ;;  %10737 = vperm.xlu1 %15225, %v10609_v16   ;;  %v11166_v16 = vld [vmem:[#allocation8 + $0x58] sm:$0xff] }
0x1862   :  { %v11165_v56 = vld [vmem:[#allocation8 + $0x50] sm:$0xff] }
0x1865   :  { %10742 = vperm.xlu1 %15225, %v10610_v0   ;;  %v11164_v0 = vld [vmem:[#allocation8 + $0x48] sm:$0xff] }
0x1867   :  { %v18854_v4 = vpop.f32.mrf.mxu0 }
0x1869   :  { %v15030_v19 = vpop.f32.mrf.mxu0  ;;  %10747 = vperm.xlu1 %15225, %v10611_v12   ;;  %v11163_v12 = vld [vmem:[#allocation8 + $0x40] sm:$0xff] }
0x186a   :  { %v11316_v19 = vld [vmem:[#allocation8 + $0x78] sm:$0xff] }
0x186d   :  { %10822 = vperm.xlu1 %15225, %v10772_v36   ;;  %v11315_v36 = vld [vmem:[#allocation8 + $0x70] sm:$0xff] }
0x186f   :  { %v18858_v42 = vpop.f32.mrf.mxu0 }
0x1871   :  { %v15052_v37 = vpop.f32.mrf.mxu0 }
0x1872   :  { %v11314_v37 = vld [vmem:[#allocation8 + $0x68] sm:$0xff] }
0x1877   :  { %v18860_v49 = vpop.f32.mrf.mxu0 }
0x1879   :  { %v15074_v31 = vpop.f32.mrf.mxu0 }
0x187a   :  { %v11313_v31 = vld [vmem:[#allocation8 + $0x60] sm:$0xff] }
0x18c9   :  { %v9970_v62 = vpop.xlane.xlu1 %9969 }
0x18ca   :  { %v9971_v40 = vsub.f32 %v9967_v33, %v9970_v62  ;;  %v10445_v33 = vld [vmem:[#allocation13 + $0x68] sm:$0xff]  ;;  %v12350_v62 = vld [vmem:[#allocation11 + $0x18] sm:$0xff] }
0x18cb   :  { %15087 = vmatpush3.msra.mxu0 %v12350_v62 }
0x18cc   :  { %v9972_v60 = vmul.f32 1.442695, %v9971_v40  ;;  %v12349_v40 = vld [vmem:[#allocation11 + $0x10] sm:$0xff]  ;;  %15088 = vmatprep.subr.mxu0 %v19690_v34 }
0x18cd   :  { %15089 = vmatpush3.msra.mxu0 %v12349_v40 }
0x18ce   :  { %15606 = vpow2.f32 %v9972_v60  ;;  %v12348_v60 = vld [vmem:[#allocation11 + $0x8] sm:$0xff]  ;;  %15090 = vmatprep.subr.mxu0 %v19690_v34 }
0x18cf   :  { %15091 = vmatpush3.msra.mxu0 %v12348_v60 }
0x18d0   :  { %15092 = vmatprep.subr.mxu0 %v19690_v34 }
0x18db   :  { %v15607_v44 = vpop.eup %15606 }
0x18dc   :  { %v9974_v14 = vsel %vm175_vm1, %v15607_v44, 0.0 }
0x18dd   :  { %9975 = vadd.xlane.f32.xlu0 %v9974_v14 }
0x18f3   :  { %10712 = vperm.xlu0 %15224, %v10604_v43   ;;  %v15773_v43 = vld [vmem:[%s19638_s10] ss:$0 sm:$0xff] }
0x18f7   :  { %10727 = vperm.xlu0 %15224, %v10607_v11  }
0x18fb   :  { %10797 = vperm.xlu0 %15224, %v10767_v6  }
0x18ff   :  { %10802 = vperm.xlu0 %15224, %v10768_v57  }
0x1903   :  { %10807 = vperm.xlu0 %15224, %v10769_v1   ;;  %v15774_v1 = vld [vmem:[%s19638_s10 + $0x1] ss:$0 sm:$0xff] }
0x1907   :  { %10812 = vperm.xlu0 %15224, %v10770_v39  }
0x190b   :  { %10817 = vperm.xlu0 %15224, %v10771_v32  }
0x190f   :  { %10827 = vperm.xlu0 %15224, %v10773_v51  }
0x1966   :  { %v9976_v29 = vpop.xlane.xlu0 %9975 }
0x1967   :  { %15608 = vrcp.f32 %v9976_v29 }
0x1974   :  { %v15609_v7 = vpop.eup %15608 }
0x1975   :  { %v9978_v38 = vmul.f32 %v15609_v7, %v15607_v44  ;;  %v12347_v44 = vld [vmem:[#allocation11] sm:$0xff] }
0x1976   :  { %15093 = vmatpush3.msra.mxu0 %v12347_v44 }
0x1977   :  { %14930 = vmatmul.mubr.msk.f32.vlgmr.msra.gmra.mxu1 %vm175_vm1, %v9978_v38  ;;  %15108 = vmatprep.subr.mxu0 %v19690_v34 }
0x1978   :  { %14944 = vmatpush3.msra.mxu1 %v10142_v25  ;;  %14951 = vmatprep.mubr.msk.f32.mxu1 %vm16047_vm0, %v19690_v34 }
0x1979   :  { %14945 = vmatprep.subr.mxu1 %v19690_v34 }
0x197a   :  { %14946 = vmatpush3.msra.mxu1 %v10141_v13 }
0x197b   :  { %14947 = vmatprep.subr.mxu1 %v19690_v34 }
0x197c   :  { %14948 = vmatpush3.msra.mxu1 %v10140_v45 }
0x197d   :  { %14949 = vmatprep.subr.mxu1 %v19690_v34 }
0x197e   :  { %14950 = vmatpush3.msra.mxu1 %v10139_v5 }
0x197f   :  { %14952 = vmatmul.mubr.msk.f32.vlgmr.msra.gmra.mxu1 %vm175_vm1, %v9978_v38  ;;  %14965 = vmatprep.subr.mxu1 %v19690_v34 }
0x1980   :  { %14966 = vmatpush3.msra.mxu1 %v10297_v26  ;;  %14973 = vmatprep.mubr.msk.f32.mxu1 %vm16047_vm0, %v19690_v34  ;;  %v15776_v26 = vld [vmem:[%s19638_s10 + $0x3] ss:$0 sm:$0xff] }
0x1981   :  { %14967 = vmatprep.subr.mxu1 %v19690_v34 }
0x1982   :  { %14968 = vmatpush3.msra.mxu1 %v10296_v59 }
0x1983   :  { %14969 = vmatprep.subr.mxu1 %v19690_v34 }
0x1984   :  { %14970 = vmatpush3.msra.mxu1 %v10295_v21 }
0x1985   :  { %14971 = vmatprep.subr.mxu1 %v19690_v34 }
0x1986   :  { %14972 = vmatpush3.msra.mxu1 %v10294_v54 }
0x1987   :  { %14974 = vmatmul.mubr.msk.f32.vlgmr.msra.gmra.mxu1 %vm175_vm1, %v9978_v38  ;;  %14987 = vmatprep.subr.mxu1 %v19690_v34 }
0x1988   :  { %14988 = vmatpush3.msra.mxu1 %v10447_v24  ;;  %14995 = vmatprep.mubr.msk.f32.mxu1 %vm16047_vm0, %v19690_v34 }
0x1989   :  { %14989 = vmatprep.subr.mxu1 %v19690_v34 }
0x198a   :  { %14990 = vmatpush3.msra.mxu1 %v10446_v63 }
0x198b   :  { %14991 = vmatprep.subr.mxu1 %v19690_v34 }
0x198c   :  { %14992 = vmatpush3.msra.mxu1 %v10445_v33  ;;  %v15777_v33 = vld [vmem:[%s19633_s5] ss:$0 sm:$0xff] }
0x198d   :  { %14993 = vmatprep.subr.mxu1 %v19690_v34 }
0x198e   :  { %14994 = vmatpush3.msra.mxu1 %v10444_v53 }
0x198f   :  { %14996 = vmatmul.mubr.msk.f32.vlgmr.msra.gmra.mxu1 %vm175_vm1, %v9978_v38  ;;  %15009 = vmatprep.subr.mxu1 %v19690_v34 }
0x1990   :  { %15010 = vmatpush3.msra.mxu1 %v10853_v22  ;;  %15017 = vmatprep.mubr.msk.f32.mxu1 %vm16047_vm0, %v19690_v34 }
0x1991   :  { %15011 = vmatprep.subr.mxu1 %v19690_v34 }
0x1992   :  { %15012 = vmatpush3.msra.mxu1 %v10852_v61  ;;  %v18951_v61 = vpop.permute.xlu0 %10712 }
0x1993   :  { %15013 = vmatprep.subr.mxu1 %v19690_v34 }
0x1994   :  { %15014 = vmatpush3.msra.mxu1 %v10851_v20 }
0x1995   :  { %15015 = vmatprep.subr.mxu1 %v19690_v34 }
0x1996   :  { %15016 = vmatpush3.msra.mxu1 %v10850_v17  ;;  %v18953_v17 = vpop.permute.xlu1 %10717 }
0x1997   :  { %15018 = vmatmul.mubr.msk.f32.vlgmr.msra.gmra.mxu1 %vm175_vm1, %v10849_v58  ;;  %15031 = vmatprep.subr.mxu1 %v19690_v34 }
0x1998   :  { %15032 = vmatpush3.msra.mxu1 %v11011_v3  ;;  %15039 = vmatprep.mubr.msk.f32.mxu1 %vm16047_vm0, %v19690_v34 }
0x1999   :  { %15033 = vmatprep.subr.mxu1 %v19690_v34 }
0x199a   :  { %15034 = vmatpush3.msra.mxu1 %v11010_v50  ;;  %v18962_v62 = vpop.permute.xlu1 %10722 }
0x199b   :  { %15035 = vmatprep.subr.mxu1 %v19690_v34 }
0x199c   :  { %15036 = vmatpush3.msra.mxu1 %v11009_v10 }
0x199d   :  { %15037 = vmatprep.subr.mxu1 %v19690_v34 }
0x199e   :  { %15038 = vmatpush3.msra.mxu1 %v11008_v55 }
0x199f   :  { %15040 = vmatmul.mubr.msk.f32.vlgmr.msra.gmra.mxu1 %vm175_vm1, %v10849_v58  ;;  %15053 = vmatprep.subr.mxu1 %v19690_v34 }
0x19a0   :  { %15054 = vmatpush3.msra.mxu1 %v11166_v16  ;;  %15061 = vmatprep.mubr.msk.f32.mxu1 %vm16047_vm0, %v19690_v34 }
0x19a1   :  { %15055 = vmatprep.subr.mxu1 %v19690_v34 }
0x19a2   :  { %15056 = vmatpush3.msra.mxu1 %v11165_v56 }
0x19a3   :  { %15057 = vmatprep.subr.mxu1 %v19690_v34 }
0x19a4   :  { %15058 = vmatpush3.msra.mxu1 %v11164_v0  ;;  %v18959_v0 = vpop.permute.xlu0 %10727 }
0x19a5   :  { %15059 = vmatprep.subr.mxu1 %v19690_v34 }
0x19a6   :  { %15060 = vmatpush3.msra.mxu1 %v11163_v12  ;;  %v19730_v12 = vld [vmem:[#allocation29_spill] sm:$0xff] }
0x19a7   :  { %15062 = vmatmul.mubr.msk.f32.vlgmr.msra.gmra.mxu1 %vm175_vm1, %v10849_v58  ;;  %15075 = vmatprep.subr.mxu1 %v19690_v34 }
0x19a8   :  { %15076 = vmatpush3.msra.mxu1 %v11316_v19  ;;  %15083 = vmatprep.mubr.msk.f32.mxu1 %vm16047_vm0, %v19690_v34 }
0x19a9   :  { %15077 = vmatprep.subr.mxu1 %v19690_v34 }
0x19aa   :  { %15078 = vmatpush3.msra.mxu1 %v11315_v36 }
0x19ab   :  { %15079 = vmatprep.subr.mxu1 %v19690_v34 }
0x19ac   :  { %15080 = vmatpush3.msra.mxu1 %v11314_v37 }
0x19ad   :  { %15081 = vmatprep.subr.mxu1 %v19690_v34 }
0x19ae   :  { %15082 = vmatpush3.msra.mxu1 %v11313_v31 }
0x19af   :  { %15084 = vmatmul.mubr.msk.f32.vlgmr.msra.gmra.mxu1 %vm175_vm1, %v10849_v58  ;;  %15097 = vmatprep.subr.mxu1 %v19690_v34 }
0x19b0   :  { %15105 = vmatprep.mubr.msk.f32.mxu1 %vm16047_vm0, %v19690_v34 }
0x1a37   :  { %v10128_v14 = vpop.f32.mrf.mxu1 }
0x1a38   :  { %v10129_v48 = vadd.f32 %v10128_v14, %v18837_v23  ;;  %v18968_v14 = vpop.permute.xlu0 %10797 }
0x1a39   :  { %v14931_v52 = vpop.f32.mrf.mxu1 }
0x1a3a   :  { %v10132_v47 = vadd.f32 %v15773_v43, %v10129_v48  ;;  %v15779_v52 = vld [vmem:[%s19633_s5 + $0x2] ss:$0 sm:$0xff] }
0x1a3c   :  { %v13653_v18 = vmul.f32 -1.442695, %v10132_v47  ;;  %v10793_v47 = vpop.permute.xlu1 %10792 }
0x1a3e   :  { %15610 = vpow2.f32 %v13653_v18 }
0x1a3f   :  { %v10283_v11 = vpop.f32.mrf.mxu1 }
0x1a40   :  { %v10284_v6 = vadd.f32 %v10283_v11, %v18840_v41  ;;  %v15775_v41 = vld [vmem:[%s19638_s10 + $0x2] ss:$0 sm:$0xff] }
0x1a41   :  { %v14953_v57 = vpop.f32.mrf.mxu1 }
0x1a42   :  { %v10287_v39 = vadd.f32 %v15774_v1, %v10284_v6  ;;  %v18973_v6 = vpop.permute.xlu0 %10802 }
0x1a44   :  { %v13656_v32 = vmul.f32 -1.442695, %v10287_v39  ;;  %v15780_v39 = vld [vmem:[%s19633_s5 + $0x3] ss:$0 sm:$0xff] }
0x1a46   :  { %15612 = vpow2.f32 %v13656_v32 }
0x1a47   :  { %v10438_v23 = vpop.f32.mrf.mxu1 }
0x1a48   :  { %v10439_v7 = vadd.f32 %v10438_v23, %v18842_v9 }
0x1a49   :  { %v14975_v51 = vpop.f32.mrf.mxu1 }
0x1a4a   :  { %v10442_v45 = vadd.f32 %v15775_v41, %v10439_v7 }
0x1a4b   :  { %v15611_v29 = vpop.eup %15610 }
0x1a4c   :  { %v10136_v25 = vadd.f32 1.0, %v15611_v29 }
0x1a4e   :  { %15614 = vrcp.f32 %v10136_v25  ;;  %v18981_v25 = vpop.permute.xlu0 %10807 }
0x1a4f   :  { %v10588_v38 = vpop.f32.mrf.mxu1  ;;  %15616 = vtanh.f32 %v10442_v45  ;;  %v19732_v45 = vld [vmem:[#allocation28_spill] sm:$0xff] }
0x1a50   :  { %v10589_v13 = vadd.f32 %v10588_v38, %v18846_v35 }
0x1a51   :  { %v14997_v5 = vpop.f32.mrf.mxu1 }
0x1a52   :  { %v10592_v59 = vadd.f32 %v15776_v26, %v10589_v13 }
0x1a53   :  { %v15613_v21 = vpop.eup %15612 }
0x1a54   :  { %v10291_v54 = vadd.f32 1.0, %v15613_v21  ;;  %v13661_v24 = vmul.f32 -1.442695, %v10592_v59 }
0x1a56   :  { %15618 = vrcp.f32 %v10291_v54 }
0x1a57   :  { %15620 = vpow2.f32 %v13661_v24  ;;  %v10997_v9 = vpop.f32.mrf.mxu1 }
0x1a58   :  { %v10998_v35 = vadd.f32 %v10997_v9, %v18850_v15  ;;  %v15778_v15 = vld [vmem:[%s19633_s5 + $0x1] ss:$0 sm:$0xff]  ;;  %v10813_v9 = vpop.permute.xlu0 %10812 }
0x1a59   :  { %v15019_v63 = vpop.f32.mrf.mxu1 }
0x1a5a   :  { %v11001_v53 = vadd.f32 %v15777_v33, %v10998_v35 }
0x1a5b   :  { %v15615_v3 = vpop.eup %15614 }
0x1a5c   :  { %v13664_v22 = vmul.f32 -1.442695, %v11001_v53  ;;  %v15617_v10 = vpop.eup %15616 }
0x1a5d   :  { %v10600_v36 = vmul.f32 %v15617_v10, %v15615_v3 }
0x1a5e   :  { %15622 = vpow2.f32 %v13664_v22 }
0x1a5f   :  { %v11152_v20 = vpop.f32.mrf.mxu1 }
0x1a60   :  { %v11153_v58 = vadd.f32 %v11152_v20, %v18854_v4 }
0x1a61   :  { %v15041_v50 = vpop.f32.mrf.mxu1 }
0x1a62   :  { %v11156_v55 = vadd.f32 %v15778_v15, %v11153_v58  ;;  %v10774_v15 = vld [vmem:[#allocation19 + $0x40] sm:$0xff] }
0x1a63   :  { %v15619_v16 = vpop.eup %15618 }
0x1a64   :  { %v15621_v56 = vpop.eup %15620  ;;  %v10599_v19 = vmul.f32 %v15619_v16, %v19730_v12  ;;  %v13667_v37 = vmul.f32 -1.442695, %v11156_v55  ;;  %v15781_v16 = vld [vmem:[#allocation19] sm:$0xff] }
0x1a65   :  { %v10596_v31 = vadd.f32 1.0, %v15621_v56 }
0x1a66   :  { %v18964_v4 = vadd.f32 %v10600_v36, %v10599_v19  ;;  %15624 = vpow2.f32 %v13667_v37 }
0x1a67   :  { %15626 = vrcp.f32 %v10596_v31  ;;  %v11307_v40 = vpop.f32.mrf.mxu1 }
0x1a68   :  { %19731 = vst [vmem:[#allocation30_spill] sm:$0xff] %v18964_v4  ;;  %15628 = vtanh.f32 %v18964_v4  ;;  %v11308_v60 = vadd.f32 %v11307_v40, %v18858_v42  ;;  %v18976_v42 = vpop.permute.xlu1 %10732 }
0x1a69   :  { %v15063_v44 = vpop.f32.mrf.mxu1 }
0x1a6a   :  { %v11311_v43 = vadd.f32 %v15779_v52, %v11308_v60  ;;  %v10775_v44 = vld [vmem:[#allocation19 + $0x48] sm:$0xff] }
0x1a6b   :  { %v15623_v48 = vpop.eup %15622 }
0x1a6c   :  { %v11005_v18 = vadd.f32 1.0, %v15623_v48 }
0x1a6e   :  { %15630 = vrcp.f32 %v11005_v18 }
0x1a6f   :  { %15632 = vtanh.f32 %v11311_v43  ;;  %v11457_v11 = vpop.f32.mrf.mxu1  ;;  %v15782_v43 = vld [vmem:[#allocation19 + $0x8] sm:$0xff] }
0x1a70   :  { %v11458_v57 = vadd.f32 %v11457_v11, %v18860_v49  ;;  %v18985_v49 = vpop.permute.xlu1 %10737 }
0x1a71   :  { %v15085_v1 = vpop.f32.mrf.mxu1 }
0x1a72   :  { %v11461_v32 = vadd.f32 %v15780_v39, %v11458_v57  ;;  %v10776_v57 = vld [vmem:[#allocation19 + $0x50] sm:$0xff]  ;;  %v10818_v1 = vpop.permute.xlu0 %10817 }
0x1a73   :  { %v15625_v23 = vpop.eup %15624 }
0x1a74   :  { %v15627_v51 = vpop.eup %15626  ;;  %v11160_v29 = vadd.f32 1.0, %v15625_v23  ;;  %v13672_v7 = vmul.f32 -1.442695, %v11461_v32  ;;  %v18998_v58 = vpop.permute.xlu1 %10742  ;;  %v15783_v32 = vld [vmem:[#allocation19 + $0x10] sm:$0xff] }
0x1a75   :  { %v15629_v38 = vpop.eup %15628 }
0x1a76   :  { %v18983_v13 = vmul.f32 %v15629_v38, %v15627_v51  ;;  %15634 = vrcp.f32 %v11160_v29  ;;  %v15784_v29 = vld [vmem:[#allocation19 + $0x20] sm:$0xff] }
0x1a77   :  { %15636 = vpow2.f32 %v13672_v7  ;;  %v10778_v38 = vld [vmem:[#allocation19 + $0x60] sm:$0xff] }
0x1a78   :  { %v10613_v41 = vcombine.high %v18983_v13, %v18983_v13  ;;  %v10620_v5 = vrot.slane %v18983_v13, %v19732_v45  ;;  %10847 = vst.msk [vmem:[#allocation16 + $0x18] sm:$0xff] %vm175_vm1, %v18983_v13 }
0x1a7a   :  { %v10627_v26 = vrot.slane %v10613_v41, %v19732_v45  ;;  %v10628_v59 = vcombine.high %v10620_v5, %v10620_v5  ;;  %v10636_v21 = vrot.slane %v10620_v5, %v19732_v45 }
0x1a7b   :  { %v15631_v54 = vpop.eup %15630 }
0x1a7c   :  { %v15633_v24 = vpop.eup %15632  ;;  %v10629_v35 = vcombine.high %v10627_v26, %v10627_v26  ;;  %v10643_v63 = vrot.slane %v10627_v26, %v19732_v45  ;;  %v10650_v33 = vrot.slane %v10628_v59, %v19732_v45  ;;  %v10658_v53 = vcombine.high %v10636_v21, %v10636_v21  ;;  %v15785_v26 = vld [vmem:[#allocation19 + $0x18] sm:$0xff] }
0x1a7d   :  { %v11469_v22 = vmul.f32 %v15633_v24, %v15631_v54  ;;  %v10665_v20 = vrot.slane %v10636_v21, %v16293_v46  ;;  %v10748_v54 = vpop.permute.xlu1 %10747  ;;  %v19733_v24 = vld [vmem:[#allocation27_spill] sm:$0xff] }
0x1a7e   :  { %v10657_v3 = vrot.slane %v10629_v35, %v19732_v45  ;;  %v10659_v50 = vcombine.high %v10643_v63, %v10643_v63  ;;  %v10660_v10 = vcombine.high %v10650_v33, %v10650_v33  ;;  %v10669_v55 = vrot.slane %v10650_v33, %v16293_v46 }
0x1a7f   :  { %v10702_v56 = vadd.f32 %v15781_v16, %v10665_v20  ;;  %v10782_v12 = vadd.f32 %v10774_v15, %v10665_v20  ;;  %v10673_v19 = vrot.slane %v10658_v53, %v16293_v46  ;;  %v10681_v36 = vrot.slane %v10643_v63, %v16293_v46  ;;  %v10779_v15 = vld [vmem:[#allocation19 + $0x68] sm:$0xff] }
0x1a80   :  { %v10661_v37 = vcombine.high %v10657_v3, %v10657_v3  ;;  %v10677_v31 = vrot.slane %v10660_v10, %v16293_v46  ;;  %v10685_v40 = vrot.slane %v10657_v3, %v16293_v46  ;;  %v19007_v60 = vrot.slane %v10659_v50, %v16293_v46  ;;  %v15786_v3 = vld [vmem:[#allocation19 + $0x28] sm:$0xff]  ;;  %v10777_v10 = vld [vmem:[#allocation19 + $0x58] sm:$0xff] }
0x1a81   :  { %v10830_v48 = vmul.f32 %v10793_v47, %v10782_v12  ;;  %v10750_v52 = vmul.f32 %v18951_v61, %v10702_v56  ;;  %v10703_v18 = vadd.f32 %v15782_v43, %v10669_v55  ;;  %v10783_v11 = vadd.f32 %v10775_v44, %v10669_v55  ;;  %v10781_v56 = vld [vmem:[#allocation19 + $0x78] sm:$0xff] }
0x1a82   :  { %v10693_v39 = vrot.slane %v10661_v37, %v16293_v46  ;;  %v10704_v23 = vadd.f32 %v15783_v32, %v10673_v19  ;;  %v10784_v51 = vadd.f32 %v10776_v57, %v10673_v19  ;;  %v10706_v7 = vadd.f32 %v15784_v29, %v10681_v36  ;;  %v10828_v19 = vpop.permute.xlu0 %10827 }
0x1a83   :  { %v15635_v41 = vpop.eup %15634  ;;  %10838 = vst.msk [vmem:[#allocation19 + $0x40] sm:$0xff] %vm175_vm1, %v10830_v48  ;;  %10758 = vst.msk [vmem:[#allocation19] sm:$0xff] %vm175_vm1, %v10750_v52  ;;  %v10831_v61 = vmul.f32 %v18968_v14, %v10783_v11  ;;  %v10751_v47 = vmul.f32 %v18953_v17, %v10703_v18  ;;  %v10786_v5 = vadd.f32 %v10778_v38, %v10681_v36 }
0x1a84   :  { %v10705_v59 = vadd.f32 %v15785_v26, %v10677_v31  ;;  %v15637_v21 = vpop.eup %15636  ;;  %v11468_v35 = vmul.f32 %v15635_v41, %v19733_v24  ;;  %v10832_v63 = vmul.f32 %v18973_v6, %v10784_v51  ;;  %v10752_v33 = vmul.f32 %v18962_v62, %v10704_v23  ;;  %v15787_v6 = vld [vmem:[#allocation19 + $0x30] sm:$0xff] }
0x1a85   :  { %v10754_v53 = vmul.f32 %v18976_v42, %v10706_v7  ;;  %v11465_v20 = vadd.f32 1.0, %v15637_v21  ;;  %10839 = vst.msk [vmem:[#allocation19 + $0x48] sm:$0xff] %vm175_vm1, %v10831_v61  ;;  %10759 = vst.msk [vmem:[#allocation19 + $0x8] sm:$0xff] %vm175_vm1, %v10751_v47  ;;  %v10834_v14 = vmul.f32 %v10813_v9, %v10786_v5  ;;  %v10707_v50 = vadd.f32 %v15786_v3, %v10685_v40  ;;  %v15788_v9 = vld [vmem:[#allocation19 + $0x38] sm:$0xff] }
0x1a86   :  { %v10753_v17 = vmul.f32 %v18959_v0, %v10705_v59  ;;  %v11470_v55 = vadd.f32 %v11469_v22, %v11468_v35  ;;  %10840 = vst.msk [vmem:[#allocation19 + $0x50] sm:$0xff] %vm175_vm1, %v10832_v63  ;;  %10760 = vst.msk [vmem:[#allocation19 + $0x10] sm:$0xff] %vm175_vm1, %v10752_v33  ;;  %v10785_v62 = vadd.f32 %v10777_v10, %v10677_v31 }
0x1a87   :  { %10762 = vst.msk [vmem:[#allocation19 + $0x20] sm:$0xff] %vm175_vm1, %v10754_v53  ;;  %v10708_v42 = vadd.f32 %v15787_v6, %v19007_v60  ;;  %v10787_v16 = vadd.f32 %v10779_v15, %v10685_v40  ;;  %15638 = vrcp.f32 %v11465_v20  ;;  %10842 = vst.msk [vmem:[#allocation19 + $0x60] sm:$0xff] %vm175_vm1, %v10834_v14  ;;  %v10755_v0 = vmul.f32 %v18985_v49, %v10707_v50  ;;  %v10780_v40 = vld [vmem:[#allocation19 + $0x70] sm:$0xff]  ;;  %v10823_v49 = vpop.permute.xlu1 %10822 }
0x1a88   :  { %10761 = vst.msk [vmem:[#allocation19 + $0x18] sm:$0xff] %vm175_vm1, %v10753_v17  ;;  %v10709_v22 = vadd.f32 %v15788_v9, %v10693_v39  ;;  %v10789_v12 = vadd.f32 %v10781_v56, %v10693_v39  ;;  %15640 = vtanh.f32 %v11470_v55  ;;  %13490 = vst.msk [vmem:[#allocation17 + $0x8] sm:$0xff] %vm175_vm1, %v11470_v55  ;;  %v10833_v36 = vmul.f32 %v18981_v25, %v10785_v62 }
0x1a89   :  { %v10756_v37 = vmul.f32 %v18998_v58, %v10708_v42  ;;  %v10835_v31 = vmul.f32 %v10818_v1, %v10787_v16  ;;  %10763 = vst.msk [vmem:[#allocation19 + $0x28] sm:$0xff] %vm175_vm1, %v10755_v0  ;;  %v10788_v52 = vadd.f32 %v10780_v40, %v19007_v60 }
0x1a8a   :  { %v10757_v44 = vmul.f32 %v10748_v54, %v10709_v22  ;;  %v10837_v48 = vmul.f32 %v10828_v19, %v10789_v12  ;;  %10841 = vst.msk [vmem:[#allocation19 + $0x58] sm:$0xff] %vm175_vm1, %v10833_v36  ;;  %v19049_v29 = vld [vmem:[#allocation19 + $0x40] sm:$0xff] }
0x1a8b   :  { %10764 = vst.msk [vmem:[#allocation19 + $0x30] sm:$0xff] %vm175_vm1, %v10756_v37  ;;  %10843 = vst.msk [vmem:[#allocation19 + $0x68] sm:$0xff] %vm175_vm1, %v10835_v31  ;;  %v10836_v25 = vmul.f32 %v10823_v49, %v10788_v52  ;;  %v19051_v7 = vld [vmem:[#allocation19] sm:$0xff] }
0x1a8c   :  { %10765 = vst.msk [vmem:[#allocation19 + $0x38] sm:$0xff] %vm175_vm1, %v10757_v44  ;;  %10845 = vst.msk [vmem:[#allocation19 + $0x78] sm:$0xff] %vm175_vm1, %v10837_v48  ;;  %v19056_v47 = vld [vmem:[#allocation19 + $0x48] sm:$0xff] }
0x1a8d   :  { %10844 = vst.msk [vmem:[#allocation19 + $0x70] sm:$0xff] %vm175_vm1, %v10836_v25  ;;  %v19058_v5 = vld [vmem:[#allocation19 + $0x8] sm:$0xff]  ;;  %v19066_v33 = vld [vmem:[#allocation19 + $0x50] sm:$0xff] }
0x1a8e   :  { %v19068_v53 = vld [vmem:[#allocation19 + $0x10] sm:$0xff]  ;;  %v19076_v55 = vld [vmem:[#allocation19 + $0x60] sm:$0xff] }
0x1a8f   :  { %v19078_v62 = vld [vmem:[#allocation19 + $0x20] sm:$0xff]  ;;  %v19088_v36 = vld [vmem:[#allocation19 + $0x18] sm:$0xff] }
0x1a90   :  { %v19090_v37 = vld [vmem:[#allocation19 + $0x28] sm:$0xff] }
0x1a91   :  { %v19095_v52 = vld [vmem:[#allocation19 + $0x58] sm:$0xff] }
0x1a92   :  { %v19098_v25 = vld [vmem:[#allocation19 + $0x30] sm:$0xff] }
0x1a94   :  { %v15639_v58 = vpop.eup %15638 }
0x1a95   :  { %v15641_v43 = vpop.eup %15640 }
0x1a96   :  { %v11472_v18 = vmul.f32 %v15641_v43, %v15639_v58 }
0x1a98   :  { %15095 = vmatmul.mubr.msk.f32.vlgmr.msra.gmra.mxu0 %vm175_vm1, %v11472_v18  ;;  %13488 = vst.msk [vmem:[#allocation17] sm:$0xff] %vm175_vm1, %v11472_v18  ;;  %v11489_v60 = vrot.slane %v11472_v18, %v19732_v45  ;;  %v11482_v11 = vcombine.high %v11472_v18, %v11472_v18 }
0x1a99   :  { %15116 = vmatprep.mubr.msk.f32.mxu0 %vm16047_vm0, %v19690_v34 }
0x1a9a   :  { %v11505_v57 = vrot.slane %v11489_v60, %v19732_v45  ;;  %v11497_v1 = vcombine.high %v11489_v60, %v11489_v60  ;;  %v11496_v39 = vrot.slane %v11482_v11, %v19732_v45  ;;  %v19104_v11 = vld [vmem:[#allocation19 + $0x68] sm:$0xff] }
0x1a9c   :  { %v11534_v32 = vrot.slane %v11505_v57, %v16293_v46  ;;  %v11519_v23 = vrot.slane %v11497_v1, %v19732_v45  ;;  %v11527_v51 = vcombine.high %v11505_v57, %v11505_v57  ;;  %v11512_v59 = vrot.slane %v11496_v39, %v19732_v45  ;;  %v19106_v57 = vld [vmem:[#allocation19 + $0x38] sm:$0xff] }
0x1a9d   :  { %v11498_v21 = vcombine.high %v11496_v39, %v11496_v39 }
0x1a9e   :  { %v11963_v38 = vmul.f32 %v19049_v29, %v11534_v32  ;;  %v11571_v41 = vmul.f32 %v11534_v32, %v19051_v7  ;;  %v11538_v61 = vrot.slane %v11519_v23, %v16293_v46  ;;  %v11542_v26 = vrot.slane %v11527_v51, %v16293_v46  ;;  %v19112_v51 = vld [vmem:[#allocation19 + $0x78] sm:$0xff] }
0x1a9f   :  { %v11550_v20 = vrot.slane %v11512_v59, %v16293_v46  ;;  %v11529_v14 = vcombine.high %v11519_v23, %v11519_v23  ;;  %v11526_v17 = vrot.slane %v11498_v21, %v19732_v45  ;;  %v11528_v16 = vcombine.high %v11512_v59, %v11512_v59 }
0x1aa0   :  { %v11971_v54 = vsel %vm175_vm1, %v11963_v38, 0.0  ;;  %v11579_v24 = vsel %vm175_vm1, %v11571_v41, 0.0  ;;  %v11964_v35 = vmul.f32 %v19056_v47, %v11538_v61  ;;  %v11572_v63 = vmul.f32 %v11538_v61, %v19058_v5  ;;  %v19114_v38 = vld [vmem:[#allocation19 + $0x70] sm:$0xff] }
0x1aa1   :  { %11972 = vadd.xlane.f32.xlu0 %v11971_v54  ;;  %11580 = vadd.xlane.f32.xlu1 %v11579_v24  ;;  %v11965_v10 = vmul.f32 %v19066_v33, %v11542_v26  ;;  %v11573_v15 = vmul.f32 %v11542_v26, %v19068_v53  ;;  %v11967_v6 = vmul.f32 %v19076_v55, %v11550_v20 }
0x1aa2   :  { %v11974_v3 = vsel %vm175_vm1, %v11964_v35, 0.0  ;;  %v11582_v50 = vsel %vm175_vm1, %v11572_v63, 0.0  ;;  %v11575_v42 = vmul.f32 %v11550_v20, %v19078_v62  ;;  %v11546_v9 = vrot.slane %v11529_v14, %v16293_v46 }
0x1aa3   :  { %v11977_v56 = vsel %vm175_vm1, %v11965_v10, 0.0  ;;  %v11585_v0 = vsel %vm175_vm1, %v11573_v15, 0.0  ;;  %v11554_v22 = vrot.slane %v11526_v17, %v16293_v46  ;;  %v11983_v12 = vsel %vm175_vm1, %v11967_v6, 0.0 }
0x1aa4   :  { %v11591_v19 = vsel %vm175_vm1, %v11575_v42, 0.0  ;;  %v11574_v31 = vmul.f32 %v11546_v9, %v19088_v36  ;;  %v11558_v44 = vrot.slane %v11528_v16, %v16293_v46  ;;  %v11530_v48 = vcombine.high %v11526_v17, %v11526_v17 }
0x1aa5   :  { %11975 = vadd.xlane.f32.xlu1 %v11974_v3  ;;  %11583 = vadd.xlane.f32.xlu0 %v11582_v50  ;;  %v11576_v40 = vmul.f32 %v11554_v22, %v19090_v37  ;;  %v11966_v49 = vmul.f32 %v19095_v52, %v11546_v9  ;;  %v11968_v32 = vmul.f32 %v19104_v11, %v11554_v22 }
0x1aa6   :  { %v11588_v58 = vsel %vm175_vm1, %v11574_v31, 0.0  ;;  %v11577_v18 = vmul.f32 %v11558_v44, %v19098_v25  ;;  %v11562_v60 = vrot.slane %v11530_v48, %v16293_v46  ;;  %v11969_v59 = vmul.f32 %v19114_v38, %v11558_v44 }
0x1aa7   :  { %v11594_v43 = vsel %vm175_vm1, %v11576_v40, 0.0  ;;  %v11980_v1 = vsel %vm175_vm1, %v11966_v49, 0.0  ;;  %v11986_v41 = vsel %vm175_vm1, %v11968_v32, 0.0 }
0x1aa8   :  { %v11597_v39 = vsel %vm175_vm1, %v11577_v18, 0.0  ;;  %v11578_v23 = vmul.f32 %v11562_v60, %v19106_v57  ;;  %v11970_v26 = vmul.f32 %v19112_v51, %v11562_v60  ;;  %v11989_v54 = vsel %vm175_vm1, %v11969_v59, 0.0 }
0x1aa9   :  { %11978 = vadd.xlane.f32.xlu1 %v11977_v56  ;;  %11586 = vadd.xlane.f32.xlu0 %v11585_v0 }
0x1aaa   :  { %v11600_v61 = vsel %vm175_vm1, %v11578_v23, 0.0  ;;  %v11992_v21 = vsel %vm175_vm1, %v11970_v26, 0.0 }
0x1aad   :  { %11984 = vadd.xlane.f32.xlu1 %v11983_v12  ;;  %11592 = vadd.xlane.f32.xlu0 %v11591_v19 }
0x1ab1   :  { %11589 = vadd.xlane.f32.xlu1 %v11588_v58  ;;  %11595 = vadd.xlane.f32.xlu0 %v11594_v43 }
0x1ab5   :  { %11981 = vadd.xlane.f32.xlu1 %v11980_v1  ;;  %11598 = vadd.xlane.f32.xlu0 %v11597_v39 }
0x1ab9   :  { %11987 = vadd.xlane.f32.xlu1 %v11986_v41  ;;  %11601 = vadd.xlane.f32.xlu0 %v11600_v61 }
0x1abd   :  { %11993 = vadd.xlane.f32.xlu1 %v11992_v21  ;;  %11990 = vadd.xlane.f32.xlu0 %v11989_v54 }
0x1b2a   :  { %v19122_v24 = vpop.xlane.xlu0 %11972  ;;  %v11581_v35 = vpop.xlane.xlu1 %11580 }
0x1b2b   :  { %v11614_v6 = vrot.slane %v11581_v35, %v16390_v8  ;;  %v12006_v58 = vrot.slane %v19122_v24, %v16390_v8 }
0x1b2e   :  { %v19124_v63 = vpop.xlane.xlu1 %11975  ;;  %v11584_v20 = vpop.xlane.xlu0 %11583 }
0x1b2f   :  { %v11618_v10 = vrot.slane %v11584_v20, %v16390_v8  ;;  %v12010_v19 = vrot.slane %v19124_v63, %v16390_v8 }
0x1b31   :  { %v11643_v56 = vsel %vm1066_vm2, %v11618_v10, %v11614_v6  ;;  %v12035_v1 = vsel %vm1066_vm2, %v12010_v19, %v12006_v58 }
0x1b32   :  { %v19126_v14 = vpop.xlane.xlu1 %11978  ;;  %v11587_v17 = vpop.xlane.xlu0 %11586 }
0x1b33   :  { %v11622_v15 = vrot.slane %v11587_v17, %v16390_v8  ;;  %v12014_v48 = vrot.slane %v19126_v14, %v16390_v8 }
0x1b35   :  { %v11644_v9 = vsel %vm1068_vm3, %v11622_v15, %v11643_v56  ;;  %v12036_v23 = vsel %vm1068_vm3, %v12014_v48, %v12035_v1 }
0x1b36   :  { %v19128_v3 = vpop.xlane.xlu1 %11984  ;;  %v19130_v50 = vpop.xlane.xlu0 %11592 }
0x1b37   :  { %v11630_v22 = vrot.slane %v19130_v50, %v16390_v8  ;;  %v12022_v21 = vrot.slane %v19128_v3, %v16390_v8 }
0x1b3a   :  { %v11590_v42 = vpop.xlane.xlu1 %11589  ;;  %v19135_v16 = vpop.xlane.xlu0 %11595 }
0x1b3b   :  { %v11626_v0 = vrot.slane %v11590_v42, %v16390_v8  ;;  %v11634_v49 = vrot.slane %v19135_v16, %v16390_v8 }
0x1b3d   :  { %v11645_v12 = vsel %vm1070_vm4, %v11626_v0, %v11644_v9 }
0x1b3e   :  { %v11646_v31 = vsel %vm1072_vm5, %v11630_v22, %v11645_v12  ;;  %v19146_v40 = vpop.xlane.xlu1 %11981  ;;  %v19148_v44 = vpop.xlane.xlu0 %11598 }
0x1b3f   :  { %v12018_v43 = vrot.slane %v19146_v40, %v16390_v8  ;;  %v11638_v18 = vrot.slane %v19148_v44, %v16390_v8  ;;  %v11647_v60 = vsel %vm1074_vm6, %v11634_v49, %v11646_v31 }
0x1b41   :  { %v12037_v61 = vsel %vm1070_vm4, %v12018_v43, %v12036_v23  ;;  %v11648_v59 = vsel %vm1076_vm7, %v11638_v18, %v11647_v60 }
0x1b42   :  { %v19162_v39 = vpop.xlane.xlu1 %11987  ;;  %v19164_v32 = vpop.xlane.xlu0 %11601  ;;  %v12038_v56 = vsel %vm1072_vm5, %v12022_v21, %v12037_v61 }
0x1b43   :  { %v11642_v41 = vrot.slane %v19164_v32, %v16390_v8  ;;  %v12026_v26 = vrot.slane %v19162_v39, %v16390_v8 }
0x1b45   :  { %v11649_v54 = vsel %vm1078_vm8, %v11642_v41, %v11648_v59  ;;  %v12039_v22 = vsel %vm1074_vm6, %v12026_v26, %v12038_v56 }
0x1b46   :  { %v19176_v10 = vpop.xlane.xlu1 %11993  ;;  %v19178_v15 = vpop.xlane.xlu0 %11990  ;;  %v11651_v6 = vsel %vm1081_vm9, %v11649_v54, -inf }
0x1b47   :  { %v12034_v0 = vrot.slane %v19176_v10, %v16390_v8  ;;  %v12030_v9 = vrot.slane %v19178_v15, %v16390_v8  ;;  %11652 = vmax.xlane.f32.xlu0 %v11651_v6 }
0x1b49   :  { %v12040_v12 = vsel %vm1076_vm7, %v12030_v9, %v12039_v22 }
0x1b4a   :  { %v12041_v19 = vsel %vm1078_vm8, %v12034_v0, %v12040_v12 }
0x1b4b   :  { %v12043_v31 = vsel %vm1081_vm9, %v12041_v19, -inf }
0x1b4c   :  { %12044 = vmax.xlane.f32.xlu1 %v12043_v31 }
0x1b58   :  { %v19190_v48 = vpop.f32.mrf.mxu0 }
0x1b59   :  { %19734 = vst [vmem:[#allocation34_spill] sm:$0xff] %v19190_v48 }
0x1b5a   :  { %v15096_v49 = vpop.f32.mrf.mxu0 }
0x1bd0   :  { %v11653_v58 = vpop.xlane.xlu0 %11652 }
0x1bd1   :  { %v11658_v43 = vrot.slane %v11653_v58, %v16293_v46  ;;  %v11662_v18 = vrot.slane %v11653_v58, %v16451_v27  ;;  %v11666_v60 = vrot.slane %v11653_v58, %v16454_v28  ;;  %v11670_v1 = vrot.slane %v11653_v58, %v16457_v30 }
0x1bd2   :  { %v11674_v56 = vrot.slane %v11653_v58, %v19724_v2 }
0x1bd3   :  { %v11695_v23 = vsub.f32 %v11581_v35, %v11658_v43  ;;  %v11696_v41 = vsub.f32 %v11584_v20, %v11662_v18  ;;  %v11698_v61 = vsub.f32 %v11590_v42, %v11670_v1  ;;  %v11697_v26 = vsub.f32 %v11587_v17, %v11666_v60  ;;  %v19735_v17 = vld [vmem:[#allocation31_spill] sm:$0xff]  ;;  %v19736_v60 = vld [vmem:[#allocation33_spill] sm:$0xff] }
0x1bd4   :  { %v11678_v42 = vrot.slane %v11653_v58, %v19735_v17  ;;  %v11699_v19 = vsub.f32 %v19130_v50, %v11674_v56  ;;  %v11682_v1 = vrot.slane %v11653_v58, %v19736_v60 }
0x1bd5   :  { %v11703_v59 = vmul.f32 1.442695, %v11695_v23  ;;  %v11705_v21 = vmul.f32 1.442695, %v11696_v41  ;;  %v12045_v54 = vpop.xlane.xlu1 %12044  ;;  %v11709_v0 = vmul.f32 1.442695, %v11698_v61 }
0x1bd6   :  { %v12050_v6 = vrot.slane %v12045_v54, %v16293_v46  ;;  %v12054_v9 = vrot.slane %v12045_v54, %v16451_v27  ;;  %v11707_v22 = vmul.f32 1.442695, %v11697_v26  ;;  %v12058_v12 = vrot.slane %v12045_v54, %v16454_v28  ;;  %v19737_v61 = vld [vmem:[#allocation32_spill] sm:$0xff] }
0x1bd7   :  { %15642 = vpow2.f32 %v11703_v59  ;;  %v12062_v31 = vrot.slane %v12045_v54, %v16457_v30  ;;  %v11700_v23 = vsub.f32 %v19135_v16, %v11678_v42  ;;  %v11711_v41 = vmul.f32 1.442695, %v11699_v19 }
0x1bd8   :  { %15644 = vpow2.f32 %v11705_v21  ;;  %v12087_v35 = vsub.f32 %v19122_v24, %v12050_v6  ;;  %v12088_v20 = vsub.f32 %v19124_v63, %v12054_v9  ;;  %v12089_v49 = vsub.f32 %v19126_v14, %v12058_v12 }
0x1bd9   :  { %15646 = vpow2.f32 %v11709_v0  ;;  %v12066_v24 = vrot.slane %v12045_v54, %v19724_v2  ;;  %v12090_v63 = vsub.f32 %v19146_v40, %v12062_v31  ;;  %v11686_v26 = vrot.slane %v11653_v58, %v19737_v61 }
0x1bda   :  { %15648 = vpow2.f32 %v11707_v22  ;;  %v12095_v43 = vmul.f32 1.442695, %v12087_v35  ;;  %v12097_v18 = vmul.f32 1.442695, %v12088_v20  ;;  %v12099_v50 = vmul.f32 1.442695, %v12089_v49 }
0x1bdb   :  { %v11701_v59 = vsub.f32 %v19148_v44, %v11682_v1  ;;  %v11713_v14 = vmul.f32 1.442695, %v11700_v23  ;;  %v12070_v6 = vrot.slane %v12045_v54, %v19735_v17  ;;  %v12091_v16 = vsub.f32 %v19128_v3, %v12066_v24 }
0x1bdc   :  { %15650 = vpow2.f32 %v12095_v43  ;;  %v12101_v56 = vmul.f32 1.442695, %v12090_v63  ;;  %v11702_v40 = vsub.f32 %v19164_v32, %v11686_v26  ;;  %v12074_v58 = vrot.slane %v12045_v54, %v19736_v60 }
0x1bdd   :  { %15652 = vpow2.f32 %v12097_v18  ;;  %v11715_v44 = vmul.f32 1.442695, %v11701_v59  ;;  %v12078_v22 = vrot.slane %v12045_v54, %v19737_v61  ;;  %v12092_v3 = vsub.f32 %v19162_v39, %v12070_v6 }
0x1bde   :  { %15654 = vpow2.f32 %v11711_v41  ;;  %v12103_v12 = vmul.f32 1.442695, %v12091_v16  ;;  %v11717_v32 = vmul.f32 1.442695, %v11702_v40  ;;  %v12093_v20 = vsub.f32 %v19178_v15, %v12074_v58 }
0x1bdf   :  { %15656 = vpow2.f32 %v12099_v50  ;;  %v12094_v19 = vsub.f32 %v19176_v10, %v12078_v22  ;;  %v12105_v54 = vmul.f32 1.442695, %v12092_v3 }
0x1be0   :  { %15658 = vpow2.f32 %v11713_v14  ;;  %v12107_v39 = vmul.f32 1.442695, %v12093_v20 }
0x1be1   :  { %15660 = vpow2.f32 %v12101_v56  ;;  %v12109_v43 = vmul.f32 1.442695, %v12094_v19 }
0x1be2   :  { %15662 = vpow2.f32 %v11715_v44 }
0x1be3   :  { %15664 = vpow2.f32 %v12103_v12 }
0x1be4   :  { %v19212_v21 = vpop.eup %15642  ;;  %15666 = vpow2.f32 %v11717_v32 }
0x1be5   :  { %v19216_v0 = vpop.eup %15644  ;;  %11728 = vperm.xlu0 %15224, %v19212_v21   ;;  %15668 = vpow2.f32 %v12105_v54 }
0x1be6   :  { %11731 = vperm.xlu1 %15225, %v19216_v0   ;;  %v19222_v9 = vpop.eup %15646  ;;  %15670 = vpow2.f32 %v12107_v39 }
0x1be7   :  { %v19226_v35 = vpop.eup %15648  ;;  %15672 = vpow2.f32 %v12109_v43 }
0x1be9   :  { %11737 = vperm.xlu0 %15224, %v19222_v9   ;;  %v19231_v42 = vpop.eup %15650 }
0x1bea   :  { %11734 = vperm.xlu1 %15225, %v19226_v35   ;;  %v19234_v31 = vpop.eup %15652 }
0x1beb   :  { %v19238_v49 = vpop.eup %15654 }
0x1bec   :  { %v19240_v18 = vpop.eup %15656 }
0x1bed   :  { %12123 = vperm.xlu0 %15224, %v19234_v31   ;;  %v19244_v10 = vpop.eup %15658 }
0x1bee   :  { %12120 = vperm.xlu1 %15225, %v19231_v42   ;;  %v19246_v15 = vpop.eup %15660 }
0x1bef   :  { %v19250_v1 = vpop.eup %15662 }
0x1bf0   :  { %v19252_v23 = vpop.eup %15664 }
0x1bf1   :  { %12126 = vperm.xlu0 %15224, %v19240_v18   ;;  %v19256_v41 = vpop.eup %15666 }
0x1bf2   :  { %11740 = vperm.xlu1 %15225, %v19238_v49   ;;  %v19258_v24 = vpop.eup %15668 }
0x1bf3   :  { %v19262_v63 = vpop.eup %15670 }
0x1bf4   :  { %v19264_v50 = vpop.eup %15672 }
0x1bf5   :  { %12129 = vperm.xlu0 %15224, %v19246_v15  }
0x1bf6   :  { %11743 = vperm.xlu1 %15225, %v19244_v10  }
0x1bf9   :  { %12132 = vperm.xlu0 %15224, %v19252_v23  }
0x1bfa   :  { %11746 = vperm.xlu1 %15225, %v19250_v1  }
0x1bfd   :  { %12135 = vperm.xlu0 %15224, %v19258_v24  }
0x1bfe   :  { %11749 = vperm.xlu1 %15225, %v19256_v41  }
0x1c01   :  { %12141 = vperm.xlu0 %15224, %v19264_v50  }
0x1c02   :  { %12138 = vperm.xlu1 %15225, %v19262_v63  }
0x1c60   :  { %v11729_v26 = vpop.permute.xlu0 %11728 }
0x1c61   :  { %v11732_v59 = vpop.permute.xlu1 %11731  ;;  %v11754_v22 = vrot.slane %v11729_v26, %v16390_v8 }
0x1c62   :  { %v11758_v58 = vrot.slane %v11732_v59, %v16390_v8 }
0x1c64   :  { %v11738_v14 = vpop.permute.xlu0 %11737  ;;  %v11783_v20 = vsel %vm1066_vm2, %v11758_v58, %v11754_v22 }
0x1c65   :  { %v11735_v6 = vpop.permute.xlu1 %11734  ;;  %v11766_v19 = vrot.slane %v11738_v14, %v16390_v8 }
0x1c66   :  { %v11762_v3 = vrot.slane %v11735_v6, %v16390_v8 }
0x1c68   :  { %v12124_v56 = vpop.permute.xlu0 %12123  ;;  %v11784_v54 = vsel %vm1068_vm3, %v11762_v3, %v11783_v20 }
0x1c69   :  { %v12121_v16 = vpop.permute.xlu1 %12120  ;;  %v12150_v26 = vrot.slane %v12124_v56, %v16390_v8  ;;  %v11785_v48 = vsel %vm1070_vm4, %v11766_v19, %v11784_v54 }
0x1c6a   :  { %v12146_v59 = vrot.slane %v12121_v16, %v16390_v8 }
0x1c6c   :  { %v12127_v44 = vpop.permute.xlu0 %12126  ;;  %v12175_v56 = vsel %vm1066_vm2, %v12150_v26, %v12146_v59 }
0x1c6d   :  { %v11741_v40 = vpop.permute.xlu1 %11740  ;;  %v12154_v58 = vrot.slane %v12127_v44, %v16390_v8 }
0x1c6e   :  { %v11770_v39 = vrot.slane %v11741_v40, %v16390_v8 }
0x1c6f   :  { %v12176_v44 = vsel %vm1068_vm3, %v12154_v58, %v12175_v56 }
0x1c70   :  { %v12130_v32 = vpop.permute.xlu0 %12129  ;;  %v11786_v14 = vsel %vm1072_vm5, %v11770_v39, %v11785_v48 }
0x1c71   :  { %v11744_v12 = vpop.permute.xlu1 %11743  ;;  %v12158_v22 = vrot.slane %v12130_v32, %v16390_v8 }
0x1c72   :  { %v11774_v4 = vrot.slane %v11744_v12, %v16390_v8 }
0x1c73   :  { %v12177_v32 = vsel %vm1070_vm4, %v12158_v22, %v12176_v44 }
0x1c74   :  { %v12133_v45 = vpop.permute.xlu0 %12132  ;;  %v11787_v20 = vsel %vm1074_vm6, %v11774_v4, %v11786_v14 }
0x1c75   :  { %v11747_v43 = vpop.permute.xlu1 %11746  ;;  %v12162_v12 = vrot.slane %v12133_v45, %v16390_v8 }
0x1c76   :  { %v11778_v6 = vrot.slane %v11747_v43, %v16390_v8 }
0x1c77   :  { %v12178_v45 = vsel %vm1072_vm5, %v12162_v12, %v12177_v32 }
0x1c78   :  { %v12136_v40 = vpop.permute.xlu0 %12135  ;;  %v11788_v19 = vsel %vm1076_vm7, %v11778_v6, %v11787_v20 }
0x1c79   :  { %v11750_v3 = vpop.permute.xlu1 %11749  ;;  %v12166_v43 = vrot.slane %v12136_v40, %v16390_v8 }
0x1c7a   :  { %v11782_v16 = vrot.slane %v11750_v3, %v16390_v8 }
0x1c7b   :  { %v12179_v26 = vsel %vm1074_vm6, %v12166_v43, %v12178_v45 }
0x1c7c   :  { %v11789_v48 = vsel %vm1078_vm8, %v11782_v16, %v11788_v19  ;;  %v12142_v39 = vpop.permute.xlu0 %12141 }
0x1c7d   :  { %v12139_v54 = vpop.permute.xlu1 %12138  ;;  %v11791_v4 = vsel %vm1081_vm9, %v11789_v48, 0.0  ;;  %v12174_v59 = vrot.slane %v12142_v39, %v16390_v8 }
0x1c7e   :  { %v12170_v14 = vrot.slane %v12139_v54, %v16390_v8  ;;  %11792 = vadd.xlane.f32.xlu1 %v11791_v4 }
0x1c80   :  { %v12180_v6 = vsel %vm1076_vm7, %v12170_v14, %v12179_v26 }
0x1c81   :  { %v12181_v58 = vsel %vm1078_vm8, %v12174_v59, %v12180_v6 }
0x1c82   :  { %v12183_v3 = vsel %vm1081_vm9, %v12181_v58, 0.0 }
0x1c83   :  { %12184 = vadd.xlane.f32.xlu0 %v12183_v3 }
0x1d07   :  { %v11793_v22 = vpop.xlane.xlu1 %11792 }
0x1d08   :  { %v11798_v40 = vrot.slane %v11793_v22, %v16293_v46  ;;  %v11802_v20 = vrot.slane %v11793_v22, %v16451_v27  ;;  %v11806_v12 = vrot.slane %v11793_v22, %v16454_v28  ;;  %v11810_v16 = vrot.slane %v11793_v22, %v16457_v30 }
0x1d09   :  { %v11814_v19 = vrot.slane %v11793_v22, %v19724_v2  ;;  %v11818_v48 = vrot.slane %v11793_v22, %v19735_v17  ;;  %v11822_v4 = vrot.slane %v11793_v22, %v19736_v60 }
0x1d0a   :  { %15674 = vrcp.f32 %v11798_v40 }
0x1d0b   :  { %15676 = vrcp.f32 %v11802_v20 }
0x1d0c   :  { %15678 = vrcp.f32 %v11806_v12  ;;  %v12185_v8 = vpop.xlane.xlu0 %12184 }
0x1d0d   :  { %15680 = vrcp.f32 %v11810_v16  ;;  %v12190_v56 = vrot.slane %v12185_v8, %v16293_v46  ;;  %v12194_v43 = vrot.slane %v12185_v8, %v16451_v27  ;;  %v12198_v44 = vrot.slane %v12185_v8, %v16454_v28 }
0x1d0e   :  { %v12202_v32 = vrot.slane %v12185_v8, %v16457_v30  ;;  %v12206_v14 = vrot.slane %v12185_v8, %v19724_v2  ;;  %v11826_v30 = vrot.slane %v11793_v22, %v19737_v61  ;;  %v12214_v58 = vrot.slane %v12185_v8, %v19736_v60 }
0x1d0f   :  { %15682 = vrcp.f32 %v12190_v56  ;;  %v12218_v22 = vrot.slane %v12185_v8, %v19737_v61 }
0x1d10   :  { %15684 = vrcp.f32 %v12194_v43 }
0x1d11   :  { %15686 = vrcp.f32 %v11814_v19 }
0x1d12   :  { %15688 = vrcp.f32 %v12198_v44  ;;  %v12425_v44 = vld [vmem:[#allocation11 + $0x28] sm:$0xff] }
0x1d13   :  { %15690 = vrcp.f32 %v11818_v48  ;;  %v12424_v48 = vld [vmem:[#allocation11 + $0x20] sm:$0xff] }
0x1d14   :  { %15692 = vrcp.f32 %v12202_v32  ;;  %v12519_v32 = vld [vmem:[#allocation11 + $0x58] sm:$0xff] }
0x1d15   :  { %15694 = vrcp.f32 %v11822_v4  ;;  %15109 = vmatpush3.msra.mxu0 %v12519_v32 }
0x1d16   :  { %15696 = vrcp.f32 %v12206_v14  ;;  %15110 = vmatprep.subr.mxu0 %v19690_v34 }
0x1d17   :  { %v15675_v54 = vpop.eup %15674  ;;  %15698 = vrcp.f32 %v11826_v30 }
0x1d18   :  { %v15677_v39 = vpop.eup %15676  ;;  %v19312_v45 = vmul.f32 %v15675_v54, %v19212_v21  ;;  %v12210_v21 = vrot.slane %v12185_v8, %v19735_v17  ;;  %v12516_v54 = vld [vmem:[#allocation11 + $0x40] sm:$0xff] }
0x1d19   :  { %v15679_v27 = vpop.eup %15678  ;;  %v19316_v28 = vmul.f32 %v15677_v39, %v19216_v0 }
0x1d1a   :  { %v15681_v59 = vpop.eup %15680  ;;  %11853 = vperm.xlu0 %15224, %v19312_v45   ;;  %v19326_v2 = vmul.f32 %v15679_v27, %v19226_v35  ;;  %15700 = vrcp.f32 %v12210_v21 }
0x1d1b   :  { %11858 = vperm.xlu1 %15225, %v19316_v28   ;;  %v19322_v26 = vmul.f32 %v15681_v59, %v19222_v9  ;;  %15702 = vrcp.f32 %v12214_v58 }
0x1d1c   :  { %v15683_v0 = vpop.eup %15682  ;;  %15704 = vrcp.f32 %v12218_v22 }
0x1d1d   :  { %v15685_v6 = vpop.eup %15684  ;;  %v19336_v17 = vmul.f32 %v15683_v0, %v19231_v42 }
0x1d1e   :  { %11868 = vperm.xlu0 %15224, %v19322_v26   ;;  %v15687_v3 = vpop.eup %15686  ;;  %v19333_v9 = vmul.f32 %v15685_v6, %v19234_v31 }
0x1d1f   :  { %11863 = vperm.xlu1 %15225, %v19326_v2   ;;  %v15689_v35 = vpop.eup %15688  ;;  %v19344_v61 = vmul.f32 %v15687_v3, %v19238_v49 }
0x1d20   :  { %v15691_v40 = vpop.eup %15690  ;;  %v19341_v60 = vmul.f32 %v15689_v35, %v19240_v18 }
0x1d21   :  { %v15693_v20 = vpop.eup %15692  ;;  %v19352_v12 = vmul.f32 %v15691_v40, %v19244_v10 }
0x1d22   :  { %12250 = vperm.xlu0 %15224, %v19333_v9   ;;  %v15695_v42 = vpop.eup %15694  ;;  %v19349_v31 = vmul.f32 %v15693_v20, %v19246_v15 }
0x1d23   :  { %12245 = vperm.xlu1 %15225, %v19336_v17   ;;  %v15697_v16 = vpop.eup %15696  ;;  %v19360_v8 = vmul.f32 %v15695_v42, %v19250_v1 }
0x1d24   :  { %v15699_v18 = vpop.eup %15698  ;;  %v19357_v49 = vmul.f32 %v15697_v16, %v19252_v23 }
0x1d25   :  { %v19368_v43 = vmul.f32 %v15699_v18, %v19256_v41  ;;  %v12426_v41 = vld [vmem:[#allocation11 + $0x30] sm:$0xff] }
0x1d26   :  { %12255 = vperm.xlu0 %15224, %v19341_v60  }
0x1d27   :  { %11873 = vperm.xlu1 %15225, %v19344_v61   ;;  %v15701_v56 = vpop.eup %15700 }
0x1d28   :  { %v15703_v15 = vpop.eup %15702  ;;  %v19365_v10 = vmul.f32 %v15701_v56, %v19258_v24  ;;  %v12427_v24 = vld [vmem:[#allocation11 + $0x38] sm:$0xff] }
0x1d29   :  { %v15705_v19 = vpop.eup %15704  ;;  %v19376_v23 = vmul.f32 %v15703_v15, %v19262_v63  ;;  %15098 = vmatpush3.msra.mxu1 %v12427_v24  ;;  %v12517_v63 = vld [vmem:[#allocation11 + $0x48] sm:$0xff] }
0x1d2a   :  { %12260 = vperm.xlu0 %15224, %v19349_v31   ;;  %v19373_v1 = vmul.f32 %v15705_v19, %v19264_v50  ;;  %15099 = vmatprep.subr.mxu1 %v19690_v34  ;;  %v12518_v50 = vld [vmem:[#allocation11 + $0x50] sm:$0xff] }
0x1d2b   :  { %11878 = vperm.xlu1 %15225, %v19352_v12   ;;  %15100 = vmatpush3.msra.mxu1 %v12426_v41 }
0x1d2c   :  { %15101 = vmatprep.subr.mxu1 %v19690_v34  ;;  %15111 = vmatpush3.msra.mxu0 %v12518_v50 }
0x1d2d   :  { %15102 = vmatpush3.msra.mxu1 %v12425_v44  ;;  %15112 = vmatprep.subr.mxu0 %v19690_v34 }
0x1d2e   :  { %12265 = vperm.xlu0 %15224, %v19357_v49   ;;  %15103 = vmatprep.subr.mxu1 %v19690_v34 }
0x1d2f   :  { %11883 = vperm.xlu1 %15225, %v19360_v8   ;;  %15104 = vmatpush3.msra.mxu1 %v12424_v48 }
0x1d30   :  { %15119 = vmatprep.subr.mxu1 %v19690_v34  ;;  %15113 = vmatpush3.msra.mxu0 %v12517_v63 }
0x1d31   :  { %15114 = vmatprep.subr.mxu0 %v19690_v34 }
0x1d32   :  { %12270 = vperm.xlu0 %15224, %v19365_v10   ;;  %15115 = vmatpush3.msra.mxu0 %v12516_v54 }
0x1d33   :  { %11888 = vperm.xlu1 %15225, %v19368_v43   ;;  %15130 = vmatprep.subr.mxu0 %v19690_v34 }
0x1d36   :  { %12280 = vperm.xlu0 %15224, %v19373_v1  }
0x1d37   :  { %12275 = vperm.xlu1 %15225, %v19376_v23  }
0x1d95   :  { %v11854_v39 = vpop.permute.xlu0 %11853 }
0x1d96   :  { %v11859_v4 = vpop.permute.xlu1 %11858  ;;  %v11891_v27 = vmul.f32 %v11854_v39, %v19051_v7 }
0x1d97   :  { %v11892_v14 = vmul.f32 %v11859_v4, %v19058_v5 }
0x1d98   :  { %v11899_v59 = vsel %vm175_vm1, %v11891_v27, 0.0 }
0x1d99   :  { %v11906_v30 = vsel %vm175_vm1, %v11892_v14, 0.0  ;;  %v11900_v21 = vrot.slane %v11899_v59, 4  ;;  %v11869_v0 = vpop.permute.xlu0 %11868 }
0x1d9a   :  { %v11907_v6 = vrot.slane %v11906_v30, 4  ;;  %v11864_v58 = vpop.permute.xlu1 %11863  ;;  %v11894_v3 = vmul.f32 %v11869_v0, %v19088_v36 }
0x1d9b   :  { %v11901_v22 = vadd.f32 %v11900_v21, %v11899_v59  ;;  %v11893_v35 = vmul.f32 %v11864_v58, %v19068_v53 }
0x1d9c   :  { %v11908_v40 = vadd.f32 %v11907_v6, %v11906_v30  ;;  %v11920_v20 = vsel %vm175_vm1, %v11894_v3, 0.0 }
0x1d9d   :  { %v11913_v7 = vsel %vm175_vm1, %v11893_v35, 0.0  ;;  %v11921_v42 = vrot.slane %v11920_v20, 4  ;;  %v11902_v16 = vrot.slane %v11901_v22, 2  ;;  %v12251_v15 = vpop.permute.xlu0 %12250 }
0x1d9e   :  { %v11909_v5 = vrot.slane %v11908_v40, 2  ;;  %v11914_v18 = vrot.slane %v11913_v7, 4  ;;  %v12246_v56 = vpop.permute.xlu1 %12245  ;;  %v12284_v24 = vmul.f32 %v12251_v15, %v19056_v47 }
0x1d9f   :  { %v12283_v19 = vmul.f32 %v12246_v56, %v19049_v29  ;;  %v11922_v36 = vadd.f32 %v11921_v42, %v11920_v20  ;;  %v11903_v32 = vadd.f32 %v11902_v16, %v11901_v22 }
0x1da0   :  { %v11915_v41 = vadd.f32 %v11914_v18, %v11913_v7  ;;  %v12298_v53 = vsel %vm175_vm1, %v12284_v24, 0.0  ;;  %v11910_v48 = vadd.f32 %v11909_v5, %v11908_v40 }
0x1da1   :  { %v12291_v44 = vsel %vm175_vm1, %v12283_v19, 0.0  ;;  %v12256_v54 = vpop.permute.xlu0 %12255  ;;  %v12299_v4 = vrot.slane %v12298_v53, 4  ;;  %v11923_v59 = vrot.slane %v11922_v36, 2  ;;  %v11904_v0 = vrot.slane %v11903_v32, 1 }
0x1da2   :  { %v11916_v50 = vrot.slane %v11915_v41, 2  ;;  %v11874_v63 = vpop.permute.xlu1 %11873  ;;  %v12292_v39 = vrot.slane %v12291_v44, 4  ;;  %v12285_v14 = vmul.f32 %v12256_v54, %v19066_v33  ;;  %v11911_v21 = vrot.slane %v11910_v48, 1 }
0x1da3   :  { %v11895_v27 = vmul.f32 %v11874_v63, %v19078_v62  ;;  %v12300_v22 = vadd.f32 %v12299_v4, %v12298_v53  ;;  %v11924_v33 = vadd.f32 %v11923_v59, %v11922_v36  ;;  %v11905_v16 = vadd.f32 %v11904_v0, %v11903_v32 }
0x1da4   :  { %v11917_v29 = vadd.f32 %v11916_v50, %v11915_v41  ;;  %v12305_v30 = vsel %vm175_vm1, %v12285_v14, 0.0  ;;  %v12293_v3 = vadd.f32 %v12292_v39, %v12291_v44  ;;  %v11912_v5 = vadd.f32 %v11911_v21, %v11910_v48 }
0x1da5   :  { %v11927_v47 = vsel %vm175_vm1, %v11895_v27, 0.0  ;;  %v12261_v58 = vpop.permute.xlu0 %12260  ;;  %v12306_v20 = vrot.slane %v12305_v30, 4  ;;  %v12301_v41 = vrot.slane %v12300_v22, 2  ;;  %v11925_v54 = vrot.slane %v11924_v33, 1 }
0x1da6   :  { %v11879_v6 = vpop.permute.xlu1 %11878  ;;  %v11928_v35 = vrot.slane %v11927_v47, 4  ;;  %v12286_v62 = vmul.f32 %v12261_v58, %v19095_v52  ;;  %v11918_v7 = vrot.slane %v11917_v29, 1  ;;  %v12294_v24 = vrot.slane %v12293_v3, 2 }
0x1da7   :  { %v11896_v40 = vmul.f32 %v11879_v6, %v19090_v37  ;;  %v12307_v53 = vadd.f32 %v12306_v20, %v12305_v30  ;;  %v12436_v48 = vsel %vm1066_vm2, %v11912_v5, %v11905_v16 }
0x1da8   :  { %v11929_v18 = vadd.f32 %v11928_v35, %v11927_v47  ;;  %v12312_v44 = vsel %vm175_vm1, %v12286_v62, 0.0  ;;  %v11919_v63 = vadd.f32 %v11918_v7, %v11917_v29  ;;  %v12295_v59 = vadd.f32 %v12294_v24, %v12293_v3 }
0x1da9   :  { %v11934_v42 = vsel %vm175_vm1, %v11896_v40, 0.0  ;;  %v12266_v19 = vpop.permute.xlu0 %12265  ;;  %v12313_v37 = vrot.slane %v12312_v44, 4  ;;  %v12302_v47 = vadd.f32 %v12301_v41, %v12300_v22  ;;  %v12308_v0 = vrot.slane %v12307_v53, 2 }
0x1daa   :  { %v11935_v56 = vrot.slane %v11934_v42, 4  ;;  %v11884_v15 = vpop.permute.xlu1 %11883  ;;  %v12287_v36 = vmul.f32 %v12266_v19, %v19076_v55  ;;  %v11930_v32 = vrot.slane %v11929_v18, 2  ;;  %v11926_v55 = vadd.f32 %v11925_v54, %v11924_v33 }
0x1dab   :  { %v11897_v52 = vmul.f32 %v11884_v15, %v19098_v25  ;;  %v12314_v4 = vadd.f32 %v12313_v37, %v12312_v44  ;;  %v12437_v25 = vsel %vm1068_vm3, %v11919_v63, %v12436_v48  ;;  %v12296_v5 = vrot.slane %v12295_v59, 1 }
0x1dac   :  { %v11936_v50 = vadd.f32 %v11935_v56, %v11934_v42  ;;  %v12319_v30 = vsel %vm175_vm1, %v12287_v36, 0.0  ;;  %v11931_v20 = vadd.f32 %v11930_v32, %v11929_v18  ;;  %v12303_v16 = vrot.slane %v12302_v47, 1 }
0x1dad   :  { %v12271_v14 = vpop.permute.xlu0 %12270  ;;  %v11941_v21 = vsel %vm175_vm1, %v11897_v52, 0.0  ;;  %v12315_v29 = vrot.slane %v12314_v4, 2  ;;  %v12320_v58 = vrot.slane %v12319_v30, 4  ;;  %v12309_v19 = vadd.f32 %v12308_v0, %v12307_v53 }
0x1dae   :  { %v11937_v39 = vrot.slane %v11936_v50, 2  ;;  %v11889_v27 = vpop.permute.xlu1 %11888  ;;  %v11942_v6 = vrot.slane %v11941_v21, 4  ;;  %v12288_v40 = vmul.f32 %v12271_v14, %v19104_v11  ;;  %v12297_v53 = vadd.f32 %v12296_v5, %v12295_v59 }
0x1daf   :  { %v11898_v35 = vmul.f32 %v11889_v27, %v19106_v57  ;;  %v12321_v3 = vadd.f32 %v12320_v58, %v12319_v30  ;;  %v12316_v24 = vadd.f32 %v12315_v29, %v12314_v4  ;;  %v12304_v0 = vadd.f32 %v12303_v16, %v12302_v47 }
0x1db0   :  { %v11938_v62 = vadd.f32 %v11937_v39, %v11936_v50  ;;  %v11943_v7 = vadd.f32 %v11942_v6, %v11941_v21  ;;  %v12326_v15 = vsel %vm175_vm1, %v12288_v40, 0.0  ;;  %v11932_v50 = vrot.slane %v11931_v20, 1 }
0x1db1   :  { %v12281_v42 = vpop.permute.xlu0 %12280  ;;  %v11948_v56 = vsel %vm175_vm1, %v11898_v35, 0.0  ;;  %v12322_v33 = vrot.slane %v12321_v3, 2  ;;  %v12327_v57 = vrot.slane %v12326_v15, 4  ;;  %v12310_v39 = vrot.slane %v12309_v19, 1 }
0x1db2   :  { %v12276_v22 = vpop.permute.xlu1 %12275  ;;  %v11944_v41 = vrot.slane %v11943_v7, 2  ;;  %v11949_v44 = vrot.slane %v11948_v56, 4  ;;  %v12290_v18 = vmul.f32 %v12281_v42, %v19112_v51  ;;  %v11939_v37 = vrot.slane %v11938_v62, 1 }
0x1db3   :  { %v12289_v11 = vmul.f32 %v12276_v22, %v19114_v38  ;;  %v12323_v54 = vadd.f32 %v12322_v33, %v12321_v3  ;;  %v12328_v36 = vadd.f32 %v12327_v57, %v12326_v15  ;;  %v12317_v14 = vrot.slane %v12316_v24, 1 }
0x1db4   :  { %v11945_v63 = vadd.f32 %v11944_v41, %v11943_v7  ;;  %v11950_v52 = vadd.f32 %v11949_v44, %v11948_v56  ;;  %v12340_v32 = vsel %vm175_vm1, %v12290_v18, 0.0  ;;  %v11933_v51 = vadd.f32 %v11932_v50, %v11931_v20 }
0x1db5   :  { %v12333_v48 = vsel %vm175_vm1, %v12289_v11, 0.0  ;;  %v12329_v30 = vrot.slane %v12328_v36, 2  ;;  %v12341_v38 = vrot.slane %v12340_v32, 4  ;;  %v12324_v29 = vrot.slane %v12323_v54, 1 }
0x1db6   :  { %v11946_v4 = vrot.slane %v11945_v63, 1  ;;  %v12334_v27 = vrot.slane %v12333_v48, 4  ;;  %v11951_v21 = vrot.slane %v11950_v52, 2  ;;  %v11940_v58 = vadd.f32 %v11939_v37, %v11938_v62 }
0x1db7   :  { %v12330_v40 = vadd.f32 %v12329_v30, %v12328_v36  ;;  %v12342_v7 = vadd.f32 %v12341_v38, %v12340_v32  ;;  %v12438_v3 = vsel %vm1070_vm4, %v11926_v55, %v12437_v25  ;;  %v12311_v22 = vadd.f32 %v12310_v39, %v12309_v19  ;;  %v12624_v32 = vld [vmem:[#allocation14 + $0x8] sm:$0xff]  ;;  %v12783_v30 = vld [vmem:[#allocation14 + $0x20] sm:$0xff]  ;;  %v12941_v38 = vld [vmem:[#allocation14 + $0x58] sm:$0xff] }
0x1db8   :  { %v12335_v6 = vadd.f32 %v12334_v27, %v12333_v48  ;;  %v11952_v35 = vadd.f32 %v11951_v21, %v11950_v52  ;;  %v11947_v42 = vadd.f32 %v11946_v4, %v11945_v63  ;;  %v12318_v5 = vadd.f32 %v12317_v14, %v12316_v24  ;;  %v12626_v24 = vld [vmem:[#allocation14 + $0x18] sm:$0xff]  ;;  %v12625_v52 = vld [vmem:[#allocation14 + $0x10] sm:$0xff]  ;;  %v12623_v4 = vld [vmem:[#allocation14] sm:$0xff] }
0x1db9   :  { %v12331_v15 = vrot.slane %v12330_v40, 1  ;;  %v12343_v41 = vrot.slane %v12342_v7, 2  ;;  %v12528_v33 = vsel %vm1066_vm2, %v12304_v0, %v12297_v53  ;;  %v12439_v47 = vsel %vm1072_vm5, %v11933_v51, %v12438_v3  ;;  %v12786_v27 = vld [vmem:[#allocation14 + $0x38] sm:$0xff]  ;;  %v12785_v14 = vld [vmem:[#allocation14 + $0x30] sm:$0xff]  ;;  %v12784_v21 = vld [vmem:[#allocation14 + $0x28] sm:$0xff] }
0x1dba   :  { %v12336_v59 = vrot.slane %v12335_v6, 2  ;;  %v11953_v56 = vrot.slane %v11952_v35, 1  ;;  %v12325_v20 = vadd.f32 %v12324_v29, %v12323_v54  ;;  %v12440_v11 = vsel %vm1074_vm6, %v11940_v58, %v12439_v47  ;;  %v12940_v0 = vld [vmem:[#allocation14 + $0x50] sm:$0xff]  ;;  %v12939_v51 = vld [vmem:[#allocation14 + $0x48] sm:$0xff]  ;;  %v12938_v29 = vld [vmem:[#allocation14 + $0x40] sm:$0xff] }
0x1dbb   :  { %v12332_v62 = vadd.f32 %v12331_v15, %v12330_v40  ;;  %v12344_v57 = vadd.f32 %v12343_v41, %v12342_v7  ;;  %v12529_v25 = vsel %vm1068_vm3, %v12311_v22, %v12528_v33  ;;  %v12441_v19 = vsel %vm1076_vm7, %v11947_v42, %v12440_v11  ;;  %v13090_v58 = vld [vmem:[#allocation14 + $0x70] sm:$0xff]  ;;  %v13088_v40 = vld [vmem:[#allocation14 + $0x60] sm:$0xff]  ;;  %v15789_v3 = vld [vmem:[%s19635_s7] ss:$0 sm:$0xff] }
0x1dbc   :  { %v12337_v16 = vadd.f32 %v12336_v59, %v12335_v6  ;;  %v11954_v44 = vadd.f32 %v11953_v56, %v11952_v35  ;;  %v12530_v18 = vsel %vm1070_vm4, %v12318_v5, %v12529_v25  ;;  %v13091_v6 = vld [vmem:[#allocation14 + $0x78] sm:$0xff]  ;;  %v13089_v35 = vld [vmem:[#allocation14 + $0x68] sm:$0xff]  ;;  %v19738_v22 = vld [vmem:[#allocation34_spill] sm:$0xff]  ;;  %v13246_v11 = vsub.f32 1.0, %v19326_v2 }
0x1dbd   :  { %v12345_v50 = vrot.slane %v12344_v57, 1  ;;  %v12531_v63 = vsel %vm1072_vm5, %v12325_v20, %v12530_v18  ;;  %v12423_v42 = vadd.f32 %v15789_v3, %v19738_v22  ;;  %v13248_v25 = vsub.f32 1.0, %v19344_v61 }
0x1dbe   :  { %v12338_v55 = vrot.slane %v12337_v16, 1  ;;  %v12442_v37 = vsel %vm1078_vm8, %v11954_v44, %v12441_v19  ;;  %v12532_v48 = vsel %vm1074_vm6, %v12332_v62, %v12531_v63  ;;  %v13245_v44 = vsub.f32 1.0, %v19316_v28 }
0x1dbf   :  { %15106 = vmatmul.mubr.msk.f32.vlgmr.msra.gmra.mxu1 %vm175_vm1, %v12442_v37  ;;  %v12346_v36 = vadd.f32 %v12345_v50, %v12344_v57  ;;  %v13406_v18 = vsub.f32 1.0, %v19336_v17  ;;  %v13408_v28 = vsub.f32 1.0, %v19341_v60  ;;  %v13410_v50 = vsub.f32 1.0, %v19357_v49  ;;  %v12621_v17 = vld [vmem:[#allocation13 + $0x10] sm:$0xff]  ;;  %v12620_v49 = vld [vmem:[#allocation13 + $0x8] sm:$0xff] }
0x1dc0   :  { %v12339_v54 = vadd.f32 %v12338_v55, %v12337_v16  ;;  %15120 = vmatpush3.msra.mxu1 %v12626_v24  ;;  %15127 = vmatprep.mubr.msk.f32.mxu1 %vm16047_vm0, %v19690_v34  ;;  %v13250_v24 = vsub.f32 1.0, %v19360_v8  ;;  %v13412_v2 = vsub.f32 1.0, %v19376_v23  ;;  %v13244_v60 = vsub.f32 1.0, %v19312_v45  ;;  %v12619_v23 = vld [vmem:[#allocation13] sm:$0xff] }
0x1dc1   :  { %15121 = vmatprep.subr.mxu1 %v19690_v34  ;;  %v13251_v45 = vsub.f32 1.0, %v19368_v43  ;;  %v12781_v43 = vld [vmem:[#allocation13 + $0x30] sm:$0xff] }
0x1dc2   :  { %v12533_v53 = vsel %vm1076_vm7, %v12339_v54, %v12532_v48  ;;  %15122 = vmatpush3.msra.mxu1 %v12625_v52  ;;  %v12622_v52 = vld [vmem:[#allocation13 + $0x18] sm:$0xff]  ;;  %v13249_v48 = vsub.f32 1.0, %v19352_v12 }
0x1dc3   :  { %v12534_v39 = vsel %vm1078_vm8, %v12346_v36, %v12533_v53  ;;  %15123 = vmatprep.subr.mxu1 %v19690_v34  ;;  %v13247_v36 = vsub.f32 1.0, %v19322_v26  ;;  %v13409_v53 = vsub.f32 1.0, %v19349_v31  ;;  %v13413_v26 = vsub.f32 1.0, %v19373_v1  ;;  %v12779_v31 = vld [vmem:[#allocation13 + $0x20] sm:$0xff]  ;;  %v12936_v1 = vld [vmem:[#allocation13 + $0x50] sm:$0xff] }
0x1dc4   :  { %15117 = vmatmul.mubr.msk.f32.vlgmr.msra.gmra.mxu0 %vm175_vm1, %v12534_v39  ;;  %15124 = vmatpush3.msra.mxu1 %v12624_v32  ;;  %v13407_v32 = vsub.f32 1.0, %v19333_v9  ;;  %v13411_v39 = vsub.f32 1.0, %v19365_v10  ;;  %v12780_v9 = vld [vmem:[#allocation13 + $0x28] sm:$0xff]  ;;  %v12937_v10 = vld [vmem:[#allocation13 + $0x58] sm:$0xff] }
0x1dc5   :  { %15138 = vmatprep.mubr.msk.f32.mxu0 %vm16047_vm0, %v19690_v34  ;;  %15125 = vmatprep.subr.mxu1 %v19690_v34 }
0x1dc6   :  { %15126 = vmatpush3.msra.mxu1 %v12623_v4  ;;  %15131 = vmatpush3.msra.mxu0 %v12622_v52 }
0x1dc7   :  { %15128 = vmatmul.mubr.msk.f32.vlgmr.msra.gmra.mxu1 %vm175_vm1, %v18983_v13  ;;  %15141 = vmatprep.subr.mxu1 %v19690_v34 }
0x1dc8   :  { %15142 = vmatpush3.msra.mxu1 %v12786_v27  ;;  %15149 = vmatprep.mubr.msk.f32.mxu1 %vm16047_vm0, %v19690_v34 }
0x1dc9   :  { %15143 = vmatprep.subr.mxu1 %v19690_v34  ;;  %15132 = vmatprep.subr.mxu0 %v19690_v34 }
0x1dca   :  { %15144 = vmatpush3.msra.mxu1 %v12785_v14  ;;  %15133 = vmatpush3.msra.mxu0 %v12621_v17  ;;  %v12782_v14 = vld [vmem:[#allocation13 + $0x38] sm:$0xff] }
0x1dcb   :  { %15145 = vmatprep.subr.mxu1 %v19690_v34  ;;  %15134 = vmatprep.subr.mxu0 %v19690_v34 }
0x1dcc   :  { %15146 = vmatpush3.msra.mxu1 %v12784_v21  ;;  %15135 = vmatpush3.msra.mxu0 %v12620_v49  ;;  %v12935_v21 = vld [vmem:[#allocation13 + $0x48] sm:$0xff] }
0x1dcd   :  { %15147 = vmatprep.subr.mxu1 %v19690_v34  ;;  %15136 = vmatprep.subr.mxu0 %v19690_v34 }
0x1dce   :  { %15148 = vmatpush3.msra.mxu1 %v12783_v30  ;;  %15137 = vmatpush3.msra.mxu0 %v12619_v23  ;;  %v12934_v30 = vld [vmem:[#allocation13 + $0x40] sm:$0xff] }
0x1dcf   :  { %15150 = vmatmul.mubr.msk.f32.vlgmr.msra.gmra.mxu1 %vm175_vm1, %v18983_v13  ;;  %15163 = vmatprep.subr.mxu1 %v19690_v34 }
0x1dd0   :  { %15164 = vmatpush3.msra.mxu1 %v12941_v38  ;;  %15171 = vmatprep.mubr.msk.f32.mxu1 %vm16047_vm0, %v19690_v34  ;;  %v13087_v38 = vld [vmem:[#allocation13 + $0x78] sm:$0xff] }
0x1dd1   :  { %15165 = vmatprep.subr.mxu1 %v19690_v34  ;;  %15152 = vmatprep.subr.mxu0 %v19690_v34 }
0x1dd2   :  { %15166 = vmatpush3.msra.mxu1 %v12940_v0  ;;  %v13086_v0 = vld [vmem:[#allocation13 + $0x70] sm:$0xff] }
0x1dd3   :  { %15167 = vmatprep.subr.mxu1 %v19690_v34 }
0x1dd4   :  { %15168 = vmatpush3.msra.mxu1 %v12939_v51  ;;  %v13085_v51 = vld [vmem:[#allocation13 + $0x68] sm:$0xff] }
0x1dd5   :  { %15169 = vmatprep.subr.mxu1 %v19690_v34 }
0x1dd6   :  { %15170 = vmatpush3.msra.mxu1 %v12938_v29  ;;  %v13084_v29 = vld [vmem:[#allocation13 + $0x60] sm:$0xff] }
0x1dd7   :  { %15172 = vmatmul.mubr.msk.f32.vlgmr.msra.gmra.mxu1 %vm175_vm1, %v18983_v13  ;;  %15185 = vmatprep.subr.mxu1 %v19690_v34 }
0x1dd8   :  { %15186 = vmatpush3.msra.mxu1 %v13091_v6  ;;  %15193 = vmatprep.mubr.msk.f32.mxu1 %vm16047_vm0, %v19690_v34 }
0x1dd9   :  { %15187 = vmatprep.subr.mxu1 %v19690_v34 }
0x1dda   :  { %15188 = vmatpush3.msra.mxu1 %v13090_v58 }
0x1ddb   :  { %15189 = vmatprep.subr.mxu1 %v19690_v34 }
0x1ddc   :  { %15190 = vmatpush3.msra.mxu1 %v13089_v35 }
0x1ddd   :  { %15191 = vmatprep.subr.mxu1 %v19690_v34 }
0x1dde   :  { %15192 = vmatpush3.msra.mxu1 %v13088_v40  ;;  %v15790_v40 = vld [vmem:[%s19638_s10] ss:$0 sm:$0xff] }
0x1ddf   :  { %15194 = vmatmul.mubr.msk.f32.vlgmr.msra.gmra.mxu1 %vm175_vm1, %v18983_v13 }
0x1e7f   :  { %v12511_v7 = vpop.f32.mrf.mxu1 }
0x1e80   :  { %v12515_v5 = vadd.f32 %v12511_v7, %v12423_v42 }
0x1e81   :  { %v15107_v59 = vpop.f32.mrf.mxu1 }
0x1e84   :  { %v12603_v56 = vpop.f32.mrf.mxu0 }
0x1e85   :  { %v12607_v15 = vadd.f32 %v12603_v56, %v12515_v5 }
0x1e86   :  { %v15118_v41 = vpop.f32.mrf.mxu0 }
0x1e87   :  { %v12608_v33 = vsel %vm175_vm1, %v12607_v15, -inf  ;;  %v19474_v47 = vpop.f32.mrf.mxu1 }
0x1e88   :  { %12609 = vmax.xlane.f32.xlu1 %v12608_v33 }
0x1e89   :  { %v15129_v20 = vpop.f32.mrf.mxu1 }
0x1e8f   :  { %v19476_v16 = vpop.f32.mrf.mxu1 }
0x1e91   :  { %v15151_v13 = vpop.f32.mrf.mxu1 }
0x1e97   :  { %v19479_v62 = vpop.f32.mrf.mxu1 }
0x1e99   :  { %13357 = vperm.xlu1 %15225, %v13245_v44   ;;  %v15173_v57 = vpop.f32.mrf.mxu1 }
0x1e9d   :  { %13362 = vperm.xlu1 %15225, %v13246_v11  }
0x1e9f   :  { %v19483_v55 = vpop.f32.mrf.mxu1 }
0x1ea1   :  { %13372 = vperm.xlu1 %15225, %v13248_v25   ;;  %v15195_v19 = vpop.f32.mrf.mxu1  ;;  %v15793_v25 = vld [vmem:[%s19638_s10 + $0x3] ss:$0 sm:$0xff] }
0x1ea5   :  { %13382 = vperm.xlu1 %15225, %v13250_v24  }
0x1ea9   :  { %13432 = vperm.xlu1 %15225, %v13406_v18  }
0x1ead   :  { %13442 = vperm.xlu1 %15225, %v13408_v28  }
0x1eb1   :  { %13452 = vperm.xlu1 %15225, %v13410_v50  }
0x1eb5   :  { %13462 = vperm.xlu1 %15225, %v13412_v2  }
0x1f11   :  { %v12610_v61 = vpop.xlane.xlu1 %12609 }
0x1f12   :  { %v12611_v37 = vsub.f32 %v12607_v15, %v12610_v61 }
0x1f14   :  { %v12612_v63 = vmul.f32 1.442695, %v12611_v37 }
0x1f16   :  { %15706 = vpow2.f32 %v12612_v63 }
0x1f23   :  { %v15707_v54 = vpop.eup %15706 }
0x1f24   :  { %v12614_v8 = vsel %vm175_vm1, %v15707_v54, 0.0 }
0x1f25   :  { %12615 = vadd.xlane.f32.xlu0 %v12614_v8  ;;  %v19739_v8 = vld [vmem:[#allocation30_spill] sm:$0xff] }
0x1f3b   :  { %13352 = vperm.xlu0 %15224, %v13244_v60  }
0x1f3f   :  { %13367 = vperm.xlu0 %15224, %v13247_v36  }
0x1f43   :  { %13377 = vperm.xlu0 %15224, %v13249_v48  }
0x1f47   :  { %13387 = vperm.xlu0 %15224, %v13251_v45  }
0x1f4b   :  { %13437 = vperm.xlu0 %15224, %v13407_v32  }
0x1f4f   :  { %13447 = vperm.xlu0 %15224, %v13409_v53  }
0x1f53   :  { %13457 = vperm.xlu0 %15224, %v13411_v39  }
0x1f57   :  { %13467 = vperm.xlu0 %15224, %v13413_v26  }
0x1fae   :  { %v12616_v4 = vpop.xlane.xlu0 %12615 }
0x1faf   :  { %15708 = vrcp.f32 %v12616_v4 }
0x1fbc   :  { %v15709_v27 = vpop.eup %15708 }
0x1fbd   :  { %v12618_v12 = vmul.f32 %v15709_v27, %v15707_v54 }
0x1fbf   :  { %15139 = vmatmul.mubr.msk.f32.vlgmr.msra.gmra.mxu0 %vm175_vm1, %v12618_v12 }
0x1fc0   :  { %15153 = vmatpush3.msra.mxu0 %v12782_v14  ;;  %15160 = vmatprep.mubr.msk.f32.mxu0 %vm16047_vm0, %v19690_v34 }
0x1fc1   :  { %15154 = vmatprep.subr.mxu0 %v19690_v34 }
0x1fc2   :  { %15155 = vmatpush3.msra.mxu0 %v12781_v43 }
0x1fc3   :  { %15156 = vmatprep.subr.mxu0 %v19690_v34 }
0x1fc4   :  { %15157 = vmatpush3.msra.mxu0 %v12780_v9 }
0x1fc5   :  { %15158 = vmatprep.subr.mxu0 %v19690_v34 }
0x1fc6   :  { %15159 = vmatpush3.msra.mxu0 %v12779_v31 }
0x1fc7   :  { %15161 = vmatmul.mubr.msk.f32.vlgmr.msra.gmra.mxu0 %vm175_vm1, %v12618_v12  ;;  %15174 = vmatprep.subr.mxu0 %v19690_v34 }
0x1fc8   :  { %15175 = vmatpush3.msra.mxu0 %v12937_v10  ;;  %15182 = vmatprep.mubr.msk.f32.mxu0 %vm16047_vm0, %v19690_v34 }
0x1fc9   :  { %15176 = vmatprep.subr.mxu0 %v19690_v34 }
0x1fca   :  { %15177 = vmatpush3.msra.mxu0 %v12936_v1 }
0x1fcb   :  { %15178 = vmatprep.subr.mxu0 %v19690_v34 }
0x1fcc   :  { %15179 = vmatpush3.msra.mxu0 %v12935_v21 }
0x1fcd   :  { %15180 = vmatprep.subr.mxu0 %v19690_v34 }
0x1fce   :  { %15181 = vmatpush3.msra.mxu0 %v12934_v30 }
0x1fcf   :  { %15183 = vmatmul.mubr.msk.f32.vlgmr.msra.gmra.mxu0 %vm175_vm1, %v12618_v12  ;;  %15196 = vmatprep.subr.mxu0 %v19690_v34 }
0x1fd0   :  { %15197 = vmatpush3.msra.mxu0 %v13087_v38  ;;  %15204 = vmatprep.mubr.msk.f32.mxu0 %vm16047_vm0, %v19690_v34 }
0x1fd1   :  { %15198 = vmatprep.subr.mxu0 %v19690_v34 }
0x1fd2   :  { %15199 = vmatpush3.msra.mxu0 %v13086_v0 }
0x1fd3   :  { %15200 = vmatprep.subr.mxu0 %v19690_v34 }
0x1fd4   :  { %15201 = vmatpush3.msra.mxu0 %v13085_v51 }
0x1fd5   :  { %15202 = vmatprep.subr.mxu0 %v19690_v34  ;;  %v15791_v34 = vld [vmem:[%s19638_s10 + $0x1] ss:$0 sm:$0xff] }
0x1fd6   :  { %15203 = vmatpush3.msra.mxu0 %v13084_v29 }
0x1fd7   :  { %15205 = vmatmul.mubr.msk.f32.vlgmr.msra.gmra.mxu0 %vm175_vm1, %v12618_v12  ;;  %v19740_v12 = vld [vmem:[#allocation28_spill] sm:$0xff] }
0x207f   :  { %v12768_v6 = vpop.f32.mrf.mxu0 }
0x2080   :  { %v12769_v58 = vadd.f32 %v12768_v6, %v19474_v47 }
0x2081   :  { %v15140_v35 = vpop.f32.mrf.mxu0 }
0x2082   :  { %v12772_v7 = vadd.f32 %v15790_v40, %v12769_v58 }
0x2084   :  { %v13678_v3 = vmul.f32 -1.442695, %v12772_v7 }
0x2086   :  { %15710 = vpow2.f32 %v13678_v3 }
0x2087   :  { %v12923_v22 = vpop.f32.mrf.mxu0 }
0x2088   :  { %v12924_v42 = vadd.f32 %v12923_v22, %v19476_v16  ;;  %v15792_v16 = vld [vmem:[%s19638_s10 + $0x2] ss:$0 sm:$0xff]  ;;  %s16050_s10 = smov [#allocation17]  }
0x2089   :  { %v15162_v59 = vpop.f32.mrf.mxu0  ;;  %s13512_s25 = sshll.u32 %s16050_s10, 4  ;;  %s13513_s25 = int_to_ptr.vmem [resolvable:$true] %s13512_s25 }
0x208a   :  { %v12927_v5 = vadd.f32 %v15791_v34, %v12924_v42  ;;  %s15962_s26 = scalar_lea.vmem %s13513_s25, 512  ;;  %p15967_p13 = scmp.lt.s32.totalorder %s13513_s25, %s13513_s25 }
0x208b   :  { %p15963_p12 = scmp.ne.s32.totalorder %s13513_s25, %s15962_s26  ;;  %p15968_p0 = scmp.lt.s32.totalorder %s15962_s26, %s15962_s26 }
0x208c   :  { %v13681_v56 = vmul.f32 -1.442695, %v12927_v5 }
0x208d   :  { %p15969_p1 = por %p15968_p0, %p15967_p13 }
0x208e   :  { %15712 = vpow2.f32 %v13681_v56 }
0x208f   :  { %v13078_v15 = vpop.f32.mrf.mxu0  ;;  %p15970_p2 = pnand %p15969_p1, %p15963_p12 }
0x2090   :  { %v13079_v47 = vadd.f32 %v13078_v15, %v19479_v62  ;;  %v19540_v62 = vpop.permute.xlu1 %13357 }
0x2091   :  { %v15184_v41 = vpop.f32.mrf.mxu0 }
0x2092   :  { %v13082_v57 = vadd.f32 %v15792_v16, %v13079_v47 }
0x2093   :  { %v15711_v33 = vpop.eup %15710 }
0x2094   :  { %v12776_v13 = vadd.f32 1.0, %v15711_v33  ;;  %v19544_v37 = vpop.permute.xlu1 %13362 }
0x2096   :  { %15714 = vrcp.f32 %v12776_v13 }
0x2097   :  { %v13228_v20 = vpop.f32.mrf.mxu0  ;;  %15716 = vtanh.f32 %v13082_v57 }
0x2098   :  { %v13229_v44 = vadd.f32 %v13228_v20, %v19483_v55  ;;  %v19542_v55 = vpop.permute.xlu0 %13352  ;;  %v19550_v23 = vpop.permute.xlu1 %13372 }
0x2099   :  { %v15206_v11 = vpop.f32.mrf.mxu0 }
0x209a   :  { %v13232_v19 = vadd.f32 %v15793_v25, %v13229_v44 }
0x209b   :  { %v15713_v24 = vpop.eup %15712 }
0x209c   :  { %v12931_v18 = vadd.f32 1.0, %v15713_v24  ;;  %v13686_v28 = vmul.f32 -1.442695, %v13232_v19  ;;  %v19546_v63 = vpop.permute.xlu0 %13367  ;;  %v19554_v48 = vpop.permute.xlu1 %13382 }
0x209e   :  { %15718 = vrcp.f32 %v12931_v18 }
0x209f   :  { %15720 = vpow2.f32 %v13686_v28 }
0x20a0   :  { %v19552_v36 = vpop.permute.xlu0 %13377  ;;  %v19558_v39 = vpop.permute.xlu1 %13432 }
0x20a3   :  { %v15715_v50 = vpop.eup %15714 }
0x20a4   :  { %v15717_v2 = vpop.eup %15716  ;;  %v19556_v45 = vpop.permute.xlu0 %13387 }
0x20a5   :  { %v13240_v17 = vmul.f32 %v15717_v2, %v15715_v50 }
0x20a8   :  { %v19560_v26 = vpop.permute.xlu0 %13437 }
0x20ab   :  { %v15719_v61 = vpop.eup %15718 }
0x20ac   :  { %v15721_v54 = vpop.eup %15720  ;;  %v13239_v52 = vmul.f32 %v15719_v61, %v19739_v8 }
0x20ad   :  { %v13236_v60 = vadd.f32 1.0, %v15721_v54 }
0x20ae   :  { %v13241_v49 = vadd.f32 %v13240_v17, %v13239_v52 }
0x20af   :  { %15722 = vrcp.f32 %v13236_v60 }
0x20b0   :  { %15724 = vtanh.f32 %v13241_v49  ;;  %13494 = vst.msk [vmem:[#allocation17 + $0x18] sm:$0xff] %vm175_vm1, %v13241_v49 }
0x20bc   :  { %v15723_v32 = vpop.eup %15722 }
0x20bd   :  { %v15725_v53 = vpop.eup %15724 }
0x20be   :  { %v13243_v4 = vmul.f32 %v15725_v53, %v15723_v32 }
0x20c0   :  { %v13253_v27 = vcombine.high %v13243_v4, %v13243_v4  ;;  %v13260_v14 = vrot.slane %v13243_v4, %v19740_v12  ;;  %13492 = vst.msk [vmem:[#allocation17 + $0x10] sm:$0xff] %vm175_vm1, %v13243_v4  ;;  %13487 = vst.msk [vmem:[#allocation16 + $0x20] sm:$0xff] %vm175_vm1, %v13243_v4 }
0x20c1   :  { %15973 = shalt.err (!%p15970_p2)
}
0x20c2   :  { %13518 = dma.vmem_to_hbm [thread:$0]  %s13513_s25, 512, %s19640_s12, [#allocation18], %s16038_s30, %s16038_s30, %s16039_s14   ;;  %v13267_v43 = vrot.slane %v13253_v27, %v19740_v12  ;;  %v13268_v9 = vcombine.high %v13260_v14, %v13260_v14  ;;  %v13276_v31 = vrot.slane %v13260_v14, %v19740_v12 }
0x20c3   :  { %s15982_s27 = scalar_lea.vmem %s13501_s3, 640  ;;  %p15987_p4 = scmp.lt.s32.totalorder %s13501_s3, %s13501_s3 }
0x20c4   :  { %p15983_p3 = scmp.ne.s32.totalorder %s13501_s3, %s15982_s27  ;;  %p15988_p5 = scmp.lt.s32.totalorder %s15982_s27, %s15982_s27 }
0x20c6   :  { %p15989_p6 = por %p15988_p5, %p15987_p4 }
0x20c8   :  { %p15990_p7 = pnand %p15989_p6, %p15983_p3 }
0x20ca   :  { %15993 = shalt.err (!%p15990_p7)
}
0x20cb   :  { %13506 = dma.vmem_to_hbm [thread:$0]  %s13501_s3, 640, %s19639_s11, [#allocation4], %s16038_s30, %s16038_s30, %s16039_s14   ;;  %v19579_v10 = vpop.permute.xlu1 %13442  ;;  %v19581_v1 = vpop.permute.xlu0 %13447  ;;  %v13269_v21 = vcombine.high %v13267_v43, %v13267_v43  ;;  %v13283_v30 = vrot.slane %v13267_v43, %v19740_v12  ;;  %v13290_v38 = vrot.slane %v13268_v9, %v19740_v12  ;;  %v13298_v0 = vcombine.high %v13276_v31, %v13276_v31  ;;  %v13414_v40 = vld [vmem:[#allocation19 + $0x40] sm:$0xff]  ;;  %v15795_v47 = vld [vmem:[#allocation19 + $0x8] sm:$0xff]  ;;  %v15796_v13 = vld [vmem:[#allocation19 + $0x10] sm:$0xff] }
0x20cc   :  { %v13305_v51 = vrot.slane %v13276_v31, %v16293_v46  ;;  %v15794_v22 = vld [vmem:[#allocation19] sm:$0xff]  ;;  %v15798_v19 = vld [vmem:[#allocation19 + $0x18] sm:$0xff]  ;;  %v15799_v18 = vld [vmem:[#allocation19 + $0x28] sm:$0xff]  ;;  %s16052_s11 = smov [#allocation19]  }
0x20cd   :  { %v13297_v29 = vrot.slane %v13269_v21, %v19740_v12  ;;  %v13299_v6 = vcombine.high %v13283_v30, %v13283_v30  ;;  %v13300_v58 = vcombine.high %v13290_v38, %v13290_v38  ;;  %v13309_v35 = vrot.slane %v13290_v38, %v16293_v46  ;;  %v15797_v16 = vld [vmem:[#allocation19 + $0x20] sm:$0xff]  ;;  %v15800_v50 = vld [vmem:[#allocation19 + $0x30] sm:$0xff]  ;;  %v13415_v61 = vld [vmem:[#allocation19 + $0x48] sm:$0xff]  ;;  %s13524_s12 = sshll.u32 %s16052_s11, 4  ;;  %s13525_s12 = int_to_ptr.vmem [resolvable:$true] %s13524_s12 }
0x20ce   :  { %v13313_v7 = vrot.slane %v13298_v0, %v16293_v46  ;;  %v13321_v3 = vrot.slane %v13283_v30, %v16293_v46  ;;  %v13342_v42 = vadd.f32 %v15794_v22, %v13305_v51  ;;  %v13422_v59 = vadd.f32 %v13414_v40, %v13305_v51  ;;  %v13416_v17 = vld [vmem:[#allocation19 + $0x50] sm:$0xff]  ;;  %v13417_v4 = vld [vmem:[#allocation19 + $0x58] sm:$0xff]  ;;  %v13418_v27 = vld [vmem:[#allocation19 + $0x60] sm:$0xff]  ;;  %s16002_s15 = scalar_lea.vmem %s13525_s12, 2048  ;;  %p16007_p9 = scmp.lt.s32.totalorder %s13525_s12, %s13525_s12 }
0x20cf   :  { %v13301_v34 = vcombine.high %v13297_v29, %v13297_v29  ;;  %v13317_v5 = vrot.slane %v13300_v58, %v16293_v46  ;;  %v13325_v56 = vrot.slane %v13297_v29, %v16293_v46  ;;  %v13329_v15 = vrot.slane %v13299_v6, %v16293_v46  ;;  %v13453_v41 = vpop.permute.xlu1 %13452  ;;  %v13458_v33 = vpop.permute.xlu0 %13457  ;;  %v13419_v12 = vld [vmem:[#allocation19 + $0x68] sm:$0xff]  ;;  %p16003_p8 = scmp.ne.s32.totalorder %s13525_s12, %s16002_s15  ;;  %p16008_p10 = scmp.lt.s32.totalorder %s16002_s15, %s16002_s15 }
0x20d0   :  { %v13343_v20 = vadd.f32 %v15795_v47, %v13309_v35  ;;  %v13344_v44 = vadd.f32 %v15796_v13, %v13313_v7  ;;  %v13346_v57 = vadd.f32 %v15797_v16, %v13321_v3  ;;  %v13390_v11 = vmul.f32 %v19542_v55, %v13342_v42  ;;  %v15801_v55 = vld [vmem:[#allocation19 + $0x38] sm:$0xff] }
0x20d1   :  { %v13333_v25 = vrot.slane %v13301_v34, %v16293_v46  ;;  %v13345_v24 = vadd.f32 %v15798_v19, %v13317_v5  ;;  %v13347_v28 = vadd.f32 %v15799_v18, %v13325_v56  ;;  %v13348_v2 = vadd.f32 %v15800_v50, %v13329_v15  ;;  %p16009_p11 = por %p16008_p10, %p16007_p9 }
0x20d2   :  { %v13391_v54 = vmul.f32 %v19540_v62, %v13343_v20  ;;  %v13392_v8 = vmul.f32 %v19544_v37, %v13344_v44  ;;  %v13394_v52 = vmul.f32 %v19550_v23, %v13346_v57  ;;  %13398 = vst.msk [vmem:[#allocation19] sm:$0xff] %vm175_vm1, %v13390_v11  ;;  %v13423_v60 = vadd.f32 %v13415_v61, %v13309_v35  ;;  %v13420_v62 = vld [vmem:[#allocation19 + $0x70] sm:$0xff]  ;;  %v13421_v37 = vld [vmem:[#allocation19 + $0x78] sm:$0xff] }
0x20d3   :  { %v13349_v49 = vadd.f32 %v15801_v55, %v13333_v25  ;;  %v13393_v46 = vmul.f32 %v19546_v63, %v13345_v24  ;;  %v13395_v32 = vmul.f32 %v19552_v36, %v13347_v28  ;;  %v13396_v53 = vmul.f32 %v19554_v48, %v13348_v2  ;;  %v13463_v21 = vpop.permute.xlu1 %13462  ;;  %v13468_v30 = vpop.permute.xlu0 %13467  ;;  %p16010_p12 = pnand %p16009_p11, %p16003_p8 }
0x20d4   :  { %13399 = vst.msk [vmem:[#allocation19 + $0x8] sm:$0xff] %vm175_vm1, %v13391_v54  ;;  %13400 = vst.msk [vmem:[#allocation19 + $0x10] sm:$0xff] %vm175_vm1, %v13392_v8  ;;  %v13424_v23 = vadd.f32 %v13416_v17, %v13313_v7  ;;  %v13425_v14 = vadd.f32 %v13417_v4, %v13317_v5  ;;  %v13426_v43 = vadd.f32 %v13418_v27, %v13321_v3 }
0x20d5   :  { %13402 = vst.msk [vmem:[#allocation19 + $0x20] sm:$0xff] %vm175_vm1, %v13394_v52  ;;  %v13427_v9 = vadd.f32 %v13419_v12, %v13325_v56  ;;  %v13397_v63 = vmul.f32 %v19556_v45, %v13349_v49  ;;  %13401 = vst.msk [vmem:[#allocation19 + $0x18] sm:$0xff] %vm175_vm1, %v13393_v46  ;;  %v13428_v36 = vadd.f32 %v13420_v62, %v13329_v15 }
0x20d6   :  { %13403 = vst.msk [vmem:[#allocation19 + $0x28] sm:$0xff] %vm175_vm1, %v13395_v32  ;;  %13404 = vst.msk [vmem:[#allocation19 + $0x30] sm:$0xff] %vm175_vm1, %v13396_v53  ;;  %v13429_v48 = vadd.f32 %v13421_v37, %v13333_v25  ;;  %v13470_v31 = vmul.f32 %v19558_v39, %v13422_v59  ;;  %v13471_v38 = vmul.f32 %v19560_v26, %v13423_v60 }
0x20d7   :  { %v13472_v0 = vmul.f32 %v19579_v10, %v13424_v23  ;;  %v13473_v51 = vmul.f32 %v19581_v1, %v13425_v14  ;;  %v13474_v29 = vmul.f32 %v13453_v41, %v13426_v43  ;;  %13405 = vst.msk [vmem:[#allocation19 + $0x38] sm:$0xff] %vm175_vm1, %v13397_v63  ;;  %v13475_v45 = vmul.f32 %v13458_v33, %v13427_v9 }
0x20d8   :  { %v13476_v6 = vmul.f32 %v13463_v21, %v13428_v36  ;;  %v13477_v58 = vmul.f32 %v13468_v30, %v13429_v48  ;;  %13478 = vst.msk [vmem:[#allocation19 + $0x40] sm:$0xff] %vm175_vm1, %v13470_v31  ;;  %13479 = vst.msk [vmem:[#allocation19 + $0x48] sm:$0xff] %vm175_vm1, %v13471_v38 }
0x20d9   :  { %13480 = vst.msk [vmem:[#allocation19 + $0x50] sm:$0xff] %vm175_vm1, %v13472_v0  ;;  %13481 = vst.msk [vmem:[#allocation19 + $0x58] sm:$0xff] %vm175_vm1, %v13473_v51 }
0x20da   :  { %13482 = vst.msk [vmem:[#allocation19 + $0x60] sm:$0xff] %vm175_vm1, %v13474_v29  ;;  %13483 = vst.msk [vmem:[#allocation19 + $0x68] sm:$0xff] %vm175_vm1, %v13475_v45 }
0x20db   :  { %13484 = vst.msk [vmem:[#allocation19 + $0x70] sm:$0xff] %vm175_vm1, %v13476_v6  ;;  %13485 = vst.msk [vmem:[#allocation19 + $0x78] sm:$0xff] %vm175_vm1, %v13477_v58 }
0x20dc   :  { %16013 = shalt.err (!%p16010_p12)
}
0x20dd   :  { %13530 = dma.vmem_to_hbm [thread:$0]  %s13525_s12, 2048, %s19641_s13, [#allocation18], %s16038_s30, %s16038_s30, %s16039_s14  }
0x20de   :  { %16032 = dma.done.wait [#allocation4], 640  }
0x20df   :  { %16033 = vsyncadd [#allocation4], 4294966656 }
0x20e0   :  { %16034 = dma.done.wait [#allocation18], 2560  }
0x20e1   :  { %16035 = vsyncadd [#allocation18], 4294964736 }
0x20e2   :  { %13540 = vsyncpa [#allocation3], 1 }
0x20e3   :  { %13541 = vsyncpa [#allocation6], 1 }
0x20e4   :  { %13542 = vsyncpa [#allocation9], 1 }
0x20e5   :  { %13543 = vsyncpa [#allocation12], 1 }
0x20e6   :  { %13544 = vsyncpa [#allocation15], 1 }
0x20e7   :  { %13545 = vsyncpa [#allocation4], 1 }
0x20e8   :  { %13546 = vsyncpa [#allocation18], 1 }

</bundles_post_ra>
